<compile_context>
chip_gen: v7x
topology: tpu7x:2x2x1
jax: 0.10.0
libtpu: 0.0.40
codegen_flags: <defaults>
</compile_context>

<pallas_src>
import math

import jax
import jax.numpy as jnp
from jax.experimental import pallas as pl
from jax.experimental.pallas import tpu as pltpu

IN_F = 28 * 28          # 784  (== full array dim -> legal as a block last-dim)
LAT = 10                # true bottleneck width
LAT_PAD = 128           # bottleneck zero-padded to one full lane group
TB_MAX = 512            # max batch-tile rows per grid step


def _round_up(x, m):
    return (x + m - 1) // m * m


def _pick_tb(batch, tb_max=TB_MAX):
    """Largest tile <= tb_max that still yields >= 2 grid steps when the
    (row-rounded) batch allows it, so v7x's two TensorCores both get work."""
    b_r = _round_up(max(batch, 1), 128)
    if b_r <= 128:
        return 128
    half = _round_up(b_r // 2, 128)
    return max(128, min(tb_max, half))


def deep_ae_kernel(
    x_ref,
    w1_ref, b1_ref,
    w2_ref, b2_ref,
    w3_ref, b3_ref,
    w4_ref, b4_ref,
    w5_ref, b5_ref,
    w6_ref, b6_ref,
    o_ref,
):
    def relu_layer(h, w_ref, b_ref):
        y = jnp.dot(h, w_ref[...], preferred_element_type=jnp.float32) + b_ref[...]
        return jnp.maximum(y, 0.0).astype(jnp.bfloat16)

    h = x_ref[...]                         # (tb, 784) bf16
    # encoder
    h = relu_layer(h, w1_ref, b1_ref)      # 784 -> 256
    h = relu_layer(h, w2_ref, b2_ref)      # 256 -> 128
    h = relu_layer(h, w3_ref, b3_ref)      # 128 -> 128 (10 real + 118 zero lanes)
    # decoder
    h = relu_layer(h, w4_ref, b4_ref)      # 128 -> 128
    h = relu_layer(h, w5_ref, b5_ref)      # 128 -> 256
    y = jnp.dot(h, w6_ref[...], preferred_element_type=jnp.float32) + b6_ref[...]
    # bf16 writeback halves output HBM bytes (output stays mostly lane-dense: 6 full
    # vregs + one 16-lane masked store per row group).
    o_ref[...] = jax.nn.sigmoid(y).astype(jnp.bfloat16)


def init_params(key):
    """nn.Linear-style init: U(-1/sqrt(fan_in), 1/sqrt(fan_in)).

    Weights are returned transposed to (in_features, out_features), f32, unpadded.
    """
    sizes = [(IN_F, 256), (256, 128), (128, LAT),
             (LAT, 128), (128, 256), (256, IN_F)]
    params = []
    for (fan_in, fan_out) in sizes:
        key, kw, kb = jax.random.split(key, 3)
        bound = 1.0 / math.sqrt(fan_in)
        w = jax.random.uniform(kw, (fan_in, fan_out), jnp.float32, -bound, bound)
        b = jax.random.uniform(kb, (1, fan_out), jnp.float32, -bound, bound)
        params.append((w, b))
    return params


def prepare_params(params):
    """Zero-pad only the 10-wide bottleneck to 128 lanes; cast weights to bf16
    (biases stay f32).  Exact: padded weight rows/cols are zero and ReLU(0)=0."""
    (w1, b1), (w2, b2), (w3, b3), (w4, b4), (w5, b5), (w6, b6) = params
    w3p = jnp.zeros((128, LAT_PAD), jnp.float32).at[:, :LAT].set(w3)
    b3p = jnp.zeros((1, LAT_PAD), jnp.float32).at[:, :LAT].set(b3)
    w4p = jnp.zeros((LAT_PAD, 128), jnp.float32).at[:LAT, :].set(w4)
    padded = [(w1, b1), (w2, b2), (w3p, b3p), (w4p, b4), (w5, b5), (w6, b6)]
    return [(w.astype(jnp.bfloat16), b.astype(jnp.float32)) for w, b in padded]


def _build_call(prepared_params, tb, b_pad, single_buffer_params):
    act_in_spec = pl.BlockSpec((tb, IN_F), lambda i: (i, 0))
    out_spec = pl.BlockSpec((tb, IN_F), lambda i: (i, 0))

    param_specs = []
    for w, b in prepared_params:
        if single_buffer_params:
            # Constant index_map -> never re-DMA'd across grid steps; the second
            # pipeline buffer would be dead VMEM.
            param_specs.append(pl.BlockSpec(w.shape, lambda i: (0, 0),
                                            pipeline_mode=pl.Buffered(1)))
            param_specs.append(pl.BlockSpec(b.shape, lambda i: (0, 0),
                                            pipeline_mode=pl.Buffered(1)))
        else:
            param_specs.append(pl.BlockSpec(w.shape, lambda i: (0, 0)))
            param_specs.append(pl.BlockSpec(b.shape, lambda i: (0, 0)))

    flops = int(2 * b_pad * (IN_F * 256 + 256 * 128 + 128 * LAT_PAD
                             + LAT_PAD * 128 + 128 * 256 + 256 * IN_F))
    transcendentals = int(b_pad * IN_F)  # final sigmoid
    bytes_accessed = int(b_pad * IN_F * (2 + 2)   # bf16 in + bf16 out
                         + sum(w.size * 2 + b.size * 4 for w, b in prepared_params))

    return pl.pallas_call(
        deep_ae_kernel,
        out_shape=jax.ShapeDtypeStruct((b_pad, IN_F), jnp.bfloat16),
        grid=(b_pad // tb,),
        in_specs=[act_in_spec] + param_specs,
        out_specs=out_spec,
        compiler_params=pltpu.CompilerParams(
            dimension_semantics=("parallel",),
            vmem_limit_bytes=32 * 1024 * 1024),
        cost_estimate=pl.CostEstimate(
            flops=flops,
            transcendentals=transcendentals,
            bytes_accessed=bytes_accessed),
    )


def deep_ae_forward(x, prepared_params, tb=None):
    """x: any array whose trailing dims flatten to 784 (e.g. (B, 1, 28, 28)).

    Returns (B, 784) bf16 sigmoid outputs; cast to f32 at the caller if needed.
    """
    x2d = x.reshape(-1, IN_F)
    B = x2d.shape[0]
    tb = _pick_tb(B) if tb is None else tb
    b_pad = _round_up(max(B, 1), tb)

    xp = x2d.astype(jnp.bfloat16)
    if b_pad != B:                       # only pad rows when B isn't a tile multiple
        xp = jnp.pad(xp, ((0, b_pad - B), (0, 0)))

    flat_args = [xp]
    for w, b in prepared_params:
        flat_args.append(w)
        flat_args.append(b)

    try:
        out = _build_call(prepared_params, tb, b_pad, True)(*flat_args)
    except Exception:
        # Fallback if pipeline_mode=pl.Buffered(1) is unsupported by this jax version.
        out = _build_call(prepared_params, tb, b_pad, False)(*flat_args)

    return out if b_pad == B else out[:B]


def reference_forward(x, params):
    """Pure-JAX f32 reference (unpadded params) for correctness checking."""
    h = x.reshape(-1, IN_F).astype(jnp.float32)
    for i, (w, b) in enumerate(params):
        h = h @ w + b
        h = jax.nn.sigmoid(h) if i == len(params) - 1 else jnp.maximum(h, 0.0)
    return h


if __name__ == "__main__":
    key = jax.random.PRNGKey(0)
    kp, kx = jax.random.split(key)

    params = init_params(kp)                  # f32, unpadded (for the reference)
    prepared = prepare_params(params)         # bf16, bottleneck-padded (for the kernel)

    # MNIST-like input: NCHW (B, 1, 28, 28); forward flattens to (B, 784).
    x = jax.random.uniform(kx, (4, 1, 28, 28), jnp.float32)

    out = deep_ae_forward(x, prepared)
    out = jax.block_until_ready(out)

    ref = reference_forward(x, params)
    assert out.shape == (4, IN_F)
    # bf16 weights/activations/output with f32 accumulation vs f32 reference.
    max_err = float(jnp.max(jnp.abs(out.astype(jnp.float32) - ref)))
    assert max_err < 2.5e-2, f"max abs err {max_err}"

    print("KERNEL_OK")
</pallas_src>

<mosaic_0001>
module attributes {stable_mosaic.version = 11 : i64} {
  func.func @deep_ae_kernel(%arg0: i32, %arg1: memref<128x784xbf16, #tpu.memory_space<vmem>>, %arg2: memref<784x256xbf16, #tpu.memory_space<vmem>>, %arg3: memref<1x256xf32, #tpu.memory_space<vmem>>, %arg4: memref<256x128xbf16, #tpu.memory_space<vmem>>, %arg5: memref<1x128xf32, #tpu.memory_space<vmem>>, %arg6: memref<128x128xbf16, #tpu.memory_space<vmem>>, %arg7: memref<1x128xf32, #tpu.memory_space<vmem>>, %arg8: memref<128x128xbf16, #tpu.memory_space<vmem>>, %arg9: memref<1x128xf32, #tpu.memory_space<vmem>>, %arg10: memref<128x256xbf16, #tpu.memory_space<vmem>>, %arg11: memref<1x256xf32, #tpu.memory_space<vmem>>, %arg12: memref<256x784xbf16, #tpu.memory_space<vmem>>, %arg13: memref<1x784xf32, #tpu.memory_space<vmem>>, %arg14: memref<128x784xbf16, #tpu.memory_space<vmem>>) attributes {dimension_semantics = [#tpu.dimension_semantics<parallel>], iteration_bounds = array<i64: 1>, scalar_prefetch = 0 : i64, scratch_operands = 0 : i64, tpu.core_type = #tpu.core_type<tc>, window_params = [{transform_indices = @transform_0, window_bounds = array<i64: 128, 784>}, {pipeline_mode = #tpu.pipeline_mode<synchronous>, transform_indices = @transform_1, window_bounds = array<i64: 784, 256>}, {pipeline_mode = #tpu.pipeline_mode<synchronous>, transform_indices = @transform_2, window_bounds = array<i64: 1, 256>}, {pipeline_mode = #tpu.pipeline_mode<synchronous>, transform_indices = @transform_3, window_bounds = array<i64: 256, 128>}, {pipeline_mode = #tpu.pipeline_mode<synchronous>, transform_indices = @transform_4, window_bounds = array<i64: 1, 128>}, {pipeline_mode = #tpu.pipeline_mode<synchronous>, transform_indices = @transform_5, window_bounds = array<i64: 128, 128>}, {pipeline_mode = #tpu.pipeline_mode<synchronous>, transform_indices = @transform_6, window_bounds = array<i64: 1, 128>}, {pipeline_mode = #tpu.pipeline_mode<synchronous>, transform_indices = @transform_7, window_bounds = array<i64: 128, 128>}, {pipeline_mode = #tpu.pipeline_mode<synchronous>, transform_indices = @transform_8, window_bounds = array<i64: 1, 128>}, {pipeline_mode = #tpu.pipeline_mode<synchronous>, transform_indices = @transform_9, window_bounds = array<i64: 128, 256>}, {pipeline_mode = #tpu.pipeline_mode<synchronous>, transform_indices = @transform_10, window_bounds = array<i64: 1, 256>}, {pipeline_mode = #tpu.pipeline_mode<synchronous>, transform_indices = @transform_11, window_bounds = array<i64: 256, 784>}, {pipeline_mode = #tpu.pipeline_mode<synchronous>, transform_indices = @transform_12, window_bounds = array<i64: 1, 784>}, {transform_indices = @transform_13, window_bounds = array<i64: 128, 784>}]} {
    %c0 = arith.constant 0 : index
    %c0_0 = arith.constant 0 : index
    %0 = vector.load %arg1[%c0, %c0_0] : memref<128x784xbf16, #tpu.memory_space<vmem>>, vector<128x784xbf16>
    %c0_1 = arith.constant 0 : index
    %c0_2 = arith.constant 0 : index
    %1 = vector.load %arg2[%c0_1, %c0_2] : memref<784x256xbf16, #tpu.memory_space<vmem>>, vector<784x256xbf16>
    %cst = arith.constant dense<0.000000e+00> : vector<128x256xf32>
    %2 = tpu.matmul %0, %1, %cst {dimension_numbers = #tpu.dot_dimension_numbers<[1], [0], [0], [1], [0, 0, 1, 1], [], []>} : vector<128x784xbf16>, vector<784x256xbf16>, vector<128x256xf32> -> vector<128x256xf32>
    %c0_3 = arith.constant 0 : index
    %c0_4 = arith.constant 0 : index
    %3 = vector.load %arg3[%c0_3, %c0_4] : memref<1x256xf32, #tpu.memory_space<vmem>>, vector<1x256xf32>
    %4 = vector.broadcast %3 : vector<1x256xf32> to vector<128x256xf32>
    %5 = arith.addf %2, %4 : vector<128x256xf32>
    %cst_5 = arith.constant 0.000000e+00 : f32
    %6 = vector.broadcast %cst_5 : f32 to vector<128x256xf32>
    %7 = arith.maximumf %5, %6 : vector<128x256xf32>
    %8 = arith.truncf %7 : vector<128x256xf32> to vector<128x256xbf16>
    %c0_6 = arith.constant 0 : index
    %c0_7 = arith.constant 0 : index
    %9 = vector.load %arg4[%c0_6, %c0_7] : memref<256x128xbf16, #tpu.memory_space<vmem>>, vector<256x128xbf16>
    %cst_8 = arith.constant dense<0.000000e+00> : vector<128x128xf32>
    %10 = tpu.matmul %8, %9, %cst_8 {dimension_numbers = #tpu.dot_dimension_numbers<[1], [0], [0], [1], [0, 0, 1, 1], [], []>} : vector<128x256xbf16>, vector<256x128xbf16>, vector<128x128xf32> -> vector<128x128xf32>
    %c0_9 = arith.constant 0 : index
    %c0_10 = arith.constant 0 : index
    %11 = vector.load %arg5[%c0_9, %c0_10] : memref<1x128xf32, #tpu.memory_space<vmem>>, vector<1x128xf32>
    %12 = vector.broadcast %11 : vector<1x128xf32> to vector<128x128xf32>
    %13 = arith.addf %10, %12 : vector<128x128xf32>
    %cst_11 = arith.constant 0.000000e+00 : f32
    %14 = vector.broadcast %cst_11 : f32 to vector<128x128xf32>
    %15 = arith.maximumf %13, %14 : vector<128x128xf32>
    %16 = arith.truncf %15 : vector<128x128xf32> to vector<128x128xbf16>
    %c0_12 = arith.constant 0 : index
    %c0_13 = arith.constant 0 : index
    %17 = vector.load %arg6[%c0_12, %c0_13] : memref<128x128xbf16, #tpu.memory_space<vmem>>, vector<128x128xbf16>
    %cst_14 = arith.constant dense<0.000000e+00> : vector<128x128xf32>
    %18 = tpu.matmul %16, %17, %cst_14 {dimension_numbers = #tpu.dot_dimension_numbers<[1], [0], [0], [1], [0, 0, 1, 1], [], []>} : vector<128x128xbf16>, vector<128x128xbf16>, vector<128x128xf32> -> vector<128x128xf32>
    %c0_15 = arith.constant 0 : index
    %c0_16 = arith.constant 0 : index
    %19 = vector.load %arg7[%c0_15, %c0_16] : memref<1x128xf32, #tpu.memory_space<vmem>>, vector<1x128xf32>
    %20 = vector.broadcast %19 : vector<1x128xf32> to vector<128x128xf32>
    %21 = arith.addf %18, %20 : vector<128x128xf32>
    %cst_17 = arith.constant 0.000000e+00 : f32
    %22 = vector.broadcast %cst_17 : f32 to vector<128x128xf32>
    %23 = arith.maximumf %21, %22 : vector<128x128xf32>
    %24 = arith.truncf %23 : vector<128x128xf32> to vector<128x128xbf16>
    %c0_18 = arith.constant 0 : index
    %c0_19 = arith.constant 0 : index
    %25 = vector.load %arg8[%c0_18, %c0_19] : memref<128x128xbf16, #tpu.memory_space<vmem>>, vector<128x128xbf16>
    %cst_20 = arith.constant dense<0.000000e+00> : vector<128x128xf32>
    %26 = tpu.matmul %24, %25, %cst_20 {dimension_numbers = #tpu.dot_dimension_numbers<[1], [0], [0], [1], [0, 0, 1, 1], [], []>} : vector<128x128xbf16>, vector<128x128xbf16>, vector<128x128xf32> -> vector<128x128xf32>
    %c0_21 = arith.constant 0 : index
    %c0_22 = arith.constant 0 : index
    %27 = vector.load %arg9[%c0_21, %c0_22] : memref<1x128xf32, #tpu.memory_space<vmem>>, vector<1x128xf32>
    %28 = vector.broadcast %27 : vector<1x128xf32> to vector<128x128xf32>
    %29 = arith.addf %26, %28 : vector<128x128xf32>
    %cst_23 = arith.constant 0.000000e+00 : f32
    %30 = vector.broadcast %cst_23 : f32 to vector<128x128xf32>
    %31 = arith.maximumf %29, %30 : vector<128x128xf32>
    %32 = arith.truncf %31 : vector<128x128xf32> to vector<128x128xbf16>
    %c0_24 = arith.constant 0 : index
    %c0_25 = arith.constant 0 : index
    %33 = vector.load %arg10[%c0_24, %c0_25] : memref<128x256xbf16, #tpu.memory_space<vmem>>, vector<128x256xbf16>
    %cst_26 = arith.constant dense<0.000000e+00> : vector<128x256xf32>
    %34 = tpu.matmul %32, %33, %cst_26 {dimension_numbers = #tpu.dot_dimension_numbers<[1], [0], [0], [1], [0, 0, 1, 1], [], []>} : vector<128x128xbf16>, vector<128x256xbf16>, vector<128x256xf32> -> vector<128x256xf32>
    %c0_27 = arith.constant 0 : index
    %c0_28 = arith.constant 0 : index
    %35 = vector.load %arg11[%c0_27, %c0_28] : memref<1x256xf32, #tpu.memory_space<vmem>>, vector<1x256xf32>
    %36 = vector.broadcast %35 : vector<1x256xf32> to vector<128x256xf32>
    %37 = arith.addf %34, %36 : vector<128x256xf32>
    %cst_29 = arith.constant 0.000000e+00 : f32
    %38 = vector.broadcast %cst_29 : f32 to vector<128x256xf32>
    %39 = arith.maximumf %37, %38 : vector<128x256xf32>
    %40 = arith.truncf %39 : vector<128x256xf32> to vector<128x256xbf16>
    %c0_30 = arith.constant 0 : index
    %c0_31 = arith.constant 0 : index
    %41 = vector.load %arg12[%c0_30, %c0_31] : memref<256x784xbf16, #tpu.memory_space<vmem>>, vector<256x784xbf16>
    %cst_32 = arith.constant dense<0.000000e+00> : vector<128x784xf32>
    %42 = tpu.matmul %40, %41, %cst_32 {dimension_numbers = #tpu.dot_dimension_numbers<[1], [0], [0], [1], [0, 0, 1, 1], [], []>} : vector<128x256xbf16>, vector<256x784xbf16>, vector<128x784xf32> -> vector<128x784xf32>
    %c0_33 = arith.constant 0 : index
    %c0_34 = arith.constant 0 : index
    %43 = vector.load %arg13[%c0_33, %c0_34] : memref<1x784xf32, #tpu.memory_space<vmem>>, vector<1x784xf32>
    %44 = vector.broadcast %43 : vector<1x784xf32> to vector<128x784xf32>
    %45 = arith.addf %42, %44 : vector<128x784xf32>
    %46 = arith.negf %45 : vector<128x784xf32>
    %47 = math.exp %46 : vector<128x784xf32>
    %cst_35 = arith.constant 1.000000e+00 : f32
    %48 = vector.broadcast %cst_35 : f32 to vector<128x784xf32>
    %49 = arith.addf %48, %47 : vector<128x784xf32>
    %50 = arith.divf %48, %49 : vector<128x784xf32>
    %51 = arith.truncf %50 : vector<128x784xf32> to vector<128x784xbf16>
    %c0_36 = arith.constant 0 : index
    %c0_37 = arith.constant 0 : index
    %52 = vector.load %arg14[%c0_36, %c0_37] : memref<128x784xbf16, #tpu.memory_space<vmem>>, vector<128x784xbf16>
    tpu.vector_store %arg14[%c0_36, %c0_37], %51 {strides = array<i32>} : memref<128x784xbf16, #tpu.memory_space<vmem>>, vector<128x784xbf16>,
    return
  }
  func.func @transform_0(%arg0: i32) -> (i32, i32) {
    %c0_i32 = arith.constant 0 : i32
    %c0_i32_0 = arith.constant 0 : i32
    return %arg0, %c0_i32 : i32, i32
  }
  func.func @transform_1(%arg0: i32) -> (i32, i32) {
    %c0_i32 = arith.constant 0 : i32
    %c0_i32_0 = arith.constant 0 : i32
    %c0_i32_1 = arith.constant 0 : i32
    return %c0_i32, %c0_i32_0 : i32, i32
  }
  func.func @transform_2(%arg0: i32) -> (i32, i32) {
    %c0_i32 = arith.constant 0 : i32
    %c0_i32_0 = arith.constant 0 : i32
    %c0_i32_1 = arith.constant 0 : i32
    return %c0_i32, %c0_i32_0 : i32, i32
  }
  func.func @transform_3(%arg0: i32) -> (i32, i32) {
    %c0_i32 = arith.constant 0 : i32
    %c0_i32_0 = arith.constant 0 : i32
    %c0_i32_1 = arith.constant 0 : i32
    return %c0_i32, %c0_i32_0 : i32, i32
  }
  func.func @transform_4(%arg0: i32) -> (i32, i32) {
    %c0_i32 = arith.constant 0 : i32
    %c0_i32_0 = arith.constant 0 : i32
    %c0_i32_1 = arith.constant 0 : i32
    return %c0_i32, %c0_i32_0 : i32, i32
  }
  func.func @transform_5(%arg0: i32) -> (i32, i32) {
    %c0_i32 = arith.constant 0 : i32
    %c0_i32_0 = arith.constant 0 : i32
    %c0_i32_1 = arith.constant 0 : i32
    return %c0_i32, %c0_i32_0 : i32, i32
  }
  func.func @transform_6(%arg0: i32) -> (i32, i32) {
    %c0_i32 = arith.constant 0 : i32
    %c0_i32_0 = arith.constant 0 : i32
    %c0_i32_1 = arith.constant 0 : i32
    return %c0_i32, %c0_i32_0 : i32, i32
  }
  func.func @transform_7(%arg0: i32) -> (i32, i32) {
    %c0_i32 = arith.constant 0 : i32
    %c0_i32_0 = arith.constant 0 : i32
    %c0_i32_1 = arith.constant 0 : i32
    return %c0_i32, %c0_i32_0 : i32, i32
  }
  func.func @transform_8(%arg0: i32) -> (i32, i32) {
    %c0_i32 = arith.constant 0 : i32
    %c0_i32_0 = arith.constant 0 : i32
    %c0_i32_1 = arith.constant 0 : i32
    return %c0_i32, %c0_i32_0 : i32, i32
  }
  func.func @transform_9(%arg0: i32) -> (i32, i32) {
    %c0_i32 = arith.constant 0 : i32
    %c0_i32_0 = arith.constant 0 : i32
    %c0_i32_1 = arith.constant 0 : i32
    return %c0_i32, %c0_i32_0 : i32, i32
  }
  func.func @transform_10(%arg0: i32) -> (i32, i32) {
    %c0_i32 = arith.constant 0 : i32
    %c0_i32_0 = arith.constant 0 : i32
    %c0_i32_1 = arith.constant 0 : i32
    return %c0_i32, %c0_i32_0 : i32, i32
  }
  func.func @transform_11(%arg0: i32) -> (i32, i32) {
    %c0_i32 = arith.constant 0 : i32
    %c0_i32_0 = arith.constant 0 : i32
    %c0_i32_1 = arith.constant 0 : i32
    return %c0_i32, %c0_i32_0 : i32, i32
  }
  func.func @transform_12(%arg0: i32) -> (i32, i32) {
    %c0_i32 = arith.constant 0 : i32
    %c0_i32_0 = arith.constant 0 : i32
    %c0_i32_1 = arith.constant 0 : i32
    return %c0_i32, %c0_i32_0 : i32, i32
  }
  func.func @transform_13(%arg0: i32) -> (i32, i32) {
    %c0_i32 = arith.constant 0 : i32
    %c0_i32_0 = arith.constant 0 : i32
    return %arg0, %c0_i32 : i32, i32
  }
}

module attributes {stable_mosaic.version = 11 : i64} {
  func.func @deep_ae_kernel(%arg0: i32, %arg1: memref<128x784xbf16, #tpu.memory_space<vmem>>, %arg2: memref<784x256xbf16, #tpu.memory_space<vmem>>, %arg3: memref<1x256xf32, #tpu.memory_space<vmem>>, %arg4: memref<256x128xbf16, #tpu.memory_space<vmem>>, %arg5: memref<1x128xf32, #tpu.memory_space<vmem>>, %arg6: memref<128x128xbf16, #tpu.memory_space<vmem>>, %arg7: memref<1x128xf32, #tpu.memory_space<vmem>>, %arg8: memref<128x128xbf16, #tpu.memory_space<vmem>>, %arg9: memref<1x128xf32, #tpu.memory_space<vmem>>, %arg10: memref<128x256xbf16, #tpu.memory_space<vmem>>, %arg11: memref<1x256xf32, #tpu.memory_space<vmem>>, %arg12: memref<256x784xbf16, #tpu.memory_space<vmem>>, %arg13: memref<1x784xf32, #tpu.memory_space<vmem>>, %arg14: memref<128x784xbf16, #tpu.memory_space<vmem>>) attributes {dimension_semantics = [#tpu.dimension_semantics<parallel>], iteration_bounds = array<i64: 1>, scalar_prefetch = 0 : i64, scratch_operands = 0 : i64, tpu.core_type = #tpu.core_type<tc>, window_params = [{transform_indices = @transform_0, window_bounds = array<i64: 128, 784>}, {pipeline_mode = #tpu.pipeline_mode<synchronous>, transform_indices = @transform_1, window_bounds = array<i64: 784, 256>}, {pipeline_mode = #tpu.pipeline_mode<synchronous>, transform_indices = @transform_2, window_bounds = array<i64: 1, 256>}, {pipeline_mode = #tpu.pipeline_mode<synchronous>, transform_indices = @transform_3, window_bounds = array<i64: 256, 128>}, {pipeline_mode = #tpu.pipeline_mode<synchronous>, transform_indices = @transform_4, window_bounds = array<i64: 1, 128>}, {pipeline_mode = #tpu.pipeline_mode<synchronous>, transform_indices = @transform_5, window_bounds = array<i64: 128, 128>}, {pipeline_mode = #tpu.pipeline_mode<synchronous>, transform_indices = @transform_6, window_bounds = array<i64: 1, 128>}, {pipeline_mode = #tpu.pipeline_mode<synchronous>, transform_indices = @transform_7, window_bounds = array<i64: 128, 128>}, {pipeline_mode = #tpu.pipeline_mode<synchronous>, transform_indices = @transform_8, window_bounds = array<i64: 1, 128>}, {pipeline_mode = #tpu.pipeline_mode<synchronous>, transform_indices = @transform_9, window_bounds = array<i64: 128, 256>}, {pipeline_mode = #tpu.pipeline_mode<synchronous>, transform_indices = @transform_10, window_bounds = array<i64: 1, 256>}, {pipeline_mode = #tpu.pipeline_mode<synchronous>, transform_indices = @transform_11, window_bounds = array<i64: 256, 784>}, {pipeline_mode = #tpu.pipeline_mode<synchronous>, transform_indices = @transform_12, window_bounds = array<i64: 1, 784>}, {transform_indices = @transform_13, window_bounds = array<i64: 128, 784>}]} {
    %c0 = arith.constant 0 : index
    %c0_0 = arith.constant 0 : index
    %0 = vector.load %arg1[%c0, %c0_0] : memref<128x784xbf16, #tpu.memory_space<vmem>>, vector<128x784xbf16>
    %c0_1 = arith.constant 0 : index
    %c0_2 = arith.constant 0 : index
    %1 = vector.load %arg2[%c0_1, %c0_2] : memref<784x256xbf16, #tpu.memory_space<vmem>>, vector<784x256xbf16>
    %cst = arith.constant dense<0.000000e+00> : vector<128x256xf32>
    %2 = tpu.matmul %0, %1, %cst {dimension_numbers = #tpu.dot_dimension_numbers<[1], [0], [0], [1], [0, 0, 1, 1], [], []>} : vector<128x784xbf16>, vector<784x256xbf16>, vector<128x256xf32> -> vector<128x256xf32>
    %c0_3 = arith.constant 0 : index
    %c0_4 = arith.constant 0 : index
    %3 = vector.load %arg3[%c0_3, %c0_4] : memref<1x256xf32, #tpu.memory_space<vmem>>, vector<1x256xf32>
    %4 = vector.broadcast %3 : vector<1x256xf32> to vector<128x256xf32>
    %5 = arith.addf %2, %4 : vector<128x256xf32>
    %cst_5 = arith.constant 0.000000e+00 : f32
    %6 = vector.broadcast %cst_5 : f32 to vector<128x256xf32>
    %7 = arith.maximumf %5, %6 : vector<128x256xf32>
    %8 = arith.truncf %7 : vector<128x256xf32> to vector<128x256xbf16>
    %c0_6 = arith.constant 0 : index
    %c0_7 = arith.constant 0 : index
    %9 = vector.load %arg4[%c0_6, %c0_7] : memref<256x128xbf16, #tpu.memory_space<vmem>>, vector<256x128xbf16>
    %cst_8 = arith.constant dense<0.000000e+00> : vector<128x128xf32>
    %10 = tpu.matmul %8, %9, %cst_8 {dimension_numbers = #tpu.dot_dimension_numbers<[1], [0], [0], [1], [0, 0, 1, 1], [], []>} : vector<128x256xbf16>, vector<256x128xbf16>, vector<128x128xf32> -> vector<128x128xf32>
    %c0_9 = arith.constant 0 : index
    %c0_10 = arith.constant 0 : index
    %11 = vector.load %arg5[%c0_9, %c0_10] : memref<1x128xf32, #tpu.memory_space<vmem>>, vector<1x128xf32>
    %12 = vector.broadcast %11 : vector<1x128xf32> to vector<128x128xf32>
    %13 = arith.addf %10, %12 : vector<128x128xf32>
    %cst_11 = arith.constant 0.000000e+00 : f32
    %14 = vector.broadcast %cst_11 : f32 to vector<128x128xf32>
    %15 = arith.maximumf %13, %14 : vector<128x128xf32>
    %16 = arith.truncf %15 : vector<128x128xf32> to vector<128x128xbf16>
    %c0_12 = arith.constant 0 : index
    %c0_13 = arith.constant 0 : index
    %17 = vector.load %arg6[%c0_12, %c0_13] : memref<128x128xbf16, #tpu.memory_space<vmem>>, vector<128x128xbf16>
    %cst_14 = arith.constant dense<0.000000e+00> : vector<128x128xf32>
    %18 = tpu.matmul %16, %17, %cst_14 {dimension_numbers = #tpu.dot_dimension_numbers<[1], [0], [0], [1], [0, 0, 1, 1], [], []>} : vector<128x128xbf16>, vector<128x128xbf16>, vector<128x128xf32> -> vector<128x128xf32>
    %c0_15 = arith.constant 0 : index
    %c0_16 = arith.constant 0 : index
    %19 = vector.load %arg7[%c0_15, %c0_16] : memref<1x128xf32, #tpu.memory_space<vmem>>, vector<1x128xf32>
    %20 = vector.broadcast %19 : vector<1x128xf32> to vector<128x128xf32>
    %21 = arith.addf %18, %20 : vector<128x128xf32>
    %cst_17 = arith.constant 0.000000e+00 : f32
    %22 = vector.broadcast %cst_17 : f32 to vector<128x128xf32>
    %23 = arith.maximumf %21, %22 : vector<128x128xf32>
    %24 = arith.truncf %23 : vector<128x128xf32> to vector<128x128xbf16>
    %c0_18 = arith.constant 0 : index
    %c0_19 = arith.constant 0 : index
    %25 = vector.load %arg8[%c0_18, %c0_19] : memref<128x128xbf16, #tpu.memory_space<vmem>>, vector<128x128xbf16>
    %cst_20 = arith.constant dense<0.000000e+00> : vector<128x128xf32>
    %26 = tpu.matmul %24, %25, %cst_20 {dimension_numbers = #tpu.dot_dimension_numbers<[1], [0], [0], [1], [0, 0, 1, 1], [], []>} : vector<128x128xbf16>, vector<128x128xbf16>, vector<128x128xf32> -> vector<128x128xf32>
    %c0_21 = arith.constant 0 : index
    %c0_22 = arith.constant 0 : index
    %27 = vector.load %arg9[%c0_21, %c0_22] : memref<1x128xf32, #tpu.memory_space<vmem>>, vector<1x128xf32>
    %28 = vector.broadcast %27 : vector<1x128xf32> to vector<128x128xf32>
    %29 = arith.addf %26, %28 : vector<128x128xf32>
    %cst_23 = arith.constant 0.000000e+00 : f32
    %30 = vector.broadcast %cst_23 : f32 to vector<128x128xf32>
    %31 = arith.maximumf %29, %30 : vector<128x128xf32>
    %32 = arith.truncf %31 : vector<128x128xf32> to vector<128x128xbf16>
    %c0_24 = arith.constant 0 : index
    %c0_25 = arith.constant 0 : index
    %33 = vector.load %arg10[%c0_24, %c0_25] : memref<128x256xbf16, #tpu.memory_space<vmem>>, vector<128x256xbf16>
    %cst_26 = arith.constant dense<0.000000e+00> : vector<128x256xf32>
    %34 = tpu.matmul %32, %33, %cst_26 {dimension_numbers = #tpu.dot_dimension_numbers<[1], [0], [0], [1], [0, 0, 1, 1], [], []>} : vector<128x128xbf16>, vector<128x256xbf16>, vector<128x256xf32> -> vector<128x256xf32>
    %c0_27 = arith.constant 0 : index
    %c0_28 = arith.constant 0 : index
    %35 = vector.load %arg11[%c0_27, %c0_28] : memref<1x256xf32, #tpu.memory_space<vmem>>, vector<1x256xf32>
    %36 = vector.broadcast %35 : vector<1x256xf32> to vector<128x256xf32>
    %37 = arith.addf %34, %36 : vector<128x256xf32>
    %cst_29 = arith.constant 0.000000e+00 : f32
    %38 = vector.broadcast %cst_29 : f32 to vector<128x256xf32>
    %39 = arith.maximumf %37, %38 : vector<128x256xf32>
    %40 = arith.truncf %39 : vector<128x256xf32> to vector<128x256xbf16>
    %c0_30 = arith.constant 0 : index
    %c0_31 = arith.constant 0 : index
    %41 = vector.load %arg12[%c0_30, %c0_31] : memref<256x784xbf16, #tpu.memory_space<vmem>>, vector<256x784xbf16>
    %cst_32 = arith.constant dense<0.000000e+00> : vector<128x784xf32>
    %42 = tpu.matmul %40, %41, %cst_32 {dimension_numbers = #tpu.dot_dimension_numbers<[1], [0], [0], [1], [0, 0, 1, 1], [], []>} : vector<128x256xbf16>, vector<256x784xbf16>, vector<128x784xf32> -> vector<128x784xf32>
    %c0_33 = arith.constant 0 : index
    %c0_34 = arith.constant 0 : index
    %43 = vector.load %arg13[%c0_33, %c0_34] : memref<1x784xf32, #tpu.memory_space<vmem>>, vector<1x784xf32>
    %44 = vector.broadcast %43 : vector<1x784xf32> to vector<128x784xf32>
    %45 = arith.addf %42, %44 : vector<128x784xf32>
    %46 = arith.negf %45 : vector<128x784xf32>
    %47 = math.exp %46 : vector<128x784xf32>
    %cst_35 = arith.constant 1.000000e+00 : f32
    %48 = vector.broadcast %cst_35 : f32 to vector<128x784xf32>
    %49 = arith.addf %48, %47 : vector<128x784xf32>
    %50 = arith.divf %48, %49 : vector<128x784xf32>
    %51 = arith.truncf %50 : vector<128x784xf32> to vector<128x784xbf16>
    %c0_36 = arith.constant 0 : index
    %c0_37 = arith.constant 0 : index
    %52 = vector.load %arg14[%c0_36, %c0_37] : memref<128x784xbf16, #tpu.memory_space<vmem>>, vector<128x784xbf16>
    tpu.vector_store %arg14[%c0_36, %c0_37], %51 {strides = array<i32>} : memref<128x784xbf16, #tpu.memory_space<vmem>>, vector<128x784xbf16>,
    return
  }
  func.func @transform_0(%arg0: i32) -> (i32, i32) {
    %c0_i32 = arith.constant 0 : i32
    %c0_i32_0 = arith.constant 0 : i32
    return %arg0, %c0_i32 : i32, i32
  }
  func.func @transform_1(%arg0: i32) -> (i32, i32) {
    %c0_i32 = arith.constant 0 : i32
    %c0_i32_0 = arith.constant 0 : i32
    %c0_i32_1 = arith.constant 0 : i32
    return %c0_i32, %c0_i32_0 : i32, i32
  }
  func.func @transform_2(%arg0: i32) -> (i32, i32) {
    %c0_i32 = arith.constant 0 : i32
    %c0_i32_0 = arith.constant 0 : i32
    %c0_i32_1 = arith.constant 0 : i32
    return %c0_i32, %c0_i32_0 : i32, i32
  }
  func.func @transform_3(%arg0: i32) -> (i32, i32) {
    %c0_i32 = arith.constant 0 : i32
    %c0_i32_0 = arith.constant 0 : i32
    %c0_i32_1 = arith.constant 0 : i32
    return %c0_i32, %c0_i32_0 : i32, i32
  }
  func.func @transform_4(%arg0: i32) -> (i32, i32) {
    %c0_i32 = arith.constant 0 : i32
    %c0_i32_0 = arith.constant 0 : i32
    %c0_i32_1 = arith.constant 0 : i32
    return %c0_i32, %c0_i32_0 : i32, i32
  }
  func.func @transform_5(%arg0: i32) -> (i32, i32) {
    %c0_i32 = arith.constant 0 : i32
    %c0_i32_0 = arith.constant 0 : i32
    %c0_i32_1 = arith.constant 0 : i32
    return %c0_i32, %c0_i32_0 : i32, i32
  }
  func.func @transform_6(%arg0: i32) -> (i32, i32) {
    %c0_i32 = arith.constant 0 : i32
    %c0_i32_0 = arith.constant 0 : i32
    %c0_i32_1 = arith.constant 0 : i32
    return %c0_i32, %c0_i32_0 : i32, i32
  }
  func.func @transform_7(%arg0: i32) -> (i32, i32) {
    %c0_i32 = arith.constant 0 : i32
    %c0_i32_0 = arith.constant 0 : i32
    %c0_i32_1 = arith.constant 0 : i32
    return %c0_i32, %c0_i32_0 : i32, i32
  }
  func.func @transform_8(%arg0: i32) -> (i32, i32) {
    %c0_i32 = arith.constant 0 : i32
    %c0_i32_0 = arith.constant 0 : i32
    %c0_i32_1 = arith.constant 0 : i32
    return %c0_i32, %c0_i32_0 : i32, i32
  }
  func.func @transform_9(%arg0: i32) -> (i32, i32) {
    %c0_i32 = arith.constant 0 : i32
    %c0_i32_0 = arith.constant 0 : i32
    %c0_i32_1 = arith.constant 0 : i32
    return %c0_i32, %c0_i32_0 : i32, i32
  }
  func.func @transform_10(%arg0: i32) -> (i32, i32) {
    %c0_i32 = arith.constant 0 : i32
    %c0_i32_0 = arith.constant 0 : i32
    %c0_i32_1 = arith.constant 0 : i32
    return %c0_i32, %c0_i32_0 : i32, i32
  }
  func.func @transform_11(%arg0: i32) -> (i32, i32) {
    %c0_i32 = arith.constant 0 : i32
    %c0_i32_0 = arith.constant 0 : i32
    %c0_i32_1 = arith.constant 0 : i32
    return %c0_i32, %c0_i32_0 : i32, i32
  }
  func.func @transform_12(%arg0: i32) -> (i32, i32) {
    %c0_i32 = arith.constant 0 : i32
    %c0_i32_0 = arith.constant 0 : i32
    %c0_i32_1 = arith.constant 0 : i32
    return %c0_i32, %c0_i32_0 : i32, i32
  }
  func.func @transform_13(%arg0: i32) -> (i32, i32) {
    %c0_i32 = arith.constant 0 : i32
    %c0_i32_0 = arith.constant 0 : i32
    return %arg0, %c0_i32 : i32, i32
  }
}

</mosaic_0001>

<bundles_post_ra>
// kernel: tpu_custom_call.1
= control target key start
LH: loop header
LB: loop body
LE: loop exit
PB: predicated region body
PF: predicated region fallthrough
CT: control target
= control target key end

     0   :  { %vm989_vm0 = vcmask 130048   ;;  %vm4627_vm1 = vcmask 125952   ;;  %s8497_s1 = inlined_call_operand.vmem [shape: bf16[784,256], index: 1, kind: input, shape index: {}]   ;;  %s8498_s0 = inlined_call_operand.vmem [shape: bf16[128,784], index: 0, kind: input, shape index: {}]   ;;  %s8499_s3 = inlined_call_operand.vmem [shape: bf16[256,128], index: 3, kind: input, shape index: {}]   ;;  %s8500_s5 = inlined_call_operand.vmem [shape: bf16[128,128], index: 5, kind: input, shape index: {}]   ;;  %s8501_s2 = inlined_call_operand.vmem [shape: f32[1,256], index: 2, kind: input, shape index: {}]   ;;  %s8502_s7 = inlined_call_operand.vmem [shape: bf16[128,128], index: 7, kind: input, shape index: {}]   ;;  %s8503_s4 = inlined_call_operand.vmem [shape: f32[1,128], index: 4, kind: input, shape index: {}]   ;;  %s8504_s9 = inlined_call_operand.vmem [shape: bf16[128,256], index: 9, kind: input, shape index: {}]   ;;  %s8505_s6 = inlined_call_operand.vmem [shape: f32[1,128], index: 6, kind: input, shape index: {}]   ;;  %s8506_s11 = inlined_call_operand.vmem [shape: bf16[256,784], index: 11, kind: input, shape index: {}]   ;;  %s8507_s8 = inlined_call_operand.vmem [shape: f32[1,128], index: 8, kind: input, shape index: {}]   ;;  %s8508_s10 = inlined_call_operand.vmem [shape: f32[1,256], index: 10, kind: input, shape index: {}]   ;;  %s8509_s12 = inlined_call_operand.vmem [shape: f32[1,784], index: 12, kind: input, shape index: {}]   ;;  %s8510_s13 = inlined_call_operand.vmem [shape: bf16[128,784], index: 13, kind: output, shape index: {}]  }
   0x1   :  { %v5627_v0 = vld [vmem:[%s8497_s1 + $0x4] ss:$8 sps:$4 sm:$0xff]   ;;  %v5629_v1 = vld [vmem:[%s8497_s1] ss:$8 sps:$4 sm:$0xff]   ;;  %v5630_v2 = vld [vmem:[%s8497_s1 + $0x14] ss:$8 sps:$4 sm:$0xff]  }
   0x2   :  { %1014 = vmatprep.subr.bf16.mxu0 %v5627_v0  ;;  %v5632_v3 = vld [vmem:[%s8497_s1 + $0x10] ss:$8 sps:$4 sm:$0xff]   ;;  %v5633_v4 = vld [vmem:[%s8497_s1 + $0x24] ss:$8 sps:$4 sm:$0xff]   ;;  %v5635_v5 = vld [vmem:[%s8497_s1 + $0x20] ss:$8 sps:$4 sm:$0xff]  }
   0x3   :  { %1015 = vmatpush1.bf16.msra.mxu0 %v5629_v1  ;;  %v5636_v6 = vld [vmem:[%s8497_s1 + $0x34] ss:$8 sps:$4 sm:$0xff]   ;;  %v5638_v7 = vld [vmem:[%s8497_s1 + $0x30] ss:$8 sps:$4 sm:$0xff]   ;;  %v5639_v8 = vld [vmem:[%s8497_s1 + $0x44] ss:$8 sps:$4 sm:$0xff]  }
   0x4   :  { %1016 = vmatprep.subr.bf16.mxu0 %v5630_v2  ;;  %v5641_v9 = vld [vmem:[%s8497_s1 + $0x40] ss:$8 sps:$4 sm:$0xff]   ;;  %v5642_v10 = vld [vmem:[%s8497_s1 + $0x54] ss:$8 sps:$4 sm:$0xff]   ;;  %v5644_v11 = vld [vmem:[%s8497_s1 + $0x50] ss:$8 sps:$4 sm:$0xff]  }
   0x5   :  { %v5645_v12 = vld [vmem:[%s8497_s1 + $0x64] ss:$8 sps:$4 sm:$0xff]   ;;  %v5647_v14 = vld [vmem:[%s8497_s1 + $0x60] ss:$8 sps:$4 sm:$0xff]   ;;  %v5648_v15 = vld [vmem:[%s8497_s1 + $0x74] ss:$8 sps:$4 sm:$0xff]  }
   0x6   :  { %v5677_v13 = vld [vmem:[%s8498_s0 + $0x4] ss:$28 sps:$4 sm:$0xff]   ;;  %v5650_v16 = vld [vmem:[%s8497_s1 + $0x70] ss:$8 sps:$4 sm:$0xff]   ;;  %v5654_v19 = vld [vmem:[%s8497_s1 + $0x94] ss:$8 sps:$4 sm:$0xff]  }
   0x7   :  { %1017 = vmatpush1.bf16.msra.mxu0 %v5632_v3  ;;  %1046 = vmatprep.mubr.bf16.mxu0 %v5677_v13  ;;  %v5651_v17 = vld [vmem:[%s8497_s1 + $0x84] ss:$8 sps:$4 sm:$0xff]   ;;  %v5653_v18 = vld [vmem:[%s8497_s1 + $0x80] ss:$8 sps:$4 sm:$0xff]   ;;  %v5656_v20 = vld [vmem:[%s8497_s1 + $0x90] ss:$8 sps:$4 sm:$0xff]  }
   0x8   :  { %1018 = vmatprep.subr.bf16.mxu0 %v5633_v4  ;;  %v5657_v21 = vld [vmem:[%s8497_s1 + $0xa4] ss:$8 sps:$4 sm:$0xff]   ;;  %v5659_v22 = vld [vmem:[%s8497_s1 + $0xa0] ss:$8 sps:$4 sm:$0xff]   ;;  %v5660_v23 = vld [vmem:[%s8497_s1 + $0xb4] ss:$8 sps:$4 sm:$0xff]  }
   0x9   :  { %v5662_v24 = vld [vmem:[%s8497_s1 + $0xb0] ss:$8 sps:$4 sm:$0xff]   ;;  %v5663_v25 = vld [vmem:[%s8497_s1 + $0xc4] ss:$8 sps:$4 sm:$0xff]   ;;  %v5665_v26 = vld [vmem:[%s8497_s1 + $0xc0] ss:$8 sps:$4 sm:$0xff]  }
   0xa   :  { %v5666_v27 = vld [vmem:[%s8497_s1 + $0xd4] ss:$8 sps:$4 sm:$0xff]   ;;  %v5668_v28 = vld [vmem:[%s8497_s1 + $0xd0] ss:$8 sps:$4 sm:$0xff]   ;;  %v5669_v29 = vld [vmem:[%s8497_s1 + $0xe4] ss:$8 sps:$4 sm:$0xff]  }
   0xb   :  { %1019 = vmatpush1.bf16.msra.mxu0 %v5635_v5  ;;  %v5671_v30 = vld [vmem:[%s8497_s1 + $0xe0] ss:$8 sps:$4 sm:$0xff]   ;;  %v5672_v31 = vld [vmem:[%s8497_s1 + $0xf4] ss:$8 sps:$4 sm:$0xff]   ;;  %v5674_v32 = vld [vmem:[%s8497_s1 + $0xf0] ss:$8 sps:$4 sm:$0xff]  }
   0xc   :  { %1020 = vmatprep.subr.bf16.mxu0 %v5636_v6  ;;  %v5680_v33 = vld [vmem:[%s8497_s1 + $0x104] ss:$8 sps:$4 sm:$0xff]   ;;  %v5675_v34 = vld [vmem:[%s8498_s0] ss:$28 sps:$4 sm:$0xff]   ;;  %v5681_v38 = vld [vmem:[%s8497_s1 + $0x110] ss:$8 sps:$4 sm:$0xff]  }
   0xd   :  { %v5678_v35 = vld [vmem:[%s8497_s1 + $0x100] ss:$8 sps:$4 sm:$0xff]   ;;  %v5684_v36 = vld [vmem:[%s8498_s0 + $0x3c] ss:$28 sps:$4 sm:$0xff]   ;;  %v5689_v39 = vld [vmem:[%s8497_s1 + $0x124] ss:$8 sps:$4 sm:$0xff]  }
   0xe   :  { %v5683_v37 = vld [vmem:[%s8497_s1 + $0x114] ss:$8 sps:$4 sm:$0xff]   ;;  %v5687_v41 = vld [vmem:[%s8497_s1 + $0x120] ss:$8 sps:$4 sm:$0xff]   ;;  %v5690_v44 = vld [vmem:[%s8497_s1 + $0x130] ss:$8 sps:$4 sm:$0xff]  }
   0xf   :  { %1021 = vmatpush1.bf16.msra.mxu0 %v5638_v7  ;;  %v5686_v40 = vld [vmem:[%s8498_s0 + $0x38] ss:$28 sps:$4 sm:$0xff]   ;;  %v5698_v45 = vld [vmem:[%s8497_s1 + $0x144] ss:$8 sps:$4 sm:$0xff]   ;;  %v5696_v47 = vld [vmem:[%s8497_s1 + $0x140] ss:$8 sps:$4 sm:$0xff]  }
  0x10   :  { %1022 = vmatprep.subr.bf16.mxu0 %v5639_v8  ;;  %v5693_v42 = vld [vmem:[%s8498_s0 + $0x74] ss:$28 sps:$4 sm:$0xff]   ;;  %v5702_v48 = vld [vmem:[%s8498_s0 + $0xac] ss:$28 sps:$4 sm:$0xff]   ;;  %v5711_v54 = vld [vmem:[%s8498_s0 + $0xe4] ss:$28 sps:$4 sm:$0xff]  }
  0x11   :  { %v5692_v43 = vld [vmem:[%s8497_s1 + $0x134] ss:$8 sps:$4 sm:$0xff]   ;;  %v5695_v46 = vld [vmem:[%s8498_s0 + $0x70] ss:$28 sps:$4 sm:$0xff]   ;;  %v5704_v52 = vld [vmem:[%s8498_s0 + $0xa8] ss:$28 sps:$4 sm:$0xff]  }
  0x12   :  { %v5701_v49 = vld [vmem:[%s8497_s1 + $0x154] ss:$8 sps:$4 sm:$0xff]   ;;  %v5699_v50 = vld [vmem:[%s8497_s1 + $0x150] ss:$8 sps:$4 sm:$0xff]   ;;  %v5707_v51 = vld [vmem:[%s8497_s1 + $0x164] ss:$8 sps:$4 sm:$0xff]  }
  0x13   :  { %1023 = vmatpush1.bf16.msra.mxu0 %v5641_v9  ;;  %v5705_v53 = vld [vmem:[%s8497_s1 + $0x160] ss:$8 sps:$4 sm:$0xff]   ;;  %v5710_v55 = vld [vmem:[%s8497_s1 + $0x174] ss:$8 sps:$4 sm:$0xff]   ;;  %v5708_v56 = vld [vmem:[%s8497_s1 + $0x170] ss:$8 sps:$4 sm:$0xff]  }
  0x14   :  { %1024 = vmatprep.subr.bf16.mxu0 %v5642_v10  ;;  %v5713_v57 = vld [vmem:[%s8498_s0 + $0xe0] ss:$28 sps:$4 sm:$0xff]   ;;  %v5716_v58 = vld [vmem:[%s8497_s1 + $0x184] ss:$8 sps:$4 sm:$0xff]   ;;  %v5717_v62 = vld [vmem:[%s8497_s1 + $0x190] ss:$8 sps:$4 sm:$0xff]  }
  0x15   :  { %v5714_v59 = vld [vmem:[%s8497_s1 + $0x180] ss:$8 sps:$4 sm:$0xff]   ;;  %v5720_v60 = vld [vmem:[%s8498_s0 + $0x11c] ss:$28 sps:$4 sm:$0xff]   ;;  %v5725_v63 = vld [vmem:[%s8497_s1 + $0x1a4] ss:$8 sps:$4 sm:$0xff]  }
  0x16   :  { %v5719_v61 = vld [vmem:[%s8497_s1 + $0x194] ss:$8 sps:$4 sm:$0xff]   ;;  %v5723_v1 = vld [vmem:[%s8497_s1 + $0x1a0] ss:$8 sps:$4 sm:$0xff]   ;;  %v5726_v4 = vld [vmem:[%s8497_s1 + $0x1b0] ss:$8 sps:$4 sm:$0xff]  }
  0x17   :  { %1025 = vmatpush1.bf16.msra.mxu0 %v5644_v11  ;;  %v5722_v0 = vld [vmem:[%s8498_s0 + $0x118] ss:$28 sps:$4 sm:$0xff]   ;;  %v5734_v5 = vld [vmem:[%s8497_s1 + $0x1c4] ss:$8 sps:$4 sm:$0xff]   ;;  %v5732_v7 = vld [vmem:[%s8497_s1 + $0x1c0] ss:$8 sps:$4 sm:$0xff]  }
  0x18   :  { %1026 = vmatprep.subr.bf16.mxu0 %v5645_v12  ;;  %v5729_v2 = vld [vmem:[%s8498_s0 + $0x154] ss:$28 sps:$4 sm:$0xff]   ;;  %v5738_v8 = vld [vmem:[%s8498_s0 + $0x18c] ss:$28 sps:$4 sm:$0xff]  }
  0x19   :  { %v5728_v3 = vld [vmem:[%s8497_s1 + $0x1b4] ss:$8 sps:$4 sm:$0xff]   ;;  %v5731_v6 = vld [vmem:[%s8498_s0 + $0x150] ss:$28 sps:$4 sm:$0xff]   ;;  %v5740_v12 = vld [vmem:[%s8498_s0 + $0x188] ss:$28 sps:$4 sm:$0xff]  }
  0x1a   :  { %v5737_v9 = vld [vmem:[%s8497_s1 + $0x1d4] ss:$8 sps:$4 sm:$0xff]   ;;  %v5735_v10 = vld [vmem:[%s8497_s1 + $0x1d0] ss:$8 sps:$4 sm:$0xff]   ;;  %v5743_v11 = vld [vmem:[%s8497_s1 + $0x1e4] ss:$8 sps:$4 sm:$0xff]  }
  0x1b   :  { %1027 = vmatpush1.bf16.msra.mxu0 %v5647_v14  ;;  %v5741_v13 = vld [vmem:[%s8497_s1 + $0x1e0] ss:$8 sps:$4 sm:$0xff]  }
  0x1c   :  { %1028 = vmatprep.subr.bf16.mxu0 %v5648_v15  ;;  %v5749_v14 = vld [vmem:[%s8498_s0 + $0xc] ss:$28 sps:$4 sm:$0xff]   ;;  %v5746_v15 = vld [vmem:[%s8497_s1 + $0x1f4] ss:$8 sps:$4 sm:$0xff]  }
  0x1f   :  { %1029 = vmatpush1.bf16.msra.mxu0 %v5650_v16  ;;  %v5744_v16 = vld [vmem:[%s8497_s1 + $0x1f0] ss:$8 sps:$4 sm:$0xff]  }
  0x20   :  { %1030 = vmatprep.subr.bf16.mxu0 %v5651_v17  ;;  %v5752_v17 = vld [vmem:[%s8497_s1 + $0x204] ss:$8 sps:$4 sm:$0xff]  }
  0x23   :  { %1031 = vmatpush1.bf16.msra.mxu0 %v5653_v18  ;;  %v5747_v18 = vld [vmem:[%s8498_s0 + $0x8] ss:$28 sps:$4 sm:$0xff]  }
  0x24   :  { %1032 = vmatprep.subr.bf16.mxu0 %v5654_v19  ;;  %v5750_v19 = vld [vmem:[%s8497_s1 + $0x200] ss:$8 sps:$4 sm:$0xff]  }
  0x27   :  { %1033 = vmatpush1.bf16.msra.mxu0 %v5656_v20  ;;  %v5756_v20 = vld [vmem:[%s8498_s0 + $0x44] ss:$28 sps:$4 sm:$0xff]  }
  0x28   :  { %1034 = vmatprep.subr.bf16.mxu0 %v5657_v21  ;;  %v5755_v21 = vld [vmem:[%s8497_s1 + $0x214] ss:$8 sps:$4 sm:$0xff]  }
  0x2b   :  { %1035 = vmatpush1.bf16.msra.mxu0 %v5659_v22  ;;  %v5753_v22 = vld [vmem:[%s8497_s1 + $0x210] ss:$8 sps:$4 sm:$0xff]  }
  0x2c   :  { %1036 = vmatprep.subr.bf16.mxu0 %v5660_v23  ;;  %v5761_v23 = vld [vmem:[%s8497_s1 + $0x224] ss:$8 sps:$4 sm:$0xff]  }
  0x2f   :  { %1037 = vmatpush1.bf16.msra.mxu0 %v5662_v24  ;;  %v5758_v24 = vld [vmem:[%s8498_s0 + $0x40] ss:$28 sps:$4 sm:$0xff]  }
  0x30   :  { %1038 = vmatprep.subr.bf16.mxu0 %v5663_v25  ;;  %v5759_v25 = vld [vmem:[%s8497_s1 + $0x220] ss:$8 sps:$4 sm:$0xff]  }
  0x33   :  { %1039 = vmatpush1.bf16.msra.mxu0 %v5665_v26  ;;  %v5765_v26 = vld [vmem:[%s8498_s0 + $0x7c] ss:$28 sps:$4 sm:$0xff]  }
  0x34   :  { %1040 = vmatprep.subr.bf16.mxu0 %v5666_v27  ;;  %v5764_v27 = vld [vmem:[%s8497_s1 + $0x234] ss:$8 sps:$4 sm:$0xff]  }
  0x37   :  { %1041 = vmatpush1.bf16.msra.mxu0 %v5668_v28  ;;  %v5762_v28 = vld [vmem:[%s8497_s1 + $0x230] ss:$8 sps:$4 sm:$0xff]  }
  0x38   :  { %1042 = vmatprep.subr.bf16.mxu0 %v5669_v29  ;;  %v5770_v29 = vld [vmem:[%s8497_s1 + $0x244] ss:$8 sps:$4 sm:$0xff]  }
  0x3b   :  { %1043 = vmatpush1.bf16.msra.mxu0 %v5671_v30  ;;  %v5767_v30 = vld [vmem:[%s8498_s0 + $0x78] ss:$28 sps:$4 sm:$0xff]  }
  0x3c   :  { %1044 = vmatprep.subr.bf16.mxu0 %v5672_v31  ;;  %v5768_v31 = vld [vmem:[%s8497_s1 + $0x240] ss:$8 sps:$4 sm:$0xff]  }
  0x3f   :  { %1045 = vmatpush1.bf16.msra.mxu0 %v5674_v32  ;;  %v5774_v32 = vld [vmem:[%s8498_s0 + $0xb4] ss:$28 sps:$4 sm:$0xff]  }
  0x40   :  { %1127 = vmatprep.subr.bf16.mxu0 %v5680_v33  ;;  %v5773_v33 = vld [vmem:[%s8497_s1 + $0x254] ss:$8 sps:$4 sm:$0xff]  }
  0x42   :  { %1047 = vmatmul.mubr.bf16.vlgmr.msra.gmra.mrb[0].mxu0 %v5675_v34  ;;  %v5771_v34 = vld [vmem:[%s8497_s1 + $0x250] ss:$8 sps:$4 sm:$0xff]  }
  0x43   :  { %1128 = vmatpush1.bf16.msra.mxu0 %v5678_v35  ;;  %1056 = vmatprep.mubr.bf16.mxu0 %v5684_v36  ;;  %v5779_v35 = vld [vmem:[%s8497_s1 + $0x264] ss:$8 sps:$4 sm:$0xff]  }
  0x44   :  { %1129 = vmatprep.subr.bf16.mxu0 %v5683_v37  ;;  %v5776_v36 = vld [vmem:[%s8498_s0 + $0xb0] ss:$28 sps:$4 sm:$0xff]   ;;  %v5777_v37 = vld [vmem:[%s8497_s1 + $0x260] ss:$8 sps:$4 sm:$0xff]  }
  0x47   :  { %1130 = vmatpush1.bf16.msra.mxu0 %v5681_v38  ;;  %v5783_v38 = vld [vmem:[%s8498_s0 + $0xec] ss:$28 sps:$4 sm:$0xff]  }
  0x48   :  { %1131 = vmatprep.subr.bf16.mxu0 %v5689_v39  ;;  %v5782_v39 = vld [vmem:[%s8497_s1 + $0x274] ss:$8 sps:$4 sm:$0xff]  }
  0x4a   :  { %1057 = vmatmul.mubr.bf16.gmra.mrb[4].mxu0 %v5686_v40  ;;  %v5780_v40 = vld [vmem:[%s8497_s1 + $0x270] ss:$8 sps:$4 sm:$0xff]  }
  0x4b   :  { %1132 = vmatpush1.bf16.msra.mxu0 %v5687_v41  ;;  %1066 = vmatprep.mubr.bf16.mxu0 %v5693_v42  ;;  %v5788_v41 = vld [vmem:[%s8497_s1 + $0x284] ss:$8 sps:$4 sm:$0xff]  }
  0x4c   :  { %1133 = vmatprep.subr.bf16.mxu0 %v5692_v43  ;;  %v5785_v42 = vld [vmem:[%s8498_s0 + $0xe8] ss:$28 sps:$4 sm:$0xff]  }
  0x4d   :  { %v5786_v43 = vld [vmem:[%s8497_s1 + $0x280] ss:$8 sps:$4 sm:$0xff]  }
  0x4f   :  { %1134 = vmatpush1.bf16.msra.mxu0 %v5690_v44  ;;  %v5792_v44 = vld [vmem:[%s8498_s0 + $0x124] ss:$28 sps:$4 sm:$0xff]  }
  0x50   :  { %1135 = vmatprep.subr.bf16.mxu0 %v5698_v45  ;;  %v5791_v45 = vld [vmem:[%s8497_s1 + $0x294] ss:$8 sps:$4 sm:$0xff]  }
  0x52   :  { %1067 = vmatmul.mubr.bf16.gmra.mrb[8].mxu0 %v5695_v46  ;;  %v5789_v46 = vld [vmem:[%s8497_s1 + $0x290] ss:$8 sps:$4 sm:$0xff]  }
  0x53   :  { %1136 = vmatpush1.bf16.msra.mxu0 %v5696_v47  ;;  %1076 = vmatprep.mubr.bf16.mxu0 %v5702_v48  ;;  %v5797_v47 = vld [vmem:[%s8497_s1 + $0x2a4] ss:$8 sps:$4 sm:$0xff]   ;;  %v5794_v48 = vld [vmem:[%s8498_s0 + $0x120] ss:$28 sps:$4 sm:$0xff]  }
  0x54   :  { %1137 = vmatprep.subr.bf16.mxu0 %v5701_v49  ;;  %v5795_v49 = vld [vmem:[%s8497_s1 + $0x2a0] ss:$8 sps:$4 sm:$0xff]  }
  0x57   :  { %1138 = vmatpush1.bf16.msra.mxu0 %v5699_v50  ;;  %v5801_v50 = vld [vmem:[%s8498_s0 + $0x15c] ss:$28 sps:$4 sm:$0xff]  }
  0x58   :  { %1139 = vmatprep.subr.bf16.mxu0 %v5707_v51  ;;  %v5800_v51 = vld [vmem:[%s8497_s1 + $0x2b4] ss:$8 sps:$4 sm:$0xff]  }
  0x5a   :  { %1077 = vmatmul.mubr.bf16.gmra.mrb[12].mxu0 %v5704_v52  ;;  %v5798_v52 = vld [vmem:[%s8497_s1 + $0x2b0] ss:$8 sps:$4 sm:$0xff]  }
  0x5b   :  { %1140 = vmatpush1.bf16.msra.mxu0 %v5705_v53  ;;  %1086 = vmatprep.mubr.bf16.mxu0 %v5711_v54  ;;  %v5806_v53 = vld [vmem:[%s8497_s1 + $0x2c4] ss:$8 sps:$4 sm:$0xff]   ;;  %v5803_v54 = vld [vmem:[%s8498_s0 + $0x158] ss:$28 sps:$4 sm:$0xff]  }
  0x5c   :  { %1141 = vmatprep.subr.bf16.mxu0 %v5710_v55  ;;  %v5804_v55 = vld [vmem:[%s8497_s1 + $0x2c0] ss:$8 sps:$4 sm:$0xff]  }
  0x5f   :  { %1142 = vmatpush1.bf16.msra.mxu0 %v5708_v56  ;;  %v5810_v56 = vld [vmem:[%s8498_s0 + $0x194] ss:$28 sps:$4 sm:$0xff]  }
  0x60   :  { %1143 = vmatprep.subr.bf16.mxu0 %v5716_v58  ;;  %v5807_v58 = vld [vmem:[%s8497_s1 + $0x2d0] ss:$8 sps:$4 sm:$0xff]  }
  0x62   :  { %1087 = vmatmul.mubr.bf16.gmra.mrb[16].mxu0 %v5713_v57  ;;  %v5809_v57 = vld [vmem:[%s8497_s1 + $0x2d4] ss:$8 sps:$4 sm:$0xff]  }
  0x63   :  { %1144 = vmatpush1.bf16.msra.mxu0 %v5714_v59  ;;  %1096 = vmatprep.mubr.bf16.mxu0 %v5720_v60  ;;  %v5815_v59 = vld [vmem:[%s8497_s1 + $0x2e4] ss:$8 sps:$4 sm:$0xff]  }
  0x64   :  { %1145 = vmatprep.subr.bf16.mxu0 %v5719_v61  ;;  %v5812_v60 = vld [vmem:[%s8498_s0 + $0x190] ss:$28 sps:$4 sm:$0xff]   ;;  %v5813_v61 = vld [vmem:[%s8497_s1 + $0x2e0] ss:$8 sps:$4 sm:$0xff]  }
  0x67   :  { %1146 = vmatpush1.bf16.msra.mxu0 %v5717_v62  ;;  %v5821_v62 = vld [vmem:[%s8498_s0 + $0x14] ss:$28 sps:$4 sm:$0xff]  }
  0x68   :  { %1147 = vmatprep.subr.bf16.mxu0 %v5725_v63  ;;  %v5818_v63 = vld [vmem:[%s8497_s1 + $0x2f4] ss:$8 sps:$4 sm:$0xff]  }
  0x6a   :  { %1097 = vmatmul.mubr.bf16.gmra.mrb[20].mxu0 %v5722_v0  ;;  %v5816_v0 = vld [vmem:[%s8497_s1 + $0x2f0] ss:$8 sps:$4 sm:$0xff]  }
  0x6b   :  { %1148 = vmatpush1.bf16.msra.mxu0 %v5723_v1  ;;  %1106 = vmatprep.mubr.bf16.mxu0 %v5729_v2  ;;  %v5824_v1 = vld [vmem:[%s8497_s1 + $0x304] ss:$8 sps:$4 sm:$0xff]  }
  0x6c   :  { %1149 = vmatprep.subr.bf16.mxu0 %v5728_v3  ;;  %v5854_v2 = vld [vmem:[%s8499_s3 + $0x40] sm:$0xff]   ;;  %v5819_v3 = vld [vmem:[%s8498_s0 + $0x10] ss:$28 sps:$4 sm:$0xff]  }
  0x6d   :  { %5258 = vmatprep.subr.bf16.mxu1 %v5854_v2 }
  0x6f   :  { %1150 = vmatpush1.bf16.msra.mxu0 %v5726_v4  ;;  %v5855_v4 = vld [vmem:[%s8499_s3] sm:$0xff]  }
  0x70   :  { %1151 = vmatprep.subr.bf16.mxu0 %v5734_v5  ;;  %v5822_v5 = vld [vmem:[%s8497_s1 + $0x300] ss:$8 sps:$4 sm:$0xff]   ;;  %5259 = vmatpush3.bf16.msra.mxu1 %v5855_v4 }
  0x71   :  { %v5871_v4 = vld [vmem:[%s8500_s5 + $0x8] sm:$0xff]  }
  0x72   :  { %1107 = vmatmul.mubr.bf16.gmra.mrb[24].mxu0 %v5731_v6  ;;  %v5856_v6 = vld [vmem:[%s8499_s3 + $0x48] sm:$0xff]  }
  0x73   :  { %1152 = vmatpush1.bf16.msra.mxu0 %v5732_v7  ;;  %1116 = vmatprep.mubr.bf16.mxu0 %v5738_v8  ;;  %v5857_v7 = vld [vmem:[%s8499_s3 + $0x8] sm:$0xff]  }
  0x74   :  { %1153 = vmatprep.subr.bf16.mxu0 %v5737_v9  ;;  %v5825_v8 = vld [vmem:[%s8498_s0 + $0x4c] ss:$28 sps:$4 sm:$0xff]   ;;  %5260 = vmatprep.subr.bf16.mxu1 %v5856_v6  ;;  %v5858_v9 = vld [vmem:[%s8499_s3 + $0x50] sm:$0xff]  }
  0x75   :  { %5261 = vmatpush3.bf16.msra.mxu1 %v5857_v7 }
  0x76   :  { %5262 = vmatprep.subr.bf16.mxu1 %v5858_v9 }
  0x77   :  { %1154 = vmatpush1.bf16.msra.mxu0 %v5735_v10  ;;  %v5859_v10 = vld [vmem:[%s8499_s3 + $0x10] sm:$0xff]  }
  0x78   :  { %1155 = vmatprep.subr.bf16.mxu0 %v5743_v11  ;;  %v5860_v11 = vld [vmem:[%s8499_s3 + $0x58] sm:$0xff]  }
  0x79   :  { %5263 = vmatpush3.bf16.msra.mxu1 %v5859_v10 }
  0x7a   :  { %1117 = vmatmul.mubr.bf16.gmra.mrb[28].mxu0 %v5740_v12  ;;  %v5827_v12 = vld [vmem:[%s8498_s0 + $0x48] ss:$28 sps:$4 sm:$0xff]   ;;  %5264 = vmatprep.subr.bf16.mxu1 %v5860_v11 }
  0x7b   :  { %1156 = vmatpush1.bf16.msra.mxu0 %v5741_v13  ;;  %1159 = vmatprep.mubr.bf16.mxu0 %v5749_v14  ;;  %v5828_v13 = vld [vmem:[%s8498_s0 + $0x84] ss:$28 sps:$4 sm:$0xff]   ;;  %v5861_v14 = vld [vmem:[%s8499_s3 + $0x18] sm:$0xff]  }
  0x7c   :  { %1157 = vmatprep.subr.bf16.mxu0 %v5746_v15  ;;  %v5862_v15 = vld [vmem:[%s8499_s3 + $0x60] sm:$0xff]  }
  0x7d   :  { %5265 = vmatpush3.bf16.msra.mxu1 %v5861_v14 }
  0x7e   :  { %5266 = vmatprep.subr.bf16.mxu1 %v5862_v15 }
  0x7f   :  { %1158 = vmatpush1.bf16.msra.mxu0 %v5744_v16  ;;  %v5863_v16 = vld [vmem:[%s8499_s3 + $0x20] sm:$0xff]  }
  0x80   :  { %1240 = vmatprep.subr.bf16.mxu0 %v5752_v17  ;;  %v5864_v17 = vld [vmem:[%s8499_s3 + $0x68] sm:$0xff]  }
  0x81   :  { %5267 = vmatpush3.bf16.msra.mxu1 %v5863_v16 }
  0x82   :  { %1160 = vmatmul.mubr.bf16.vlgmr.msra.gmra.mrb[0].mxu0 %v5747_v18  ;;  %v5830_v18 = vld [vmem:[%s8498_s0 + $0x80] ss:$28 sps:$4 sm:$0xff]   ;;  %5268 = vmatprep.subr.bf16.mxu1 %v5864_v17 }
  0x83   :  { %1241 = vmatpush1.bf16.msra.mxu0 %v5750_v19  ;;  %1169 = vmatprep.mubr.bf16.mxu0 %v5756_v20  ;;  %v5831_v19 = vld [vmem:[%s8498_s0 + $0xbc] ss:$28 sps:$4 sm:$0xff]  }
  0x84   :  { %1242 = vmatprep.subr.bf16.mxu0 %v5755_v21  ;;  %v5833_v20 = vld [vmem:[%s8498_s0 + $0xb8] ss:$28 sps:$4 sm:$0xff]  }
  0x85   :  { %v5834_v21 = vld [vmem:[%s8498_s0 + $0xf4] ss:$28 sps:$4 sm:$0xff]  }
  0x87   :  { %1243 = vmatpush1.bf16.msra.mxu0 %v5753_v22  ;;  %v5836_v22 = vld [vmem:[%s8498_s0 + $0xf0] ss:$28 sps:$4 sm:$0xff]  }
  0x88   :  { %1244 = vmatprep.subr.bf16.mxu0 %v5761_v23  ;;  %v5837_v23 = vld [vmem:[%s8498_s0 + $0x12c] ss:$28 sps:$4 sm:$0xff]  }
  0x8a   :  { %1170 = vmatmul.mubr.bf16.gmra.mrb[4].mxu0 %v5758_v24  ;;  %v5839_v24 = vld [vmem:[%s8498_s0 + $0x128] ss:$28 sps:$4 sm:$0xff]  }
  0x8b   :  { %1245 = vmatpush1.bf16.msra.mxu0 %v5759_v25  ;;  %1179 = vmatprep.mubr.bf16.mxu0 %v5765_v26  ;;  %v5840_v25 = vld [vmem:[%s8498_s0 + $0x164] ss:$28 sps:$4 sm:$0xff]  }
  0x8c   :  { %1246 = vmatprep.subr.bf16.mxu0 %v5764_v27  ;;  %v5842_v26 = vld [vmem:[%s8498_s0 + $0x160] ss:$28 sps:$4 sm:$0xff]  }
  0x8d   :  { %v5843_v27 = vld [vmem:[%s8498_s0 + $0x19c] ss:$28 sps:$4 sm:$0xff]  }
  0x8f   :  { %1247 = vmatpush1.bf16.msra.mxu0 %v5762_v28  ;;  %v5845_v28 = vld [vmem:[%s8498_s0 + $0x198] ss:$28 sps:$4 sm:$0xff]  }
  0x90   :  { %1248 = vmatprep.subr.bf16.mxu0 %v5770_v29  ;;  %v6519_v29 = vmov 0  }
  0x92   :  { %1180 = vmatmul.mubr.bf16.gmra.mrb[8].mxu0 %v5767_v30  ;;  %v5846_v30 = vld [vmem:[%s8498_s0 + $0x18] ss:$28 sps:$4 sm:$0xff]  }
  0x93   :  { %1249 = vmatpush1.bf16.msra.mxu0 %v5768_v31  ;;  %1189 = vmatprep.mubr.bf16.mxu0 %v5774_v32  ;;  %v5847_v31 = vld [vmem:[%s8498_s0 + $0x50] ss:$28 sps:$4 sm:$0xff]   ;;  %v5848_v32 = vld [vmem:[%s8498_s0 + $0x88] ss:$28 sps:$4 sm:$0xff]  }
  0x94   :  { %1250 = vmatprep.subr.bf16.mxu0 %v5773_v33  ;;  %v5849_v33 = vld [vmem:[%s8498_s0 + $0xc0] ss:$28 sps:$4 sm:$0xff]  }
  0x97   :  { %1251 = vmatpush1.bf16.msra.mxu0 %v5771_v34  ;;  %v5850_v34 = vld [vmem:[%s8498_s0 + $0xf8] ss:$28 sps:$4 sm:$0xff]  }
  0x98   :  { %1252 = vmatprep.subr.bf16.mxu0 %v5779_v35  ;;  %v5851_v35 = vld [vmem:[%s8498_s0 + $0x130] ss:$28 sps:$4 sm:$0xff]  }
  0x9a   :  { %1190 = vmatmul.mubr.bf16.gmra.mrb[12].mxu0 %v5776_v36  ;;  %v5852_v36 = vld [vmem:[%s8498_s0 + $0x168] ss:$28 sps:$4 sm:$0xff]  }
  0x9b   :  { %1253 = vmatpush1.bf16.msra.mxu0 %v5777_v37  ;;  %1199 = vmatprep.mubr.bf16.mxu0 %v5783_v38  ;;  %v5853_v37 = vld [vmem:[%s8498_s0 + $0x1a0] ss:$28 sps:$4 sm:$0xff]   ;;  %v5865_v38 = vld [vmem:[%s8499_s3 + $0x28] sm:$0xff]  }
  0x9c   :  { %1254 = vmatprep.subr.bf16.mxu0 %v5782_v39  ;;  %5269 = vmatpush3.bf16.msra.mxu1 %v5865_v38  ;;  %v5866_v39 = vld [vmem:[%s8499_s3 + $0x70] sm:$0xff]  }
  0x9d   :  { %5270 = vmatprep.subr.bf16.mxu1 %v5866_v39 }
  0x9f   :  { %1255 = vmatpush1.bf16.msra.mxu0 %v5780_v40  ;;  %v5867_v40 = vld [vmem:[%s8499_s3 + $0x30] sm:$0xff]  }
  0xa0   :  { %1256 = vmatprep.subr.bf16.mxu0 %v5788_v41  ;;  %5271 = vmatpush3.bf16.msra.mxu1 %v5867_v40  ;;  %v5868_v41 = vld [vmem:[%s8499_s3 + $0x78] sm:$0xff]  }
  0xa1   :  { %5272 = vmatprep.subr.bf16.mxu1 %v5868_v41 }
  0xa2   :  { %1200 = vmatmul.mubr.bf16.gmra.mrb[16].mxu0 %v5785_v42  ;;  %v5869_v42 = vld [vmem:[%s8499_s3 + $0x38] sm:$0xff]  }
  0xa3   :  { %1257 = vmatpush1.bf16.msra.mxu0 %v5786_v43  ;;  %1209 = vmatprep.mubr.bf16.mxu0 %v5792_v44  ;;  %v5870_v43 = vld [vmem:[%s8500_s5] sm:$0xff]   ;;  %v209_v44 = vlaneseq }
  0xa4   :  { %1258 = vmatprep.subr.bf16.mxu0 %v5791_v45  ;;  %5273 = vmatpush3.bf16.msra.mxu1 %v5869_v42 }
  0xa5   :  { %5418 = vmatprep.subr.bf16.mxu1 %v5870_v43  ;;  %v7119_v45 = vshrl.u32 %v209_v44, 7 }
  0xa7   :  { %1259 = vmatpush1.bf16.msra.mxu0 %v5789_v46  ;;  %v7122_v46 = vsub.s32 0, %v7119_v45 }
  0xa8   :  { %1260 = vmatprep.subr.bf16.mxu0 %v5797_v47  ;;  %v207_v47 = vld [vmem:[%s8501_s2] sm:$0x3] }
  0xaa   :  { %1210 = vmatmul.mubr.bf16.gmra.mrb[20].mxu0 %v5794_v48  ;;  %v7128_v48 = vsub.s32 1, %v7119_v45 }
  0xab   :  { %1261 = vmatpush1.bf16.msra.mxu0 %v5795_v49  ;;  %1219 = vmatprep.mubr.bf16.mxu0 %v5801_v50  ;;  %v7131_v49 = vrot.slane %v207_v47, %v7122_v46 }
  0xac   :  { %1262 = vmatprep.subr.bf16.mxu0 %v5800_v51  ;;  %v7134_v50 = vrot.slane %v207_v47, %v7128_v48 }
  0xaf   :  { %1263 = vmatpush1.bf16.msra.mxu0 %v5798_v52 }
  0xb0   :  { %1264 = vmatprep.subr.bf16.mxu0 %v5806_v53 }
  0xb2   :  { %1220 = vmatmul.mubr.bf16.gmra.mrb[24].mxu0 %v5803_v54 }
  0xb3   :  { %1265 = vmatpush1.bf16.msra.mxu0 %v5804_v55  ;;  %1229 = vmatprep.mubr.bf16.mxu0 %v5810_v56 }
  0xb4   :  { %1266 = vmatprep.subr.bf16.mxu0 %v5809_v57 }
  0xb7   :  { %1267 = vmatpush1.bf16.msra.mxu0 %v5807_v58 }
  0xb8   :  { %1268 = vmatprep.subr.bf16.mxu0 %v5815_v59 }
  0xba   :  { %1230 = vmatmul.mubr.bf16.gmra.mrb[28].mxu0 %v5812_v60 }
  0xbb   :  { %1269 = vmatpush1.bf16.msra.mxu0 %v5813_v61  ;;  %1272 = vmatprep.mubr.bf16.mxu0 %v5821_v62 }
  0xbc   :  { %1270 = vmatprep.subr.bf16.mxu0 %v5818_v63 }
  0xbf   :  { %1271 = vmatpush1.bf16.msra.mxu0 %v5816_v0 }
  0xc0   :  { %1353 = vmatprep.subr.bf16.mxu0 %v5824_v1 }
  0xc2   :  { %1273 = vmatmul.mubr.bf16.vlgmr.msra.gmra.mrb[0].mxu0 %v5819_v3 }
  0xc3   :  { %1354 = vmatpush1.bf16.msra.mxu0 %v5822_v5  ;;  %1282 = vmatprep.mubr.bf16.mxu0 %v5825_v8 }
  0xca   :  { %1283 = vmatmul.mubr.bf16.gmra.mrb[4].mxu0 %v5827_v12  ;;  %v5872_v12 = vld [vmem:[%s8500_s5 + $0x10] sm:$0xff]  }
  0xcb   :  { %1292 = vmatprep.mubr.bf16.mxu0 %v5828_v13 }
  0xd2   :  { %1293 = vmatmul.mubr.bf16.gmra.mrb[8].mxu0 %v5830_v18 }
  0xd3   :  { %1302 = vmatprep.mubr.bf16.mxu0 %v5831_v19 }
  0xda   :  { %1303 = vmatmul.mubr.bf16.gmra.mrb[12].mxu0 %v5833_v20  ;;  %v5873_v20 = vld [vmem:[%s8500_s5 + $0x18] sm:$0xff]  }
  0xdb   :  { %1312 = vmatprep.mubr.bf16.mxu0 %v5834_v21 }
  0xe2   :  { %1313 = vmatmul.mubr.bf16.gmra.mrb[16].mxu0 %v5836_v22 }
  0xe3   :  { %1322 = vmatprep.mubr.bf16.mxu0 %v5837_v23 }
  0xea   :  { %1323 = vmatmul.mubr.bf16.gmra.mrb[20].mxu0 %v5839_v24 }
  0xeb   :  { %1332 = vmatprep.mubr.bf16.mxu0 %v5840_v25 }
  0xf2   :  { %1333 = vmatmul.mubr.bf16.gmra.mrb[24].mxu0 %v5842_v26 }
  0xf3   :  { %1342 = vmatprep.mubr.bf16.mxu0 %v5843_v27 }
  0xfa   :  { %1343 = vmatmul.mubr.bf16.gmra.mrb[28].mxu0 %v5845_v28  ;;  %v5874_v28 = vld [vmem:[%s8500_s5 + $0x20] sm:$0xff]  }
  0xfb   :  { %1385 = vmatprep.mubr.bf16.mxu0 %v6519_v29 }
 0x102   :  { %4847 = vmatmul.mubr.msk.bf16.vlgmr.msra.gmra.mrb[0].mxu0 %vm989_vm0, %v5846_v30 }
 0x103   :  { %1395 = vmatprep.mubr.bf16.mxu0 %v6519_v29 }
 0x10a   :  { %4848 = vmatmul.mubr.msk.bf16.gmra.mrb[4].mxu0 %vm989_vm0, %v5847_v31 }
 0x10b   :  { %1405 = vmatprep.mubr.bf16.mxu0 %v6519_v29 }
 0x112   :  { %4849 = vmatmul.mubr.msk.bf16.gmra.mrb[8].mxu0 %vm989_vm0, %v5848_v32 }
 0x113   :  { %1415 = vmatprep.mubr.bf16.mxu0 %v6519_v29 }
 0x11a   :  { %4850 = vmatmul.mubr.msk.bf16.gmra.mrb[12].mxu0 %vm989_vm0, %v5849_v33 }
 0x11b   :  { %1425 = vmatprep.mubr.bf16.mxu0 %v6519_v29 }
 0x122   :  { %4851 = vmatmul.mubr.msk.bf16.gmra.mrb[16].mxu0 %vm989_vm0, %v5850_v34 }
 0x123   :  { %1435 = vmatprep.mubr.bf16.mxu0 %v6519_v29 }
 0x12a   :  { %4852 = vmatmul.mubr.msk.bf16.gmra.mrb[20].mxu0 %vm989_vm0, %v5851_v35 }
 0x12b   :  { %1445 = vmatprep.mubr.bf16.mxu0 %v6519_v29 }
 0x132   :  { %4853 = vmatmul.mubr.msk.bf16.gmra.mrb[24].mxu0 %vm989_vm0, %v5852_v36 }
 0x133   :  { %1455 = vmatprep.mubr.bf16.mxu0 %v6519_v29 }
 0x13a   :  { %4854 = vmatmul.mubr.msk.bf16.gmra.mrb[28].mxu0 %vm989_vm0, %v5853_v37  ;;  %v5875_v37 = vld [vmem:[%s8500_s5 + $0x28] sm:$0xff]  }
 0x1d5   :  { %v1387_v51 = vpop.f32.mrb[0].mxu0 }
 0x1d6   :  { %v5498_v52 = vadd.f32 %v1387_v51, %v7131_v49  ;;  %v1389_v53 = vpop.f32.mrb[1].mxu0 }
 0x1d7   :  { %v5499_v54 = vadd.f32 %v1389_v53, %v7134_v50  ;;  %v1391_v55 = vpop.f32.mrb[2].mxu0 }
 0x1d8   :  { %v5500_v56 = vadd.f32 %v1391_v55, %v7131_v49  ;;  %v1393_v57 = vpop.f32.mrb[3].mxu0  ;;  %v1466_v59 = vmax.f32 %v5498_v52, 0.0 }
 0x1d9   :  { %v5501_v58 = vadd.f32 %v1393_v57, %v7134_v50  ;;  %v1467_v61 = vmax.f32 %v5499_v54, 0.0 }
 0x1da   :  { %v1468_v60 = vmax.f32 %v5500_v56, 0.0 }
 0x1db   :  { %v1469_v62 = vmax.f32 %v5501_v58, 0.0 }
 0x1dc   :  { %v1498_v63 = vpack.c.bf16 %v1468_v60, %v1466_v59 }
 0x1dd   :  { %v1397_v0 = vpop.f32.mrb[4].mxu0  ;;  %v1499_v1 = vpack.c.bf16 %v1469_v62, %v1467_v61 }
 0x1de   :  { %v5502_v2 = vadd.f32 %v1397_v0, %v7131_v49  ;;  %v1399_v3 = vpop.f32.mrb[5].mxu0 }
 0x1df   :  { %v5503_v5 = vadd.f32 %v1399_v3, %v7134_v50  ;;  %v1401_v6 = vpop.f32.mrb[6].mxu0  ;;  %1681 = vmatprep.mubr.bf16.mxu1 %v1499_v1 }
 0x1e0   :  { %v5504_v7 = vadd.f32 %v1401_v6, %v7131_v49  ;;  %v1403_v8 = vpop.f32.mrb[7].mxu0  ;;  %1682 = vmatmul.mubr.bf16.vlgmr.msra.gmra.mrb[0].mxu1 %v1498_v63  ;;  %v1470_v10 = vmax.f32 %v5502_v2, 0.0 }
 0x1e1   :  { %v5505_v9 = vadd.f32 %v1403_v8, %v7134_v50  ;;  %5419 = vmatpush3.bf16.msra.mxu1 %v5870_v43  ;;  %v1471_v13 = vmax.f32 %v5503_v5, 0.0 }
 0x1e2   :  { %v1472_v11 = vmax.f32 %v5504_v7, 0.0  ;;  %5420 = vmatprep.subr.bf16.mxu1 %v5871_v4 }
 0x1e3   :  { %v1473_v14 = vmax.f32 %v5505_v9, 0.0 }
 0x1e4   :  { %v1500_v15 = vpack.c.bf16 %v1472_v11, %v1470_v10 }
 0x1e5   :  { %v1501_v16 = vpack.c.bf16 %v1473_v14, %v1471_v13  ;;  %v1407_v17 = vpop.f32.mrb[8].mxu0  ;;  %5421 = vmatpush3.bf16.msra.mxu1 %v5871_v4 }
 0x1e6   :  { %v5506_v18 = vadd.f32 %v1407_v17, %v7131_v49  ;;  %v1409_v19 = vpop.f32.mrb[9].mxu0  ;;  %5422 = vmatprep.subr.bf16.mxu1 %v5872_v12 }
 0x1e7   :  { %v5507_v21 = vadd.f32 %v1409_v19, %v7134_v50  ;;  %v1411_v22 = vpop.f32.mrb[10].mxu0  ;;  %1689 = vmatprep.mubr.bf16.mxu1 %v1501_v16 }
 0x1e8   :  { %v5508_v23 = vadd.f32 %v1411_v22, %v7131_v49  ;;  %v1413_v24 = vpop.f32.mrb[11].mxu0  ;;  %1690 = vmatmul.mubr.bf16.gmra.mrb[4].mxu1 %v1500_v15  ;;  %v1474_v26 = vmax.f32 %v5506_v18, 0.0 }
 0x1e9   :  { %v5509_v25 = vadd.f32 %v1413_v24, %v7134_v50  ;;  %5423 = vmatpush3.bf16.msra.mxu1 %v5872_v12  ;;  %v1475_v30 = vmax.f32 %v5507_v21, 0.0 }
 0x1ea   :  { %v1476_v27 = vmax.f32 %v5508_v23, 0.0  ;;  %5424 = vmatprep.subr.bf16.mxu1 %v5873_v20 }
 0x1eb   :  { %v1477_v31 = vmax.f32 %v5509_v25, 0.0 }
 0x1ec   :  { %v1502_v32 = vpack.c.bf16 %v1476_v27, %v1474_v26 }
 0x1ed   :  { %v1503_v33 = vpack.c.bf16 %v1477_v31, %v1475_v30  ;;  %v1417_v34 = vpop.f32.mrb[12].mxu0  ;;  %5425 = vmatpush3.bf16.msra.mxu1 %v5873_v20 }
 0x1ee   :  { %v5510_v35 = vadd.f32 %v1417_v34, %v7131_v49  ;;  %v1419_v36 = vpop.f32.mrb[13].mxu0  ;;  %5426 = vmatprep.subr.bf16.mxu1 %v5874_v28 }
 0x1ef   :  { %v5511_v38 = vadd.f32 %v1419_v36, %v7134_v50  ;;  %v1421_v39 = vpop.f32.mrb[14].mxu0  ;;  %1697 = vmatprep.mubr.bf16.mxu1 %v1503_v33 }
 0x1f0   :  { %v5512_v40 = vadd.f32 %v1421_v39, %v7131_v49  ;;  %v1423_v41 = vpop.f32.mrb[15].mxu0  ;;  %1698 = vmatmul.mubr.bf16.gmra.mrb[8].mxu1 %v1502_v32  ;;  %v1478_v43 = vmax.f32 %v5510_v35, 0.0 }
 0x1f1   :  { %v5513_v42 = vadd.f32 %v1423_v41, %v7134_v50  ;;  %5427 = vmatpush3.bf16.msra.mxu1 %v5874_v28  ;;  %v1479_v47 = vmax.f32 %v5511_v38, 0.0 }
 0x1f2   :  { %v1480_v44 = vmax.f32 %v5512_v40, 0.0  ;;  %5428 = vmatprep.subr.bf16.mxu1 %v5875_v37 }
 0x1f3   :  { %v1481_v51 = vmax.f32 %v5513_v42, 0.0 }
 0x1f4   :  { %v1504_v52 = vpack.c.bf16 %v1480_v44, %v1478_v43 }
 0x1f5   :  { %v1505_v53 = vpack.c.bf16 %v1481_v51, %v1479_v47  ;;  %v1427_v54 = vpop.f32.mrb[16].mxu0  ;;  %5429 = vmatpush3.bf16.msra.mxu1 %v5875_v37 }
 0x1f6   :  { %v5514_v55 = vadd.f32 %v1427_v54, %v7131_v49  ;;  %v1429_v56 = vpop.f32.mrb[17].mxu0  ;;  %v7195_v54 = vld [vmem:[%s8503_s4] ss:$0 sm:$0xff] }
 0x1f7   :  { %v5515_v57 = vadd.f32 %v1429_v56, %v7134_v50  ;;  %v1431_v58 = vpop.f32.mrb[18].mxu0  ;;  %1705 = vmatprep.mubr.bf16.mxu1 %v1505_v53 }
 0x1f8   :  { %v5516_v59 = vadd.f32 %v1431_v58, %v7131_v49  ;;  %v1433_v60 = vpop.f32.mrb[19].mxu0  ;;  %1706 = vmatmul.mubr.bf16.gmra.mrb[12].mxu1 %v1504_v52  ;;  %v1482_v62 = vmax.f32 %v5514_v55, 0.0  ;;  %v5876_v52 = vld [vmem:[%s8500_s5 + $0x30] sm:$0xff]  }
 0x1f9   :  { %v5517_v61 = vadd.f32 %v1433_v60, %v7134_v50  ;;  %v1483_v0 = vmax.f32 %v5515_v57, 0.0  ;;  %5430 = vmatprep.subr.bf16.mxu1 %v5876_v52 }
 0x1fa   :  { %v1484_v63 = vmax.f32 %v5516_v59, 0.0  ;;  %5431 = vmatpush3.bf16.msra.mxu1 %v5876_v52 }
 0x1fb   :  { %v1485_v1 = vmax.f32 %v5517_v61, 0.0 }
 0x1fc   :  { %v1506_v2 = vpack.c.bf16 %v1484_v63, %v1482_v62 }
 0x1fd   :  { %v1507_v3 = vpack.c.bf16 %v1485_v1, %v1483_v0  ;;  %v1437_v4 = vpop.f32.mrb[20].mxu0 }
 0x1fe   :  { %v5518_v5 = vadd.f32 %v1437_v4, %v7131_v49  ;;  %v1439_v6 = vpop.f32.mrb[21].mxu0 }
 0x1ff   :  { %v5519_v7 = vadd.f32 %v1439_v6, %v7134_v50  ;;  %v1441_v8 = vpop.f32.mrb[22].mxu0  ;;  %1713 = vmatprep.mubr.bf16.mxu1 %v1507_v3 }
 0x200   :  { %v5520_v9 = vadd.f32 %v1441_v8, %v7131_v49  ;;  %v1443_v10 = vpop.f32.mrb[23].mxu0  ;;  %1714 = vmatmul.mubr.bf16.gmra.mrb[16].mxu1 %v1506_v2  ;;  %v1486_v12 = vmax.f32 %v5518_v5, 0.0 }
 0x201   :  { %v5521_v11 = vadd.f32 %v1443_v10, %v7134_v50  ;;  %v1487_v14 = vmax.f32 %v5519_v7, 0.0 }
 0x202   :  { %v1488_v13 = vmax.f32 %v5520_v9, 0.0 }
 0x203   :  { %v1489_v15 = vmax.f32 %v5521_v11, 0.0 }
 0x204   :  { %v1508_v16 = vpack.c.bf16 %v1488_v13, %v1486_v12 }
 0x205   :  { %v1509_v17 = vpack.c.bf16 %v1489_v15, %v1487_v14  ;;  %v1447_v18 = vpop.f32.mrb[24].mxu0 }
 0x206   :  { %v5522_v19 = vadd.f32 %v1447_v18, %v7131_v49  ;;  %v1449_v20 = vpop.f32.mrb[25].mxu0 }
 0x207   :  { %v5523_v21 = vadd.f32 %v1449_v20, %v7134_v50  ;;  %v1451_v22 = vpop.f32.mrb[26].mxu0  ;;  %1721 = vmatprep.mubr.bf16.mxu1 %v1509_v17 }
 0x208   :  { %v5524_v23 = vadd.f32 %v1451_v22, %v7131_v49  ;;  %v1453_v24 = vpop.f32.mrb[27].mxu0  ;;  %1722 = vmatmul.mubr.bf16.gmra.mrb[20].mxu1 %v1508_v16  ;;  %v1490_v26 = vmax.f32 %v5522_v19, 0.0  ;;  %v5879_v16 = vld [vmem:[%s8502_s7 + $0x8] sm:$0xff]  }
 0x209   :  { %v5525_v25 = vadd.f32 %v1453_v24, %v7134_v50  ;;  %v1491_v28 = vmax.f32 %v5523_v21, 0.0  ;;  %v5880_v21 = vld [vmem:[%s8502_s7 + $0x10] sm:$0xff]  }
 0x20a   :  { %v1492_v27 = vmax.f32 %v5524_v23, 0.0 }
 0x20b   :  { %v1493_v30 = vmax.f32 %v5525_v25, 0.0 }
 0x20c   :  { %v1510_v31 = vpack.c.bf16 %v1492_v27, %v1490_v26 }
 0x20d   :  { %v1511_v32 = vpack.c.bf16 %v1493_v30, %v1491_v28  ;;  %v1457_v33 = vpop.f32.mrb[28].mxu0  ;;  %v5881_v30 = vld [vmem:[%s8502_s7 + $0x18] sm:$0xff]  }
 0x20e   :  { %v5526_v34 = vadd.f32 %v1457_v33, %v7131_v49  ;;  %v1459_v35 = vpop.f32.mrb[29].mxu0 }
 0x20f   :  { %v5527_v36 = vadd.f32 %v1459_v35, %v7134_v50  ;;  %v1461_v37 = vpop.f32.mrb[30].mxu0  ;;  %1729 = vmatprep.mubr.bf16.mxu1 %v1511_v32  ;;  %v5882_v35 = vld [vmem:[%s8502_s7 + $0x20] sm:$0xff]  }
 0x210   :  { %v5528_v38 = vadd.f32 %v1461_v37, %v7131_v49  ;;  %v1463_v39 = vpop.f32.mrb[31].mxu0  ;;  %1730 = vmatmul.mubr.bf16.gmra.mrb[24].mxu1 %v1510_v31  ;;  %v1494_v41 = vmax.f32 %v5526_v34, 0.0  ;;  %v5877_v49 = vld [vmem:[%s8500_s5 + $0x38] sm:$0xff]  }
 0x211   :  { %v5529_v40 = vadd.f32 %v1463_v39, %v7134_v50  ;;  %v1495_v43 = vmax.f32 %v5527_v36, 0.0  ;;  %5432 = vmatprep.subr.bf16.mxu1 %v5877_v49  ;;  %v5878_v50 = vld [vmem:[%s8502_s7] sm:$0xff]  }
 0x212   :  { %v1496_v42 = vmax.f32 %v5528_v38, 0.0  ;;  %5433 = vmatpush3.bf16.msra.mxu1 %v5877_v49 }
 0x213   :  { %v1497_v44 = vmax.f32 %v5529_v40, 0.0  ;;  %5450 = vmatprep.subr.bf16.mxu1 %v5878_v50 }
 0x214   :  { %v1512_v47 = vpack.c.bf16 %v1496_v42, %v1494_v41 }
 0x215   :  { %v1513_v51 = vpack.c.bf16 %v1497_v44, %v1495_v43  ;;  %v5883_v43 = vld [vmem:[%s8502_s7 + $0x28] sm:$0xff]  }
 0x217   :  { %1737 = vmatprep.mubr.bf16.mxu1 %v1513_v51 }
 0x218   :  { %1738 = vmatmul.mubr.bf16.gmra.mrb[28].mxu1 %v1512_v47 }
 0x2b3   :  { %v5274_v53 = vpop.f32.mrb[0].mxu1 }
 0x2b4   :  { %v5275_v55 = vpop.f32.mrb[1].mxu1 }
 0x2b5   :  { %v5276_v56 = vadd.f32 %v5275_v55, %v5274_v53  ;;  %v5277_v57 = vpop.f32.mrb[2].mxu1 }
 0x2b6   :  { %v5278_v58 = vpop.f32.mrb[3].mxu1 }
 0x2b7   :  { %v1684_v59 = vadd.f32 %v5276_v56, %v7195_v54  ;;  %v5279_v60 = vadd.f32 %v5278_v58, %v5277_v57 }
 0x2b9   :  { %v1687_v61 = vadd.f32 %v5279_v60, %v7195_v54  ;;  %v1746_v62 = vmax.f32 %v1684_v59, 0.0 }
 0x2bb   :  { %v1747_v63 = vmax.f32 %v1687_v61, 0.0  ;;  %v5280_v0 = vpop.f32.mrb[4].mxu1 }
 0x2bc   :  { %v5281_v1 = vpop.f32.mrb[5].mxu1 }
 0x2bd   :  { %v5282_v2 = vadd.f32 %v5281_v1, %v5280_v0  ;;  %v5283_v3 = vpop.f32.mrb[6].mxu1  ;;  %v1762_v4 = vpack.c.bf16 %v1747_v63, %v1746_v62 }
 0x2be   :  { %v5284_v5 = vpop.f32.mrb[7].mxu1 }
 0x2bf   :  { %v1692_v6 = vadd.f32 %v5282_v2, %v7195_v54  ;;  %v5285_v7 = vadd.f32 %v5284_v5, %v5283_v3  ;;  %5434 = vmatprep.mubr.bf16.mxu1 %v1762_v4 }
 0x2c1   :  { %v1695_v8 = vadd.f32 %v5285_v7, %v7195_v54  ;;  %v1748_v9 = vmax.f32 %v1692_v6, 0.0 }
 0x2c3   :  { %v1749_v10 = vmax.f32 %v1695_v8, 0.0  ;;  %v5286_v11 = vpop.f32.mrb[8].mxu1 }
 0x2c4   :  { %v5287_v12 = vpop.f32.mrb[9].mxu1 }
 0x2c5   :  { %v1763_v13 = vpack.c.bf16 %v1749_v10, %v1748_v9  ;;  %v5288_v14 = vadd.f32 %v5287_v12, %v5286_v11  ;;  %v5289_v15 = vpop.f32.mrb[10].mxu1 }
 0x2c6   :  { %v5290_v17 = vpop.f32.mrb[11].mxu1 }
 0x2c7   :  { %v1700_v18 = vadd.f32 %v5288_v14, %v7195_v54  ;;  %v5291_v19 = vadd.f32 %v5290_v17, %v5289_v15  ;;  %5435 = vmatmul.mubr.bf16.vlgmr.msra.gmra.mrb[32].mxu1 %v1763_v13 }
 0x2c8   :  { %5451 = vmatpush3.bf16.msra.mxu1 %v5878_v50 }
 0x2c9   :  { %v1703_v20 = vadd.f32 %v5291_v19, %v7195_v54  ;;  %5452 = vmatprep.subr.bf16.mxu1 %v5879_v16  ;;  %v1750_v22 = vmax.f32 %v1700_v18, 0.0 }
 0x2cb   :  { %v1751_v23 = vmax.f32 %v1703_v20, 0.0  ;;  %v5292_v24 = vpop.f32.mrb[12].mxu1 }
 0x2cc   :  { %v5293_v25 = vpop.f32.mrb[13].mxu1  ;;  %5453 = vmatpush3.bf16.msra.mxu1 %v5879_v16 }
 0x2cd   :  { %v5294_v26 = vadd.f32 %v5293_v25, %v5292_v24  ;;  %v5295_v27 = vpop.f32.mrb[14].mxu1  ;;  %v1764_v28 = vpack.c.bf16 %v1751_v23, %v1750_v22  ;;  %5454 = vmatprep.subr.bf16.mxu1 %v5880_v21  ;;  %v5884_v24 = vld [vmem:[%s8502_s7 + $0x30] sm:$0xff]   ;;  %v5885_v25 = vld [vmem:[%s8502_s7 + $0x38] sm:$0xff]  }
 0x2ce   :  { %v5296_v31 = vpop.f32.mrb[15].mxu1 }
 0x2cf   :  { %v1708_v32 = vadd.f32 %v5294_v26, %v7195_v54  ;;  %v5297_v33 = vadd.f32 %v5296_v31, %v5295_v27  ;;  %5438 = vmatprep.mubr.bf16.mxu1 %v1764_v28  ;;  %v7240_v26 = vld [vmem:[%s8505_s6] ss:$0 sm:$0xff] }
 0x2d0   :  { %5455 = vmatpush3.bf16.msra.mxu1 %v5880_v21 }
 0x2d1   :  { %v1711_v34 = vadd.f32 %v5297_v33, %v7195_v54  ;;  %5456 = vmatprep.subr.bf16.mxu1 %v5881_v30  ;;  %v1752_v36 = vmax.f32 %v1708_v32, 0.0 }
 0x2d3   :  { %v1753_v37 = vmax.f32 %v1711_v34, 0.0  ;;  %v5298_v38 = vpop.f32.mrb[16].mxu1 }
 0x2d4   :  { %v5299_v39 = vpop.f32.mrb[17].mxu1  ;;  %5457 = vmatpush3.bf16.msra.mxu1 %v5881_v30 }
 0x2d5   :  { %v5300_v40 = vadd.f32 %v5299_v39, %v5298_v38  ;;  %v5301_v41 = vpop.f32.mrb[18].mxu1  ;;  %v1765_v42 = vpack.c.bf16 %v1753_v37, %v1752_v36  ;;  %5458 = vmatprep.subr.bf16.mxu1 %v5882_v35 }
 0x2d6   :  { %v5302_v44 = vpop.f32.mrb[19].mxu1 }
 0x2d7   :  { %v1716_v47 = vadd.f32 %v5300_v40, %v7195_v54  ;;  %v5303_v51 = vadd.f32 %v5302_v44, %v5301_v41  ;;  %5439 = vmatmul.mubr.bf16.gmra.mrb[36].mxu1 %v1765_v42  ;;  %v5886_v42 = vld [vmem:[%s8504_s9] ss:$8 sps:$4 sm:$0xff]   ;;  %v5889_v44 = vld [vmem:[%s8504_s9 + $0x10] ss:$8 sps:$4 sm:$0xff]  }
 0x2d8   :  { %5459 = vmatpush3.bf16.msra.mxu1 %v5882_v35 }
 0x2d9   :  { %v1719_v52 = vadd.f32 %v5303_v51, %v7195_v54  ;;  %5460 = vmatprep.subr.bf16.mxu1 %v5883_v43  ;;  %v1754_v49 = vmax.f32 %v1716_v47, 0.0  ;;  %v5894_v47 = vld [vmem:[%s8504_s9 + $0x24] ss:$8 sps:$4 sm:$0xff]  }
 0x2db   :  { %v1755_v50 = vmax.f32 %v1719_v52, 0.0  ;;  %v5304_v53 = vpop.f32.mrb[20].mxu1  ;;  %v5892_v52 = vld [vmem:[%s8504_s9 + $0x20] ss:$8 sps:$4 sm:$0xff]  }
 0x2dc   :  { %v5305_v55 = vpop.f32.mrb[21].mxu1  ;;  %5461 = vmatpush3.bf16.msra.mxu1 %v5883_v43  ;;  %v5891_v43 = vld [vmem:[%s8504_s9 + $0x14] ss:$8 sps:$4 sm:$0xff]  }
 0x2dd   :  { %v5306_v56 = vadd.f32 %v5305_v55, %v5304_v53  ;;  %v5307_v57 = vpop.f32.mrb[22].mxu1  ;;  %v1766_v58 = vpack.c.bf16 %v1755_v50, %v1754_v49  ;;  %5462 = vmatprep.subr.bf16.mxu1 %v5884_v24  ;;  %v5897_v53 = vld [vmem:[%s8504_s9 + $0x34] ss:$8 sps:$4 sm:$0xff]  }
 0x2de   :  { %v5308_v59 = vpop.f32.mrb[23].mxu1 }
 0x2df   :  { %v1724_v60 = vadd.f32 %v5306_v56, %v7195_v54  ;;  %v5309_v61 = vadd.f32 %v5308_v59, %v5307_v57  ;;  %5442 = vmatprep.mubr.bf16.mxu1 %v1766_v58 }
 0x2e0   :  { %5463 = vmatpush3.bf16.msra.mxu1 %v5884_v24 }
 0x2e1   :  { %v1727_v62 = vadd.f32 %v5309_v61, %v7195_v54  ;;  %v1756_v63 = vmax.f32 %v1724_v60, 0.0  ;;  %5464 = vmatprep.subr.bf16.mxu1 %v5885_v25  ;;  %v5895_v60 = vld [vmem:[%s8504_s9 + $0x30] ss:$8 sps:$4 sm:$0xff]  }
 0x2e3   :  { %v1757_v0 = vmax.f32 %v1727_v62, 0.0  ;;  %v5310_v1 = vpop.f32.mrb[24].mxu1 }
 0x2e4   :  { %v5311_v2 = vpop.f32.mrb[25].mxu1  ;;  %5465 = vmatpush3.bf16.msra.mxu1 %v5885_v25 }
 0x2e5   :  { %v5312_v3 = vadd.f32 %v5311_v2, %v5310_v1  ;;  %v5313_v4 = vpop.f32.mrb[26].mxu1  ;;  %v1767_v5 = vpack.c.bf16 %v1757_v0, %v1756_v63  ;;  %v5900_v63 = vld [vmem:[%s8504_s9 + $0x44] ss:$8 sps:$4 sm:$0xff]  }
 0x2e6   :  { %v5314_v6 = vpop.f32.mrb[27].mxu1 }
 0x2e7   :  { %v1732_v7 = vadd.f32 %v5312_v3, %v7195_v54  ;;  %v5315_v8 = vadd.f32 %v5314_v6, %v5313_v4  ;;  %5443 = vmatmul.mubr.bf16.gmra.mrb[40].mxu1 %v1767_v5  ;;  %v5898_v4 = vld [vmem:[%s8504_s9 + $0x40] ss:$8 sps:$4 sm:$0xff]   ;;  %v5903_v5 = vld [vmem:[%s8504_s9 + $0x54] ss:$8 sps:$4 sm:$0xff]   ;;  %v5901_v6 = vld [vmem:[%s8504_s9 + $0x50] ss:$8 sps:$4 sm:$0xff]  }
 0x2e9   :  { %v1735_v9 = vadd.f32 %v5315_v8, %v7195_v54  ;;  %v1758_v10 = vmax.f32 %v1732_v7, 0.0 }
 0x2eb   :  { %v1759_v11 = vmax.f32 %v1735_v9, 0.0  ;;  %v5316_v12 = vpop.f32.mrb[28].mxu1 }
 0x2ec   :  { %v5317_v13 = vpop.f32.mrb[29].mxu1 }
 0x2ed   :  { %v5318_v14 = vadd.f32 %v5317_v13, %v5316_v12  ;;  %v5319_v15 = vpop.f32.mrb[30].mxu1  ;;  %v1768_v16 = vpack.c.bf16 %v1759_v11, %v1758_v10 }
 0x2ee   :  { %v5320_v17 = vpop.f32.mrb[31].mxu1 }
 0x2ef   :  { %v1740_v18 = vadd.f32 %v5318_v14, %v7195_v54  ;;  %v5321_v19 = vadd.f32 %v5320_v17, %v5319_v15  ;;  %5446 = vmatprep.mubr.bf16.mxu1 %v1768_v16 }
 0x2f1   :  { %v1743_v20 = vadd.f32 %v5321_v19, %v7195_v54  ;;  %v1760_v21 = vmax.f32 %v1740_v18, 0.0  ;;  %v5888_v54 = vld [vmem:[%s8504_s9 + $0x4] ss:$8 sps:$4 sm:$0xff]  }
 0x2f2   :  { %2262 = vmatprep.subr.bf16.mxu1 %v5888_v54 }
 0x2f3   :  { %v1761_v22 = vmax.f32 %v1743_v20, 0.0 }
 0x2f5   :  { %v1769_v23 = vpack.c.bf16 %v1761_v22, %v1760_v21 }
 0x2f7   :  { %5447 = vmatmul.mubr.bf16.gmra.mrb[44].mxu1 %v1769_v23 }
 0x39a   :  { %v5436_v27 = vpop.f32.mrb[32].mxu1 }
 0x39b   :  { %v1884_v28 = vadd.f32 %v5436_v27, %v7240_v26  ;;  %v1875_v30 = vpop.f32.mrb[33].mxu1 }
 0x39c   :  { %v1876_v31 = vadd.f32 %v7240_v26, %v1875_v30  ;;  %v5437_v32 = vpop.f32.mrb[34].mxu1 }
 0x39d   :  { %v1887_v33 = vadd.f32 %v5437_v32, %v7240_v26  ;;  %v1878_v34 = vpop.f32.mrb[35].mxu1  ;;  %v1940_v36 = vmax.f32 %v1884_v28, 0.0 }
 0x39e   :  { %v1879_v35 = vadd.f32 %v7240_v26, %v1878_v34  ;;  %v1938_v38 = vmax.f32 %v1876_v31, 0.0 }
 0x39f   :  { %v1941_v37 = vmax.f32 %v1887_v33, 0.0 }
 0x3a0   :  { %v1939_v39 = vmax.f32 %v1879_v35, 0.0 }
 0x3a1   :  { %v1955_v40 = vpack.c.bf16 %v1941_v37, %v1940_v36  ;;  %v5906_v36 = vld [vmem:[%s8504_s9 + $0x64] ss:$8 sps:$4 sm:$0xff]   ;;  %v5904_v37 = vld [vmem:[%s8504_s9 + $0x60] ss:$8 sps:$4 sm:$0xff]  }
 0x3a2   :  { %v1954_v41 = vpack.c.bf16 %v1939_v39, %v1938_v38  ;;  %v5907_v38 = vld [vmem:[%s8504_s9 + $0x70] ss:$8 sps:$4 sm:$0xff]   ;;  %v5912_v39 = vld [vmem:[%s8506_s11 + $0x4] ss:$28 sps:$4 sm:$0xff]  }
 0x3a4   :  { %5466 = vmatprep.mubr.bf16.mxu1 %v1954_v41  ;;  %v5915_v41 = vld [vmem:[%s8506_s11 + $0x14] ss:$28 sps:$4 sm:$0xff]  }
 0x3a5   :  { %5467 = vmatmul.mubr.bf16.vlgmr.msra.gmra.mrb[48].mxu1 %v1955_v40  ;;  %v5913_v40 = vld [vmem:[%s8506_s11 + $0x10] ss:$28 sps:$4 sm:$0xff]   ;;  %3390 = vmatprep.subr.bf16.mxu0 %v5915_v41 }
 0x3a6   :  { %2263 = vmatpush1.bf16.msra.mxu1 %v5886_v42  ;;  %v5919_v42 = vld [vmem:[%s8506_s11 + $0x48] ss:$28 sps:$4 sm:$0xff]   ;;  %3391 = vmatpush1.bf16.msra.mxu0 %v5913_v40 }
 0x3a7   :  { %2264 = vmatprep.subr.bf16.mxu1 %v5891_v43  ;;  %v5921_v43 = vld [vmem:[%s8506_s11 + $0x4c] ss:$28 sps:$4 sm:$0xff]  }
 0x3a8   :  { %3392 = vmatprep.subr.bf16.mxu0 %v5921_v43 }
 0x3aa   :  { %v5440_v51 = vpop.f32.mrb[36].mxu1  ;;  %2265 = vmatpush1.bf16.msra.mxu1 %v5889_v44  ;;  %v5927_v44 = vld [vmem:[%s8506_s11 + $0x84] ss:$28 sps:$4 sm:$0xff]   ;;  %3393 = vmatpush1.bf16.msra.mxu0 %v5919_v42 }
 0x3ab   :  { %v1900_v49 = vadd.f32 %v5440_v51, %v7240_v26  ;;  %v1891_v50 = vpop.f32.mrb[37].mxu1  ;;  %2266 = vmatprep.subr.bf16.mxu1 %v5894_v47  ;;  %v5925_v47 = vld [vmem:[%s8506_s11 + $0x80] ss:$28 sps:$4 sm:$0xff]   ;;  %3394 = vmatprep.subr.bf16.mxu0 %v5927_v44 }
 0x3ac   :  { %v1892_v55 = vadd.f32 %v7240_v26, %v1891_v50  ;;  %v5441_v56 = vpop.f32.mrb[38].mxu1  ;;  %v5933_v51 = vld [vmem:[%s8506_s11 + $0xbc] ss:$28 sps:$4 sm:$0xff]   ;;  %v5937_v50 = vld [vmem:[%s8506_s11 + $0xf0] ss:$28 sps:$4 sm:$0xff]  }
 0x3ad   :  { %v1903_v57 = vadd.f32 %v5441_v56, %v7240_v26  ;;  %v1894_v58 = vpop.f32.mrb[39].mxu1  ;;  %v1944_v61 = vmax.f32 %v1900_v49, 0.0  ;;  %v5939_v49 = vld [vmem:[%s8506_s11 + $0xf4] ss:$28 sps:$4 sm:$0xff]   ;;  %v5951_v56 = vld [vmem:[%s8506_s11 + $0x164] ss:$28 sps:$4 sm:$0xff]  }
 0x3ae   :  { %v1895_v59 = vadd.f32 %v7240_v26, %v1894_v58  ;;  %2267 = vmatpush1.bf16.msra.mxu1 %v5892_v52  ;;  %v1942_v0 = vmax.f32 %v1892_v55, 0.0  ;;  %3395 = vmatpush1.bf16.msra.mxu0 %v5925_v47  ;;  %v5931_v52 = vld [vmem:[%s8506_s11 + $0xb8] ss:$28 sps:$4 sm:$0xff]   ;;  %v5943_v55 = vld [vmem:[%s8506_s11 + $0x128] ss:$28 sps:$4 sm:$0xff]  }
 0x3af   :  { %v1945_v62 = vmax.f32 %v1903_v57, 0.0  ;;  %2268 = vmatprep.subr.bf16.mxu1 %v5897_v53  ;;  %3396 = vmatprep.subr.bf16.mxu0 %v5933_v51  ;;  %v5945_v53 = vld [vmem:[%s8506_s11 + $0x12c] ss:$28 sps:$4 sm:$0xff]   ;;  %v5949_v57 = vld [vmem:[%s8506_s11 + $0x160] ss:$28 sps:$4 sm:$0xff]  }
 0x3b0   :  { %v1943_v1 = vmax.f32 %v1895_v59, 0.0  ;;  %v5957_v58 = vld [vmem:[%s8506_s11 + $0x19c] ss:$28 sps:$4 sm:$0xff]  }
 0x3b1   :  { %v1957_v2 = vpack.c.bf16 %v1945_v62, %v1944_v61  ;;  %v5955_v59 = vld [vmem:[%s8506_s11 + $0x198] ss:$28 sps:$4 sm:$0xff]   ;;  %v5961_v61 = vld [vmem:[%s8506_s11 + $0x1d0] ss:$28 sps:$4 sm:$0xff]   ;;  %v5934_v44 = vld [vmem:[%s8506_s11 + $0xe0] ss:$28 sps:$4 sm:$0xff]  }
 0x3b2   :  { %v1956_v3 = vpack.c.bf16 %v1943_v1, %v1942_v0  ;;  %2269 = vmatpush1.bf16.msra.mxu1 %v5895_v60  ;;  %3397 = vmatpush1.bf16.msra.mxu0 %v5931_v52  ;;  %v5963_v60 = vld [vmem:[%s8506_s11 + $0x1d4] ss:$28 sps:$4 sm:$0xff]   ;;  %v5969_v62 = vld [vmem:[%s8506_s11 + $0x20c] ss:$28 sps:$4 sm:$0xff]   ;;  %v5975_v0 = vld [vmem:[%s8506_s11 + $0x244] ss:$28 sps:$4 sm:$0xff]  }
 0x3b3   :  { %2270 = vmatprep.subr.bf16.mxu1 %v5900_v63  ;;  %3398 = vmatprep.subr.bf16.mxu0 %v5939_v49  ;;  %v5967_v63 = vld [vmem:[%s8506_s11 + $0x208] ss:$28 sps:$4 sm:$0xff]   ;;  %v5973_v1 = vld [vmem:[%s8506_s11 + $0x240] ss:$28 sps:$4 sm:$0xff]   ;;  %v5940_v52 = vld [vmem:[%s8506_s11 + $0x118] ss:$28 sps:$4 sm:$0xff]  }
 0x3b4   :  { %5470 = vmatprep.mubr.bf16.mxu1 %v1956_v3  ;;  %v5979_v3 = vld [vmem:[%s8506_s11 + $0x278] ss:$28 sps:$4 sm:$0xff]  }
 0x3b5   :  { %5471 = vmatmul.mubr.bf16.gmra.mrb[52].mxu1 %v1957_v2  ;;  %v5981_v2 = vld [vmem:[%s8506_s11 + $0x27c] ss:$28 sps:$4 sm:$0xff]   ;;  %v5948_v49 = vld [vmem:[%s8506_s11 + $0x154] ss:$28 sps:$4 sm:$0xff]  }
 0x3b6   :  { %2271 = vmatpush1.bf16.msra.mxu1 %v5898_v4  ;;  %3399 = vmatpush1.bf16.msra.mxu0 %v5937_v50  ;;  %v5987_v4 = vld [vmem:[%s8506_s11 + $0x2b4] ss:$28 sps:$4 sm:$0xff]   ;;  %v5942_v51 = vld [vmem:[%s8506_s11 + $0x11c] ss:$28 sps:$4 sm:$0xff]  }
 0x3b7   :  { %2272 = vmatprep.subr.bf16.mxu1 %v5903_v5  ;;  %3400 = vmatprep.subr.bf16.mxu0 %v5945_v53  ;;  %v5985_v5 = vld [vmem:[%s8506_s11 + $0x2b0] ss:$28 sps:$4 sm:$0xff]  }
 0x3b8   :  { %v5946_v50 = vld [vmem:[%s8506_s11 + $0x150] ss:$28 sps:$4 sm:$0xff]  }
 0x3ba   :  { %v5444_v7 = vpop.f32.mrb[40].mxu1  ;;  %2273 = vmatpush1.bf16.msra.mxu1 %v5901_v6  ;;  %3401 = vmatpush1.bf16.msra.mxu0 %v5943_v55  ;;  %v5993_v6 = vld [vmem:[%s8506_s11 + $0x2ec] ss:$28 sps:$4 sm:$0xff]  }
 0x3bb   :  { %v1916_v8 = vadd.f32 %v5444_v7, %v7240_v26  ;;  %v1907_v9 = vpop.f32.mrb[41].mxu1  ;;  %2274 = vmatprep.subr.bf16.mxu1 %v5906_v36  ;;  %3402 = vmatprep.subr.bf16.mxu0 %v5951_v56  ;;  %v5991_v7 = vld [vmem:[%s8506_s11 + $0x2e8] ss:$28 sps:$4 sm:$0xff]  }
 0x3bc   :  { %v1908_v10 = vadd.f32 %v7240_v26, %v1907_v9  ;;  %v5445_v11 = vpop.f32.mrb[42].mxu1  ;;  %v5954_v55 = vld [vmem:[%s8506_s11 + $0x18c] ss:$28 sps:$4 sm:$0xff]  }
 0x3bd   :  { %v1919_v12 = vadd.f32 %v5445_v11, %v7240_v26  ;;  %v1910_v13 = vpop.f32.mrb[43].mxu1  ;;  %v1948_v15 = vmax.f32 %v1916_v8, 0.0  ;;  %v7394_v8 = vld [vmem:[%s8507_s8] ss:$0 sm:$0xff] }
 0x3be   :  { %v1911_v14 = vadd.f32 %v7240_v26, %v1910_v13  ;;  %v1946_v17 = vmax.f32 %v1908_v10, 0.0  ;;  %2275 = vmatpush1.bf16.msra.mxu1 %v5904_v37  ;;  %3403 = vmatpush1.bf16.msra.mxu0 %v5949_v57  ;;  %v5928_v37 = vld [vmem:[%s8506_s11 + $0xa8] ss:$28 sps:$4 sm:$0xff]  }
 0x3bf   :  { %v1949_v16 = vmax.f32 %v1919_v12, 0.0  ;;  %3404 = vmatprep.subr.bf16.mxu0 %v5957_v58 }
 0x3c0   :  { %v1947_v18 = vmax.f32 %v1911_v14, 0.0 }
 0x3c1   :  { %v1959_v19 = vpack.c.bf16 %v1949_v16, %v1948_v15 }
 0x3c2   :  { %v1958_v20 = vpack.c.bf16 %v1947_v18, %v1946_v17  ;;  %3405 = vmatpush1.bf16.msra.mxu0 %v5955_v59 }
 0x3c3   :  { %3406 = vmatprep.subr.bf16.mxu0 %v5963_v60 }
 0x3c4   :  { %5474 = vmatprep.mubr.bf16.mxu1 %v1958_v20 }
 0x3c5   :  { %5475 = vmatmul.mubr.bf16.gmra.mrb[56].mxu1 %v1959_v19 }
 0x3c6   :  { %3407 = vmatpush1.bf16.msra.mxu0 %v5961_v61 }
 0x3c7   :  { %3408 = vmatprep.subr.bf16.mxu0 %v5969_v62  ;;  %v5952_v62 = vld [vmem:[%s8506_s11 + $0x188] ss:$28 sps:$4 sm:$0xff]  }
 0x3ca   :  { %v5448_v21 = vpop.f32.mrb[44].mxu1  ;;  %3409 = vmatpush1.bf16.msra.mxu0 %v5967_v63 }
 0x3cb   :  { %v1932_v22 = vadd.f32 %v5448_v21, %v7240_v26  ;;  %v1923_v23 = vpop.f32.mrb[45].mxu1  ;;  %3410 = vmatprep.subr.bf16.mxu0 %v5975_v0  ;;  %v5960_v0 = vld [vmem:[%s8506_s11 + $0x1c4] ss:$28 sps:$4 sm:$0xff]  }
 0x3cc   :  { %v1924_v24 = vadd.f32 %v7240_v26, %v1923_v23  ;;  %v5449_v25 = vpop.f32.mrb[46].mxu1 }
 0x3cd   :  { %v1935_v54 = vadd.f32 %v5449_v25, %v7240_v26  ;;  %v1926_v27 = vpop.f32.mrb[47].mxu1  ;;  %v1952_v30 = vmax.f32 %v1932_v22, 0.0  ;;  %v5910_v22 = vld [vmem:[%s8506_s11] ss:$28 sps:$4 sm:$0xff]   ;;  %v5916_v25 = vld [vmem:[%s8506_s11 + $0x38] ss:$28 sps:$4 sm:$0xff]  }
 0x3ce   :  { %v1927_v28 = vadd.f32 %v7240_v26, %v1926_v27  ;;  %v1950_v32 = vmax.f32 %v1924_v24, 0.0  ;;  %v5909_v26 = vld [vmem:[%s8504_s9 + $0x74] ss:$8 sps:$4 sm:$0xff]   ;;  %3411 = vmatpush1.bf16.msra.mxu0 %v5973_v1  ;;  %v5922_v27 = vld [vmem:[%s8506_s11 + $0x70] ss:$28 sps:$4 sm:$0xff]  }
 0x3cf   :  { %v1953_v31 = vmax.f32 %v1935_v54, 0.0  ;;  %2276 = vmatprep.subr.bf16.mxu1 %v5909_v26  ;;  %3412 = vmatprep.subr.bf16.mxu0 %v5981_v2  ;;  %v5918_v24 = vld [vmem:[%s8506_s11 + $0x3c] ss:$28 sps:$4 sm:$0xff]   ;;  %v5924_v54 = vld [vmem:[%s8506_s11 + $0x74] ss:$28 sps:$4 sm:$0xff]  }
 0x3d0   :  { %v1951_v33 = vmax.f32 %v1927_v28, 0.0  ;;  %2277 = vmatpush1.bf16.msra.mxu1 %v5907_v38  ;;  %v5936_v38 = vld [vmem:[%s8506_s11 + $0xe4] ss:$28 sps:$4 sm:$0xff]  }
 0x3d1   :  { %v1961_v34 = vpack.c.bf16 %v1953_v31, %v1952_v30  ;;  %3164 = vmatprep.subr.bf16.mxu1 %v5912_v39  ;;  %v5930_v30 = vld [vmem:[%s8506_s11 + $0xac] ss:$28 sps:$4 sm:$0xff]  }
 0x3d2   :  { %v1960_v35 = vpack.c.bf16 %v1951_v33, %v1950_v32  ;;  %3413 = vmatpush1.bf16.msra.mxu0 %v5979_v3 }
 0x3d3   :  { %3414 = vmatprep.subr.bf16.mxu0 %v5987_v4 }
 0x3d4   :  { %5478 = vmatprep.mubr.bf16.mxu1 %v1960_v35 }
 0x3d5   :  { %5479 = vmatmul.mubr.bf16.gmra.mrb[60].mxu1 %v1961_v34 }
 0x3d6   :  { %2294 = vmatprep.mubr.bf16.mxu1 %v6519_v29  ;;  %3415 = vmatpush1.bf16.msra.mxu0 %v5985_v5 }
 0x3d7   :  { %3416 = vmatprep.subr.bf16.mxu0 %v5993_v6  ;;  %v5958_v6 = vld [vmem:[%s8506_s11 + $0x1c0] ss:$28 sps:$4 sm:$0xff]  }
 0x3da   :  { %3417 = vmatpush1.bf16.msra.mxu0 %v5991_v7 }
 0x478   :  { %v5468_v9 = vpop.f32.mrb[48].mxu1 }
 0x479   :  { %v2076_v10 = vadd.f32 %v5468_v9, %v7394_v8  ;;  %v2067_v11 = vpop.f32.mrb[49].mxu1  ;;  %v5966_v9 = vld [vmem:[%s8506_s11 + $0x1fc] ss:$28 sps:$4 sm:$0xff]  }
 0x47a   :  { %v2068_v12 = vadd.f32 %v7394_v8, %v2067_v11  ;;  %v5469_v13 = vpop.f32.mrb[50].mxu1  ;;  %v5972_v11 = vld [vmem:[%s8506_s11 + $0x234] ss:$28 sps:$4 sm:$0xff]  }
 0x47b   :  { %v2079_v14 = vadd.f32 %v5469_v13, %v7394_v8  ;;  %v2070_v15 = vpop.f32.mrb[51].mxu1  ;;  %v2132_v17 = vmax.f32 %v2076_v10, 0.0  ;;  %v5964_v10 = vld [vmem:[%s8506_s11 + $0x1f8] ss:$28 sps:$4 sm:$0xff]  }
 0x47c   :  { %v2071_v16 = vadd.f32 %v7394_v8, %v2070_v15  ;;  %v2130_v19 = vmax.f32 %v2068_v12, 0.0  ;;  %v5970_v12 = vld [vmem:[%s8506_s11 + $0x230] ss:$28 sps:$4 sm:$0xff]  }
 0x47d   :  { %v2133_v18 = vmax.f32 %v2079_v14, 0.0  ;;  %v5978_v14 = vld [vmem:[%s8506_s11 + $0x26c] ss:$28 sps:$4 sm:$0xff]  }
 0x47e   :  { %v2131_v20 = vmax.f32 %v2071_v16, 0.0 }
 0x47f   :  { %v2147_v21 = vpack.c.bf16 %v2133_v18, %v2132_v17 }
 0x480   :  { %v2146_v23 = vpack.c.bf16 %v2131_v20, %v2130_v19 }
 0x482   :  { %2295 = vmatmul.mubr.bf16.vlgmr.msra.gmra.mrb[64].mxu1 %v2146_v23  ;;  %v5984_v23 = vld [vmem:[%s8506_s11 + $0x2a4] ss:$28 sps:$4 sm:$0xff]  }
 0x483   :  { %2304 = vmatprep.mubr.bf16.mxu1 %v6519_v29  ;;  %3165 = vmatpush1.bf16.msra.mxu1 %v5910_v22 }
 0x484   :  { %3166 = vmatprep.subr.bf16.mxu1 %v5918_v24 }
 0x487   :  { %3167 = vmatpush1.bf16.msra.mxu1 %v5916_v25 }
 0x488   :  { %v5472_v28 = vpop.f32.mrb[52].mxu1  ;;  %3168 = vmatprep.subr.bf16.mxu1 %v5924_v54 }
 0x489   :  { %v2092_v31 = vadd.f32 %v5472_v28, %v7394_v8  ;;  %v2083_v32 = vpop.f32.mrb[53].mxu1 }
 0x48a   :  { %v2084_v33 = vadd.f32 %v7394_v8, %v2083_v32  ;;  %v5473_v34 = vpop.f32.mrb[54].mxu1  ;;  %2305 = vmatmul.mubr.bf16.gmra.mrb[68].mxu1 %v2147_v21  ;;  %v5976_v21 = vld [vmem:[%s8506_s11 + $0x268] ss:$28 sps:$4 sm:$0xff]   ;;  %v5988_v32 = vld [vmem:[%s8506_s11 + $0x2d8] ss:$28 sps:$4 sm:$0xff]  }
 0x48b   :  { %v2095_v35 = vadd.f32 %v5473_v34, %v7394_v8  ;;  %v2086_v36 = vpop.f32.mrb[55].mxu1  ;;  %2314 = vmatprep.mubr.bf16.mxu1 %v6519_v29  ;;  %3169 = vmatpush1.bf16.msra.mxu1 %v5922_v27  ;;  %v2136_v39 = vmax.f32 %v2092_v31, 0.0  ;;  %v5999_v34 = vld [vmem:[%s8506_s11 + $0x324] ss:$28 sps:$4 sm:$0xff]  }
 0x48c   :  { %v2087_v26 = vadd.f32 %v7394_v8, %v2086_v36  ;;  %3170 = vmatprep.subr.bf16.mxu1 %v5930_v30  ;;  %v2134_v41 = vmax.f32 %v2084_v33, 0.0  ;;  %v5982_v30 = vld [vmem:[%s8506_s11 + $0x2a0] ss:$28 sps:$4 sm:$0xff]   ;;  %v5996_v33 = vld [vmem:[%s8506_s11 + $0x314] ss:$28 sps:$4 sm:$0xff]   ;;  %3418 = vmatprep.subr.bf16.mxu0 %v5999_v34 }
 0x48d   :  { %v2137_v40 = vmax.f32 %v2095_v35, 0.0  ;;  %v5997_v35 = vld [vmem:[%s8506_s11 + $0x320] ss:$28 sps:$4 sm:$0xff]   ;;  %v6002_v36 = vld [vmem:[%s8506_s11 + $0x34c] ss:$28 sps:$4 sm:$0xff]  }
 0x48e   :  { %v2135_v42 = vmax.f32 %v2087_v26, 0.0  ;;  %3419 = vmatpush1.bf16.msra.mxu0 %v5997_v35  ;;  %v6000_v26 = vld [vmem:[%s8506_s11 + $0x348] ss:$28 sps:$4 sm:$0xff]   ;;  %v7629_v34 = vld [vmem:[%s8506_s11 + $0xc0] ss:$28 sps:$4 sm:$0xff]  }
 0x48f   :  { %v2149_v43 = vpack.c.bf16 %v2137_v40, %v2136_v39  ;;  %3171 = vmatpush1.bf16.msra.mxu1 %v5928_v37  ;;  %v6005_v37 = vld [vmem:[%s8506_s11 + $0x35c] ss:$28 sps:$4 sm:$0xff]   ;;  %v6008_v39 = vld [vmem:[%s8506_s11 + $0xc] ss:$28 sps:$4 sm:$0xff]  }
 0x490   :  { %v2148_v47 = vpack.c.bf16 %v2135_v42, %v2134_v41  ;;  %3172 = vmatprep.subr.bf16.mxu1 %v5936_v38  ;;  %v6003_v38 = vld [vmem:[%s8506_s11 + $0x358] ss:$28 sps:$4 sm:$0xff]   ;;  %3420 = vmatprep.subr.bf16.mxu0 %v6005_v37  ;;  %v2170_v41 = vld [vmem:[%s8508_s10] sm:$0x3] }
 0x491   :  { %v7530_v40 = vld [vmem:[%s8506_s11 + $0x1d8] ss:$28 sps:$4 sm:$0xff]   ;;  %v7537_v42 = vrot.slane %v2170_v41, %v7122_v46 }
 0x492   :  { %2315 = vmatmul.mubr.bf16.gmra.mrb[72].mxu1 %v2148_v47  ;;  %3421 = vmatpush1.bf16.msra.mxu0 %v6003_v38  ;;  %v7638_v37 = vld [vmem:[%s8506_s11 + $0x2b8] ss:$28 sps:$4 sm:$0xff]  }
 0x493   :  { %2324 = vmatprep.mubr.bf16.mxu1 %v6519_v29  ;;  %3173 = vmatpush1.bf16.msra.mxu1 %v5934_v44 }
 0x494   :  { %3174 = vmatprep.subr.bf16.mxu1 %v5942_v51  ;;  %5354 = vmatprep.subr.bf16.mxu0 %v7530_v40 }
 0x497   :  { %3175 = vmatpush1.bf16.msra.mxu1 %v5940_v52 }
 0x498   :  { %v5476_v53 = vpop.f32.mrb[56].mxu1  ;;  %3176 = vmatprep.subr.bf16.mxu1 %v5948_v49 }
 0x499   :  { %v2108_v56 = vadd.f32 %v5476_v53, %v7394_v8  ;;  %v2099_v57 = vpop.f32.mrb[57].mxu1 }
 0x49a   :  { %v2100_v58 = vadd.f32 %v7394_v8, %v2099_v57  ;;  %v5477_v59 = vpop.f32.mrb[58].mxu1  ;;  %2325 = vmatmul.mubr.bf16.gmra.mrb[76].mxu1 %v2149_v43  ;;  %v7540_v43 = vrot.slane %v2170_v41, %v7128_v48 }
 0x49b   :  { %v2111_v60 = vadd.f32 %v5477_v59, %v7394_v8  ;;  %v2102_v61 = vpop.f32.mrb[59].mxu1  ;;  %2334 = vmatprep.mubr.bf16.mxu1 %v6519_v29  ;;  %3177 = vmatpush1.bf16.msra.mxu1 %v5946_v50  ;;  %v2140_v1 = vmax.f32 %v2108_v56, 0.0 }
 0x49c   :  { %v2103_v63 = vadd.f32 %v7394_v8, %v2102_v61  ;;  %3178 = vmatprep.subr.bf16.mxu1 %v5954_v55  ;;  %v2138_v3 = vmax.f32 %v2100_v58, 0.0 }
 0x49d   :  { %v2141_v2 = vmax.f32 %v2111_v60, 0.0 }
 0x49e   :  { %v2139_v4 = vmax.f32 %v2103_v63, 0.0  ;;  %v6006_v63 = vld [vmem:[%s8506_s11 + $0x8] ss:$28 sps:$4 sm:$0xff]  }
 0x49f   :  { %v2151_v5 = vpack.c.bf16 %v2141_v2, %v2140_v1  ;;  %3179 = vmatpush1.bf16.msra.mxu1 %v5952_v62 }
 0x4a0   :  { %v2150_v7 = vpack.c.bf16 %v2139_v4, %v2138_v3  ;;  %3180 = vmatprep.subr.bf16.mxu1 %v5960_v0  ;;  %v7556_v0 = vld [vmem:[%s8506_s11 + $0x18] ss:$28 sps:$4 sm:$0xff]   ;;  %v6011_v3 = vld [vmem:[%s8506_s11 + $0x44] ss:$28 sps:$4 sm:$0xff]   ;;  %v7565_v4 = vld [vmem:[%s8506_s11 + $0x210] ss:$28 sps:$4 sm:$0xff]  }
 0x4a2   :  { %2335 = vmatmul.mubr.bf16.gmra.mrb[80].mxu1 %v2150_v7 }
 0x4a3   :  { %2344 = vmatprep.mubr.bf16.mxu1 %v6519_v29  ;;  %3181 = vmatpush1.bf16.msra.mxu1 %v5958_v6 }
 0x4a4   :  { %3182 = vmatprep.subr.bf16.mxu1 %v5966_v9 }
 0x4a7   :  { %3183 = vmatpush1.bf16.msra.mxu1 %v5964_v10 }
 0x4a8   :  { %v5480_v13 = vpop.f32.mrb[60].mxu1  ;;  %3184 = vmatprep.subr.bf16.mxu1 %v5972_v11  ;;  %v6009_v11 = vld [vmem:[%s8506_s11 + $0x40] ss:$28 sps:$4 sm:$0xff]  }
 0x4a9   :  { %v2124_v15 = vadd.f32 %v5480_v13, %v7394_v8  ;;  %v2115_v16 = vpop.f32.mrb[61].mxu1 }
 0x4aa   :  { %v2116_v17 = vadd.f32 %v7394_v8, %v2115_v16  ;;  %v5481_v18 = vpop.f32.mrb[62].mxu1  ;;  %2345 = vmatmul.mubr.bf16.gmra.mrb[84].mxu1 %v2151_v5  ;;  %v7590_v16 = vld [vmem:[%s8506_s11 + $0x248] ss:$28 sps:$4 sm:$0xff]  }
 0x4ab   :  { %v2127_v19 = vadd.f32 %v5481_v18, %v7394_v8  ;;  %v2118_v20 = vpop.f32.mrb[63].mxu1  ;;  %2354 = vmatprep.mubr.bf16.mxu1 %v6519_v29  ;;  %3185 = vmatpush1.bf16.msra.mxu1 %v5970_v12  ;;  %v2144_v24 = vmax.f32 %v2124_v15, 0.0  ;;  %v7581_v12 = vld [vmem:[%s8506_s11 + $0x50] ss:$28 sps:$4 sm:$0xff]   ;;  %v6014_v15 = vld [vmem:[%s8506_s11 + $0x7c] ss:$28 sps:$4 sm:$0xff]  }
 0x4ac   :  { %v2119_v22 = vadd.f32 %v7394_v8, %v2118_v20  ;;  %3186 = vmatprep.subr.bf16.mxu1 %v5978_v14  ;;  %v2142_v54 = vmax.f32 %v2116_v17, 0.0  ;;  %v5990_v8 = vld [vmem:[%s8506_s11 + $0x2dc] ss:$28 sps:$4 sm:$0xff]  }
 0x4ad   :  { %v2145_v25 = vmax.f32 %v2127_v19, 0.0 }
 0x4ae   :  { %v2143_v27 = vmax.f32 %v2119_v22, 0.0  ;;  %v6012_v22 = vld [vmem:[%s8506_s11 + $0x78] ss:$28 sps:$4 sm:$0xff]  }
 0x4af   :  { %v2153_v28 = vpack.c.bf16 %v2145_v25, %v2144_v24  ;;  %3187 = vmatpush1.bf16.msra.mxu1 %v5976_v21 }
 0x4b0   :  { %v2152_v31 = vpack.c.bf16 %v2143_v27, %v2142_v54  ;;  %3188 = vmatprep.subr.bf16.mxu1 %v5984_v23  ;;  %v7603_v23 = vld [vmem:[%s8506_s11 + $0x88] ss:$28 sps:$4 sm:$0xff]   ;;  %v6017_v54 = vld [vmem:[%s8506_s11 + $0xb4] ss:$28 sps:$4 sm:$0xff]   ;;  %v7613_v27 = vld [vmem:[%s8506_s11 + $0x280] ss:$28 sps:$4 sm:$0xff]  }
 0x4b2   :  { %2355 = vmatmul.mubr.bf16.gmra.mrb[88].mxu1 %v2152_v31 }
 0x4b3   :  { %2364 = vmatprep.mubr.bf16.mxu1 %v6519_v29  ;;  %3189 = vmatpush1.bf16.msra.mxu1 %v5982_v30  ;;  %v5994_v29 = vld [vmem:[%s8506_s11 + $0x310] ss:$28 sps:$4 sm:$0xff]  }
 0x4b4   :  { %3190 = vmatprep.subr.bf16.mxu1 %v5990_v8 }
 0x4b7   :  { %3191 = vmatpush1.bf16.msra.mxu1 %v5988_v32 }
 0x4b8   :  { %3192 = vmatprep.subr.bf16.mxu1 %v5996_v33  ;;  %v6015_v33 = vld [vmem:[%s8506_s11 + $0xb0] ss:$28 sps:$4 sm:$0xff]  }
 0x4ba   :  { %2365 = vmatmul.mubr.bf16.gmra.mrb[92].mxu1 %v2153_v28 }
 0x4bb   :  { %3193 = vmatpush1.bf16.msra.mxu1 %v5994_v29 }
 0x4bc   :  { %3194 = vmatprep.subr.bf16.mxu1 %v6002_v36  ;;  %v6020_v36 = vld [vmem:[%s8506_s11 + $0xec] ss:$28 sps:$4 sm:$0xff]  }
 0x4bf   :  { %3195 = vmatpush1.bf16.msra.mxu1 %v6000_v26 }
 0x4c0   :  { %3277 = vmatprep.subr.bf16.mxu1 %v6008_v39 }
 0x555   :  { %v2296_v44 = vpop.f32.mrb[64].mxu1 }
 0x556   :  { %v2297_v47 = vadd.f32 %v2296_v44, %v7537_v42  ;;  %v2298_v51 = vpop.f32.mrb[65].mxu1 }
 0x557   :  { %v2299_v52 = vadd.f32 %v2298_v51, %v7540_v43  ;;  %v2300_v49 = vpop.f32.mrb[66].mxu1  ;;  %v7651_v51 = vld [vmem:[%s8506_s11 + $0xf8] ss:$28 sps:$4 sm:$0xff]  }
 0x558   :  { %v2301_v50 = vadd.f32 %v2300_v49, %v7537_v42  ;;  %v2302_v53 = vpop.f32.mrb[67].mxu1  ;;  %v2375_v56 = vmax.f32 %v2297_v47, 0.0  ;;  %v6018_v47 = vld [vmem:[%s8506_s11 + $0xe8] ss:$28 sps:$4 sm:$0xff]  }
 0x559   :  { %v2303_v55 = vadd.f32 %v2302_v53, %v7540_v43  ;;  %v2376_v58 = vmax.f32 %v2299_v52, 0.0  ;;  %v7661_v53 = vld [vmem:[%s8506_s11 + $0x2f0] ss:$28 sps:$4 sm:$0xff]  }
 0x55a   :  { %v2377_v57 = vmax.f32 %v2301_v50, 0.0  ;;  %v6023_v50 = vld [vmem:[%s8506_s11 + $0x124] ss:$28 sps:$4 sm:$0xff]  }
 0x55b   :  { %v2378_v59 = vmax.f32 %v2303_v55, 0.0 }
 0x55c   :  { %v7546_v60 = vpack.c.bf16 %v2377_v57, %v2375_v56 }
 0x55d   :  { %v7548_v61 = vpack.c.bf16 %v2378_v59, %v2376_v58  ;;  %v2306_v62 = vpop.f32.mrb[68].mxu1 }
 0x55e   :  { %v2307_v1 = vadd.f32 %v2306_v62, %v7537_v42  ;;  %v2308_v2 = vpop.f32.mrb[69].mxu1  ;;  %v6021_v62 = vld [vmem:[%s8506_s11 + $0x120] ss:$28 sps:$4 sm:$0xff]  }
 0x55f   :  { %v2309_v5 = vadd.f32 %v2308_v2, %v7540_v43  ;;  %v2310_v6 = vpop.f32.mrb[70].mxu1  ;;  %3196 = vmatprep.mubr.bf16.mxu1 %v7548_v61  ;;  %3422 = vmatprep.mubr.bf16.mxu0 %v7548_v61 }
 0x560   :  { %v2311_v7 = vadd.f32 %v2310_v6, %v7537_v42  ;;  %v2312_v9 = vpop.f32.mrb[71].mxu1  ;;  %3197 = vmatmul.mubr.bf16.vlgmr.msra.gmra.mrb[96].mxu1 %v7546_v60  ;;  %3423 = vmatmul.mubr.bf16.vlgmr.msra.gmra.mrb[32].mxu0 %v7546_v60  ;;  %v2379_v13 = vmax.f32 %v2307_v1, 0.0 }
 0x561   :  { %v2313_v10 = vadd.f32 %v2312_v9, %v7540_v43  ;;  %3278 = vmatpush1.bf16.msra.mxu1 %v6006_v63  ;;  %5355 = vmatpush3.bf16.msra.mxu0 %v7556_v0  ;;  %v2380_v17 = vmax.f32 %v2309_v5, 0.0  ;;  %v7677_v63 = vld [vmem:[%s8506_s11 + $0x130] ss:$28 sps:$4 sm:$0xff]   ;;  %v7686_v5 = vld [vmem:[%s8506_s11 + $0x328] ss:$28 sps:$4 sm:$0xff]  }
 0x562   :  { %v2381_v14 = vmax.f32 %v2311_v7, 0.0  ;;  %3279 = vmatprep.subr.bf16.mxu1 %v6011_v3  ;;  %5356 = vmatprep.subr.bf16.mxu0 %v7565_v4  ;;  %v6026_v3 = vld [vmem:[%s8506_s11 + $0x15c] ss:$28 sps:$4 sm:$0xff]  }
 0x563   :  { %v2382_v18 = vmax.f32 %v2313_v10, 0.0 }
 0x564   :  { %v7592_v19 = vpack.c.bf16 %v2381_v14, %v2379_v13  ;;  %v6024_v13 = vld [vmem:[%s8506_s11 + $0x158] ss:$28 sps:$4 sm:$0xff]   ;;  %v7699_v14 = vld [vmem:[%s8506_s11 + $0x168] ss:$28 sps:$4 sm:$0xff]  }
 0x565   :  { %v7594_v20 = vpack.c.bf16 %v2382_v18, %v2380_v17  ;;  %v2316_v21 = vpop.f32.mrb[72].mxu1  ;;  %3280 = vmatpush1.bf16.msra.mxu1 %v6009_v11  ;;  %5357 = vmatpush3.bf16.msra.mxu0 %v7581_v12  ;;  %v6029_v18 = vld [vmem:[%s8506_s11 + $0x194] ss:$28 sps:$4 sm:$0xff]  }
 0x566   :  { %v2317_v24 = vadd.f32 %v2316_v21, %v7537_v42  ;;  %v2318_v25 = vpop.f32.mrb[73].mxu1  ;;  %3281 = vmatprep.subr.bf16.mxu1 %v6014_v15  ;;  %5358 = vmatprep.subr.bf16.mxu0 %v7590_v16  ;;  %v7709_v21 = vld [vmem:[%s8506_s11 + $0x360] ss:$28 sps:$4 sm:$0xff]  }
 0x567   :  { %v2319_v28 = vadd.f32 %v2318_v25, %v7540_v43  ;;  %v2320_v30 = vpop.f32.mrb[74].mxu1  ;;  %3206 = vmatprep.mubr.bf16.mxu1 %v7594_v20  ;;  %3432 = vmatprep.mubr.bf16.mxu0 %v7594_v20 }
 0x568   :  { %v2321_v31 = vadd.f32 %v2320_v30, %v7537_v42  ;;  %v2322_v8 = vpop.f32.mrb[75].mxu1  ;;  %3207 = vmatmul.mubr.bf16.gmra.mrb[100].mxu1 %v7592_v19  ;;  %3433 = vmatmul.mubr.bf16.gmra.mrb[36].mxu0 %v7592_v19  ;;  %v2383_v29 = vmax.f32 %v2317_v24, 0.0  ;;  %v6027_v30 = vld [vmem:[%s8506_s11 + $0x190] ss:$28 sps:$4 sm:$0xff]  }
 0x569   :  { %v2323_v32 = vadd.f32 %v2322_v8, %v7540_v43  ;;  %3282 = vmatpush1.bf16.msra.mxu1 %v6012_v22  ;;  %5359 = vmatpush3.bf16.msra.mxu0 %v7603_v23  ;;  %v2384_v26 = vmax.f32 %v2319_v28, 0.0 }
 0x56a   :  { %v2385_v35 = vmax.f32 %v2321_v31, 0.0  ;;  %3283 = vmatprep.subr.bf16.mxu1 %v6017_v54  ;;  %5360 = vmatprep.subr.bf16.mxu0 %v7613_v27  ;;  %v7725_v31 = vld [vmem:[%s8506_s11 + $0x1a0] ss:$28 sps:$4 sm:$0xff]  }
 0x56b   :  { %v2386_v38 = vmax.f32 %v2323_v32, 0.0 }
 0x56c   :  { %v7640_v39 = vpack.c.bf16 %v2385_v35, %v2383_v29 }
 0x56d   :  { %v7642_v41 = vpack.c.bf16 %v2386_v38, %v2384_v26  ;;  %v2326_v44 = vpop.f32.mrb[76].mxu1  ;;  %3284 = vmatpush1.bf16.msra.mxu1 %v6015_v33  ;;  %5361 = vmatpush3.bf16.msra.mxu0 %v7629_v34  ;;  %v6032_v33 = vld [vmem:[%s8506_s11 + $0x1cc] ss:$28 sps:$4 sm:$0xff]  }
 0x56e   :  { %v2327_v52 = vadd.f32 %v2326_v44, %v7537_v42  ;;  %v2328_v49 = vpop.f32.mrb[77].mxu1  ;;  %3285 = vmatprep.subr.bf16.mxu1 %v6020_v36  ;;  %5362 = vmatprep.subr.bf16.mxu0 %v7638_v37  ;;  %v6030_v44 = vld [vmem:[%s8506_s11 + $0x1c8] ss:$28 sps:$4 sm:$0xff]  }
 0x56f   :  { %v2329_v55 = vadd.f32 %v2328_v49, %v7540_v43  ;;  %v2330_v56 = vpop.f32.mrb[78].mxu1  ;;  %3216 = vmatprep.mubr.bf16.mxu1 %v7642_v41  ;;  %3442 = vmatprep.mubr.bf16.mxu0 %v7642_v41  ;;  %v6037_v49 = vld [vmem:[%s8506_s11 + $0x204] ss:$28 sps:$4 sm:$0xff]  }
 0x570   :  { %v2331_v57 = vadd.f32 %v2330_v56, %v7537_v42  ;;  %v2332_v58 = vpop.f32.mrb[79].mxu1  ;;  %3217 = vmatmul.mubr.bf16.gmra.mrb[104].mxu1 %v7640_v39  ;;  %3443 = vmatmul.mubr.bf16.gmra.mrb[40].mxu0 %v7640_v39  ;;  %v2387_v1 = vmax.f32 %v2327_v52, 0.0 }
 0x571   :  { %v2333_v59 = vadd.f32 %v2332_v58, %v7540_v43  ;;  %3286 = vmatpush1.bf16.msra.mxu1 %v6018_v47  ;;  %5363 = vmatpush3.bf16.msra.mxu0 %v7651_v51  ;;  %v2388_v6 = vmax.f32 %v2329_v55, 0.0 }
 0x572   :  { %v2389_v2 = vmax.f32 %v2331_v57, 0.0  ;;  %3287 = vmatprep.subr.bf16.mxu1 %v6023_v50  ;;  %5364 = vmatprep.subr.bf16.mxu0 %v7661_v53 }
 0x573   :  { %v2390_v7 = vmax.f32 %v2333_v59, 0.0  ;;  %v6035_v59 = vld [vmem:[%s8506_s11 + $0x200] ss:$28 sps:$4 sm:$0xff]  }
 0x574   :  { %v7688_v9 = vpack.c.bf16 %v2389_v2, %v2387_v1  ;;  %v6042_v2 = vld [vmem:[%s8506_s11 + $0x23c] ss:$28 sps:$4 sm:$0xff]  }
 0x575   :  { %v7690_v10 = vpack.c.bf16 %v2390_v7, %v2388_v6  ;;  %v2336_v11 = vpop.f32.mrb[80].mxu1  ;;  %3288 = vmatpush1.bf16.msra.mxu1 %v6021_v62  ;;  %5365 = vmatpush3.bf16.msra.mxu0 %v7677_v63 }
 0x576   :  { %v2337_v15 = vadd.f32 %v2336_v11, %v7537_v42  ;;  %v2338_v17 = vpop.f32.mrb[81].mxu1  ;;  %3289 = vmatprep.subr.bf16.mxu1 %v6026_v3  ;;  %5366 = vmatprep.subr.bf16.mxu0 %v7686_v5 }
 0x577   :  { %v2339_v22 = vadd.f32 %v2338_v17, %v7540_v43  ;;  %v2340_v24 = vpop.f32.mrb[82].mxu1  ;;  %3226 = vmatprep.mubr.bf16.mxu1 %v7690_v10  ;;  %3452 = vmatprep.mubr.bf16.mxu0 %v7690_v10 }
 0x578   :  { %v2341_v25 = vadd.f32 %v2340_v24, %v7537_v42  ;;  %v2342_v54 = vpop.f32.mrb[83].mxu1  ;;  %3227 = vmatmul.mubr.bf16.gmra.mrb[108].mxu1 %v7688_v9  ;;  %3453 = vmatmul.mubr.bf16.gmra.mrb[44].mxu0 %v7688_v9  ;;  %v2391_v8 = vmax.f32 %v2337_v15, 0.0  ;;  %v6040_v15 = vld [vmem:[%s8506_s11 + $0x238] ss:$28 sps:$4 sm:$0xff]  }
 0x579   :  { %v2343_v28 = vadd.f32 %v2342_v54, %v7540_v43  ;;  %3290 = vmatpush1.bf16.msra.mxu1 %v6024_v13  ;;  %5367 = vmatpush3.bf16.msra.mxu0 %v7699_v14  ;;  %v2392_v29 = vmax.f32 %v2339_v22, 0.0  ;;  %v6047_v22 = vld [vmem:[%s8506_s11 + $0x274] ss:$28 sps:$4 sm:$0xff]  }
 0x57a   :  { %v2393_v32 = vmax.f32 %v2341_v25, 0.0  ;;  %3291 = vmatprep.subr.bf16.mxu1 %v6029_v18  ;;  %5368 = vmatprep.subr.bf16.mxu0 %v7709_v21 }
 0x57b   :  { %v2394_v35 = vmax.f32 %v2343_v28, 0.0 }
 0x57c   :  { %v7731_v36 = vpack.c.bf16 %v2393_v32, %v2391_v8  ;;  %v6045_v8 = vld [vmem:[%s8506_s11 + $0x270] ss:$28 sps:$4 sm:$0xff]  }
 0x57d   :  { %v7733_v26 = vpack.c.bf16 %v2394_v35, %v2392_v29  ;;  %v2346_v38 = vpop.f32.mrb[84].mxu1  ;;  %3292 = vmatpush1.bf16.msra.mxu1 %v6027_v30  ;;  %5369 = vmatpush3.bf16.msra.mxu0 %v7725_v31  ;;  %v6052_v29 = vld [vmem:[%s8506_s11 + $0x2ac] ss:$28 sps:$4 sm:$0xff]  }
 0x57e   :  { %v2347_v47 = vadd.f32 %v2346_v38, %v7537_v42  ;;  %v2348_v52 = vpop.f32.mrb[85].mxu1  ;;  %3293 = vmatprep.subr.bf16.mxu1 %v6032_v33 }
 0x57f   :  { %v2349_v50 = vadd.f32 %v2348_v52, %v7540_v43  ;;  %v2350_v55 = vpop.f32.mrb[86].mxu1  ;;  %3236 = vmatprep.mubr.bf16.mxu1 %v7733_v26  ;;  %3462 = vmatprep.mubr.bf16.mxu0 %v7733_v26 }
 0x580   :  { %v2351_v56 = vadd.f32 %v2350_v55, %v7537_v42  ;;  %v2352_v57 = vpop.f32.mrb[87].mxu1  ;;  %3237 = vmatmul.mubr.bf16.gmra.mrb[112].mxu1 %v7731_v36  ;;  %3463 = vmatmul.mubr.bf16.gmra.mrb[48].mxu0 %v7731_v36  ;;  %v2395_v62 = vmax.f32 %v2347_v47, 0.0 }
 0x581   :  { %v2353_v58 = vadd.f32 %v2352_v57, %v7540_v43  ;;  %3294 = vmatpush1.bf16.msra.mxu1 %v6030_v44  ;;  %v2396_v3 = vmax.f32 %v2349_v50, 0.0 }
 0x582   :  { %v2397_v1 = vmax.f32 %v2351_v56, 0.0  ;;  %3295 = vmatprep.subr.bf16.mxu1 %v6037_v49  ;;  %v6050_v49 = vld [vmem:[%s8506_s11 + $0x2a8] ss:$28 sps:$4 sm:$0xff]  }
 0x583   :  { %v2398_v6 = vmax.f32 %v2353_v58, 0.0  ;;  %v6057_v56 = vld [vmem:[%s8506_s11 + $0x2e4] ss:$28 sps:$4 sm:$0xff]  }
 0x584   :  { %v7756_v7 = vpack.c.bf16 %v2397_v1, %v2395_v62 }
 0x585   :  { %v7758_v11 = vpack.c.bf16 %v2398_v6, %v2396_v3  ;;  %v2356_v13 = vpop.f32.mrb[88].mxu1  ;;  %3296 = vmatpush1.bf16.msra.mxu1 %v6035_v59 }
 0x586   :  { %v2357_v17 = vadd.f32 %v2356_v13, %v7537_v42  ;;  %v2358_v18 = vpop.f32.mrb[89].mxu1  ;;  %3297 = vmatprep.subr.bf16.mxu1 %v6042_v2  ;;  %v6055_v2 = vld [vmem:[%s8506_s11 + $0x2e0] ss:$28 sps:$4 sm:$0xff]  }
 0x587   :  { %v2359_v24 = vadd.f32 %v2358_v18, %v7540_v43  ;;  %v2360_v25 = vpop.f32.mrb[90].mxu1  ;;  %3246 = vmatprep.mubr.bf16.mxu1 %v7758_v11  ;;  %3472 = vmatprep.mubr.bf16.mxu0 %v7758_v11  ;;  %v6062_v13 = vld [vmem:[%s8506_s11 + $0x31c] ss:$28 sps:$4 sm:$0xff]  }
 0x588   :  { %v2361_v54 = vadd.f32 %v2360_v25, %v7537_v42  ;;  %v2362_v28 = vpop.f32.mrb[91].mxu1  ;;  %3247 = vmatmul.mubr.bf16.gmra.mrb[116].mxu1 %v7756_v7  ;;  %3473 = vmatmul.mubr.bf16.gmra.mrb[52].mxu0 %v7756_v7  ;;  %v2399_v32 = vmax.f32 %v2357_v17, 0.0 }
 0x589   :  { %v2363_v30 = vadd.f32 %v2362_v28, %v7540_v43  ;;  %3298 = vmatpush1.bf16.msra.mxu1 %v6040_v15  ;;  %v2400_v35 = vmax.f32 %v2359_v24, 0.0  ;;  %v6065_v24 = vld [vmem:[%s8506_s11 + $0x350] ss:$28 sps:$4 sm:$0xff]  }
 0x58a   :  { %v2401_v33 = vmax.f32 %v2361_v54, 0.0  ;;  %3299 = vmatprep.subr.bf16.mxu1 %v6047_v22  ;;  %v6067_v22 = vld [vmem:[%s8506_s11 + $0x354] ss:$28 sps:$4 sm:$0xff]  }
 0x58b   :  { %v2402_v38 = vmax.f32 %v2363_v30, 0.0 }
 0x58c   :  { %v7780_v44 = vpack.c.bf16 %v2401_v33, %v2399_v32 }
 0x58d   :  { %v7782_v47 = vpack.c.bf16 %v2402_v38, %v2400_v35  ;;  %v2366_v52 = vpop.f32.mrb[92].mxu1  ;;  %3300 = vmatpush1.bf16.msra.mxu1 %v6045_v8 }
 0x58e   :  { %v2367_v50 = vadd.f32 %v2366_v52, %v7537_v42  ;;  %v2368_v55 = vpop.f32.mrb[93].mxu1  ;;  %3301 = vmatprep.subr.bf16.mxu1 %v6052_v29 }
 0x58f   :  { %v2369_v57 = vadd.f32 %v2368_v55, %v7540_v43  ;;  %v2370_v58 = vpop.f32.mrb[94].mxu1  ;;  %3256 = vmatprep.mubr.bf16.mxu1 %v7782_v47  ;;  %3482 = vmatprep.mubr.bf16.mxu0 %v7782_v47 }
 0x590   :  { %v2371_v59 = vadd.f32 %v2370_v58, %v7537_v42  ;;  %v2372_v62 = vpop.f32.mrb[95].mxu1  ;;  %3257 = vmatmul.mubr.bf16.gmra.mrb[120].mxu1 %v7780_v44  ;;  %3483 = vmatmul.mubr.bf16.gmra.mrb[56].mxu0 %v7780_v44  ;;  %v2403_v3 = vmax.f32 %v2367_v50, 0.0 }
 0x591   :  { %v2373_v1 = vadd.f32 %v2372_v62, %v7540_v43  ;;  %3302 = vmatpush1.bf16.msra.mxu1 %v6050_v49  ;;  %v2404_v42 = vmax.f32 %v2369_v57, 0.0  ;;  %v6060_v43 = vld [vmem:[%s8506_s11 + $0x318] ss:$28 sps:$4 sm:$0xff]  }
 0x592   :  { %v2405_v6 = vmax.f32 %v2371_v59, 0.0  ;;  %3303 = vmatprep.subr.bf16.mxu1 %v6057_v56 }
 0x593   :  { %v2406_v15 = vmax.f32 %v2373_v1, 0.0 }
 0x594   :  { %v2421_v17 = vpack.c.bf16 %v2405_v6, %v2403_v3 }
 0x595   :  { %v2422_v18 = vpack.c.bf16 %v2406_v15, %v2404_v42  ;;  %3304 = vmatpush1.bf16.msra.mxu1 %v6055_v2 }
 0x596   :  { %3305 = vmatprep.subr.bf16.mxu1 %v6062_v13 }
 0x597   :  { %3266 = vmatprep.mubr.bf16.mxu1 %v2422_v18  ;;  %3492 = vmatprep.mubr.bf16.mxu0 %v2422_v18 }
 0x598   :  { %3267 = vmatmul.mubr.bf16.gmra.mrb[124].mxu1 %v2421_v17  ;;  %3493 = vmatmul.mubr.bf16.gmra.mrb[60].mxu0 %v2421_v17 }
 0x599   :  { %3306 = vmatpush1.bf16.msra.mxu1 %v6060_v43  ;;  %3309 = vmatprep.mubr.bf16.mxu1 %v7548_v61 }
 0x59a   :  { %3535 = vmatprep.mubr.bf16.mxu0 %v7548_v61  ;;  %3307 = vmatprep.subr.bf16.mxu1 %v6067_v22  ;;  %v2575_v61 = vsub.s32 5, %v7119_v45 }
 0x59d   :  { %3308 = vmatpush1.bf16.msra.mxu1 %v6065_v24 }
 0x59e   :  { %5482 = vmatprep.subr.bf16.mxu1 %v7530_v40  ;;  %v2571_v40 = vsub.s32 4, %v7119_v45 }
 0x5a0   :  { %3310 = vmatmul.mubr.bf16.vlgmr.msra.gmra.mrb[128].mxu1 %v7546_v60  ;;  %3536 = vmatmul.mubr.bf16.vlgmr.msra.gmra.mrb[64].mxu0 %v7546_v60  ;;  %v2551_v60 = vld [vmem:[%s8509_s12] sm:$0x7f] }
 0x5a1   :  { %3319 = vmatprep.mubr.bf16.mxu1 %v7594_v20  ;;  %5490 = vmatpush3.bf16.msra.mxu1 %v7556_v0  ;;  %v7863_v0 = vrot.slane %v2551_v60, %v7122_v46 }
 0x5a2   :  { %3543 = vmatprep.mubr.bf16.mxu0 %v7594_v20  ;;  %5483 = vmatprep.subr.bf16.mxu1 %v7565_v4  ;;  %v7865_v4 = vrot.slane %v2551_v60, %v2571_v40 }
 0x5a5   :  { %5491 = vmatpush3.bf16.msra.mxu1 %v7581_v12  ;;  %v7868_v12 = vrot.slane %v2551_v60, %v7128_v48 }
 0x5a6   :  { %5484 = vmatprep.subr.bf16.mxu1 %v7590_v16  ;;  %v7870_v16 = vrot.slane %v2551_v60, %v2575_v61 }
 0x5a8   :  { %3320 = vmatmul.mubr.bf16.gmra.mrb[132].mxu1 %v7592_v19  ;;  %3544 = vmatmul.mubr.bf16.gmra.mrb[68].mxu0 %v7592_v19 }
 0x5a9   :  { %3329 = vmatprep.mubr.bf16.mxu1 %v7642_v41  ;;  %5492 = vmatpush3.bf16.msra.mxu1 %v7603_v23 }
 0x5aa   :  { %5485 = vmatprep.subr.bf16.mxu1 %v7613_v27 }
 0x5ad   :  { %5493 = vmatpush3.bf16.msra.mxu1 %v7629_v34 }
 0x5ae   :  { %5486 = vmatprep.subr.bf16.mxu1 %v7638_v37 }
 0x5b0   :  { %3330 = vmatmul.mubr.bf16.gmra.mrb[136].mxu1 %v7640_v39 }
 0x5b1   :  { %3339 = vmatprep.mubr.bf16.mxu1 %v7690_v10  ;;  %5494 = vmatpush3.bf16.msra.mxu1 %v7651_v51 }
 0x5b2   :  { %5487 = vmatprep.subr.bf16.mxu1 %v7661_v53 }
 0x5b5   :  { %5495 = vmatpush3.bf16.msra.mxu1 %v7677_v63 }
 0x5b6   :  { %5488 = vmatprep.subr.bf16.mxu1 %v7686_v5 }
 0x5b8   :  { %3340 = vmatmul.mubr.bf16.gmra.mrb[140].mxu1 %v7688_v9 }
 0x5b9   :  { %3349 = vmatprep.mubr.bf16.mxu1 %v7733_v26  ;;  %5496 = vmatpush3.bf16.msra.mxu1 %v7699_v14 }
 0x5ba   :  { %5489 = vmatprep.subr.bf16.mxu1 %v7709_v21 }
 0x5bd   :  { %5497 = vmatpush3.bf16.msra.mxu1 %v7725_v31 }
 0x5c0   :  { %3350 = vmatmul.mubr.bf16.gmra.mrb[144].mxu1 %v7731_v36 }
 0x5c1   :  { %3359 = vmatprep.mubr.bf16.mxu1 %v7758_v11 }
 0x5c8   :  { %3360 = vmatmul.mubr.bf16.gmra.mrb[148].mxu1 %v7756_v7 }
 0x5c9   :  { %3369 = vmatprep.mubr.bf16.mxu1 %v7782_v47 }
 0x5d0   :  { %3370 = vmatmul.mubr.bf16.gmra.mrb[152].mxu1 %v7780_v44 }
 0x5d1   :  { %3379 = vmatprep.mubr.bf16.mxu1 %v2422_v18 }
 0x5d8   :  { %3380 = vmatmul.mubr.bf16.gmra.mrb[156].mxu1 %v2421_v17 }
 0x5d9   :  { %3551 = vmatprep.mubr.bf16.mxu1 %v7642_v41 }
 0x5e0   :  { %3552 = vmatmul.mubr.bf16.vlgmr.msra.gmra.mrb[160].mxu1 %v7640_v39 }
 0x5e1   :  { %3559 = vmatprep.mubr.bf16.mxu1 %v7690_v10 }
 0x5e8   :  { %3560 = vmatmul.mubr.bf16.gmra.mrb[164].mxu1 %v7688_v9 }
 0x5e9   :  { %3567 = vmatprep.mubr.bf16.mxu1 %v7733_v26 }
 0x5f0   :  { %3568 = vmatmul.mubr.bf16.gmra.mrb[168].mxu1 %v7731_v36 }
 0x5f1   :  { %3575 = vmatprep.mubr.bf16.mxu1 %v7758_v11 }
 0x5f8   :  { %3576 = vmatmul.mubr.bf16.gmra.mrb[172].mxu1 %v7756_v7 }
 0x5f9   :  { %3583 = vmatprep.mubr.bf16.mxu1 %v7782_v47 }
 0x600   :  { %3584 = vmatmul.mubr.bf16.gmra.mrb[176].mxu1 %v7780_v44 }
 0x601   :  { %3591 = vmatprep.mubr.bf16.mxu1 %v2422_v18 }
 0x608   :  { %3592 = vmatmul.mubr.bf16.gmra.mrb[180].mxu1 %v2421_v17 }
 0x633   :  { %v3198_v19 = vpop.f32.mrb[96].mxu1  ;;  %v3424_v20 = vpop.f32.mrb[32].mxu0 }
 0x634   :  { %v3199_v23 = vadd.f32 %v3198_v19, %v7863_v0  ;;  %v3425_v27 = vadd.f32 %v3424_v20, %v7865_v4  ;;  %v3200_v34 = vpop.f32.mrb[97].mxu1  ;;  %v3426_v37 = vpop.f32.mrb[33].mxu0 }
 0x635   :  { %v3201_v39 = vadd.f32 %v3200_v34, %v7868_v12  ;;  %v3427_v46 = vadd.f32 %v3426_v37, %v7870_v16  ;;  %v3202_v41 = vpop.f32.mrb[98].mxu1  ;;  %v3428_v51 = vpop.f32.mrb[34].mxu0 }
 0x636   :  { %v5018_v53 = vmul.f32 -1.442695, %v3199_v23  ;;  %v5022_v63 = vmul.f32 -1.442695, %v3425_v27  ;;  %v3203_v48 = vadd.f32 %v3202_v41, %v7863_v0  ;;  %v3429_v5 = vadd.f32 %v3428_v51, %v7865_v4  ;;  %v3204_v9 = vpop.f32.mrb[99].mxu1  ;;  %v3430_v10 = vpop.f32.mrb[35].mxu0 }
 0x637   :  { %v5019_v14 = vmul.f32 -1.442695, %v3201_v39  ;;  %v5023_v21 = vmul.f32 -1.442695, %v3427_v46  ;;  %v3205_v31 = vadd.f32 %v3204_v9, %v7868_v12  ;;  %v3431_v36 = vadd.f32 %v3430_v10, %v7870_v16 }
 0x638   :  { %6070 = vpow2.f32 %v5018_v53  ;;  %v5025_v26 = vmul.f32 -1.442695, %v3203_v48  ;;  %v5029_v7 = vmul.f32 -1.442695, %v3429_v5 }
 0x639   :  { %6072 = vpow2.f32 %v5022_v63  ;;  %v5026_v11 = vmul.f32 -1.442695, %v3205_v31  ;;  %v5030_v25 = vmul.f32 -1.442695, %v3431_v36 }
 0x63a   :  { %6074 = vpow2.f32 %v5019_v14 }
 0x63b   :  { %6076 = vpow2.f32 %v5023_v21  ;;  %v3208_v54 = vpop.f32.mrb[100].mxu1  ;;  %v3434_v28 = vpop.f32.mrb[36].mxu0 }
 0x63c   :  { %6078 = vpow2.f32 %v5025_v26  ;;  %v3209_v30 = vadd.f32 %v3208_v54, %v7863_v0  ;;  %v3435_v8 = vadd.f32 %v3434_v28, %v7865_v4  ;;  %v3210_v32 = vpop.f32.mrb[101].mxu1  ;;  %v3436_v33 = vpop.f32.mrb[37].mxu0 }
 0x63d   :  { %6080 = vpow2.f32 %v5029_v7  ;;  %v3211_v29 = vadd.f32 %v3210_v32, %v7868_v12  ;;  %v3437_v35 = vadd.f32 %v3436_v33, %v7870_v16  ;;  %v3212_v38 = vpop.f32.mrb[102].mxu1  ;;  %v3438_v44 = vpop.f32.mrb[38].mxu0 }
 0x63e   :  { %6082 = vpow2.f32 %v5026_v11  ;;  %v5032_v47 = vmul.f32 -1.442695, %v3209_v30  ;;  %v5036_v52 = vmul.f32 -1.442695, %v3435_v8  ;;  %v3213_v49 = vadd.f32 %v3212_v38, %v7863_v0  ;;  %v3214_v50 = vpop.f32.mrb[103].mxu1  ;;  %v3440_v55 = vpop.f32.mrb[39].mxu0 }
 0x63f   :  { %6084 = vpow2.f32 %v5030_v25  ;;  %v5033_v56 = vmul.f32 -1.442695, %v3211_v29  ;;  %v5037_v57 = vmul.f32 -1.442695, %v3437_v35  ;;  %v3439_v41 = vadd.f32 %v3438_v44, %v7865_v4 }
 0x640   :  { %6086 = vpow2.f32 %v5032_v47  ;;  %v5039_v58 = vmul.f32 -1.442695, %v3213_v49  ;;  %v3215_v63 = vadd.f32 %v3214_v50, %v7868_v12  ;;  %v3441_v10 = vadd.f32 %v3440_v55, %v7870_v16 }
 0x641   :  { %6088 = vpow2.f32 %v5036_v52  ;;  %v5043_v28 = vmul.f32 -1.442695, %v3439_v41 }
 0x642   :  { %v6071_v59 = vpop.eup %6070  ;;  %6090 = vpow2.f32 %v5033_v56  ;;  %v5040_v35 = vmul.f32 -1.442695, %v3215_v63  ;;  %v5044_v52 = vmul.f32 -1.442695, %v3441_v10 }
 0x643   :  { %v6073_v62 = vpop.eup %6072  ;;  %v3936_v1 = vadd.f32 1.0, %v6071_v59  ;;  %6092 = vpow2.f32 %v5037_v57  ;;  %v3218_v2 = vpop.f32.mrb[104].mxu1 }
 0x644   :  { %v3444_v3 = vpop.f32.mrb[40].mxu0  ;;  %v6075_v6 = vpop.eup %6074  ;;  %v3940_v13 = vadd.f32 1.0, %v6073_v62  ;;  %6094 = vpow2.f32 %v5039_v58  ;;  %v3219_v26 = vadd.f32 %v3218_v2, %v7863_v0 }
 0x645   :  { %v3220_v42 = vpop.f32.mrb[105].mxu1  ;;  %v3446_v15 = vpop.f32.mrb[41].mxu0  ;;  %6096 = vrcp.f32 %v3936_v1  ;;  %v3937_v18 = vadd.f32 1.0, %v6075_v6  ;;  %v3445_v30 = vadd.f32 %v3444_v3, %v7865_v4 }
 0x646   :  { %v6077_v17 = vpop.eup %6076  ;;  %v3222_v43 = vpop.f32.mrb[106].mxu1  ;;  %6098 = vrcp.f32 %v3940_v13  ;;  %v3221_v38 = vadd.f32 %v3220_v42, %v7868_v12  ;;  %v3447_v49 = vadd.f32 %v3446_v15, %v7870_v16  ;;  %v5046_v55 = vmul.f32 -1.442695, %v3219_v26 }
 0x647   :  { %v3448_v22 = vpop.f32.mrb[42].mxu0  ;;  %v6079_v24 = vpop.eup %6078  ;;  %v3941_v40 = vadd.f32 1.0, %v6077_v17  ;;  %6100 = vrcp.f32 %v3937_v18  ;;  %v3223_v56 = vadd.f32 %v3222_v43, %v7863_v0  ;;  %v5050_v59 = vmul.f32 -1.442695, %v3445_v30 }
 0x648   :  { %v7885_v60 = vpop.f32.mrb[107].mxu1  ;;  %v6081_v61 = vpop.eup %6080  ;;  %v3943_v19 = vadd.f32 1.0, %v6079_v24  ;;  %v3449_v62 = vadd.f32 %v3448_v22, %v7865_v4  ;;  %v5047_v3 = vmul.f32 -1.442695, %v3221_v38  ;;  %v5051_v17 = vmul.f32 -1.442695, %v3447_v49 }
 0x649   :  { %v7887_v20 = vpop.f32.mrb[43].mxu0  ;;  %v6083_v23 = vpop.eup %6082  ;;  %6102 = vrcp.f32 %v3941_v40  ;;  %v3947_v27 = vadd.f32 1.0, %v6081_v61  ;;  %v3225_v6 = vadd.f32 %v7885_v60, %v7868_v12  ;;  %v5053_v40 = vmul.f32 -1.442695, %v3223_v56 }
 0x64a   :  { %v6085_v34 = vpop.eup %6084  ;;  %6104 = vrcp.f32 %v3943_v19  ;;  %v3944_v37 = vadd.f32 1.0, %v6083_v23  ;;  %v3451_v18 = vadd.f32 %v7887_v20, %v7870_v16  ;;  %v5057_v20 = vmul.f32 -1.442695, %v3449_v62 }
 0x64b   :  { %v6087_v39 = vpop.eup %6086  ;;  %6106 = vrcp.f32 %v3947_v27  ;;  %v3948_v46 = vadd.f32 1.0, %v6085_v34  ;;  %v3228_v48 = vpop.f32.mrb[108].mxu1 }
 0x64c   :  { %v6089_v51 = vpop.eup %6088  ;;  %6108 = vrcp.f32 %v3944_v37  ;;  %v3950_v53 = vadd.f32 1.0, %v6087_v39  ;;  %v3454_v14 = vpop.f32.mrb[44].mxu0  ;;  %v3229_v60 = vadd.f32 %v3228_v48, %v7863_v0  ;;  %v5058_v63 = vmul.f32 -1.442695, %v3451_v18 }
 0x64d   :  { %v6091_v5 = vpop.eup %6090  ;;  %6110 = vrcp.f32 %v3948_v46  ;;  %v3954_v9 = vadd.f32 1.0, %v6089_v51  ;;  %v7892_v21 = vpop.f32.mrb[109].mxu1  ;;  %v3455_v34 = vadd.f32 %v3454_v14, %v7865_v4  ;;  %v5054_v51 = vmul.f32 -1.442695, %v3225_v6 }
 0x64e   :  { %v6093_v31 = vpop.eup %6092  ;;  %6112 = vrcp.f32 %v3950_v53  ;;  %v3951_v36 = vadd.f32 1.0, %v6091_v5  ;;  %v7895_v7 = vpop.f32.mrb[45].mxu0 }
 0x64f   :  { %v7897_v11 = vpop.f32.mrb[110].mxu1  ;;  %v6095_v25 = vpop.eup %6094  ;;  %6114 = vrcp.f32 %v3954_v9  ;;  %v3955_v54 = vadd.f32 1.0, %v6093_v31  ;;  %v5060_v9 = vmul.f32 -1.442695, %v3229_v60 }
 0x650   :  { %v7900_v8 = vpop.f32.mrb[46].mxu0  ;;  %v7902_v32 = vpop.f32.mrb[111].mxu1  ;;  %6116 = vrcp.f32 %v3951_v36  ;;  %v3957_v29 = vadd.f32 1.0, %v6095_v25  ;;  %v5064_v36 = vmul.f32 -1.442695, %v3455_v34  ;;  %v3233_v34 = vadd.f32 %v7897_v11, %v7863_v0 }
 0x651   :  { %v6097_v33 = vpop.eup %6096  ;;  %v7905_v44 = vpop.f32.mrb[47].mxu0  ;;  %6118 = vrcp.f32 %v3955_v54  ;;  %v3231_v54 = vadd.f32 %v7892_v21, %v7868_v12 }
 0x652   :  { %v6099_v47 = vpop.eup %6098  ;;  %6120 = vrcp.f32 %v3957_v29 }
 0x653   :  { %v6101_v50 = vpop.eup %6100  ;;  %6122 = vpow2.f32 %v5043_v28  ;;  %v7912_v13 = vpop.f32.mrb[112].mxu1 }
 0x654   :  { %v6103_v57 = vpop.eup %6102  ;;  %v5194_v58 = vpack.c.bf16 %v6101_v50, %v6097_v33  ;;  %6124 = vpow2.f32 %v5040_v35  ;;  %v7914_v42 = vpop.f32.mrb[48].mxu0 }
 0x655   :  { %v6105_v1 = vpop.eup %6104  ;;  %v5196_v2 = vpack.c.bf16 %v6103_v57, %v6099_v47  ;;  %6126 = vpow2.f32 %v5044_v52  ;;  %v7921_v43 = vpop.f32.mrb[113].mxu1 }
 0x656   :  { %v6107_v15 = vpop.eup %6106  ;;  %4624 = vst [vmem:[%s8510_s13] sm:$0xff] %v5194_v58  ;;  %v7923_v22 = vpop.f32.mrb[49].mxu0  ;;  %6128 = vpow2.f32 %v5046_v55 }
 0x657   :  { %v6109_v24 = vpop.eup %6108  ;;  %4626 = vst [vmem:[%s8510_s13 + $0x10] sm:$0xff] %v5196_v2  ;;  %v7929_v61 = vpop.f32.mrb[114].mxu1  ;;  %6130 = vpow2.f32 %v5050_v59  ;;  %v3457_v59 = vadd.f32 %v7895_v7, %v7870_v16 }
 0x658   :  { %v3468_v19 = vpop.f32.mrb[50].mxu0  ;;  %v6111_v23 = vpop.eup %6110  ;;  %v5198_v27 = vpack.c.bf16 %v6109_v24, %v6105_v1  ;;  %6132 = vpow2.f32 %v5047_v3  ;;  %v7970_v3 = vmul.f32 -1.442695, %v3231_v54 }
 0x659   :  { %v7932_v37 = vpop.f32.mrb[115].mxu1  ;;  %v3470_v39 = vpop.f32.mrb[51].mxu0  ;;  %v5200_v41 = vpack.c.bf16 %v6111_v23, %v6107_v15  ;;  %6134 = vpow2.f32 %v5051_v17  ;;  %v7938_v48 = vadd.f32 %v3468_v19, %v7865_v4 }
 0x65a   :  { %v6113_v46 = vpop.eup %6112  ;;  %4629 = vst [vmem:[%s8510_s13 + $0x1c] sm:$0xff] %v5198_v27  ;;  %6136 = vpow2.f32 %v5053_v40  ;;  %v7944_v10 = vadd.f32 %v3470_v39, %v7870_v16 }
 0x65b   :  { %v6115_v53 = vpop.eup %6114  ;;  %4631 = vst [vmem:[%s8510_s13 + $0x2c] sm:$0xff] %v5200_v41  ;;  %6138 = vpow2.f32 %v5057_v20  ;;  %v3248_v28 = vpop.f32.mrb[116].mxu1  ;;  %v7984_v20 = vmul.f32 -1.442695, %v3457_v59  ;;  %v3459_v41 = vadd.f32 %v7900_v8, %v7865_v4 }
 0x65c   :  { %v6117_v5 = vpop.eup %6116  ;;  %6140 = vpow2.f32 %v5054_v51  ;;  %v3474_v30 = vpop.f32.mrb[52].mxu0  ;;  %v7954_v29 = vadd.f32 %v3248_v28, %v7863_v0  ;;  %v3235_v51 = vadd.f32 %v7902_v32, %v7868_v12 }
 0x65d   :  { %v6119_v14 = vpop.eup %6118  ;;  %v5202_v31 = vpack.c.bf16 %v6117_v5, %v6113_v46  ;;  %6142 = vpow2.f32 %v5058_v63  ;;  %v7957_v35 = vadd.f32 %v3474_v30, %v7865_v4  ;;  %v3250_v38 = vpop.f32.mrb[117].mxu1 }
 0x65e   :  { %v7946_v26 = vpop.eup %6120  ;;  %v5204_v25 = vpack.c.bf16 %v6119_v14, %v6115_v53  ;;  %v3476_v47 = vpop.f32.mrb[53].mxu0  ;;  %6144 = vpow2.f32 %v5060_v9  ;;  %v7963_v49 = vadd.f32 %v3250_v38, %v7868_v12  ;;  %v3461_v9 = vadd.f32 %v7905_v44, %v7870_v16 }
 0x65f   :  { %v6123_v33 = vpop.eup %6122  ;;  %4633 = vst [vmem:[%s8510_s13 + $0x38] sm:$0xff] %v5202_v31  ;;  %v7966_v50 = vadd.f32 %v3476_v47, %v7870_v16  ;;  %v3252_v55 = vpop.f32.mrb[118].mxu1  ;;  %6146 = vpow2.f32 %v5064_v36  ;;  %v5067_v44 = vmul.f32 -1.442695, %v3233_v34 }
 0x660   :  { %v6125_v52 = vpop.eup %6124  ;;  %4635 = vst [vmem:[%s8510_s13 + $0x48] sm:$0xff] %v5204_v25  ;;  %v3961_v21 = vadd.f32 1.0, %v6123_v33  ;;  %v3478_v56 = vpop.f32.mrb[54].mxu0  ;;  %v7973_v18 = vadd.f32 %v3252_v55, %v7863_v0 }
 0x661   :  { %v6127_v57 = vpop.eup %6126  ;;  %v3958_v58 = vadd.f32 1.0, %v6125_v52  ;;  %v3254_v62 = vpop.f32.mrb[119].mxu1  ;;  %v7976_v24 = vadd.f32 %v3478_v56, %v7865_v4  ;;  %v5071_v56 = vmul.f32 -1.442695, %v3459_v41  ;;  %v3467_v41 = vadd.f32 %v7923_v22, %v7870_v16 }
 0x662   :  { %v6129_v1 = vpop.eup %6128  ;;  %6148 = vrcp.f32 %v3961_v21  ;;  %v3962_v2 = vadd.f32 1.0, %v6127_v57  ;;  %v3480_v6 = vpop.f32.mrb[55].mxu0  ;;  %v7979_v7 = vadd.f32 %v3254_v62, %v7868_v12  ;;  %v5068_v57 = vmul.f32 -1.442695, %v3235_v51 }
 0x663   :  { %v6131_v15 = vpop.eup %6130  ;;  %6150 = vrcp.f32 %v3958_v58  ;;  %v3964_v17 = vadd.f32 1.0, %v6129_v1  ;;  %v7982_v19 = vadd.f32 %v3480_v6, %v7870_v16  ;;  %v3258_v53 = vpop.f32.mrb[120].mxu1  ;;  %v3239_v1 = vadd.f32 %v7912_v13, %v7863_v0 }
 0x664   :  { %v6133_v40 = vpop.eup %6132  ;;  %6152 = vrcp.f32 %v3962_v2  ;;  %v3968_v60 = vadd.f32 1.0, %v6131_v15  ;;  %v7995_v14 = vadd.f32 %v3258_v53, %v7863_v0  ;;  %v3484_v11 = vpop.f32.mrb[56].mxu0 }
 0x665   :  { %v6135_v23 = vpop.eup %6134  ;;  %6154 = vrcp.f32 %v3964_v17  ;;  %v3965_v27 = vadd.f32 1.0, %v6133_v40  ;;  %v3260_v31 = vpop.f32.mrb[121].mxu1  ;;  %v7998_v8 = vadd.f32 %v3484_v11, %v7865_v4 }
 0x666   :  { %v6137_v39 = vpop.eup %6136  ;;  %6156 = vrcp.f32 %v3968_v60  ;;  %v3969_v46 = vadd.f32 1.0, %v6135_v23  ;;  %v8001_v32 = vadd.f32 %v3260_v31, %v7868_v12  ;;  %v3486_v54 = vpop.f32.mrb[57].mxu0  ;;  %v5072_v23 = vmul.f32 -1.442695, %v3461_v9 }
 0x667   :  { %v6139_v63 = vpop.eup %6138  ;;  %6158 = vrcp.f32 %v3965_v27  ;;  %v3971_v5 = vadd.f32 1.0, %v6137_v39  ;;  %v3262_v28 = vpop.f32.mrb[122].mxu1  ;;  %v8004_v38 = vadd.f32 %v3486_v54, %v7870_v16  ;;  %v3465_v27 = vadd.f32 %v7914_v42, %v7865_v4 }
 0x668   :  { %v6141_v36 = vpop.eup %6140  ;;  %6160 = vrcp.f32 %v3969_v46  ;;  %v3975_v25 = vadd.f32 1.0, %v6139_v63  ;;  %v3488_v47 = vpop.f32.mrb[58].mxu0  ;;  %v8009_v2 = vadd.f32 %v3262_v28, %v7863_v0  ;;  %v3241_v46 = vadd.f32 %v7921_v43, %v7868_v12 }
 0x669   :  { %v6143_v30 = vpop.eup %6142  ;;  %6162 = vrcp.f32 %v3971_v5  ;;  %v3972_v33 = vadd.f32 1.0, %v6141_v36  ;;  %v3264_v52 = vpop.f32.mrb[123].mxu1  ;;  %v8012_v17 = vadd.f32 %v3488_v47, %v7865_v4  ;;  %v5074_v42 = vmul.f32 -1.442695, %v3239_v1 }
 0x66a   :  { %v6145_v21 = vpop.eup %6144  ;;  %6164 = vrcp.f32 %v3975_v25  ;;  %v3976_v55 = vadd.f32 1.0, %v6143_v30  ;;  %v3490_v58 = vpop.f32.mrb[59].mxu0  ;;  %v8015_v40 = vadd.f32 %v3264_v52, %v7868_v12 }
 0x66b   :  { %v6147_v59 = vpop.eup %6146  ;;  %6166 = vrcp.f32 %v3972_v33  ;;  %v3978_v62 = vadd.f32 1.0, %v6145_v21  ;;  %v8020_v13 = vadd.f32 %v3490_v58, %v7870_v16  ;;  %v3268_v51 = vpop.f32.mrb[124].mxu1 }
 0x66c   :  { %v6149_v6 = vpop.eup %6148  ;;  %6168 = vrcp.f32 %v3976_v55  ;;  %v3982_v15 = vadd.f32 1.0, %v6147_v59  ;;  %v3494_v53 = vpop.f32.mrb[60].mxu0  ;;  %v8029_v9 = vadd.f32 %v3268_v51, %v7863_v0  ;;  %v5078_v55 = vmul.f32 -1.442695, %v3465_v27 }
 0x66d   :  { %v6151_v60 = vpop.eup %6150  ;;  %6170 = vrcp.f32 %v3978_v62  ;;  %v3270_v11 = vpop.f32.mrb[125].mxu1  ;;  %v8036_v43 = vadd.f32 %v3494_v53, %v7865_v4  ;;  %v5075_v62 = vmul.f32 -1.442695, %v3241_v46 }
 0x66e   :  { %v6153_v34 = vpop.eup %6152  ;;  %v5206_v39 = vpack.c.bf16 %v6151_v60, %v7946_v26  ;;  %6172 = vrcp.f32 %v3982_v15  ;;  %v3496_v31 = vpop.f32.mrb[61].mxu0  ;;  %v8039_v22 = vadd.f32 %v3270_v11, %v7868_v12  ;;  %v5085_v15 = vmul.f32 -1.442695, %v7938_v48 }
 0x66f   :  { %v6155_v63 = vpop.eup %6154  ;;  %v5208_v5 = vpack.c.bf16 %v6153_v34, %v6149_v6  ;;  %6174 = vpow2.f32 %v7970_v3  ;;  %v8042_v3 = vadd.f32 %v3496_v31, %v7870_v16  ;;  %v3272_v36 = vpop.f32.mrb[126].mxu1 }
 0x670   :  { %v6157_v26 = vpop.eup %6156  ;;  %4637 = vst [vmem:[%s8510_s13 + $0x54] sm:$0xff] %v5206_v39  ;;  %6176 = vpow2.f32 %v7984_v20  ;;  %v3498_v25 = vpop.f32.mrb[62].mxu0  ;;  %v3243_v20 = vadd.f32 %v7929_v61, %v7863_v0  ;;  %v8050_v28 = vadd.f32 %v3272_v36, %v7863_v0  ;;  %v5079_v0 = vmul.f32 -1.442695, %v3467_v41 }
 0x671   :  { %v6159_v54 = vpop.eup %6158  ;;  %4639 = vst [vmem:[%s8510_s13 + $0x64] sm:$0xff] %v5208_v5  ;;  %6178 = vpow2.f32 %v5067_v44  ;;  %v8053_v30 = vadd.f32 %v3498_v25, %v7865_v4  ;;  %v3274_v33 = vpop.f32.mrb[127].mxu1  ;;  %v3245_v44 = vadd.f32 %v7932_v37, %v7868_v12 }
 0x672   :  { %v3500_v47 = vpop.f32.mrb[63].mxu0  ;;  %v6161_v52 = vpop.eup %6160  ;;  %v5210_v21 = vpack.c.bf16 %v6159_v54, %v6155_v63  ;;  %6180 = vpow2.f32 %v5071_v56  ;;  %v8061_v4 = vadd.f32 %v3274_v33, %v7868_v12  ;;  %v5081_v37 = vmul.f32 -1.442695, %v3243_v20 }
 0x673   :  { %v6163_v58 = vpop.eup %6162  ;;  %v5212_v59 = vpack.c.bf16 %v6161_v52, %v6157_v26  ;;  %6182 = vpow2.f32 %v5068_v57  ;;  %v8064_v56 = vadd.f32 %v3500_v47, %v7870_v16  ;;  %v8070_v60 = vpop.f32.mrb[128].mxu1  ;;  %v5082_v16 = vmul.f32 -1.442695, %v3245_v44 }
 0x674   :  { %v6165_v61 = vpop.eup %6164  ;;  %4641 = vst [vmem:[%s8510_s13 + $0x70] sm:$0xff] %v5210_v21  ;;  %6184 = vpow2.f32 %v5072_v23  ;;  %v5370_v23 = vpop.f32.mrb[64].mxu0 }
 0x675   :  { %v6167_v1 = vpop.eup %6166  ;;  %4643 = vst [vmem:[%s8510_s13 + $0x80] sm:$0xff] %v5212_v59  ;;  %6186 = vpow2.f32 %v5074_v42  ;;  %v8074_v34 = vpop.f32.mrb[129].mxu1 }
 0x676   :  { %v6169_v57 = vpop.eup %6168  ;;  %v5214_v6 = vpack.c.bf16 %v6167_v1, %v6163_v58  ;;  %6188 = vpow2.f32 %v5078_v55  ;;  %v5371_v39 = vpop.f32.mrb[65].mxu0 }
 0x677   :  { %v8072_v12 = vpop.eup %6170  ;;  %v5216_v27 = vpack.c.bf16 %v6169_v57, %v6165_v61  ;;  %6190 = vpow2.f32 %v5075_v62  ;;  %v8081_v41 = vadd.f32 %v5371_v39, %v5370_v23  ;;  %v8083_v48 = vpop.f32.mrb[130].mxu1 }
 0x678   :  { %v8076_v46 = vpop.eup %6172  ;;  %4645 = vst [vmem:[%s8510_s13 + $0x8c] sm:$0xff] %v5214_v6  ;;  %6192 = vpow2.f32 %v5079_v0  ;;  %v5373_v51 = vpop.f32.mrb[66].mxu0 }
 0x679   :  { %v6175_v53 = vpop.eup %6174  ;;  %4647 = vst [vmem:[%s8510_s13 + $0x9c] sm:$0xff] %v5216_v27  ;;  %6194 = vpow2.f32 %v5081_v37  ;;  %v8088_v63 = vpop.f32.mrb[131].mxu1 }
 0x67a   :  { %v5374_v5 = vpop.f32.mrb[67].mxu0  ;;  %v6177_v42 = vpop.eup %6176  ;;  %v3979_v11 = vadd.f32 1.0, %v6175_v53  ;;  %6196 = vpow2.f32 %v5085_v15 }
 0x67b   :  { %v6179_v31 = vpop.eup %6178  ;;  %v3983_v26 = vadd.f32 1.0, %v6177_v42  ;;  %6198 = vpow2.f32 %v5082_v16  ;;  %v8090_v54 = vadd.f32 %v5374_v5, %v5373_v51  ;;  %v8092_v21 = vpop.f32.mrb[132].mxu1 }
 0x67c   :  { %v6181_v36 = vpop.eup %6180  ;;  %6200 = vrcp.f32 %v3979_v11  ;;  %v3985_v25 = vadd.f32 1.0, %v6179_v31  ;;  %v5376_v55 = vpop.f32.mrb[68].mxu0 }
 0x67d   :  { %v6183_v20 = vpop.eup %6182  ;;  %6202 = vrcp.f32 %v3983_v26  ;;  %v3989_v33 = vadd.f32 1.0, %v6181_v36  ;;  %v8094_v62 = vpop.f32.mrb[133].mxu1  ;;  %v5086_v36 = vmul.f32 -1.442695, %v7944_v10  ;;  %v5089_v10 = vmul.f32 -1.442695, %v7963_v49 }
 0x67e   :  { %v6185_v47 = vpop.eup %6184  ;;  %6204 = vrcp.f32 %v3985_v25  ;;  %v3986_v52 = vadd.f32 1.0, %v6183_v20  ;;  %v5377_v44 = vpop.f32.mrb[69].mxu0  ;;  %v5095_v49 = vmul.f32 -1.442695, %v7973_v18  ;;  %v5102_v18 = vmul.f32 -1.442695, %v7995_v14 }
 0x67f   :  { %v6187_v58 = vpop.eup %6186  ;;  %6206 = vrcp.f32 %v3989_v33  ;;  %v3990_v59 = vadd.f32 1.0, %v6185_v47  ;;  %v8096_v1 = vpop.f32.mrb[134].mxu1  ;;  %v8098_v15 = vadd.f32 %v5377_v44, %v5376_v55  ;;  %v5088_v33 = vmul.f32 -1.442695, %v7954_v29 }
 0x680   :  { %v6189_v61 = vpop.eup %6188  ;;  %6208 = vrcp.f32 %v3986_v52  ;;  %v3992_v0 = vadd.f32 1.0, %v6187_v58  ;;  %v5379_v37 = vpop.f32.mrb[70].mxu0  ;;  %v5092_v58 = vmul.f32 -1.442695, %v7957_v35  ;;  %v5093_v29 = vmul.f32 -1.442695, %v7966_v50 }
 0x681   :  { %v6191_v57 = vpop.eup %6190  ;;  %6210 = vrcp.f32 %v3990_v59  ;;  %v3996_v6 = vadd.f32 1.0, %v6189_v61  ;;  %v8100_v23 = vpop.f32.mrb[135].mxu1  ;;  %v5096_v50 = vmul.f32 -1.442695, %v7979_v7  ;;  %v5107_v14 = vmul.f32 -1.442695, %v8004_v38 }
 0x682   :  { %v5380_v27 = vpop.f32.mrb[71].mxu0  ;;  %v6193_v16 = vpop.eup %6192  ;;  %6212 = vrcp.f32 %v3992_v0  ;;  %v3993_v39 = vadd.f32 1.0, %v6191_v57 }
 0x683   :  { %v6195_v51 = vpop.eup %6194  ;;  %6214 = vrcp.f32 %v3996_v6  ;;  %v3997_v53 = vadd.f32 1.0, %v6193_v16  ;;  %v8102_v11 = vadd.f32 %v5380_v27, %v5379_v37  ;;  %v8106_v47 = vpop.f32.mrb[136].mxu1  ;;  %v5099_v6 = vmul.f32 -1.442695, %v7976_v24 }
 0x684   :  { %v6197_v5 = vpop.eup %6196  ;;  %6216 = vrcp.f32 %v3993_v39  ;;  %v3999_v42 = vadd.f32 1.0, %v6195_v51  ;;  %v8110_v59 = vpop.f32.mrb[137].mxu1  ;;  %v5100_v51 = vmul.f32 -1.442695, %v7982_v19  ;;  %v5103_v19 = vmul.f32 -1.442695, %v8001_v32 }
 0x685   :  { %v6199_v31 = vpop.eup %6198  ;;  %6218 = vrcp.f32 %v3997_v53  ;;  %v4003_v26 = vadd.f32 1.0, %v6197_v5  ;;  %v8114_v0 = vpop.f32.mrb[138].mxu1 }
 0x686   :  { %v6201_v25 = vpop.eup %6200  ;;  %6220 = vrcp.f32 %v3999_v42  ;;  %v4000_v20 = vadd.f32 1.0, %v6199_v31  ;;  %v5106_v42 = vmul.f32 -1.442695, %v7998_v8 }
 0x687   :  { %v6203_v52 = vpop.eup %6202  ;;  %v5218_v55 = vpack.c.bf16 %v6201_v25, %v8072_v12  ;;  %6222 = vrcp.f32 %v4003_v26  ;;  %v8120_v12 = vpop.f32.mrb[139].mxu1 }
 0x688   :  { %v6205_v44 = vpop.eup %6204  ;;  %v5220_v61 = vpack.c.bf16 %v6203_v52, %v8076_v46  ;;  %6224 = vrcp.f32 %v4000_v20 }
 0x689   :  { %v6207_v37 = vpop.eup %6206  ;;  %4649 = vst [vmem:[%s8510_s13 + $0xa8] sm:$0xff] %v5218_v55  ;;  %6226 = vpow2.f32 %v5086_v36 }
 0x68a   :  { %v6209_v35 = vpop.eup %6208  ;;  %4651 = vst [vmem:[%s8510_s13 + $0xb8] sm:$0xff] %v5220_v61  ;;  %6228 = vpow2.f32 %v5088_v33 }
 0x68b   :  { %v6211_v46 = vpop.eup %6210  ;;  %v5222_v57 = vpack.c.bf16 %v6209_v35, %v6205_v44  ;;  %6230 = vpow2.f32 %v5092_v58  ;;  %v8136_v24 = vpop.f32.mrb[140].mxu1 }
 0x68c   :  { %v6213_v27 = vpop.eup %6212  ;;  %v5224_v16 = vpack.c.bf16 %v6211_v46, %v6207_v37  ;;  %6232 = vpow2.f32 %v5089_v10  ;;  %v8139_v31 = vpop.f32.mrb[141].mxu1 }
 0x68d   :  { %v6215_v39 = vpop.eup %6214  ;;  %4653 = vst [vmem:[%s8510_s13 + $0xc4] sm:$0xff] %v5222_v57  ;;  %6234 = vpow2.f32 %v5093_v29  ;;  %v8142_v25 = vpop.f32.mrb[142].mxu1 }
 0x68e   :  { %v6217_v53 = vpop.eup %6216  ;;  %4655 = vst [vmem:[%s8510_s13 + $0xd4] sm:$0xff] %v5224_v16  ;;  %6236 = vpow2.f32 %v5095_v49  ;;  %v8150_v33 = vpop.f32.mrb[143].mxu1 }
 0x68f   :  { %v6219_v5 = vpop.eup %6218  ;;  %v5226_v7 = vpack.c.bf16 %v6217_v53, %v6213_v27  ;;  %6238 = vpow2.f32 %v5099_v6 }
 0x690   :  { %v6221_v26 = vpop.eup %6220  ;;  %v5228_v36 = vpack.c.bf16 %v6219_v5, %v6215_v39  ;;  %6240 = vpow2.f32 %v5096_v50 }
 0x691   :  { %v8144_v20 = vpop.eup %6222  ;;  %4657 = vst [vmem:[%s8510_s13 + $0xe0] sm:$0xff] %v5226_v7  ;;  %6242 = vpow2.f32 %v5100_v51 }
 0x692   :  { %v6225_v8 = vpop.eup %6224  ;;  %4659 = vst [vmem:[%s8510_s13 + $0xf0] sm:$0xff] %v5228_v36  ;;  %6244 = vpow2.f32 %v5102_v18 }
 0x693   :  { %v6227_v32 = vpop.eup %6226  ;;  %v5230_v52 = vpack.c.bf16 %v6225_v8, %v6221_v26  ;;  %6246 = vpow2.f32 %v5106_v42  ;;  %v8158_v37 = vpop.f32.mrb[144].mxu1 }
 0x694   :  { %v6229_v55 = vpop.eup %6228  ;;  %v4004_v58 = vadd.f32 1.0, %v6227_v32  ;;  %6248 = vpow2.f32 %v5103_v19  ;;  %v8160_v49 = vpop.f32.mrb[145].mxu1 }
 0x695   :  { %v6231_v44 = vpop.eup %6230  ;;  %4661 = vst [vmem:[%s8510_s13 + $0xfc] sm:$0xff] %v5230_v52  ;;  %v4006_v38 = vadd.f32 1.0, %v6229_v55  ;;  %6250 = vpow2.f32 %v5107_v14  ;;  %v8162_v6 = vpop.f32.mrb[146].mxu1  ;;  %v5109_v52 = vmul.f32 -1.442695, %v8009_v2  ;;  %v2563_v55 = vsub.s32 2, %v7119_v45 }
 0x696   :  { %v6233_v61 = vpop.eup %6232  ;;  %6252 = vrcp.f32 %v4004_v58  ;;  %v4010_v10 = vadd.f32 1.0, %v6231_v44  ;;  %v8164_v50 = vpop.f32.mrb[147].mxu1 }
 0x697   :  { %v6235_v29 = vpop.eup %6234  ;;  %6254 = vrcp.f32 %v4006_v38  ;;  %v4007_v35 = vadd.f32 1.0, %v6233_v61  ;;  %v5113_v61 = vmul.f32 -1.442695, %v8012_v17  ;;  %v5116_v17 = vmul.f32 -1.442695, %v8029_v9 }
 0x698   :  { %v6237_v46 = vpop.eup %6236  ;;  %6256 = vrcp.f32 %v4010_v10  ;;  %v4011_v57 = vadd.f32 1.0, %v6235_v29  ;;  %v5121_v9 = vmul.f32 -1.442695, %v8042_v3  ;;  %v5127_v3 = vmul.f32 -1.442695, %v8053_v30 }
 0x699   :  { %v6239_v27 = vpop.eup %6238  ;;  %6258 = vrcp.f32 %v4007_v35  ;;  %v4013_v16 = vadd.f32 1.0, %v6237_v46  ;;  %v5110_v46 = vmul.f32 -1.442695, %v8015_v40 }
 0x69a   :  { %v6241_v39 = vpop.eup %6240  ;;  %6260 = vrcp.f32 %v4011_v57  ;;  %v4017_v51 = vadd.f32 1.0, %v6239_v27  ;;  %v5114_v27 = vmul.f32 -1.442695, %v8020_v13  ;;  %v5120_v13 = vmul.f32 -1.442695, %v8036_v43 }
 0x69b   :  { %v6243_v53 = vpop.eup %6242  ;;  %6262 = vrcp.f32 %v4013_v16  ;;  %v4014_v18 = vadd.f32 1.0, %v6241_v39  ;;  %v8166_v14 = vpop.f32.mrb[148].mxu1  ;;  %v5123_v43 = vmul.f32 -1.442695, %v8050_v28 }
 0x69c   :  { %v6245_v5 = vpop.eup %6244  ;;  %6264 = vrcp.f32 %v4017_v51  ;;  %v4018_v7 = vadd.f32 1.0, %v6243_v53  ;;  %v8170_v58 = vpop.f32.mrb[149].mxu1 }
 0x69d   :  { %v6247_v42 = vpop.eup %6246  ;;  %6266 = vrcp.f32 %v4014_v18  ;;  %v4020_v26 = vadd.f32 1.0, %v6245_v5  ;;  %v8173_v10 = vpop.f32.mrb[150].mxu1  ;;  %v5117_v5 = vmul.f32 -1.442695, %v8039_v22 }
 0x69e   :  { %v6249_v36 = vpop.eup %6248  ;;  %6268 = vrcp.f32 %v4018_v7  ;;  %v4024_v19 = vadd.f32 1.0, %v6247_v42  ;;  %v8177_v57 = vpop.f32.mrb[151].mxu1 }
 0x69f   :  { %v6251_v8 = vpop.eup %6250  ;;  %6270 = vrcp.f32 %v4020_v26  ;;  %v4021_v32 = vadd.f32 1.0, %v6249_v36 }
 0x6a0   :  { %v6253_v44 = vpop.eup %6252  ;;  %6272 = vrcp.f32 %v4024_v19  ;;  %v4025_v38 = vadd.f32 1.0, %v6251_v8 }
 0x6a1   :  { %v6255_v29 = vpop.eup %6254  ;;  %v5232_v35 = vpack.c.bf16 %v6253_v44, %v8144_v20  ;;  %6274 = vrcp.f32 %v4021_v32  ;;  %v8187_v20 = vld [vmem:[%s8509_s12] sm:$0x7f]  ;;  %v5124_v44 = vmul.f32 -1.442695, %v8061_v4 }
 0x6a2   :  { %v6257_v2 = vpop.eup %6256  ;;  %6276 = vrcp.f32 %v4025_v38  ;;  %v8190_v40 = vrot.slane %v8187_v20, %v2563_v55 }
 0x6a3   :  { %v6259_v16 = vpop.eup %6258  ;;  %4663 = vst [vmem:[%s8510_s13 + $0x10c] sm:$0xff] %v5232_v35  ;;  %6278 = vpow2.f32 %v5109_v52  ;;  %v8198_v42 = vpop.f32.mrb[152].mxu1 }
 0x6a4   :  { %v6261_v39 = vpop.eup %6260  ;;  %v5234_v51 = vpack.c.bf16 %v6259_v16, %v6255_v29  ;;  %6280 = vpow2.f32 %v5113_v61  ;;  %v3312_v22 = vadd.f32 %v8070_v60, %v8190_v40  ;;  %v8206_v36 = vpop.f32.mrb[153].mxu1  ;;  %v5128_v60 = vmul.f32 -1.442695, %v8064_v56 }
 0x6a5   :  { %v6263_v53 = vpop.eup %6262  ;;  %v5236_v18 = vpack.c.bf16 %v6261_v39, %v6257_v2  ;;  %6282 = vpow2.f32 %v5110_v46  ;;  %v8209_v32 = vpop.f32.mrb[154].mxu1  ;;  %v2567_v29 = vsub.s32 3, %v7119_v45 }
 0x6a6   :  { %v6265_v7 = vpop.eup %6264  ;;  %4665 = vst [vmem:[%s8510_s13 + $0x118] sm:$0xff] %v5234_v51  ;;  %6284 = vpow2.f32 %v5114_v27  ;;  %v8212_v38 = vpop.f32.mrb[155].mxu1  ;;  %v5020_v30 = vmul.f32 -1.442695, %v3312_v22  ;;  %v2579_v27 = vsub.s32 6, %v7119_v45 }
 0x6a7   :  { %v6267_v26 = vpop.eup %6266  ;;  %4667 = vst [vmem:[%s8510_s13 + $0x128] sm:$0xff] %v5236_v18  ;;  %6286 = vpow2.f32 %v5116_v17 }
 0x6a8   :  { %v6269_v19 = vpop.eup %6268  ;;  %v5238_v8 = vpack.c.bf16 %v6267_v26, %v6263_v53  ;;  %6288 = vpow2.f32 %v5120_v13  ;;  %v8232_v13 = vrot.slane %v8187_v20, %v2567_v29  ;;  %v8239_v26 = vrot.slane %v8187_v20, %v2579_v27 }
 0x6a9   :  { %v6271_v52 = vpop.eup %6270  ;;  %v5240_v55 = vpack.c.bf16 %v6269_v19, %v6265_v7  ;;  %6290 = vpow2.f32 %v5117_v5 }
 0x6aa   :  { %v6273_v28 = vpop.eup %6272  ;;  %4669 = vst [vmem:[%s8510_s13 + $0x134] sm:$0xff] %v5238_v8  ;;  %6292 = vpow2.f32 %v5121_v9  ;;  %v3538_v20 = vadd.f32 %v8081_v41, %v8239_v26 }
 0x6ab   :  { %v6275_v61 = vpop.eup %6274  ;;  %4671 = vst [vmem:[%s8510_s13 + $0x144] sm:$0xff] %v5240_v55  ;;  %6294 = vpow2.f32 %v5123_v43  ;;  %v8226_v17 = vpop.f32.mrb[156].mxu1 }
 0x6ac   :  { %v6277_v4 = vpop.eup %6276  ;;  %v5242_v35 = vpack.c.bf16 %v6275_v61, %v6271_v52  ;;  %6296 = vpow2.f32 %v5127_v3  ;;  %v8234_v45 = vpop.f32.mrb[157].mxu1  ;;  %v3314_v52 = vadd.f32 %v8074_v34, %v8232_v13  ;;  %v3316_v34 = vadd.f32 %v8083_v48, %v8190_v40 }
 0x6ad   :  { %v6279_v46 = vpop.eup %6278  ;;  %v5244_v2 = vpack.c.bf16 %v6277_v4, %v6273_v28  ;;  %6298 = vpow2.f32 %v5124_v44  ;;  %v8236_v5 = vpop.f32.mrb[158].mxu1 }
 0x6ae   :  { %v6281_v16 = vpop.eup %6280  ;;  %4673 = vst [vmem:[%s8510_s13 + $0x150] sm:$0xff] %v5242_v35  ;;  %v4027_v56 = vadd.f32 1.0, %v6279_v46  ;;  %6300 = vpow2.f32 %v5128_v60  ;;  %v8241_v43 = vpop.f32.mrb[159].mxu1  ;;  %v5021_v46 = vmul.f32 -1.442695, %v3314_v52  ;;  %v3324_v52 = vadd.f32 %v8094_v62, %v8232_v13 }
 0x6af   :  { %v6283_v39 = vpop.eup %6282  ;;  %4675 = vst [vmem:[%s8510_s13 + $0x160] sm:$0xff] %v5244_v2  ;;  %v4031_v51 = vadd.f32 1.0, %v6281_v16  ;;  %6302 = vpow2.f32 %v5020_v30  ;;  %v3328_v62 = vadd.f32 %v8100_v23, %v8232_v13  ;;  %v3332_v23 = vadd.f32 %v8106_v47, %v8190_v40 }
 0x6b0   :  { %v6285_v53 = vpop.eup %6284  ;;  %6304 = vrcp.f32 %v4027_v56  ;;  %v4028_v18 = vadd.f32 1.0, %v6283_v39  ;;  %v3318_v56 = vadd.f32 %v8088_v63, %v8232_v13 }
 0x6b1   :  { %v6287_v7 = vpop.eup %6286  ;;  %6306 = vrcp.f32 %v4031_v51  ;;  %v4032_v9 = vadd.f32 1.0, %v6285_v53 }
 0x6b2   :  { %v6289_v22 = vpop.eup %6288  ;;  %6308 = vrcp.f32 %v4028_v18  ;;  %v4034_v19 = vadd.f32 1.0, %v6287_v7  ;;  %v5024_v18 = vmul.f32 -1.442695, %v3538_v20  ;;  %v3541_v7 = vadd.f32 %v8090_v54, %v8239_v26 }
 0x6b3   :  { %v6291_v8 = vpop.eup %6290  ;;  %6310 = vrcp.f32 %v4032_v9  ;;  %v4038_v3 = vadd.f32 1.0, %v6289_v22  ;;  %v5382_v29 = vpop.f32.mrb[160].mxu1  ;;  %v3546_v54 = vadd.f32 %v8098_v15, %v8239_v26  ;;  %v5035_v15 = vmul.f32 -1.442695, %v3324_v52 }
 0x6b4   :  { %v6293_v55 = vpop.eup %6292  ;;  %6312 = vrcp.f32 %v4034_v19  ;;  %v4035_v44 = vadd.f32 1.0, %v6291_v8  ;;  %v5383_v2 = vpop.f32.mrb[161].mxu1  ;;  %v3322_v19 = vadd.f32 %v8092_v21, %v8190_v40  ;;  %v5031_v20 = vmul.f32 -1.442695, %v3541_v7 }
 0x6b5   :  { %v6295_v28 = vpop.eup %6294  ;;  %6314 = vrcp.f32 %v4038_v3  ;;  %v4039_v60 = vadd.f32 1.0, %v6293_v55  ;;  %v8251_v39 = vadd.f32 %v5383_v2, %v5382_v29  ;;  %v5385_v41 = vpop.f32.mrb[162].mxu1  ;;  %v5027_v3 = vmul.f32 -1.442695, %v3316_v34 }
 0x6b6   :  { %v6297_v61 = vpop.eup %6296  ;;  %6316 = vrcp.f32 %v4035_v44  ;;  %v4041_v30 = vadd.f32 1.0, %v6295_v28  ;;  %v5386_v9 = vpop.f32.mrb[163].mxu1  ;;  %v5028_v44 = vmul.f32 -1.442695, %v3318_v56  ;;  %v3326_v21 = vadd.f32 %v8096_v1, %v8190_v40 }
 0x6b7   :  { %v6299_v4 = vpop.eup %6298  ;;  %6318 = vrcp.f32 %v4039_v60  ;;  %v4045_v35 = vadd.f32 1.0, %v6297_v61  ;;  %v8257_v8 = vadd.f32 %v5386_v9, %v5385_v41  ;;  %v5034_v29 = vmul.f32 -1.442695, %v3322_v19 }
 0x6b8   :  { %v6301_v27 = vpop.eup %6300  ;;  %6320 = vrcp.f32 %v4041_v30  ;;  %v4042_v16 = vadd.f32 1.0, %v6299_v4  ;;  %v5038_v2 = vmul.f32 -1.442695, %v3546_v54  ;;  %v5042_v9 = vmul.f32 -1.442695, %v3328_v62 }
 0x6b9   :  { %v6303_v51 = vpop.eup %6302  ;;  %6322 = vrcp.f32 %v4045_v35  ;;  %v4046_v53 = vadd.f32 1.0, %v6301_v27 }
 0x6ba   :  { %v6305_v22 = vpop.eup %6304  ;;  %6324 = vrcp.f32 %v4042_v16  ;;  %v3938_v48 = vadd.f32 1.0, %v6303_v51  ;;  %v5041_v51 = vmul.f32 -1.442695, %v3326_v21 }
 0x6bb   :  { %v6307_v63 = vpop.eup %6306  ;;  %6326 = vrcp.f32 %v4046_v53  ;;  %v5388_v4 = vpop.f32.mrb[164].mxu1 }
 0x6bc   :  { %v6309_v55 = vpop.eup %6308  ;;  %6328 = vrcp.f32 %v3938_v48  ;;  %v5389_v34 = vpop.f32.mrb[165].mxu1 }
 0x6bd   :  { %v6311_v28 = vpop.eup %6310  ;;  %v5246_v60 = vpack.c.bf16 %v6309_v55, %v6305_v22  ;;  %6330 = vpow2.f32 %v5021_v46  ;;  %v3549_v46 = vadd.f32 %v8102_v11, %v8239_v26  ;;  %v8277_v27 = vadd.f32 %v5389_v34, %v5388_v4  ;;  %v5391_v16 = vpop.f32.mrb[166].mxu1 }
 0x6be   :  { %v6313_v61 = vpop.eup %6312  ;;  %v5248_v30 = vpack.c.bf16 %v6311_v28, %v6307_v63  ;;  %6332 = vpow2.f32 %v5024_v18  ;;  %v3334_v11 = vadd.f32 %v8110_v59, %v8232_v13  ;;  %v5392_v53 = vpop.f32.mrb[167].mxu1  ;;  %v5048_v59 = vmul.f32 -1.442695, %v3332_v23 }
 0x6bf   :  { %v6315_v35 = vpop.eup %6314  ;;  %4677 = vst [vmem:[%s8510_s13 + $0x16c] sm:$0xff] %v5246_v60  ;;  %6334 = vpow2.f32 %v5027_v3  ;;  %v8281_v22 = vadd.f32 %v5392_v53, %v5391_v16  ;;  %v5045_v47 = vmul.f32 -1.442695, %v3549_v46 }
 0x6c0   :  { %v6317_v1 = vpop.eup %6316  ;;  %4679 = vst [vmem:[%s8510_s13 + $0x17c] sm:$0xff] %v5248_v30  ;;  %6336 = vpow2.f32 %v5028_v44  ;;  %v5049_v52 = vmul.f32 -1.442695, %v3334_v11 }
 0x6c1   :  { %v6319_v56 = vpop.eup %6318  ;;  %v5250_v41 = vpack.c.bf16 %v6317_v1, %v6313_v61  ;;  %6338 = vpow2.f32 %v5031_v20 }
 0x6c2   :  { %v6321_v18 = vpop.eup %6320  ;;  %v5252_v7 = vpack.c.bf16 %v6319_v56, %v6315_v35  ;;  %6340 = vpow2.f32 %v5034_v29 }
 0x6c3   :  { %v6323_v48 = vpop.eup %6322  ;;  %4681 = vst [vmem:[%s8510_s13 + $0x188] sm:$0xff] %v5250_v41  ;;  %6342 = vpow2.f32 %v5035_v15  ;;  %v5394_v54 = vpop.f32.mrb[168].mxu1  ;;  %v3336_v41 = vadd.f32 %v8114_v0, %v8190_v40 }
 0x6c4   :  { %v6325_v19 = vpop.eup %6324  ;;  %4683 = vst [vmem:[%s8510_s13 + $0x198] sm:$0xff] %v5252_v7  ;;  %6344 = vpow2.f32 %v5038_v2  ;;  %v5395_v60 = vpop.f32.mrb[169].mxu1 }
 0x6c5   :  { %v6327_v63 = vpop.eup %6326  ;;  %v5254_v3 = vpack.c.bf16 %v6325_v19, %v6321_v18  ;;  %6346 = vpow2.f32 %v5041_v51  ;;  %v8297_v61 = vadd.f32 %v5395_v60, %v5394_v54  ;;  %v5397_v30 = vpop.f32.mrb[170].mxu1  ;;  %v3338_v19 = vadd.f32 %v8120_v12, %v8232_v13 }
 0x6c6   :  { %v8289_v55 = vpop.eup %6328  ;;  %v5256_v44 = vpack.c.bf16 %v6327_v63, %v6323_v48  ;;  %6348 = vpow2.f32 %v5042_v9  ;;  %v5398_v4 = vpop.f32.mrb[171].mxu1 }
 0x6c7   :  { %v6331_v28 = vpop.eup %6330  ;;  %4685 = vst [vmem:[%s8510_s13 + $0x1a4] sm:$0xff] %v5254_v3  ;;  %6350 = vpow2.f32 %v5045_v47  ;;  %v8299_v46 = vadd.f32 %v5398_v4, %v5397_v30 }
 0x6c8   :  { %v6333_v20 = vpop.eup %6332  ;;  %4687 = vst [vmem:[%s8510_s13 + $0x1b4] sm:$0xff] %v5256_v44  ;;  %v3939_v21 = vadd.f32 1.0, %v6331_v28  ;;  %6352 = vpow2.f32 %v5048_v59  ;;  %v3342_v44 = vadd.f32 %v8136_v24, %v8190_v40 }
 0x6c9   :  { %v6335_v29 = vpop.eup %6334  ;;  %v3942_v62 = vadd.f32 1.0, %v6333_v20  ;;  %6354 = vpow2.f32 %v5049_v52  ;;  %v5055_v52 = vmul.f32 -1.442695, %v3336_v41  ;;  %v3344_v20 = vadd.f32 %v8139_v31, %v8232_v13 }
 0x6ca   :  { %v6337_v35 = vpop.eup %6336  ;;  %6356 = vrcp.f32 %v3939_v21  ;;  %v3945_v15 = vadd.f32 1.0, %v6335_v29  ;;  %v3346_v29 = vadd.f32 %v8142_v25, %v8190_v40  ;;  %v5062_v31 = vmul.f32 -1.442695, %v3342_v44 }
 0x6cb   :  { %v6339_v34 = vpop.eup %6338  ;;  %6358 = vrcp.f32 %v3942_v62  ;;  %v3946_v1 = vadd.f32 1.0, %v6337_v35  ;;  %v5400_v53 = vpop.f32.mrb[172].mxu1  ;;  %v3348_v62 = vadd.f32 %v8150_v33, %v8232_v13  ;;  %v5056_v35 = vmul.f32 -1.442695, %v3338_v19 }
 0x6cc   :  { %v6341_v2 = vpop.eup %6340  ;;  %6360 = vrcp.f32 %v3945_v15  ;;  %v3949_v23 = vadd.f32 1.0, %v6339_v34  ;;  %v5401_v9 = vpop.f32.mrb[173].mxu1  ;;  %v5063_v25 = vmul.f32 -1.442695, %v3344_v20  ;;  %v3354_v33 = vadd.f32 %v8160_v49, %v8232_v13 }
 0x6cd   :  { %v6343_v16 = vpop.eup %6342  ;;  %6362 = vrcp.f32 %v3946_v1  ;;  %v3952_v56 = vadd.f32 1.0, %v6341_v2  ;;  %v8305_v59 = vadd.f32 %v5401_v9, %v5400_v53  ;;  %v5403_v63 = vpop.f32.mrb[174].mxu1  ;;  %v3352_v1 = vadd.f32 %v8158_v37, %v8190_v40 }
 0x6ce   :  { %v6345_v51 = vpop.eup %6344  ;;  %6364 = vrcp.f32 %v3949_v23  ;;  %v3953_v11 = vadd.f32 1.0, %v6343_v16  ;;  %v5404_v54 = vpop.f32.mrb[175].mxu1  ;;  %v5070_v41 = vmul.f32 -1.442695, %v3348_v62  ;;  %v3358_v53 = vadd.f32 %v8164_v50, %v8232_v13 }
 0x6cf   :  { %v6347_v18 = vpop.eup %6346  ;;  %6366 = vrcp.f32 %v3952_v56  ;;  %v3956_v7 = vadd.f32 1.0, %v6345_v51  ;;  %v8311_v21 = vadd.f32 %v5404_v54, %v5403_v63  ;;  %v3356_v51 = vadd.f32 %v8162_v6, %v8190_v40 }
 0x6d0   :  { %v6349_v48 = vpop.eup %6348  ;;  %6368 = vrcp.f32 %v3953_v11  ;;  %v3959_v47 = vadd.f32 1.0, %v6347_v18  ;;  %v3362_v6 = vadd.f32 %v8166_v14, %v8190_v40  ;;  %v3364_v50 = vadd.f32 %v8170_v58, %v8232_v13 }
 0x6d1   :  { %v6351_v3 = vpop.eup %6350  ;;  %6370 = vrcp.f32 %v3956_v7  ;;  %v3960_v0 = vadd.f32 1.0, %v6349_v48  ;;  %v5083_v44 = vmul.f32 -1.442695, %v3356_v51  ;;  %v3366_v54 = vadd.f32 %v8173_v10, %v8190_v40 }
 0x6d2   :  { %v6353_v28 = vpop.eup %6352  ;;  %6372 = vrcp.f32 %v3959_v47  ;;  %v3963_v60 = vadd.f32 1.0, %v6351_v3  ;;  %v5076_v47 = vmul.f32 -1.442695, %v3352_v1  ;;  %v5077_v3 = vmul.f32 -1.442695, %v3354_v33 }
 0x6d3   :  { %v6355_v12 = vpop.eup %6354  ;;  %6374 = vrcp.f32 %v3960_v0  ;;  %v3966_v30 = vadd.f32 1.0, %v6353_v28  ;;  %v5406_v16 = vpop.f32.mrb[176].mxu1  ;;  %v5084_v20 = vmul.f32 -1.442695, %v3358_v53  ;;  %v5090_v58 = vmul.f32 -1.442695, %v3362_v6 }
 0x6d4   :  { %v6357_v4 = vpop.eup %6356  ;;  %6376 = vrcp.f32 %v3963_v60  ;;  %v3967_v24 = vadd.f32 1.0, %v6355_v12  ;;  %v5407_v37 = vpop.f32.mrb[177].mxu1  ;;  %v5091_v10 = vmul.f32 -1.442695, %v3364_v50 }
 0x6d5   :  { %v6359_v15 = vpop.eup %6358  ;;  %v5195_v34 = vpack.c.bf16 %v6357_v4, %v8289_v55  ;;  %6378 = vrcp.f32 %v3966_v30  ;;  %v5069_v55 = vmul.f32 -1.442695, %v3346_v29  ;;  %v8333_v18 = vadd.f32 %v5407_v37, %v5406_v16  ;;  %v5409_v7 = vpop.f32.mrb[178].mxu1 }
 0x6d6   :  { %v6361_v2 = vpop.eup %6360  ;;  %v5197_v23 = vpack.c.bf16 %v6359_v15, %v6359_v15  ;;  %6380 = vrcp.f32 %v3967_v24  ;;  %v5410_v19 = vpop.f32.mrb[179].mxu1 }
 0x6d7   :  { %v6363_v56 = vpop.eup %6362  ;;  %4625 = vst [vmem:[%s8510_s13 + $0x8] sm:$0xff] %v5195_v34  ;;  %6382 = vpow2.f32 %v5055_v52  ;;  %v8342_v0 = vadd.f32 %v5410_v19, %v5409_v7 }
 0x6d8   :  { %v6365_v11 = vpop.eup %6364  ;;  %4628 = vst.msk [vmem:[%s8510_s13 + $0x18] sm:$0xf] %vm4627_vm1, %v5197_v23  ;;  %v5199_v49 = vpack.c.bf16 %v6363_v56, %v6361_v2  ;;  %6384 = vpow2.f32 %v5056_v35  ;;  %v5097_v35 = vmul.f32 -1.442695, %v3366_v54 }
 0x6d9   :  { %v6367_v9 = vpop.eup %6366  ;;  %v5201_v48 = vpack.c.bf16 %v6365_v11, %v6365_v11  ;;  %6386 = vpow2.f32 %v5062_v31 }
 0x6da   :  { %v6369_v63 = vpop.eup %6368  ;;  %4630 = vst [vmem:[%s8510_s13 + $0x24] sm:$0xff] %v5199_v49  ;;  %6388 = vpow2.f32 %v5063_v25 }
 0x6db   :  { %v6371_v52 = vpop.eup %6370  ;;  %4632 = vst.msk [vmem:[%s8510_s13 + $0x34] sm:$0xf] %vm4627_vm1, %v5201_v48  ;;  %v5203_v14 = vpack.c.bf16 %v6369_v63, %v6367_v9  ;;  %6390 = vpow2.f32 %v5069_v55  ;;  %v5412_v62 = vpop.f32.mrb[180].mxu1 }
 0x6dc   :  { %v6373_v28 = vpop.eup %6372  ;;  %v5205_v60 = vpack.c.bf16 %v6371_v52, %v6371_v52  ;;  %6392 = vpow2.f32 %v5070_v41  ;;  %v5413_v15 = vpop.f32.mrb[181].mxu1 }
 0x6dd   :  { %v6375_v12 = vpop.eup %6374  ;;  %4634 = vst [vmem:[%s8510_s13 + $0x40] sm:$0xff] %v5203_v14  ;;  %6394 = vpow2.f32 %v5076_v47  ;;  %v8360_v31 = vadd.f32 %v5413_v15, %v5412_v62  ;;  %v5415_v1 = vpop.f32.mrb[182].mxu1  ;;  %v3372_v14 = vadd.f32 %v8198_v42, %v8190_v40 }
 0x6de   :  { %v6377_v30 = vpop.eup %6376  ;;  %4636 = vst.msk [vmem:[%s8510_s13 + $0x50] sm:$0xf] %vm4627_vm1, %v5205_v60  ;;  %v5207_v29 = vpack.c.bf16 %v6375_v12, %v6373_v28  ;;  %6396 = vpow2.f32 %v5077_v3  ;;  %v5416_v25 = vpop.f32.mrb[183].mxu1  ;;  %v3368_v3 = vadd.f32 %v8177_v57, %v8232_v13  ;;  %v3374_v28 = vadd.f32 %v8206_v36, %v8232_v13 }
 0x6df   :  { %v6379_v4 = vpop.eup %6378  ;;  %v5209_v24 = vpack.c.bf16 %v6377_v30, %v6377_v30  ;;  %6398 = vpow2.f32 %v5083_v44  ;;  %v8366_v56 = vadd.f32 %v5416_v25, %v5415_v1  ;;  %v3376_v12 = vadd.f32 %v8209_v32, %v8190_v40 }
 0x6e0   :  { %v6381_v34 = vpop.eup %6380  ;;  %4638 = vst [vmem:[%s8510_s13 + $0x5c] sm:$0xff] %v5207_v29  ;;  %6400 = vpow2.f32 %v5084_v20  ;;  %v5098_v30 = vmul.f32 -1.442695, %v3368_v3  ;;  %v3378_v29 = vadd.f32 %v8212_v38, %v8232_v13  ;;  %v5104_v62 = vmul.f32 -1.442695, %v3372_v14 }
 0x6e1   :  { %v6383_v2 = vpop.eup %6382  ;;  %4640 = vst.msk [vmem:[%s8510_s13 + $0x6c] sm:$0xf] %vm4627_vm1, %v5209_v24  ;;  %v5211_v23 = vpack.c.bf16 %v6381_v34, %v6379_v4  ;;  %6402 = vpow2.f32 %v5090_v58  ;;  %v3382_v36 = vadd.f32 %v8226_v17, %v8190_v40  ;;  %v5105_v24 = vmul.f32 -1.442695, %v3374_v28 }
 0x6e2   :  { %v6385_v33 = vpop.eup %6384  ;;  %v3973_v16 = vadd.f32 1.0, %v6383_v2  ;;  %6404 = vpow2.f32 %v5091_v10  ;;  %v3384_v32 = vadd.f32 %v8234_v45, %v8232_v13  ;;  %v5111_v34 = vmul.f32 -1.442695, %v3376_v12 }
 0x6e3   :  { %v6387_v55 = vpop.eup %6386  ;;  %4642 = vst [vmem:[%s8510_s13 + $0x78] sm:$0xff] %v5211_v23  ;;  %v3974_v41 = vadd.f32 1.0, %v6385_v33  ;;  %6406 = vpow2.f32 %v5097_v35  ;;  %v3386_v38 = vadd.f32 %v8236_v5, %v8190_v40  ;;  %v5112_v2 = vmul.f32 -1.442695, %v3378_v29 }
 0x6e4   :  { %v6389_v51 = vpop.eup %6388  ;;  %6408 = vrcp.f32 %v3973_v16  ;;  %v3980_v37 = vadd.f32 1.0, %v6387_v55  ;;  %v3388_v23 = vadd.f32 %v8241_v43, %v8232_v13  ;;  %v5118_v45 = vmul.f32 -1.442695, %v3382_v36 }
 0x6e5   :  { %v6391_v11 = vpop.eup %6390  ;;  %6410 = vrcp.f32 %v3974_v41  ;;  %v3981_v49 = vadd.f32 1.0, %v6389_v51  ;;  %v3554_v33 = vadd.f32 %v8251_v39, %v8239_v26  ;;  %v5119_v40 = vmul.f32 -1.442695, %v3384_v32 }
 0x6e6   :  { %v6393_v53 = vpop.eup %6392  ;;  %6412 = vrcp.f32 %v3980_v37  ;;  %v3987_v7 = vadd.f32 1.0, %v6391_v11  ;;  %v3557_v5 = vadd.f32 %v8257_v8, %v8239_v26  ;;  %v5125_v43 = vmul.f32 -1.442695, %v3386_v38 }
 0x6e7   :  { %v6395_v9 = vpop.eup %6394  ;;  %6414 = vrcp.f32 %v3981_v49  ;;  %v3988_v48 = vadd.f32 1.0, %v6393_v53  ;;  %v3562_v41 = vadd.f32 %v8277_v27, %v8239_v26  ;;  %v5126_v39 = vmul.f32 -1.442695, %v3388_v23 }
 0x6e8   :  { %v6397_v47 = vpop.eup %6396  ;;  %6416 = vrcp.f32 %v3987_v7  ;;  %v3994_v6 = vadd.f32 1.0, %v6395_v9  ;;  %v3565_v37 = vadd.f32 %v8281_v22, %v8239_v26  ;;  %v5052_v49 = vmul.f32 -1.442695, %v3554_v33 }
 0x6e9   :  { %v6399_v19 = vpop.eup %6398  ;;  %6418 = vrcp.f32 %v3988_v48  ;;  %v3995_v63 = vadd.f32 1.0, %v6397_v47  ;;  %v5059_v7 = vmul.f32 -1.442695, %v3557_v5  ;;  %v5066_v48 = vmul.f32 -1.442695, %v3562_v41 }
 0x6ea   :  { %v6401_v50 = vpop.eup %6400  ;;  %6420 = vrcp.f32 %v3994_v6  ;;  %v4001_v52 = vadd.f32 1.0, %v6399_v19  ;;  %v5073_v47 = vmul.f32 -1.442695, %v3565_v37 }
 0x6eb   :  { %v6403_v44 = vpop.eup %6402  ;;  %6422 = vrcp.f32 %v3995_v63  ;;  %v4002_v54 = vadd.f32 1.0, %v6401_v50 }
 0x6ec   :  { %v6405_v60 = vpop.eup %6404  ;;  %6424 = vrcp.f32 %v4001_v52  ;;  %v4008_v20 = vadd.f32 1.0, %v6403_v44 }
 0x6ed   :  { %v6407_v58 = vpop.eup %6406  ;;  %6426 = vrcp.f32 %v4002_v54  ;;  %v4009_v57 = vadd.f32 1.0, %v6405_v60 }
 0x6ee   :  { %v6409_v42 = vpop.eup %6408  ;;  %6428 = vrcp.f32 %v4008_v20  ;;  %v4015_v10 = vadd.f32 1.0, %v6407_v58 }
 0x6ef   :  { %v6411_v4 = vpop.eup %6410  ;;  %6430 = vrcp.f32 %v4009_v57 }
 0x6f0   :  { %v6413_v35 = vpop.eup %6412  ;;  %v5215_v15 = vpack.c.bf16 %v6411_v4, %v6409_v42  ;;  %6432 = vrcp.f32 %v4015_v10 }
 0x6f1   :  { %v6415_v1 = vpop.eup %6414  ;;  %6434 = vpow2.f32 %v5098_v30 }
 0x6f2   :  { %v6417_v17 = vpop.eup %6416  ;;  %4646 = vst [vmem:[%s8510_s13 + $0x94] sm:$0xff] %v5215_v15  ;;  %v5219_v25 = vpack.c.bf16 %v6415_v1, %v6413_v35  ;;  %6436 = vpow2.f32 %v5104_v62  ;;  %v3570_v62 = vadd.f32 %v8297_v61, %v8239_v26  ;;  %v3578_v15 = vadd.f32 %v8305_v59, %v8239_v26 }
 0x6f3   :  { %v6419_v16 = vpop.eup %6418  ;;  %6438 = vpow2.f32 %v5105_v24  ;;  %v3573_v24 = vadd.f32 %v8299_v46, %v8239_v26  ;;  %v3581_v1 = vadd.f32 %v8311_v21, %v8239_v26  ;;  %v3589_v59 = vadd.f32 %v8342_v0, %v8239_v26 }
 0x6f4   :  { %v6421_v55 = vpop.eup %6420  ;;  %4650 = vst [vmem:[%s8510_s13 + $0xb0] sm:$0xff] %v5219_v25  ;;  %v5223_v13 = vpack.c.bf16 %v6419_v16, %v6417_v17  ;;  %6440 = vpow2.f32 %v5111_v34  ;;  %v5080_v23 = vmul.f32 -1.442695, %v3570_v62  ;;  %v3586_v17 = vadd.f32 %v8333_v18, %v8239_v26 }
 0x6f5   :  { %v6423_v51 = vpop.eup %6422  ;;  %6442 = vpow2.f32 %v5112_v2  ;;  %v3594_v21 = vadd.f32 %v8360_v31, %v8239_v26  ;;  %v3597_v18 = vadd.f32 %v8366_v56, %v8239_v26 }
 0x6f6   :  { %v6425_v11 = vpop.eup %6424  ;;  %4654 = vst [vmem:[%s8510_s13 + $0xcc] sm:$0xff] %v5223_v13  ;;  %v5227_v8 = vpack.c.bf16 %v6423_v51, %v6421_v55  ;;  %6444 = vpow2.f32 %v5118_v45  ;;  %v5087_v45 = vmul.f32 -1.442695, %v3573_v24  ;;  %v5101_v55 = vmul.f32 -1.442695, %v3581_v1 }
 0x6f7   :  { %v6427_v53 = vpop.eup %6426  ;;  %6446 = vpow2.f32 %v5119_v40  ;;  %v5094_v40 = vmul.f32 -1.442695, %v3578_v15  ;;  %v5115_v51 = vmul.f32 -1.442695, %v3589_v59  ;;  %v5122_v37 = vmul.f32 -1.442695, %v3594_v21 }
 0x6f8   :  { %v6429_v9 = vpop.eup %6428  ;;  %4658 = vst [vmem:[%s8510_s13 + $0xe8] sm:$0xff] %v5227_v8  ;;  %v5231_v27 = vpack.c.bf16 %v6427_v53, %v6425_v11  ;;  %6448 = vpow2.f32 %v5125_v43  ;;  %v5108_v43 = vmul.f32 -1.442695, %v3586_v17  ;;  %v5129_v56 = vmul.f32 -1.442695, %v3597_v18 }
 0x6f9   :  { %v6431_v22 = vpop.eup %6430  ;;  %6450 = vpow2.f32 %v5126_v39 }
 0x6fa   :  { %v8409_v6 = vpop.eup %6432  ;;  %4662 = vst [vmem:[%s8510_s13 + $0x104] sm:$0xff] %v5231_v27  ;;  %v5235_v19 = vpack.c.bf16 %v6431_v22, %v6429_v9  ;;  %6452 = vpow2.f32 %v5052_v49 }
 0x6fb   :  { %v6435_v63 = vpop.eup %6434  ;;  %6454 = vpow2.f32 %v5059_v7 }
 0x6fc   :  { %v6437_v3 = vpop.eup %6436  ;;  %4666 = vst [vmem:[%s8510_s13 + $0x120] sm:$0xff] %v5235_v19  ;;  %v4016_v50 = vadd.f32 1.0, %v6435_v63  ;;  %6456 = vpow2.f32 %v5066_v48 }
 0x6fd   :  { %v6439_v52 = vpop.eup %6438  ;;  %v4022_v14 = vadd.f32 1.0, %v6437_v3  ;;  %6458 = vpow2.f32 %v5073_v47 }
 0x6fe   :  { %v6441_v44 = vpop.eup %6440  ;;  %6460 = vrcp.f32 %v4016_v50  ;;  %v4023_v54 = vadd.f32 1.0, %v6439_v52 }
 0x6ff   :  { %v6443_v28 = vpop.eup %6442  ;;  %6462 = vrcp.f32 %v4022_v14  ;;  %v4029_v60 = vadd.f32 1.0, %v6441_v44 }
 0x700   :  { %v6445_v20 = vpop.eup %6444  ;;  %6464 = vrcp.f32 %v4023_v54  ;;  %v4030_v12 = vadd.f32 1.0, %v6443_v28 }
 0x701   :  { %v6447_v58 = vpop.eup %6446  ;;  %6466 = vrcp.f32 %v4029_v60  ;;  %v4036_v57 = vadd.f32 1.0, %v6445_v20 }
 0x702   :  { %v6449_v30 = vpop.eup %6448  ;;  %6468 = vrcp.f32 %v4030_v12  ;;  %v4037_v29 = vadd.f32 1.0, %v6447_v58 }
 0x703   :  { %v6451_v42 = vpop.eup %6450  ;;  %6470 = vrcp.f32 %v4036_v57  ;;  %v4043_v10 = vadd.f32 1.0, %v6449_v30 }
 0x704   :  { %v6453_v36 = vpop.eup %6452  ;;  %6472 = vrcp.f32 %v4037_v29  ;;  %v4044_v4 = vadd.f32 1.0, %v6451_v42 }
 0x705   :  { %v6455_v32 = vpop.eup %6454  ;;  %6474 = vrcp.f32 %v4043_v10  ;;  %v3970_v35 = vadd.f32 1.0, %v6453_v36 }
 0x706   :  { %v6457_v34 = vpop.eup %6456  ;;  %6476 = vrcp.f32 %v4044_v4  ;;  %v3977_v38 = vadd.f32 1.0, %v6455_v32 }
 0x707   :  { %v6459_v2 = vpop.eup %6458  ;;  %6478 = vrcp.f32 %v3970_v35  ;;  %v3984_v61 = vadd.f32 1.0, %v6457_v34 }
 0x708   :  { %v6461_v46 = vpop.eup %6460  ;;  %6480 = vrcp.f32 %v3977_v38  ;;  %v3991_v25 = vadd.f32 1.0, %v6459_v2 }
 0x709   :  { %v6463_v33 = vpop.eup %6462  ;;  %v5239_v16 = vpack.c.bf16 %v6461_v46, %v8409_v6  ;;  %6482 = vrcp.f32 %v3984_v61 }
 0x70a   :  { %v6465_v5 = vpop.eup %6464  ;;  %6484 = vrcp.f32 %v3991_v25 }
 0x70b   :  { %v6467_v13 = vpop.eup %6466  ;;  %4670 = vst [vmem:[%s8510_s13 + $0x13c] sm:$0xff] %v5239_v16  ;;  %v5243_v0 = vpack.c.bf16 %v6465_v5, %v6463_v33  ;;  %6486 = vpow2.f32 %v5080_v23 }
 0x70c   :  { %v6469_v41 = vpop.eup %6468  ;;  %6488 = vpow2.f32 %v5087_v45 }
 0x70d   :  { %v6471_v39 = vpop.eup %6470  ;;  %4674 = vst [vmem:[%s8510_s13 + $0x158] sm:$0xff] %v5243_v0  ;;  %v5247_v31 = vpack.c.bf16 %v6469_v41, %v6467_v13  ;;  %6490 = vpow2.f32 %v5094_v40 }
 0x70e   :  { %v6473_v26 = vpop.eup %6472  ;;  %6492 = vpow2.f32 %v5101_v55 }
 0x70f   :  { %v6475_v11 = vpop.eup %6474  ;;  %4678 = vst [vmem:[%s8510_s13 + $0x174] sm:$0xff] %v5247_v31  ;;  %v5251_v8 = vpack.c.bf16 %v6473_v26, %v6471_v39  ;;  %6494 = vpow2.f32 %v5108_v43 }
 0x710   :  { %v6477_v49 = vpop.eup %6476  ;;  %6496 = vpow2.f32 %v5115_v51 }
 0x711   :  { %v6479_v53 = vpop.eup %6478  ;;  %4682 = vst [vmem:[%s8510_s13 + $0x190] sm:$0xff] %v5251_v8  ;;  %v5255_v7 = vpack.c.bf16 %v6477_v49, %v6475_v11  ;;  %6498 = vpow2.f32 %v5122_v37 }
 0x712   :  { %v6481_v9 = vpop.eup %6480  ;;  %v5213_v27 = vpack.c.bf16 %v6479_v53, %v6479_v53  ;;  %6500 = vpow2.f32 %v5129_v56 }
 0x713   :  { %v6483_v48 = vpop.eup %6482  ;;  %4686 = vst [vmem:[%s8510_s13 + $0x1ac] sm:$0xff] %v5255_v7  ;;  %v5217_v22 = vpack.c.bf16 %v6481_v9, %v6481_v9 }
 0x714   :  { %v6485_v47 = vpop.eup %6484  ;;  %4644 = vst.msk [vmem:[%s8510_s13 + $0x88] sm:$0xf] %vm4627_vm1, %v5213_v27  ;;  %v5221_v6 = vpack.c.bf16 %v6483_v48, %v6483_v48 }
 0x715   :  { %v6487_v19 = vpop.eup %6486  ;;  %4648 = vst.msk [vmem:[%s8510_s13 + $0xa4] sm:$0xf] %vm4627_vm1, %v5217_v22  ;;  %v5225_v63 = vpack.c.bf16 %v6485_v47, %v6485_v47 }
 0x716   :  { %v6489_v3 = vpop.eup %6488  ;;  %4652 = vst.msk [vmem:[%s8510_s13 + $0xc0] sm:$0xf] %vm4627_vm1, %v5221_v6  ;;  %v3998_v50 = vadd.f32 1.0, %v6487_v19 }
 0x717   :  { %v6491_v52 = vpop.eup %6490  ;;  %4656 = vst.msk [vmem:[%s8510_s13 + $0xdc] sm:$0xf] %vm4627_vm1, %v5225_v63  ;;  %v4005_v14 = vadd.f32 1.0, %v6489_v3 }
 0x718   :  { %v6493_v44 = vpop.eup %6492  ;;  %6502 = vrcp.f32 %v3998_v50  ;;  %v4012_v54 = vadd.f32 1.0, %v6491_v52 }
 0x719   :  { %v6495_v28 = vpop.eup %6494  ;;  %6504 = vrcp.f32 %v4005_v14  ;;  %v4019_v60 = vadd.f32 1.0, %v6493_v44 }
 0x71a   :  { %v6497_v20 = vpop.eup %6496  ;;  %6506 = vrcp.f32 %v4012_v54  ;;  %v4026_v12 = vadd.f32 1.0, %v6495_v28 }
 0x71b   :  { %v6499_v58 = vpop.eup %6498  ;;  %6508 = vrcp.f32 %v4019_v60  ;;  %v4033_v57 = vadd.f32 1.0, %v6497_v20 }
 0x71c   :  { %v6501_v30 = vpop.eup %6500  ;;  %6510 = vrcp.f32 %v4026_v12  ;;  %v4040_v29 = vadd.f32 1.0, %v6499_v58 }
 0x71d   :  { %6512 = vrcp.f32 %v4033_v57  ;;  %v4047_v42 = vadd.f32 1.0, %v6501_v30 }
 0x71e   :  { %6514 = vrcp.f32 %v4040_v29 }
 0x71f   :  { %6516 = vrcp.f32 %v4047_v42 }
 0x722   :  { %v6503_v10 = vpop.eup %6502 }
 0x723   :  { %v6505_v62 = vpop.eup %6504  ;;  %v5229_v36 = vpack.c.bf16 %v6503_v10, %v6503_v10 }
 0x724   :  { %v6507_v4 = vpop.eup %6506  ;;  %v5233_v24 = vpack.c.bf16 %v6505_v62, %v6505_v62 }
 0x725   :  { %v6509_v32 = vpop.eup %6508  ;;  %4660 = vst.msk [vmem:[%s8510_s13 + $0xf8] sm:$0xf] %vm4627_vm1, %v5229_v36  ;;  %v5237_v35 = vpack.c.bf16 %v6507_v4, %v6507_v4 }
 0x726   :  { %v6511_v15 = vpop.eup %6510  ;;  %4664 = vst.msk [vmem:[%s8510_s13 + $0x114] sm:$0xf] %vm4627_vm1, %v5233_v24  ;;  %v5241_v34 = vpack.c.bf16 %v6509_v32, %v6509_v32 }
 0x727   :  { %v6513_v38 = vpop.eup %6512  ;;  %4668 = vst.msk [vmem:[%s8510_s13 + $0x130] sm:$0xf] %vm4627_vm1, %v5237_v35  ;;  %v5245_v1 = vpack.c.bf16 %v6511_v15, %v6511_v15 }
 0x728   :  { %v6515_v2 = vpop.eup %6514  ;;  %4672 = vst.msk [vmem:[%s8510_s13 + $0x14c] sm:$0xf] %vm4627_vm1, %v5241_v34  ;;  %v5249_v61 = vpack.c.bf16 %v6513_v38, %v6513_v38 }
 0x729   :  { %v6517_v23 = vpop.eup %6516  ;;  %4676 = vst.msk [vmem:[%s8510_s13 + $0x168] sm:$0xf] %vm4627_vm1, %v5245_v1  ;;  %v5253_v17 = vpack.c.bf16 %v6515_v2, %v6515_v2 }
 0x72a   :  { %4680 = vst.msk [vmem:[%s8510_s13 + $0x184] sm:$0xf] %vm4627_vm1, %v5249_v61  ;;  %v5257_v46 = vpack.c.bf16 %v6517_v23, %v6517_v23 }
 0x72b   :  { %4684 = vst.msk [vmem:[%s8510_s13 + $0x1a0] sm:$0xf] %vm4627_vm1, %v5253_v17 }
 0x72c   :  { %4688 = vst.msk [vmem:[%s8510_s13 + $0x1bc] sm:$0xf] %vm4627_vm1, %v5257_v46 }

// kernel: tpu_custom_call.1
= control target key start
LH: loop header
LB: loop body
LE: loop exit
PB: predicated region body
PF: predicated region fallthrough
CT: control target
= control target key end

     0   :  { %vm989_vm0 = vcmask 130048   ;;  %vm4627_vm1 = vcmask 125952   ;;  %s8497_s1 = inlined_call_operand.vmem [shape: bf16[784,256], index: 1, kind: input, shape index: {}]   ;;  %s8498_s0 = inlined_call_operand.vmem [shape: bf16[128,784], index: 0, kind: input, shape index: {}]   ;;  %s8499_s3 = inlined_call_operand.vmem [shape: bf16[256,128], index: 3, kind: input, shape index: {}]   ;;  %s8500_s5 = inlined_call_operand.vmem [shape: bf16[128,128], index: 5, kind: input, shape index: {}]   ;;  %s8501_s2 = inlined_call_operand.vmem [shape: f32[1,256], index: 2, kind: input, shape index: {}]   ;;  %s8502_s7 = inlined_call_operand.vmem [shape: bf16[128,128], index: 7, kind: input, shape index: {}]   ;;  %s8503_s4 = inlined_call_operand.vmem [shape: f32[1,128], index: 4, kind: input, shape index: {}]   ;;  %s8504_s9 = inlined_call_operand.vmem [shape: bf16[128,256], index: 9, kind: input, shape index: {}]   ;;  %s8505_s6 = inlined_call_operand.vmem [shape: f32[1,128], index: 6, kind: input, shape index: {}]   ;;  %s8506_s11 = inlined_call_operand.vmem [shape: bf16[256,784], index: 11, kind: input, shape index: {}]   ;;  %s8507_s8 = inlined_call_operand.vmem [shape: f32[1,128], index: 8, kind: input, shape index: {}]   ;;  %s8508_s10 = inlined_call_operand.vmem [shape: f32[1,256], index: 10, kind: input, shape index: {}]   ;;  %s8509_s12 = inlined_call_operand.vmem [shape: f32[1,784], index: 12, kind: input, shape index: {}]   ;;  %s8510_s13 = inlined_call_operand.vmem [shape: bf16[128,784], index: 13, kind: output, shape index: {}]  }
   0x1   :  { %v5627_v0 = vld [vmem:[%s8497_s1 + $0x4] ss:$8 sps:$4 sm:$0xff]   ;;  %v5629_v1 = vld [vmem:[%s8497_s1] ss:$8 sps:$4 sm:$0xff]   ;;  %v5630_v2 = vld [vmem:[%s8497_s1 + $0x14] ss:$8 sps:$4 sm:$0xff]  }
   0x2   :  { %1014 = vmatprep.subr.bf16.mxu0 %v5627_v0  ;;  %v5632_v3 = vld [vmem:[%s8497_s1 + $0x10] ss:$8 sps:$4 sm:$0xff]   ;;  %v5633_v4 = vld [vmem:[%s8497_s1 + $0x24] ss:$8 sps:$4 sm:$0xff]   ;;  %v5635_v5 = vld [vmem:[%s8497_s1 + $0x20] ss:$8 sps:$4 sm:$0xff]  }
   0x3   :  { %1015 = vmatpush1.bf16.msra.mxu0 %v5629_v1  ;;  %v5636_v6 = vld [vmem:[%s8497_s1 + $0x34] ss:$8 sps:$4 sm:$0xff]   ;;  %v5638_v7 = vld [vmem:[%s8497_s1 + $0x30] ss:$8 sps:$4 sm:$0xff]   ;;  %v5639_v8 = vld [vmem:[%s8497_s1 + $0x44] ss:$8 sps:$4 sm:$0xff]  }
   0x4   :  { %1016 = vmatprep.subr.bf16.mxu0 %v5630_v2  ;;  %v5641_v9 = vld [vmem:[%s8497_s1 + $0x40] ss:$8 sps:$4 sm:$0xff]   ;;  %v5642_v10 = vld [vmem:[%s8497_s1 + $0x54] ss:$8 sps:$4 sm:$0xff]   ;;  %v5644_v11 = vld [vmem:[%s8497_s1 + $0x50] ss:$8 sps:$4 sm:$0xff]  }
   0x5   :  { %v5645_v12 = vld [vmem:[%s8497_s1 + $0x64] ss:$8 sps:$4 sm:$0xff]   ;;  %v5647_v14 = vld [vmem:[%s8497_s1 + $0x60] ss:$8 sps:$4 sm:$0xff]   ;;  %v5648_v15 = vld [vmem:[%s8497_s1 + $0x74] ss:$8 sps:$4 sm:$0xff]  }
   0x6   :  { %v5677_v13 = vld [vmem:[%s8498_s0 + $0x4] ss:$28 sps:$4 sm:$0xff]   ;;  %v5650_v16 = vld [vmem:[%s8497_s1 + $0x70] ss:$8 sps:$4 sm:$0xff]   ;;  %v5654_v19 = vld [vmem:[%s8497_s1 + $0x94] ss:$8 sps:$4 sm:$0xff]  }
   0x7   :  { %1017 = vmatpush1.bf16.msra.mxu0 %v5632_v3  ;;  %1046 = vmatprep.mubr.bf16.mxu0 %v5677_v13  ;;  %v5651_v17 = vld [vmem:[%s8497_s1 + $0x84] ss:$8 sps:$4 sm:$0xff]   ;;  %v5653_v18 = vld [vmem:[%s8497_s1 + $0x80] ss:$8 sps:$4 sm:$0xff]   ;;  %v5656_v20 = vld [vmem:[%s8497_s1 + $0x90] ss:$8 sps:$4 sm:$0xff]  }
   0x8   :  { %1018 = vmatprep.subr.bf16.mxu0 %v5633_v4  ;;  %v5657_v21 = vld [vmem:[%s8497_s1 + $0xa4] ss:$8 sps:$4 sm:$0xff]   ;;  %v5659_v22 = vld [vmem:[%s8497_s1 + $0xa0] ss:$8 sps:$4 sm:$0xff]   ;;  %v5660_v23 = vld [vmem:[%s8497_s1 + $0xb4] ss:$8 sps:$4 sm:$0xff]  }
   0x9   :  { %v5662_v24 = vld [vmem:[%s8497_s1 + $0xb0] ss:$8 sps:$4 sm:$0xff]   ;;  %v5663_v25 = vld [vmem:[%s8497_s1 + $0xc4] ss:$8 sps:$4 sm:$0xff]   ;;  %v5665_v26 = vld [vmem:[%s8497_s1 + $0xc0] ss:$8 sps:$4 sm:$0xff]  }
   0xa   :  { %v5666_v27 = vld [vmem:[%s8497_s1 + $0xd4] ss:$8 sps:$4 sm:$0xff]   ;;  %v5668_v28 = vld [vmem:[%s8497_s1 + $0xd0] ss:$8 sps:$4 sm:$0xff]   ;;  %v5669_v29 = vld [vmem:[%s8497_s1 + $0xe4] ss:$8 sps:$4 sm:$0xff]  }
   0xb   :  { %1019 = vmatpush1.bf16.msra.mxu0 %v5635_v5  ;;  %v5671_v30 = vld [vmem:[%s8497_s1 + $0xe0] ss:$8 sps:$4 sm:$0xff]   ;;  %v5672_v31 = vld [vmem:[%s8497_s1 + $0xf4] ss:$8 sps:$4 sm:$0xff]   ;;  %v5674_v32 = vld [vmem:[%s8497_s1 + $0xf0] ss:$8 sps:$4 sm:$0xff]  }
   0xc   :  { %1020 = vmatprep.subr.bf16.mxu0 %v5636_v6  ;;  %v5680_v33 = vld [vmem:[%s8497_s1 + $0x104] ss:$8 sps:$4 sm:$0xff]   ;;  %v5675_v34 = vld [vmem:[%s8498_s0] ss:$28 sps:$4 sm:$0xff]   ;;  %v5681_v38 = vld [vmem:[%s8497_s1 + $0x110] ss:$8 sps:$4 sm:$0xff]  }
   0xd   :  { %v5678_v35 = vld [vmem:[%s8497_s1 + $0x100] ss:$8 sps:$4 sm:$0xff]   ;;  %v5684_v36 = vld [vmem:[%s8498_s0 + $0x3c] ss:$28 sps:$4 sm:$0xff]   ;;  %v5689_v39 = vld [vmem:[%s8497_s1 + $0x124] ss:$8 sps:$4 sm:$0xff]  }
   0xe   :  { %v5683_v37 = vld [vmem:[%s8497_s1 + $0x114] ss:$8 sps:$4 sm:$0xff]   ;;  %v5687_v41 = vld [vmem:[%s8497_s1 + $0x120] ss:$8 sps:$4 sm:$0xff]   ;;  %v5690_v44 = vld [vmem:[%s8497_s1 + $0x130] ss:$8 sps:$4 sm:$0xff]  }
   0xf   :  { %1021 = vmatpush1.bf16.msra.mxu0 %v5638_v7  ;;  %v5686_v40 = vld [vmem:[%s8498_s0 + $0x38] ss:$28 sps:$4 sm:$0xff]   ;;  %v5698_v45 = vld [vmem:[%s8497_s1 + $0x144] ss:$8 sps:$4 sm:$0xff]   ;;  %v5696_v47 = vld [vmem:[%s8497_s1 + $0x140] ss:$8 sps:$4 sm:$0xff]  }
  0x10   :  { %1022 = vmatprep.subr.bf16.mxu0 %v5639_v8  ;;  %v5693_v42 = vld [vmem:[%s8498_s0 + $0x74] ss:$28 sps:$4 sm:$0xff]   ;;  %v5702_v48 = vld [vmem:[%s8498_s0 + $0xac] ss:$28 sps:$4 sm:$0xff]   ;;  %v5711_v54 = vld [vmem:[%s8498_s0 + $0xe4] ss:$28 sps:$4 sm:$0xff]  }
  0x11   :  { %v5692_v43 = vld [vmem:[%s8497_s1 + $0x134] ss:$8 sps:$4 sm:$0xff]   ;;  %v5695_v46 = vld [vmem:[%s8498_s0 + $0x70] ss:$28 sps:$4 sm:$0xff]   ;;  %v5704_v52 = vld [vmem:[%s8498_s0 + $0xa8] ss:$28 sps:$4 sm:$0xff]  }
  0x12   :  { %v5701_v49 = vld [vmem:[%s8497_s1 + $0x154] ss:$8 sps:$4 sm:$0xff]   ;;  %v5699_v50 = vld [vmem:[%s8497_s1 + $0x150] ss:$8 sps:$4 sm:$0xff]   ;;  %v5707_v51 = vld [vmem:[%s8497_s1 + $0x164] ss:$8 sps:$4 sm:$0xff]  }
  0x13   :  { %1023 = vmatpush1.bf16.msra.mxu0 %v5641_v9  ;;  %v5705_v53 = vld [vmem:[%s8497_s1 + $0x160] ss:$8 sps:$4 sm:$0xff]   ;;  %v5710_v55 = vld [vmem:[%s8497_s1 + $0x174] ss:$8 sps:$4 sm:$0xff]   ;;  %v5708_v56 = vld [vmem:[%s8497_s1 + $0x170] ss:$8 sps:$4 sm:$0xff]  }
  0x14   :  { %1024 = vmatprep.subr.bf16.mxu0 %v5642_v10  ;;  %v5713_v57 = vld [vmem:[%s8498_s0 + $0xe0] ss:$28 sps:$4 sm:$0xff]   ;;  %v5716_v58 = vld [vmem:[%s8497_s1 + $0x184] ss:$8 sps:$4 sm:$0xff]   ;;  %v5717_v62 = vld [vmem:[%s8497_s1 + $0x190] ss:$8 sps:$4 sm:$0xff]  }
  0x15   :  { %v5714_v59 = vld [vmem:[%s8497_s1 + $0x180] ss:$8 sps:$4 sm:$0xff]   ;;  %v5720_v60 = vld [vmem:[%s8498_s0 + $0x11c] ss:$28 sps:$4 sm:$0xff]   ;;  %v5725_v63 = vld [vmem:[%s8497_s1 + $0x1a4] ss:$8 sps:$4 sm:$0xff]  }
  0x16   :  { %v5719_v61 = vld [vmem:[%s8497_s1 + $0x194] ss:$8 sps:$4 sm:$0xff]   ;;  %v5723_v1 = vld [vmem:[%s8497_s1 + $0x1a0] ss:$8 sps:$4 sm:$0xff]   ;;  %v5726_v4 = vld [vmem:[%s8497_s1 + $0x1b0] ss:$8 sps:$4 sm:$0xff]  }
  0x17   :  { %1025 = vmatpush1.bf16.msra.mxu0 %v5644_v11  ;;  %v5722_v0 = vld [vmem:[%s8498_s0 + $0x118] ss:$28 sps:$4 sm:$0xff]   ;;  %v5734_v5 = vld [vmem:[%s8497_s1 + $0x1c4] ss:$8 sps:$4 sm:$0xff]   ;;  %v5732_v7 = vld [vmem:[%s8497_s1 + $0x1c0] ss:$8 sps:$4 sm:$0xff]  }
  0x18   :  { %1026 = vmatprep.subr.bf16.mxu0 %v5645_v12  ;;  %v5729_v2 = vld [vmem:[%s8498_s0 + $0x154] ss:$28 sps:$4 sm:$0xff]   ;;  %v5738_v8 = vld [vmem:[%s8498_s0 + $0x18c] ss:$28 sps:$4 sm:$0xff]  }
  0x19   :  { %v5728_v3 = vld [vmem:[%s8497_s1 + $0x1b4] ss:$8 sps:$4 sm:$0xff]   ;;  %v5731_v6 = vld [vmem:[%s8498_s0 + $0x150] ss:$28 sps:$4 sm:$0xff]   ;;  %v5740_v12 = vld [vmem:[%s8498_s0 + $0x188] ss:$28 sps:$4 sm:$0xff]  }
  0x1a   :  { %v5737_v9 = vld [vmem:[%s8497_s1 + $0x1d4] ss:$8 sps:$4 sm:$0xff]   ;;  %v5735_v10 = vld [vmem:[%s8497_s1 + $0x1d0] ss:$8 sps:$4 sm:$0xff]   ;;  %v5743_v11 = vld [vmem:[%s8497_s1 + $0x1e4] ss:$8 sps:$4 sm:$0xff]  }
  0x1b   :  { %1027 = vmatpush1.bf16.msra.mxu0 %v5647_v14  ;;  %v5741_v13 = vld [vmem:[%s8497_s1 + $0x1e0] ss:$8 sps:$4 sm:$0xff]  }
  0x1c   :  { %1028 = vmatprep.subr.bf16.mxu0 %v5648_v15  ;;  %v5749_v14 = vld [vmem:[%s8498_s0 + $0xc] ss:$28 sps:$4 sm:$0xff]   ;;  %v5746_v15 = vld [vmem:[%s8497_s1 + $0x1f4] ss:$8 sps:$4 sm:$0xff]  }
  0x1f   :  { %1029 = vmatpush1.bf16.msra.mxu0 %v5650_v16  ;;  %v5744_v16 = vld [vmem:[%s8497_s1 + $0x1f0] ss:$8 sps:$4 sm:$0xff]  }
  0x20   :  { %1030 = vmatprep.subr.bf16.mxu0 %v5651_v17  ;;  %v5752_v17 = vld [vmem:[%s8497_s1 + $0x204] ss:$8 sps:$4 sm:$0xff]  }
  0x23   :  { %1031 = vmatpush1.bf16.msra.mxu0 %v5653_v18  ;;  %v5747_v18 = vld [vmem:[%s8498_s0 + $0x8] ss:$28 sps:$4 sm:$0xff]  }
  0x24   :  { %1032 = vmatprep.subr.bf16.mxu0 %v5654_v19  ;;  %v5750_v19 = vld [vmem:[%s8497_s1 + $0x200] ss:$8 sps:$4 sm:$0xff]  }
  0x27   :  { %1033 = vmatpush1.bf16.msra.mxu0 %v5656_v20  ;;  %v5756_v20 = vld [vmem:[%s8498_s0 + $0x44] ss:$28 sps:$4 sm:$0xff]  }
  0x28   :  { %1034 = vmatprep.subr.bf16.mxu0 %v5657_v21  ;;  %v5755_v21 = vld [vmem:[%s8497_s1 + $0x214] ss:$8 sps:$4 sm:$0xff]  }
  0x2b   :  { %1035 = vmatpush1.bf16.msra.mxu0 %v5659_v22  ;;  %v5753_v22 = vld [vmem:[%s8497_s1 + $0x210] ss:$8 sps:$4 sm:$0xff]  }
  0x2c   :  { %1036 = vmatprep.subr.bf16.mxu0 %v5660_v23  ;;  %v5761_v23 = vld [vmem:[%s8497_s1 + $0x224] ss:$8 sps:$4 sm:$0xff]  }
  0x2f   :  { %1037 = vmatpush1.bf16.msra.mxu0 %v5662_v24  ;;  %v5758_v24 = vld [vmem:[%s8498_s0 + $0x40] ss:$28 sps:$4 sm:$0xff]  }
  0x30   :  { %1038 = vmatprep.subr.bf16.mxu0 %v5663_v25  ;;  %v5759_v25 = vld [vmem:[%s8497_s1 + $0x220] ss:$8 sps:$4 sm:$0xff]  }
  0x33   :  { %1039 = vmatpush1.bf16.msra.mxu0 %v5665_v26  ;;  %v5765_v26 = vld [vmem:[%s8498_s0 + $0x7c] ss:$28 sps:$4 sm:$0xff]  }
  0x34   :  { %1040 = vmatprep.subr.bf16.mxu0 %v5666_v27  ;;  %v5764_v27 = vld [vmem:[%s8497_s1 + $0x234] ss:$8 sps:$4 sm:$0xff]  }
  0x37   :  { %1041 = vmatpush1.bf16.msra.mxu0 %v5668_v28  ;;  %v5762_v28 = vld [vmem:[%s8497_s1 + $0x230] ss:$8 sps:$4 sm:$0xff]  }
  0x38   :  { %1042 = vmatprep.subr.bf16.mxu0 %v5669_v29  ;;  %v5770_v29 = vld [vmem:[%s8497_s1 + $0x244] ss:$8 sps:$4 sm:$0xff]  }
  0x3b   :  { %1043 = vmatpush1.bf16.msra.mxu0 %v5671_v30  ;;  %v5767_v30 = vld [vmem:[%s8498_s0 + $0x78] ss:$28 sps:$4 sm:$0xff]  }
  0x3c   :  { %1044 = vmatprep.subr.bf16.mxu0 %v5672_v31  ;;  %v5768_v31 = vld [vmem:[%s8497_s1 + $0x240] ss:$8 sps:$4 sm:$0xff]  }
  0x3f   :  { %1045 = vmatpush1.bf16.msra.mxu0 %v5674_v32  ;;  %v5774_v32 = vld [vmem:[%s8498_s0 + $0xb4] ss:$28 sps:$4 sm:$0xff]  }
  0x40   :  { %1127 = vmatprep.subr.bf16.mxu0 %v5680_v33  ;;  %v5773_v33 = vld [vmem:[%s8497_s1 + $0x254] ss:$8 sps:$4 sm:$0xff]  }
  0x42   :  { %1047 = vmatmul.mubr.bf16.vlgmr.msra.gmra.mrb[0].mxu0 %v5675_v34  ;;  %v5771_v34 = vld [vmem:[%s8497_s1 + $0x250] ss:$8 sps:$4 sm:$0xff]  }
  0x43   :  { %1128 = vmatpush1.bf16.msra.mxu0 %v5678_v35  ;;  %1056 = vmatprep.mubr.bf16.mxu0 %v5684_v36  ;;  %v5779_v35 = vld [vmem:[%s8497_s1 + $0x264] ss:$8 sps:$4 sm:$0xff]  }
  0x44   :  { %1129 = vmatprep.subr.bf16.mxu0 %v5683_v37  ;;  %v5776_v36 = vld [vmem:[%s8498_s0 + $0xb0] ss:$28 sps:$4 sm:$0xff]   ;;  %v5777_v37 = vld [vmem:[%s8497_s1 + $0x260] ss:$8 sps:$4 sm:$0xff]  }
  0x47   :  { %1130 = vmatpush1.bf16.msra.mxu0 %v5681_v38  ;;  %v5783_v38 = vld [vmem:[%s8498_s0 + $0xec] ss:$28 sps:$4 sm:$0xff]  }
  0x48   :  { %1131 = vmatprep.subr.bf16.mxu0 %v5689_v39  ;;  %v5782_v39 = vld [vmem:[%s8497_s1 + $0x274] ss:$8 sps:$4 sm:$0xff]  }
  0x4a   :  { %1057 = vmatmul.mubr.bf16.gmra.mrb[4].mxu0 %v5686_v40  ;;  %v5780_v40 = vld [vmem:[%s8497_s1 + $0x270] ss:$8 sps:$4 sm:$0xff]  }
  0x4b   :  { %1132 = vmatpush1.bf16.msra.mxu0 %v5687_v41  ;;  %1066 = vmatprep.mubr.bf16.mxu0 %v5693_v42  ;;  %v5788_v41 = vld [vmem:[%s8497_s1 + $0x284] ss:$8 sps:$4 sm:$0xff]  }
  0x4c   :  { %1133 = vmatprep.subr.bf16.mxu0 %v5692_v43  ;;  %v5785_v42 = vld [vmem:[%s8498_s0 + $0xe8] ss:$28 sps:$4 sm:$0xff]  }
  0x4d   :  { %v5786_v43 = vld [vmem:[%s8497_s1 + $0x280] ss:$8 sps:$4 sm:$0xff]  }
  0x4f   :  { %1134 = vmatpush1.bf16.msra.mxu0 %v5690_v44  ;;  %v5792_v44 = vld [vmem:[%s8498_s0 + $0x124] ss:$28 sps:$4 sm:$0xff]  }
  0x50   :  { %1135 = vmatprep.subr.bf16.mxu0 %v5698_v45  ;;  %v5791_v45 = vld [vmem:[%s8497_s1 + $0x294] ss:$8 sps:$4 sm:$0xff]  }
  0x52   :  { %1067 = vmatmul.mubr.bf16.gmra.mrb[8].mxu0 %v5695_v46  ;;  %v5789_v46 = vld [vmem:[%s8497_s1 + $0x290] ss:$8 sps:$4 sm:$0xff]  }
  0x53   :  { %1136 = vmatpush1.bf16.msra.mxu0 %v5696_v47  ;;  %1076 = vmatprep.mubr.bf16.mxu0 %v5702_v48  ;;  %v5797_v47 = vld [vmem:[%s8497_s1 + $0x2a4] ss:$8 sps:$4 sm:$0xff]   ;;  %v5794_v48 = vld [vmem:[%s8498_s0 + $0x120] ss:$28 sps:$4 sm:$0xff]  }
  0x54   :  { %1137 = vmatprep.subr.bf16.mxu0 %v5701_v49  ;;  %v5795_v49 = vld [vmem:[%s8497_s1 + $0x2a0] ss:$8 sps:$4 sm:$0xff]  }
  0x57   :  { %1138 = vmatpush1.bf16.msra.mxu0 %v5699_v50  ;;  %v5801_v50 = vld [vmem:[%s8498_s0 + $0x15c] ss:$28 sps:$4 sm:$0xff]  }
  0x58   :  { %1139 = vmatprep.subr.bf16.mxu0 %v5707_v51  ;;  %v5800_v51 = vld [vmem:[%s8497_s1 + $0x2b4] ss:$8 sps:$4 sm:$0xff]  }
  0x5a   :  { %1077 = vmatmul.mubr.bf16.gmra.mrb[12].mxu0 %v5704_v52  ;;  %v5798_v52 = vld [vmem:[%s8497_s1 + $0x2b0] ss:$8 sps:$4 sm:$0xff]  }
  0x5b   :  { %1140 = vmatpush1.bf16.msra.mxu0 %v5705_v53  ;;  %1086 = vmatprep.mubr.bf16.mxu0 %v5711_v54  ;;  %v5806_v53 = vld [vmem:[%s8497_s1 + $0x2c4] ss:$8 sps:$4 sm:$0xff]   ;;  %v5803_v54 = vld [vmem:[%s8498_s0 + $0x158] ss:$28 sps:$4 sm:$0xff]  }
  0x5c   :  { %1141 = vmatprep.subr.bf16.mxu0 %v5710_v55  ;;  %v5804_v55 = vld [vmem:[%s8497_s1 + $0x2c0] ss:$8 sps:$4 sm:$0xff]  }
  0x5f   :  { %1142 = vmatpush1.bf16.msra.mxu0 %v5708_v56  ;;  %v5810_v56 = vld [vmem:[%s8498_s0 + $0x194] ss:$28 sps:$4 sm:$0xff]  }
  0x60   :  { %1143 = vmatprep.subr.bf16.mxu0 %v5716_v58  ;;  %v5807_v58 = vld [vmem:[%s8497_s1 + $0x2d0] ss:$8 sps:$4 sm:$0xff]  }
  0x62   :  { %1087 = vmatmul.mubr.bf16.gmra.mrb[16].mxu0 %v5713_v57  ;;  %v5809_v57 = vld [vmem:[%s8497_s1 + $0x2d4] ss:$8 sps:$4 sm:$0xff]  }
  0x63   :  { %1144 = vmatpush1.bf16.msra.mxu0 %v5714_v59  ;;  %1096 = vmatprep.mubr.bf16.mxu0 %v5720_v60  ;;  %v5815_v59 = vld [vmem:[%s8497_s1 + $0x2e4] ss:$8 sps:$4 sm:$0xff]  }
  0x64   :  { %1145 = vmatprep.subr.bf16.mxu0 %v5719_v61  ;;  %v5812_v60 = vld [vmem:[%s8498_s0 + $0x190] ss:$28 sps:$4 sm:$0xff]   ;;  %v5813_v61 = vld [vmem:[%s8497_s1 + $0x2e0] ss:$8 sps:$4 sm:$0xff]  }
  0x67   :  { %1146 = vmatpush1.bf16.msra.mxu0 %v5717_v62  ;;  %v5821_v62 = vld [vmem:[%s8498_s0 + $0x14] ss:$28 sps:$4 sm:$0xff]  }
  0x68   :  { %1147 = vmatprep.subr.bf16.mxu0 %v5725_v63  ;;  %v5818_v63 = vld [vmem:[%s8497_s1 + $0x2f4] ss:$8 sps:$4 sm:$0xff]  }
  0x6a   :  { %1097 = vmatmul.mubr.bf16.gmra.mrb[20].mxu0 %v5722_v0  ;;  %v5816_v0 = vld [vmem:[%s8497_s1 + $0x2f0] ss:$8 sps:$4 sm:$0xff]  }
  0x6b   :  { %1148 = vmatpush1.bf16.msra.mxu0 %v5723_v1  ;;  %1106 = vmatprep.mubr.bf16.mxu0 %v5729_v2  ;;  %v5824_v1 = vld [vmem:[%s8497_s1 + $0x304] ss:$8 sps:$4 sm:$0xff]  }
  0x6c   :  { %1149 = vmatprep.subr.bf16.mxu0 %v5728_v3  ;;  %v5854_v2 = vld [vmem:[%s8499_s3 + $0x40] sm:$0xff]   ;;  %v5819_v3 = vld [vmem:[%s8498_s0 + $0x10] ss:$28 sps:$4 sm:$0xff]  }
  0x6d   :  { %5258 = vmatprep.subr.bf16.mxu1 %v5854_v2 }
  0x6f   :  { %1150 = vmatpush1.bf16.msra.mxu0 %v5726_v4  ;;  %v5855_v4 = vld [vmem:[%s8499_s3] sm:$0xff]  }
  0x70   :  { %1151 = vmatprep.subr.bf16.mxu0 %v5734_v5  ;;  %v5822_v5 = vld [vmem:[%s8497_s1 + $0x300] ss:$8 sps:$4 sm:$0xff]   ;;  %5259 = vmatpush3.bf16.msra.mxu1 %v5855_v4 }
  0x71   :  { %v5871_v4 = vld [vmem:[%s8500_s5 + $0x8] sm:$0xff]  }
  0x72   :  { %1107 = vmatmul.mubr.bf16.gmra.mrb[24].mxu0 %v5731_v6  ;;  %v5856_v6 = vld [vmem:[%s8499_s3 + $0x48] sm:$0xff]  }
  0x73   :  { %1152 = vmatpush1.bf16.msra.mxu0 %v5732_v7  ;;  %1116 = vmatprep.mubr.bf16.mxu0 %v5738_v8  ;;  %v5857_v7 = vld [vmem:[%s8499_s3 + $0x8] sm:$0xff]  }
  0x74   :  { %1153 = vmatprep.subr.bf16.mxu0 %v5737_v9  ;;  %v5825_v8 = vld [vmem:[%s8498_s0 + $0x4c] ss:$28 sps:$4 sm:$0xff]   ;;  %5260 = vmatprep.subr.bf16.mxu1 %v5856_v6  ;;  %v5858_v9 = vld [vmem:[%s8499_s3 + $0x50] sm:$0xff]  }
  0x75   :  { %5261 = vmatpush3.bf16.msra.mxu1 %v5857_v7 }
  0x76   :  { %5262 = vmatprep.subr.bf16.mxu1 %v5858_v9 }
  0x77   :  { %1154 = vmatpush1.bf16.msra.mxu0 %v5735_v10  ;;  %v5859_v10 = vld [vmem:[%s8499_s3 + $0x10] sm:$0xff]  }
  0x78   :  { %1155 = vmatprep.subr.bf16.mxu0 %v5743_v11  ;;  %v5860_v11 = vld [vmem:[%s8499_s3 + $0x58] sm:$0xff]  }
  0x79   :  { %5263 = vmatpush3.bf16.msra.mxu1 %v5859_v10 }
  0x7a   :  { %1117 = vmatmul.mubr.bf16.gmra.mrb[28].mxu0 %v5740_v12  ;;  %v5827_v12 = vld [vmem:[%s8498_s0 + $0x48] ss:$28 sps:$4 sm:$0xff]   ;;  %5264 = vmatprep.subr.bf16.mxu1 %v5860_v11 }
  0x7b   :  { %1156 = vmatpush1.bf16.msra.mxu0 %v5741_v13  ;;  %1159 = vmatprep.mubr.bf16.mxu0 %v5749_v14  ;;  %v5828_v13 = vld [vmem:[%s8498_s0 + $0x84] ss:$28 sps:$4 sm:$0xff]   ;;  %v5861_v14 = vld [vmem:[%s8499_s3 + $0x18] sm:$0xff]  }
  0x7c   :  { %1157 = vmatprep.subr.bf16.mxu0 %v5746_v15  ;;  %v5862_v15 = vld [vmem:[%s8499_s3 + $0x60] sm:$0xff]  }
  0x7d   :  { %5265 = vmatpush3.bf16.msra.mxu1 %v5861_v14 }
  0x7e   :  { %5266 = vmatprep.subr.bf16.mxu1 %v5862_v15 }
  0x7f   :  { %1158 = vmatpush1.bf16.msra.mxu0 %v5744_v16  ;;  %v5863_v16 = vld [vmem:[%s8499_s3 + $0x20] sm:$0xff]  }
  0x80   :  { %1240 = vmatprep.subr.bf16.mxu0 %v5752_v17  ;;  %v5864_v17 = vld [vmem:[%s8499_s3 + $0x68] sm:$0xff]  }
  0x81   :  { %5267 = vmatpush3.bf16.msra.mxu1 %v5863_v16 }
  0x82   :  { %1160 = vmatmul.mubr.bf16.vlgmr.msra.gmra.mrb[0].mxu0 %v5747_v18  ;;  %v5830_v18 = vld [vmem:[%s8498_s0 + $0x80] ss:$28 sps:$4 sm:$0xff]   ;;  %5268 = vmatprep.subr.bf16.mxu1 %v5864_v17 }
  0x83   :  { %1241 = vmatpush1.bf16.msra.mxu0 %v5750_v19  ;;  %1169 = vmatprep.mubr.bf16.mxu0 %v5756_v20  ;;  %v5831_v19 = vld [vmem:[%s8498_s0 + $0xbc] ss:$28 sps:$4 sm:$0xff]  }
  0x84   :  { %1242 = vmatprep.subr.bf16.mxu0 %v5755_v21  ;;  %v5833_v20 = vld [vmem:[%s8498_s0 + $0xb8] ss:$28 sps:$4 sm:$0xff]  }
  0x85   :  { %v5834_v21 = vld [vmem:[%s8498_s0 + $0xf4] ss:$28 sps:$4 sm:$0xff]  }
  0x87   :  { %1243 = vmatpush1.bf16.msra.mxu0 %v5753_v22  ;;  %v5836_v22 = vld [vmem:[%s8498_s0 + $0xf0] ss:$28 sps:$4 sm:$0xff]  }
  0x88   :  { %1244 = vmatprep.subr.bf16.mxu0 %v5761_v23  ;;  %v5837_v23 = vld [vmem:[%s8498_s0 + $0x12c] ss:$28 sps:$4 sm:$0xff]  }
  0x8a   :  { %1170 = vmatmul.mubr.bf16.gmra.mrb[4].mxu0 %v5758_v24  ;;  %v5839_v24 = vld [vmem:[%s8498_s0 + $0x128] ss:$28 sps:$4 sm:$0xff]  }
  0x8b   :  { %1245 = vmatpush1.bf16.msra.mxu0 %v5759_v25  ;;  %1179 = vmatprep.mubr.bf16.mxu0 %v5765_v26  ;;  %v5840_v25 = vld [vmem:[%s8498_s0 + $0x164] ss:$28 sps:$4 sm:$0xff]  }
  0x8c   :  { %1246 = vmatprep.subr.bf16.mxu0 %v5764_v27  ;;  %v5842_v26 = vld [vmem:[%s8498_s0 + $0x160] ss:$28 sps:$4 sm:$0xff]  }
  0x8d   :  { %v5843_v27 = vld [vmem:[%s8498_s0 + $0x19c] ss:$28 sps:$4 sm:$0xff]  }
  0x8f   :  { %1247 = vmatpush1.bf16.msra.mxu0 %v5762_v28  ;;  %v5845_v28 = vld [vmem:[%s8498_s0 + $0x198] ss:$28 sps:$4 sm:$0xff]  }
  0x90   :  { %1248 = vmatprep.subr.bf16.mxu0 %v5770_v29  ;;  %v6519_v29 = vmov 0  }
  0x92   :  { %1180 = vmatmul.mubr.bf16.gmra.mrb[8].mxu0 %v5767_v30  ;;  %v5846_v30 = vld [vmem:[%s8498_s0 + $0x18] ss:$28 sps:$4 sm:$0xff]  }
  0x93   :  { %1249 = vmatpush1.bf16.msra.mxu0 %v5768_v31  ;;  %1189 = vmatprep.mubr.bf16.mxu0 %v5774_v32  ;;  %v5847_v31 = vld [vmem:[%s8498_s0 + $0x50] ss:$28 sps:$4 sm:$0xff]   ;;  %v5848_v32 = vld [vmem:[%s8498_s0 + $0x88] ss:$28 sps:$4 sm:$0xff]  }
  0x94   :  { %1250 = vmatprep.subr.bf16.mxu0 %v5773_v33  ;;  %v5849_v33 = vld [vmem:[%s8498_s0 + $0xc0] ss:$28 sps:$4 sm:$0xff]  }
  0x97   :  { %1251 = vmatpush1.bf16.msra.mxu0 %v5771_v34  ;;  %v5850_v34 = vld [vmem:[%s8498_s0 + $0xf8] ss:$28 sps:$4 sm:$0xff]  }
  0x98   :  { %1252 = vmatprep.subr.bf16.mxu0 %v5779_v35  ;;  %v5851_v35 = vld [vmem:[%s8498_s0 + $0x130] ss:$28 sps:$4 sm:$0xff]  }
  0x9a   :  { %1190 = vmatmul.mubr.bf16.gmra.mrb[12].mxu0 %v5776_v36  ;;  %v5852_v36 = vld [vmem:[%s8498_s0 + $0x168] ss:$28 sps:$4 sm:$0xff]  }
  0x9b   :  { %1253 = vmatpush1.bf16.msra.mxu0 %v5777_v37  ;;  %1199 = vmatprep.mubr.bf16.mxu0 %v5783_v38  ;;  %v5853_v37 = vld [vmem:[%s8498_s0 + $0x1a0] ss:$28 sps:$4 sm:$0xff]   ;;  %v5865_v38 = vld [vmem:[%s8499_s3 + $0x28] sm:$0xff]  }
  0x9c   :  { %1254 = vmatprep.subr.bf16.mxu0 %v5782_v39  ;;  %5269 = vmatpush3.bf16.msra.mxu1 %v5865_v38  ;;  %v5866_v39 = vld [vmem:[%s8499_s3 + $0x70] sm:$0xff]  }
  0x9d   :  { %5270 = vmatprep.subr.bf16.mxu1 %v5866_v39 }
  0x9f   :  { %1255 = vmatpush1.bf16.msra.mxu0 %v5780_v40  ;;  %v5867_v40 = vld [vmem:[%s8499_s3 + $0x30] sm:$0xff]  }
  0xa0   :  { %1256 = vmatprep.subr.bf16.mxu0 %v5788_v41  ;;  %5271 = vmatpush3.bf16.msra.mxu1 %v5867_v40  ;;  %v5868_v41 = vld [vmem:[%s8499_s3 + $0x78] sm:$0xff]  }
  0xa1   :  { %5272 = vmatprep.subr.bf16.mxu1 %v5868_v41 }
  0xa2   :  { %1200 = vmatmul.mubr.bf16.gmra.mrb[16].mxu0 %v5785_v42  ;;  %v5869_v42 = vld [vmem:[%s8499_s3 + $0x38] sm:$0xff]  }
  0xa3   :  { %1257 = vmatpush1.bf16.msra.mxu0 %v5786_v43  ;;  %1209 = vmatprep.mubr.bf16.mxu0 %v5792_v44  ;;  %v5870_v43 = vld [vmem:[%s8500_s5] sm:$0xff]   ;;  %v209_v44 = vlaneseq }
  0xa4   :  { %1258 = vmatprep.subr.bf16.mxu0 %v5791_v45  ;;  %5273 = vmatpush3.bf16.msra.mxu1 %v5869_v42 }
  0xa5   :  { %5418 = vmatprep.subr.bf16.mxu1 %v5870_v43  ;;  %v7119_v45 = vshrl.u32 %v209_v44, 7 }
  0xa7   :  { %1259 = vmatpush1.bf16.msra.mxu0 %v5789_v46  ;;  %v7122_v46 = vsub.s32 0, %v7119_v45 }
  0xa8   :  { %1260 = vmatprep.subr.bf16.mxu0 %v5797_v47  ;;  %v207_v47 = vld [vmem:[%s8501_s2] sm:$0x3] }
  0xaa   :  { %1210 = vmatmul.mubr.bf16.gmra.mrb[20].mxu0 %v5794_v48  ;;  %v7128_v48 = vsub.s32 1, %v7119_v45 }
  0xab   :  { %1261 = vmatpush1.bf16.msra.mxu0 %v5795_v49  ;;  %1219 = vmatprep.mubr.bf16.mxu0 %v5801_v50  ;;  %v7131_v49 = vrot.slane %v207_v47, %v7122_v46 }
  0xac   :  { %1262 = vmatprep.subr.bf16.mxu0 %v5800_v51  ;;  %v7134_v50 = vrot.slane %v207_v47, %v7128_v48 }
  0xaf   :  { %1263 = vmatpush1.bf16.msra.mxu0 %v5798_v52 }
  0xb0   :  { %1264 = vmatprep.subr.bf16.mxu0 %v5806_v53 }
  0xb2   :  { %1220 = vmatmul.mubr.bf16.gmra.mrb[24].mxu0 %v5803_v54 }
  0xb3   :  { %1265 = vmatpush1.bf16.msra.mxu0 %v5804_v55  ;;  %1229 = vmatprep.mubr.bf16.mxu0 %v5810_v56 }
  0xb4   :  { %1266 = vmatprep.subr.bf16.mxu0 %v5809_v57 }
  0xb7   :  { %1267 = vmatpush1.bf16.msra.mxu0 %v5807_v58 }
  0xb8   :  { %1268 = vmatprep.subr.bf16.mxu0 %v5815_v59 }
  0xba   :  { %1230 = vmatmul.mubr.bf16.gmra.mrb[28].mxu0 %v5812_v60 }
  0xbb   :  { %1269 = vmatpush1.bf16.msra.mxu0 %v5813_v61  ;;  %1272 = vmatprep.mubr.bf16.mxu0 %v5821_v62 }
  0xbc   :  { %1270 = vmatprep.subr.bf16.mxu0 %v5818_v63 }
  0xbf   :  { %1271 = vmatpush1.bf16.msra.mxu0 %v5816_v0 }
  0xc0   :  { %1353 = vmatprep.subr.bf16.mxu0 %v5824_v1 }
  0xc2   :  { %1273 = vmatmul.mubr.bf16.vlgmr.msra.gmra.mrb[0].mxu0 %v5819_v3 }
  0xc3   :  { %1354 = vmatpush1.bf16.msra.mxu0 %v5822_v5  ;;  %1282 = vmatprep.mubr.bf16.mxu0 %v5825_v8 }
  0xca   :  { %1283 = vmatmul.mubr.bf16.gmra.mrb[4].mxu0 %v5827_v12  ;;  %v5872_v12 = vld [vmem:[%s8500_s5 + $0x10] sm:$0xff]  }
  0xcb   :  { %1292 = vmatprep.mubr.bf16.mxu0 %v5828_v13 }
  0xd2   :  { %1293 = vmatmul.mubr.bf16.gmra.mrb[8].mxu0 %v5830_v18 }
  0xd3   :  { %1302 = vmatprep.mubr.bf16.mxu0 %v5831_v19 }
  0xda   :  { %1303 = vmatmul.mubr.bf16.gmra.mrb[12].mxu0 %v5833_v20  ;;  %v5873_v20 = vld [vmem:[%s8500_s5 + $0x18] sm:$0xff]  }
  0xdb   :  { %1312 = vmatprep.mubr.bf16.mxu0 %v5834_v21 }
  0xe2   :  { %1313 = vmatmul.mubr.bf16.gmra.mrb[16].mxu0 %v5836_v22 }
  0xe3   :  { %1322 = vmatprep.mubr.bf16.mxu0 %v5837_v23 }
  0xea   :  { %1323 = vmatmul.mubr.bf16.gmra.mrb[20].mxu0 %v5839_v24 }
  0xeb   :  { %1332 = vmatprep.mubr.bf16.mxu0 %v5840_v25 }
  0xf2   :  { %1333 = vmatmul.mubr.bf16.gmra.mrb[24].mxu0 %v5842_v26 }
  0xf3   :  { %1342 = vmatprep.mubr.bf16.mxu0 %v5843_v27 }
  0xfa   :  { %1343 = vmatmul.mubr.bf16.gmra.mrb[28].mxu0 %v5845_v28  ;;  %v5874_v28 = vld [vmem:[%s8500_s5 + $0x20] sm:$0xff]  }
  0xfb   :  { %1385 = vmatprep.mubr.bf16.mxu0 %v6519_v29 }
 0x102   :  { %4847 = vmatmul.mubr.msk.bf16.vlgmr.msra.gmra.mrb[0].mxu0 %vm989_vm0, %v5846_v30 }
 0x103   :  { %1395 = vmatprep.mubr.bf16.mxu0 %v6519_v29 }
 0x10a   :  { %4848 = vmatmul.mubr.msk.bf16.gmra.mrb[4].mxu0 %vm989_vm0, %v5847_v31 }
 0x10b   :  { %1405 = vmatprep.mubr.bf16.mxu0 %v6519_v29 }
 0x112   :  { %4849 = vmatmul.mubr.msk.bf16.gmra.mrb[8].mxu0 %vm989_vm0, %v5848_v32 }
 0x113   :  { %1415 = vmatprep.mubr.bf16.mxu0 %v6519_v29 }
 0x11a   :  { %4850 = vmatmul.mubr.msk.bf16.gmra.mrb[12].mxu0 %vm989_vm0, %v5849_v33 }
 0x11b   :  { %1425 = vmatprep.mubr.bf16.mxu0 %v6519_v29 }
 0x122   :  { %4851 = vmatmul.mubr.msk.bf16.gmra.mrb[16].mxu0 %vm989_vm0, %v5850_v34 }
 0x123   :  { %1435 = vmatprep.mubr.bf16.mxu0 %v6519_v29 }
 0x12a   :  { %4852 = vmatmul.mubr.msk.bf16.gmra.mrb[20].mxu0 %vm989_vm0, %v5851_v35 }
 0x12b   :  { %1445 = vmatprep.mubr.bf16.mxu0 %v6519_v29 }
 0x132   :  { %4853 = vmatmul.mubr.msk.bf16.gmra.mrb[24].mxu0 %vm989_vm0, %v5852_v36 }
 0x133   :  { %1455 = vmatprep.mubr.bf16.mxu0 %v6519_v29 }
 0x13a   :  { %4854 = vmatmul.mubr.msk.bf16.gmra.mrb[28].mxu0 %vm989_vm0, %v5853_v37  ;;  %v5875_v37 = vld [vmem:[%s8500_s5 + $0x28] sm:$0xff]  }
 0x1d5   :  { %v1387_v51 = vpop.f32.mrb[0].mxu0 }
 0x1d6   :  { %v5498_v52 = vadd.f32 %v1387_v51, %v7131_v49  ;;  %v1389_v53 = vpop.f32.mrb[1].mxu0 }
 0x1d7   :  { %v5499_v54 = vadd.f32 %v1389_v53, %v7134_v50  ;;  %v1391_v55 = vpop.f32.mrb[2].mxu0 }
 0x1d8   :  { %v5500_v56 = vadd.f32 %v1391_v55, %v7131_v49  ;;  %v1393_v57 = vpop.f32.mrb[3].mxu0  ;;  %v1466_v59 = vmax.f32 %v5498_v52, 0.0 }
 0x1d9   :  { %v5501_v58 = vadd.f32 %v1393_v57, %v7134_v50  ;;  %v1467_v61 = vmax.f32 %v5499_v54, 0.0 }
 0x1da   :  { %v1468_v60 = vmax.f32 %v5500_v56, 0.0 }
 0x1db   :  { %v1469_v62 = vmax.f32 %v5501_v58, 0.0 }
 0x1dc   :  { %v1498_v63 = vpack.c.bf16 %v1468_v60, %v1466_v59 }
 0x1dd   :  { %v1397_v0 = vpop.f32.mrb[4].mxu0  ;;  %v1499_v1 = vpack.c.bf16 %v1469_v62, %v1467_v61 }
 0x1de   :  { %v5502_v2 = vadd.f32 %v1397_v0, %v7131_v49  ;;  %v1399_v3 = vpop.f32.mrb[5].mxu0 }
 0x1df   :  { %v5503_v5 = vadd.f32 %v1399_v3, %v7134_v50  ;;  %v1401_v6 = vpop.f32.mrb[6].mxu0  ;;  %1681 = vmatprep.mubr.bf16.mxu1 %v1499_v1 }
 0x1e0   :  { %v5504_v7 = vadd.f32 %v1401_v6, %v7131_v49  ;;  %v1403_v8 = vpop.f32.mrb[7].mxu0  ;;  %1682 = vmatmul.mubr.bf16.vlgmr.msra.gmra.mrb[0].mxu1 %v1498_v63  ;;  %v1470_v10 = vmax.f32 %v5502_v2, 0.0 }
 0x1e1   :  { %v5505_v9 = vadd.f32 %v1403_v8, %v7134_v50  ;;  %5419 = vmatpush3.bf16.msra.mxu1 %v5870_v43  ;;  %v1471_v13 = vmax.f32 %v5503_v5, 0.0 }
 0x1e2   :  { %v1472_v11 = vmax.f32 %v5504_v7, 0.0  ;;  %5420 = vmatprep.subr.bf16.mxu1 %v5871_v4 }
 0x1e3   :  { %v1473_v14 = vmax.f32 %v5505_v9, 0.0 }
 0x1e4   :  { %v1500_v15 = vpack.c.bf16 %v1472_v11, %v1470_v10 }
 0x1e5   :  { %v1501_v16 = vpack.c.bf16 %v1473_v14, %v1471_v13  ;;  %v1407_v17 = vpop.f32.mrb[8].mxu0  ;;  %5421 = vmatpush3.bf16.msra.mxu1 %v5871_v4 }
 0x1e6   :  { %v5506_v18 = vadd.f32 %v1407_v17, %v7131_v49  ;;  %v1409_v19 = vpop.f32.mrb[9].mxu0  ;;  %5422 = vmatprep.subr.bf16.mxu1 %v5872_v12 }
 0x1e7   :  { %v5507_v21 = vadd.f32 %v1409_v19, %v7134_v50  ;;  %v1411_v22 = vpop.f32.mrb[10].mxu0  ;;  %1689 = vmatprep.mubr.bf16.mxu1 %v1501_v16 }
 0x1e8   :  { %v5508_v23 = vadd.f32 %v1411_v22, %v7131_v49  ;;  %v1413_v24 = vpop.f32.mrb[11].mxu0  ;;  %1690 = vmatmul.mubr.bf16.gmra.mrb[4].mxu1 %v1500_v15  ;;  %v1474_v26 = vmax.f32 %v5506_v18, 0.0 }
 0x1e9   :  { %v5509_v25 = vadd.f32 %v1413_v24, %v7134_v50  ;;  %5423 = vmatpush3.bf16.msra.mxu1 %v5872_v12  ;;  %v1475_v30 = vmax.f32 %v5507_v21, 0.0 }
 0x1ea   :  { %v1476_v27 = vmax.f32 %v5508_v23, 0.0  ;;  %5424 = vmatprep.subr.bf16.mxu1 %v5873_v20 }
 0x1eb   :  { %v1477_v31 = vmax.f32 %v5509_v25, 0.0 }
 0x1ec   :  { %v1502_v32 = vpack.c.bf16 %v1476_v27, %v1474_v26 }
 0x1ed   :  { %v1503_v33 = vpack.c.bf16 %v1477_v31, %v1475_v30  ;;  %v1417_v34 = vpop.f32.mrb[12].mxu0  ;;  %5425 = vmatpush3.bf16.msra.mxu1 %v5873_v20 }
 0x1ee   :  { %v5510_v35 = vadd.f32 %v1417_v34, %v7131_v49  ;;  %v1419_v36 = vpop.f32.mrb[13].mxu0  ;;  %5426 = vmatprep.subr.bf16.mxu1 %v5874_v28 }
 0x1ef   :  { %v5511_v38 = vadd.f32 %v1419_v36, %v7134_v50  ;;  %v1421_v39 = vpop.f32.mrb[14].mxu0  ;;  %1697 = vmatprep.mubr.bf16.mxu1 %v1503_v33 }
 0x1f0   :  { %v5512_v40 = vadd.f32 %v1421_v39, %v7131_v49  ;;  %v1423_v41 = vpop.f32.mrb[15].mxu0  ;;  %1698 = vmatmul.mubr.bf16.gmra.mrb[8].mxu1 %v1502_v32  ;;  %v1478_v43 = vmax.f32 %v5510_v35, 0.0 }
 0x1f1   :  { %v5513_v42 = vadd.f32 %v1423_v41, %v7134_v50  ;;  %5427 = vmatpush3.bf16.msra.mxu1 %v5874_v28  ;;  %v1479_v47 = vmax.f32 %v5511_v38, 0.0 }
 0x1f2   :  { %v1480_v44 = vmax.f32 %v5512_v40, 0.0  ;;  %5428 = vmatprep.subr.bf16.mxu1 %v5875_v37 }
 0x1f3   :  { %v1481_v51 = vmax.f32 %v5513_v42, 0.0 }
 0x1f4   :  { %v1504_v52 = vpack.c.bf16 %v1480_v44, %v1478_v43 }
 0x1f5   :  { %v1505_v53 = vpack.c.bf16 %v1481_v51, %v1479_v47  ;;  %v1427_v54 = vpop.f32.mrb[16].mxu0  ;;  %5429 = vmatpush3.bf16.msra.mxu1 %v5875_v37 }
 0x1f6   :  { %v5514_v55 = vadd.f32 %v1427_v54, %v7131_v49  ;;  %v1429_v56 = vpop.f32.mrb[17].mxu0  ;;  %v7195_v54 = vld [vmem:[%s8503_s4] ss:$0 sm:$0xff] }
 0x1f7   :  { %v5515_v57 = vadd.f32 %v1429_v56, %v7134_v50  ;;  %v1431_v58 = vpop.f32.mrb[18].mxu0  ;;  %1705 = vmatprep.mubr.bf16.mxu1 %v1505_v53 }
 0x1f8   :  { %v5516_v59 = vadd.f32 %v1431_v58, %v7131_v49  ;;  %v1433_v60 = vpop.f32.mrb[19].mxu0  ;;  %1706 = vmatmul.mubr.bf16.gmra.mrb[12].mxu1 %v1504_v52  ;;  %v1482_v62 = vmax.f32 %v5514_v55, 0.0  ;;  %v5876_v52 = vld [vmem:[%s8500_s5 + $0x30] sm:$0xff]  }
 0x1f9   :  { %v5517_v61 = vadd.f32 %v1433_v60, %v7134_v50  ;;  %v1483_v0 = vmax.f32 %v5515_v57, 0.0  ;;  %5430 = vmatprep.subr.bf16.mxu1 %v5876_v52 }
 0x1fa   :  { %v1484_v63 = vmax.f32 %v5516_v59, 0.0  ;;  %5431 = vmatpush3.bf16.msra.mxu1 %v5876_v52 }
 0x1fb   :  { %v1485_v1 = vmax.f32 %v5517_v61, 0.0 }
 0x1fc   :  { %v1506_v2 = vpack.c.bf16 %v1484_v63, %v1482_v62 }
 0x1fd   :  { %v1507_v3 = vpack.c.bf16 %v1485_v1, %v1483_v0  ;;  %v1437_v4 = vpop.f32.mrb[20].mxu0 }
 0x1fe   :  { %v5518_v5 = vadd.f32 %v1437_v4, %v7131_v49  ;;  %v1439_v6 = vpop.f32.mrb[21].mxu0 }
 0x1ff   :  { %v5519_v7 = vadd.f32 %v1439_v6, %v7134_v50  ;;  %v1441_v8 = vpop.f32.mrb[22].mxu0  ;;  %1713 = vmatprep.mubr.bf16.mxu1 %v1507_v3 }
 0x200   :  { %v5520_v9 = vadd.f32 %v1441_v8, %v7131_v49  ;;  %v1443_v10 = vpop.f32.mrb[23].mxu0  ;;  %1714 = vmatmul.mubr.bf16.gmra.mrb[16].mxu1 %v1506_v2  ;;  %v1486_v12 = vmax.f32 %v5518_v5, 0.0 }
 0x201   :  { %v5521_v11 = vadd.f32 %v1443_v10, %v7134_v50  ;;  %v1487_v14 = vmax.f32 %v5519_v7, 0.0 }
 0x202   :  { %v1488_v13 = vmax.f32 %v5520_v9, 0.0 }
 0x203   :  { %v1489_v15 = vmax.f32 %v5521_v11, 0.0 }
 0x204   :  { %v1508_v16 = vpack.c.bf16 %v1488_v13, %v1486_v12 }
 0x205   :  { %v1509_v17 = vpack.c.bf16 %v1489_v15, %v1487_v14  ;;  %v1447_v18 = vpop.f32.mrb[24].mxu0 }
 0x206   :  { %v5522_v19 = vadd.f32 %v1447_v18, %v7131_v49  ;;  %v1449_v20 = vpop.f32.mrb[25].mxu0 }
 0x207   :  { %v5523_v21 = vadd.f32 %v1449_v20, %v7134_v50  ;;  %v1451_v22 = vpop.f32.mrb[26].mxu0  ;;  %1721 = vmatprep.mubr.bf16.mxu1 %v1509_v17 }
 0x208   :  { %v5524_v23 = vadd.f32 %v1451_v22, %v7131_v49  ;;  %v1453_v24 = vpop.f32.mrb[27].mxu0  ;;  %1722 = vmatmul.mubr.bf16.gmra.mrb[20].mxu1 %v1508_v16  ;;  %v1490_v26 = vmax.f32 %v5522_v19, 0.0  ;;  %v5879_v16 = vld [vmem:[%s8502_s7 + $0x8] sm:$0xff]  }
 0x209   :  { %v5525_v25 = vadd.f32 %v1453_v24, %v7134_v50  ;;  %v1491_v28 = vmax.f32 %v5523_v21, 0.0  ;;  %v5880_v21 = vld [vmem:[%s8502_s7 + $0x10] sm:$0xff]  }
 0x20a   :  { %v1492_v27 = vmax.f32 %v5524_v23, 0.0 }
 0x20b   :  { %v1493_v30 = vmax.f32 %v5525_v25, 0.0 }
 0x20c   :  { %v1510_v31 = vpack.c.bf16 %v1492_v27, %v1490_v26 }
 0x20d   :  { %v1511_v32 = vpack.c.bf16 %v1493_v30, %v1491_v28  ;;  %v1457_v33 = vpop.f32.mrb[28].mxu0  ;;  %v5881_v30 = vld [vmem:[%s8502_s7 + $0x18] sm:$0xff]  }
 0x20e   :  { %v5526_v34 = vadd.f32 %v1457_v33, %v7131_v49  ;;  %v1459_v35 = vpop.f32.mrb[29].mxu0 }
 0x20f   :  { %v5527_v36 = vadd.f32 %v1459_v35, %v7134_v50  ;;  %v1461_v37 = vpop.f32.mrb[30].mxu0  ;;  %1729 = vmatprep.mubr.bf16.mxu1 %v1511_v32  ;;  %v5882_v35 = vld [vmem:[%s8502_s7 + $0x20] sm:$0xff]  }
 0x210   :  { %v5528_v38 = vadd.f32 %v1461_v37, %v7131_v49  ;;  %v1463_v39 = vpop.f32.mrb[31].mxu0  ;;  %1730 = vmatmul.mubr.bf16.gmra.mrb[24].mxu1 %v1510_v31  ;;  %v1494_v41 = vmax.f32 %v5526_v34, 0.0  ;;  %v5877_v49 = vld [vmem:[%s8500_s5 + $0x38] sm:$0xff]  }
 0x211   :  { %v5529_v40 = vadd.f32 %v1463_v39, %v7134_v50  ;;  %v1495_v43 = vmax.f32 %v5527_v36, 0.0  ;;  %5432 = vmatprep.subr.bf16.mxu1 %v5877_v49  ;;  %v5878_v50 = vld [vmem:[%s8502_s7] sm:$0xff]  }
 0x212   :  { %v1496_v42 = vmax.f32 %v5528_v38, 0.0  ;;  %5433 = vmatpush3.bf16.msra.mxu1 %v5877_v49 }
 0x213   :  { %v1497_v44 = vmax.f32 %v5529_v40, 0.0  ;;  %5450 = vmatprep.subr.bf16.mxu1 %v5878_v50 }
 0x214   :  { %v1512_v47 = vpack.c.bf16 %v1496_v42, %v1494_v41 }
 0x215   :  { %v1513_v51 = vpack.c.bf16 %v1497_v44, %v1495_v43  ;;  %v5883_v43 = vld [vmem:[%s8502_s7 + $0x28] sm:$0xff]  }
 0x217   :  { %1737 = vmatprep.mubr.bf16.mxu1 %v1513_v51 }
 0x218   :  { %1738 = vmatmul.mubr.bf16.gmra.mrb[28].mxu1 %v1512_v47 }
 0x2b3   :  { %v5274_v53 = vpop.f32.mrb[0].mxu1 }
 0x2b4   :  { %v5275_v55 = vpop.f32.mrb[1].mxu1 }
 0x2b5   :  { %v5276_v56 = vadd.f32 %v5275_v55, %v5274_v53  ;;  %v5277_v57 = vpop.f32.mrb[2].mxu1 }
 0x2b6   :  { %v5278_v58 = vpop.f32.mrb[3].mxu1 }
 0x2b7   :  { %v1684_v59 = vadd.f32 %v5276_v56, %v7195_v54  ;;  %v5279_v60 = vadd.f32 %v5278_v58, %v5277_v57 }
 0x2b9   :  { %v1687_v61 = vadd.f32 %v5279_v60, %v7195_v54  ;;  %v1746_v62 = vmax.f32 %v1684_v59, 0.0 }
 0x2bb   :  { %v1747_v63 = vmax.f32 %v1687_v61, 0.0  ;;  %v5280_v0 = vpop.f32.mrb[4].mxu1 }
 0x2bc   :  { %v5281_v1 = vpop.f32.mrb[5].mxu1 }
 0x2bd   :  { %v5282_v2 = vadd.f32 %v5281_v1, %v5280_v0  ;;  %v5283_v3 = vpop.f32.mrb[6].mxu1  ;;  %v1762_v4 = vpack.c.bf16 %v1747_v63, %v1746_v62 }
 0x2be   :  { %v5284_v5 = vpop.f32.mrb[7].mxu1 }
 0x2bf   :  { %v1692_v6 = vadd.f32 %v5282_v2, %v7195_v54  ;;  %v5285_v7 = vadd.f32 %v5284_v5, %v5283_v3  ;;  %5434 = vmatprep.mubr.bf16.mxu1 %v1762_v4 }
 0x2c1   :  { %v1695_v8 = vadd.f32 %v5285_v7, %v7195_v54  ;;  %v1748_v9 = vmax.f32 %v1692_v6, 0.0 }
 0x2c3   :  { %v1749_v10 = vmax.f32 %v1695_v8, 0.0  ;;  %v5286_v11 = vpop.f32.mrb[8].mxu1 }
 0x2c4   :  { %v5287_v12 = vpop.f32.mrb[9].mxu1 }
 0x2c5   :  { %v1763_v13 = vpack.c.bf16 %v1749_v10, %v1748_v9  ;;  %v5288_v14 = vadd.f32 %v5287_v12, %v5286_v11  ;;  %v5289_v15 = vpop.f32.mrb[10].mxu1 }
 0x2c6   :  { %v5290_v17 = vpop.f32.mrb[11].mxu1 }
 0x2c7   :  { %v1700_v18 = vadd.f32 %v5288_v14, %v7195_v54  ;;  %v5291_v19 = vadd.f32 %v5290_v17, %v5289_v15  ;;  %5435 = vmatmul.mubr.bf16.vlgmr.msra.gmra.mrb[32].mxu1 %v1763_v13 }
 0x2c8   :  { %5451 = vmatpush3.bf16.msra.mxu1 %v5878_v50 }
 0x2c9   :  { %v1703_v20 = vadd.f32 %v5291_v19, %v7195_v54  ;;  %5452 = vmatprep.subr.bf16.mxu1 %v5879_v16  ;;  %v1750_v22 = vmax.f32 %v1700_v18, 0.0 }
 0x2cb   :  { %v1751_v23 = vmax.f32 %v1703_v20, 0.0  ;;  %v5292_v24 = vpop.f32.mrb[12].mxu1 }
 0x2cc   :  { %v5293_v25 = vpop.f32.mrb[13].mxu1  ;;  %5453 = vmatpush3.bf16.msra.mxu1 %v5879_v16 }
 0x2cd   :  { %v5294_v26 = vadd.f32 %v5293_v25, %v5292_v24  ;;  %v5295_v27 = vpop.f32.mrb[14].mxu1  ;;  %v1764_v28 = vpack.c.bf16 %v1751_v23, %v1750_v22  ;;  %5454 = vmatprep.subr.bf16.mxu1 %v5880_v21  ;;  %v5884_v24 = vld [vmem:[%s8502_s7 + $0x30] sm:$0xff]   ;;  %v5885_v25 = vld [vmem:[%s8502_s7 + $0x38] sm:$0xff]  }
 0x2ce   :  { %v5296_v31 = vpop.f32.mrb[15].mxu1 }
 0x2cf   :  { %v1708_v32 = vadd.f32 %v5294_v26, %v7195_v54  ;;  %v5297_v33 = vadd.f32 %v5296_v31, %v5295_v27  ;;  %5438 = vmatprep.mubr.bf16.mxu1 %v1764_v28  ;;  %v7240_v26 = vld [vmem:[%s8505_s6] ss:$0 sm:$0xff] }
 0x2d0   :  { %5455 = vmatpush3.bf16.msra.mxu1 %v5880_v21 }
 0x2d1   :  { %v1711_v34 = vadd.f32 %v5297_v33, %v7195_v54  ;;  %5456 = vmatprep.subr.bf16.mxu1 %v5881_v30  ;;  %v1752_v36 = vmax.f32 %v1708_v32, 0.0 }
 0x2d3   :  { %v1753_v37 = vmax.f32 %v1711_v34, 0.0  ;;  %v5298_v38 = vpop.f32.mrb[16].mxu1 }
 0x2d4   :  { %v5299_v39 = vpop.f32.mrb[17].mxu1  ;;  %5457 = vmatpush3.bf16.msra.mxu1 %v5881_v30 }
 0x2d5   :  { %v5300_v40 = vadd.f32 %v5299_v39, %v5298_v38  ;;  %v5301_v41 = vpop.f32.mrb[18].mxu1  ;;  %v1765_v42 = vpack.c.bf16 %v1753_v37, %v1752_v36  ;;  %5458 = vmatprep.subr.bf16.mxu1 %v5882_v35 }
 0x2d6   :  { %v5302_v44 = vpop.f32.mrb[19].mxu1 }
 0x2d7   :  { %v1716_v47 = vadd.f32 %v5300_v40, %v7195_v54  ;;  %v5303_v51 = vadd.f32 %v5302_v44, %v5301_v41  ;;  %5439 = vmatmul.mubr.bf16.gmra.mrb[36].mxu1 %v1765_v42  ;;  %v5886_v42 = vld [vmem:[%s8504_s9] ss:$8 sps:$4 sm:$0xff]   ;;  %v5889_v44 = vld [vmem:[%s8504_s9 + $0x10] ss:$8 sps:$4 sm:$0xff]  }
 0x2d8   :  { %5459 = vmatpush3.bf16.msra.mxu1 %v5882_v35 }
 0x2d9   :  { %v1719_v52 = vadd.f32 %v5303_v51, %v7195_v54  ;;  %5460 = vmatprep.subr.bf16.mxu1 %v5883_v43  ;;  %v1754_v49 = vmax.f32 %v1716_v47, 0.0  ;;  %v5894_v47 = vld [vmem:[%s8504_s9 + $0x24] ss:$8 sps:$4 sm:$0xff]  }
 0x2db   :  { %v1755_v50 = vmax.f32 %v1719_v52, 0.0  ;;  %v5304_v53 = vpop.f32.mrb[20].mxu1  ;;  %v5892_v52 = vld [vmem:[%s8504_s9 + $0x20] ss:$8 sps:$4 sm:$0xff]  }
 0x2dc   :  { %v5305_v55 = vpop.f32.mrb[21].mxu1  ;;  %5461 = vmatpush3.bf16.msra.mxu1 %v5883_v43  ;;  %v5891_v43 = vld [vmem:[%s8504_s9 + $0x14] ss:$8 sps:$4 sm:$0xff]  }
 0x2dd   :  { %v5306_v56 = vadd.f32 %v5305_v55, %v5304_v53  ;;  %v5307_v57 = vpop.f32.mrb[22].mxu1  ;;  %v1766_v58 = vpack.c.bf16 %v1755_v50, %v1754_v49  ;;  %5462 = vmatprep.subr.bf16.mxu1 %v5884_v24  ;;  %v5897_v53 = vld [vmem:[%s8504_s9 + $0x34] ss:$8 sps:$4 sm:$0xff]  }
 0x2de   :  { %v5308_v59 = vpop.f32.mrb[23].mxu1 }
 0x2df   :  { %v1724_v60 = vadd.f32 %v5306_v56, %v7195_v54  ;;  %v5309_v61 = vadd.f32 %v5308_v59, %v5307_v57  ;;  %5442 = vmatprep.mubr.bf16.mxu1 %v1766_v58 }
 0x2e0   :  { %5463 = vmatpush3.bf16.msra.mxu1 %v5884_v24 }
 0x2e1   :  { %v1727_v62 = vadd.f32 %v5309_v61, %v7195_v54  ;;  %v1756_v63 = vmax.f32 %v1724_v60, 0.0  ;;  %5464 = vmatprep.subr.bf16.mxu1 %v5885_v25  ;;  %v5895_v60 = vld [vmem:[%s8504_s9 + $0x30] ss:$8 sps:$4 sm:$0xff]  }
 0x2e3   :  { %v1757_v0 = vmax.f32 %v1727_v62, 0.0  ;;  %v5310_v1 = vpop.f32.mrb[24].mxu1 }
 0x2e4   :  { %v5311_v2 = vpop.f32.mrb[25].mxu1  ;;  %5465 = vmatpush3.bf16.msra.mxu1 %v5885_v25 }
 0x2e5   :  { %v5312_v3 = vadd.f32 %v5311_v2, %v5310_v1  ;;  %v5313_v4 = vpop.f32.mrb[26].mxu1  ;;  %v1767_v5 = vpack.c.bf16 %v1757_v0, %v1756_v63  ;;  %v5900_v63 = vld [vmem:[%s8504_s9 + $0x44] ss:$8 sps:$4 sm:$0xff]  }
 0x2e6   :  { %v5314_v6 = vpop.f32.mrb[27].mxu1 }
 0x2e7   :  { %v1732_v7 = vadd.f32 %v5312_v3, %v7195_v54  ;;  %v5315_v8 = vadd.f32 %v5314_v6, %v5313_v4  ;;  %5443 = vmatmul.mubr.bf16.gmra.mrb[40].mxu1 %v1767_v5  ;;  %v5898_v4 = vld [vmem:[%s8504_s9 + $0x40] ss:$8 sps:$4 sm:$0xff]   ;;  %v5903_v5 = vld [vmem:[%s8504_s9 + $0x54] ss:$8 sps:$4 sm:$0xff]   ;;  %v5901_v6 = vld [vmem:[%s8504_s9 + $0x50] ss:$8 sps:$4 sm:$0xff]  }
 0x2e9   :  { %v1735_v9 = vadd.f32 %v5315_v8, %v7195_v54  ;;  %v1758_v10 = vmax.f32 %v1732_v7, 0.0 }
 0x2eb   :  { %v1759_v11 = vmax.f32 %v1735_v9, 0.0  ;;  %v5316_v12 = vpop.f32.mrb[28].mxu1 }
 0x2ec   :  { %v5317_v13 = vpop.f32.mrb[29].mxu1 }
 0x2ed   :  { %v5318_v14 = vadd.f32 %v5317_v13, %v5316_v12  ;;  %v5319_v15 = vpop.f32.mrb[30].mxu1  ;;  %v1768_v16 = vpack.c.bf16 %v1759_v11, %v1758_v10 }
 0x2ee   :  { %v5320_v17 = vpop.f32.mrb[31].mxu1 }
 0x2ef   :  { %v1740_v18 = vadd.f32 %v5318_v14, %v7195_v54  ;;  %v5321_v19 = vadd.f32 %v5320_v17, %v5319_v15  ;;  %5446 = vmatprep.mubr.bf16.mxu1 %v1768_v16 }
 0x2f1   :  { %v1743_v20 = vadd.f32 %v5321_v19, %v7195_v54  ;;  %v1760_v21 = vmax.f32 %v1740_v18, 0.0  ;;  %v5888_v54 = vld [vmem:[%s8504_s9 + $0x4] ss:$8 sps:$4 sm:$0xff]  }
 0x2f2   :  { %2262 = vmatprep.subr.bf16.mxu1 %v5888_v54 }
 0x2f3   :  { %v1761_v22 = vmax.f32 %v1743_v20, 0.0 }
 0x2f5   :  { %v1769_v23 = vpack.c.bf16 %v1761_v22, %v1760_v21 }
 0x2f7   :  { %5447 = vmatmul.mubr.bf16.gmra.mrb[44].mxu1 %v1769_v23 }
 0x39a   :  { %v5436_v27 = vpop.f32.mrb[32].mxu1 }
 0x39b   :  { %v1884_v28 = vadd.f32 %v5436_v27, %v7240_v26  ;;  %v1875_v30 = vpop.f32.mrb[33].mxu1 }
 0x39c   :  { %v1876_v31 = vadd.f32 %v7240_v26, %v1875_v30  ;;  %v5437_v32 = vpop.f32.mrb[34].mxu1 }
 0x39d   :  { %v1887_v33 = vadd.f32 %v5437_v32, %v7240_v26  ;;  %v1878_v34 = vpop.f32.mrb[35].mxu1  ;;  %v1940_v36 = vmax.f32 %v1884_v28, 0.0 }
 0x39e   :  { %v1879_v35 = vadd.f32 %v7240_v26, %v1878_v34  ;;  %v1938_v38 = vmax.f32 %v1876_v31, 0.0 }
 0x39f   :  { %v1941_v37 = vmax.f32 %v1887_v33, 0.0 }
 0x3a0   :  { %v1939_v39 = vmax.f32 %v1879_v35, 0.0 }
 0x3a1   :  { %v1955_v40 = vpack.c.bf16 %v1941_v37, %v1940_v36  ;;  %v5906_v36 = vld [vmem:[%s8504_s9 + $0x64] ss:$8 sps:$4 sm:$0xff]   ;;  %v5904_v37 = vld [vmem:[%s8504_s9 + $0x60] ss:$8 sps:$4 sm:$0xff]  }
 0x3a2   :  { %v1954_v41 = vpack.c.bf16 %v1939_v39, %v1938_v38  ;;  %v5907_v38 = vld [vmem:[%s8504_s9 + $0x70] ss:$8 sps:$4 sm:$0xff]   ;;  %v5912_v39 = vld [vmem:[%s8506_s11 + $0x4] ss:$28 sps:$4 sm:$0xff]  }
 0x3a4   :  { %5466 = vmatprep.mubr.bf16.mxu1 %v1954_v41  ;;  %v5915_v41 = vld [vmem:[%s8506_s11 + $0x14] ss:$28 sps:$4 sm:$0xff]  }
 0x3a5   :  { %5467 = vmatmul.mubr.bf16.vlgmr.msra.gmra.mrb[48].mxu1 %v1955_v40  ;;  %v5913_v40 = vld [vmem:[%s8506_s11 + $0x10] ss:$28 sps:$4 sm:$0xff]   ;;  %3390 = vmatprep.subr.bf16.mxu0 %v5915_v41 }
 0x3a6   :  { %2263 = vmatpush1.bf16.msra.mxu1 %v5886_v42  ;;  %v5919_v42 = vld [vmem:[%s8506_s11 + $0x48] ss:$28 sps:$4 sm:$0xff]   ;;  %3391 = vmatpush1.bf16.msra.mxu0 %v5913_v40 }
 0x3a7   :  { %2264 = vmatprep.subr.bf16.mxu1 %v5891_v43  ;;  %v5921_v43 = vld [vmem:[%s8506_s11 + $0x4c] ss:$28 sps:$4 sm:$0xff]  }
 0x3a8   :  { %3392 = vmatprep.subr.bf16.mxu0 %v5921_v43 }
 0x3aa   :  { %v5440_v51 = vpop.f32.mrb[36].mxu1  ;;  %2265 = vmatpush1.bf16.msra.mxu1 %v5889_v44  ;;  %v5927_v44 = vld [vmem:[%s8506_s11 + $0x84] ss:$28 sps:$4 sm:$0xff]   ;;  %3393 = vmatpush1.bf16.msra.mxu0 %v5919_v42 }
 0x3ab   :  { %v1900_v49 = vadd.f32 %v5440_v51, %v7240_v26  ;;  %v1891_v50 = vpop.f32.mrb[37].mxu1  ;;  %2266 = vmatprep.subr.bf16.mxu1 %v5894_v47  ;;  %v5925_v47 = vld [vmem:[%s8506_s11 + $0x80] ss:$28 sps:$4 sm:$0xff]   ;;  %3394 = vmatprep.subr.bf16.mxu0 %v5927_v44 }
 0x3ac   :  { %v1892_v55 = vadd.f32 %v7240_v26, %v1891_v50  ;;  %v5441_v56 = vpop.f32.mrb[38].mxu1  ;;  %v5933_v51 = vld [vmem:[%s8506_s11 + $0xbc] ss:$28 sps:$4 sm:$0xff]   ;;  %v5937_v50 = vld [vmem:[%s8506_s11 + $0xf0] ss:$28 sps:$4 sm:$0xff]  }
 0x3ad   :  { %v1903_v57 = vadd.f32 %v5441_v56, %v7240_v26  ;;  %v1894_v58 = vpop.f32.mrb[39].mxu1  ;;  %v1944_v61 = vmax.f32 %v1900_v49, 0.0  ;;  %v5939_v49 = vld [vmem:[%s8506_s11 + $0xf4] ss:$28 sps:$4 sm:$0xff]   ;;  %v5951_v56 = vld [vmem:[%s8506_s11 + $0x164] ss:$28 sps:$4 sm:$0xff]  }
 0x3ae   :  { %v1895_v59 = vadd.f32 %v7240_v26, %v1894_v58  ;;  %2267 = vmatpush1.bf16.msra.mxu1 %v5892_v52  ;;  %v1942_v0 = vmax.f32 %v1892_v55, 0.0  ;;  %3395 = vmatpush1.bf16.msra.mxu0 %v5925_v47  ;;  %v5931_v52 = vld [vmem:[%s8506_s11 + $0xb8] ss:$28 sps:$4 sm:$0xff]   ;;  %v5943_v55 = vld [vmem:[%s8506_s11 + $0x128] ss:$28 sps:$4 sm:$0xff]  }
 0x3af   :  { %v1945_v62 = vmax.f32 %v1903_v57, 0.0  ;;  %2268 = vmatprep.subr.bf16.mxu1 %v5897_v53  ;;  %3396 = vmatprep.subr.bf16.mxu0 %v5933_v51  ;;  %v5945_v53 = vld [vmem:[%s8506_s11 + $0x12c] ss:$28 sps:$4 sm:$0xff]   ;;  %v5949_v57 = vld [vmem:[%s8506_s11 + $0x160] ss:$28 sps:$4 sm:$0xff]  }
 0x3b0   :  { %v1943_v1 = vmax.f32 %v1895_v59, 0.0  ;;  %v5957_v58 = vld [vmem:[%s8506_s11 + $0x19c] ss:$28 sps:$4 sm:$0xff]  }
 0x3b1   :  { %v1957_v2 = vpack.c.bf16 %v1945_v62, %v1944_v61  ;;  %v5955_v59 = vld [vmem:[%s8506_s11 + $0x198] ss:$28 sps:$4 sm:$0xff]   ;;  %v5961_v61 = vld [vmem:[%s8506_s11 + $0x1d0] ss:$28 sps:$4 sm:$0xff]   ;;  %v5934_v44 = vld [vmem:[%s8506_s11 + $0xe0] ss:$28 sps:$4 sm:$0xff]  }
 0x3b2   :  { %v1956_v3 = vpack.c.bf16 %v1943_v1, %v1942_v0  ;;  %2269 = vmatpush1.bf16.msra.mxu1 %v5895_v60  ;;  %3397 = vmatpush1.bf16.msra.mxu0 %v5931_v52  ;;  %v5963_v60 = vld [vmem:[%s8506_s11 + $0x1d4] ss:$28 sps:$4 sm:$0xff]   ;;  %v5969_v62 = vld [vmem:[%s8506_s11 + $0x20c] ss:$28 sps:$4 sm:$0xff]   ;;  %v5975_v0 = vld [vmem:[%s8506_s11 + $0x244] ss:$28 sps:$4 sm:$0xff]  }
 0x3b3   :  { %2270 = vmatprep.subr.bf16.mxu1 %v5900_v63  ;;  %3398 = vmatprep.subr.bf16.mxu0 %v5939_v49  ;;  %v5967_v63 = vld [vmem:[%s8506_s11 + $0x208] ss:$28 sps:$4 sm:$0xff]   ;;  %v5973_v1 = vld [vmem:[%s8506_s11 + $0x240] ss:$28 sps:$4 sm:$0xff]   ;;  %v5940_v52 = vld [vmem:[%s8506_s11 + $0x118] ss:$28 sps:$4 sm:$0xff]  }
 0x3b4   :  { %5470 = vmatprep.mubr.bf16.mxu1 %v1956_v3  ;;  %v5979_v3 = vld [vmem:[%s8506_s11 + $0x278] ss:$28 sps:$4 sm:$0xff]  }
 0x3b5   :  { %5471 = vmatmul.mubr.bf16.gmra.mrb[52].mxu1 %v1957_v2  ;;  %v5981_v2 = vld [vmem:[%s8506_s11 + $0x27c] ss:$28 sps:$4 sm:$0xff]   ;;  %v5948_v49 = vld [vmem:[%s8506_s11 + $0x154] ss:$28 sps:$4 sm:$0xff]  }
 0x3b6   :  { %2271 = vmatpush1.bf16.msra.mxu1 %v5898_v4  ;;  %3399 = vmatpush1.bf16.msra.mxu0 %v5937_v50  ;;  %v5987_v4 = vld [vmem:[%s8506_s11 + $0x2b4] ss:$28 sps:$4 sm:$0xff]   ;;  %v5942_v51 = vld [vmem:[%s8506_s11 + $0x11c] ss:$28 sps:$4 sm:$0xff]  }
 0x3b7   :  { %2272 = vmatprep.subr.bf16.mxu1 %v5903_v5  ;;  %3400 = vmatprep.subr.bf16.mxu0 %v5945_v53  ;;  %v5985_v5 = vld [vmem:[%s8506_s11 + $0x2b0] ss:$28 sps:$4 sm:$0xff]  }
 0x3b8   :  { %v5946_v50 = vld [vmem:[%s8506_s11 + $0x150] ss:$28 sps:$4 sm:$0xff]  }
 0x3ba   :  { %v5444_v7 = vpop.f32.mrb[40].mxu1  ;;  %2273 = vmatpush1.bf16.msra.mxu1 %v5901_v6  ;;  %3401 = vmatpush1.bf16.msra.mxu0 %v5943_v55  ;;  %v5993_v6 = vld [vmem:[%s8506_s11 + $0x2ec] ss:$28 sps:$4 sm:$0xff]  }
 0x3bb   :  { %v1916_v8 = vadd.f32 %v5444_v7, %v7240_v26  ;;  %v1907_v9 = vpop.f32.mrb[41].mxu1  ;;  %2274 = vmatprep.subr.bf16.mxu1 %v5906_v36  ;;  %3402 = vmatprep.subr.bf16.mxu0 %v5951_v56  ;;  %v5991_v7 = vld [vmem:[%s8506_s11 + $0x2e8] ss:$28 sps:$4 sm:$0xff]  }
 0x3bc   :  { %v1908_v10 = vadd.f32 %v7240_v26, %v1907_v9  ;;  %v5445_v11 = vpop.f32.mrb[42].mxu1  ;;  %v5954_v55 = vld [vmem:[%s8506_s11 + $0x18c] ss:$28 sps:$4 sm:$0xff]  }
 0x3bd   :  { %v1919_v12 = vadd.f32 %v5445_v11, %v7240_v26  ;;  %v1910_v13 = vpop.f32.mrb[43].mxu1  ;;  %v1948_v15 = vmax.f32 %v1916_v8, 0.0  ;;  %v7394_v8 = vld [vmem:[%s8507_s8] ss:$0 sm:$0xff] }
 0x3be   :  { %v1911_v14 = vadd.f32 %v7240_v26, %v1910_v13  ;;  %v1946_v17 = vmax.f32 %v1908_v10, 0.0  ;;  %2275 = vmatpush1.bf16.msra.mxu1 %v5904_v37  ;;  %3403 = vmatpush1.bf16.msra.mxu0 %v5949_v57  ;;  %v5928_v37 = vld [vmem:[%s8506_s11 + $0xa8] ss:$28 sps:$4 sm:$0xff]  }
 0x3bf   :  { %v1949_v16 = vmax.f32 %v1919_v12, 0.0  ;;  %3404 = vmatprep.subr.bf16.mxu0 %v5957_v58 }
 0x3c0   :  { %v1947_v18 = vmax.f32 %v1911_v14, 0.0 }
 0x3c1   :  { %v1959_v19 = vpack.c.bf16 %v1949_v16, %v1948_v15 }
 0x3c2   :  { %v1958_v20 = vpack.c.bf16 %v1947_v18, %v1946_v17  ;;  %3405 = vmatpush1.bf16.msra.mxu0 %v5955_v59 }
 0x3c3   :  { %3406 = vmatprep.subr.bf16.mxu0 %v5963_v60 }
 0x3c4   :  { %5474 = vmatprep.mubr.bf16.mxu1 %v1958_v20 }
 0x3c5   :  { %5475 = vmatmul.mubr.bf16.gmra.mrb[56].mxu1 %v1959_v19 }
 0x3c6   :  { %3407 = vmatpush1.bf16.msra.mxu0 %v5961_v61 }
 0x3c7   :  { %3408 = vmatprep.subr.bf16.mxu0 %v5969_v62  ;;  %v5952_v62 = vld [vmem:[%s8506_s11 + $0x188] ss:$28 sps:$4 sm:$0xff]  }
 0x3ca   :  { %v5448_v21 = vpop.f32.mrb[44].mxu1  ;;  %3409 = vmatpush1.bf16.msra.mxu0 %v5967_v63 }
 0x3cb   :  { %v1932_v22 = vadd.f32 %v5448_v21, %v7240_v26  ;;  %v1923_v23 = vpop.f32.mrb[45].mxu1  ;;  %3410 = vmatprep.subr.bf16.mxu0 %v5975_v0  ;;  %v5960_v0 = vld [vmem:[%s8506_s11 + $0x1c4] ss:$28 sps:$4 sm:$0xff]  }
 0x3cc   :  { %v1924_v24 = vadd.f32 %v7240_v26, %v1923_v23  ;;  %v5449_v25 = vpop.f32.mrb[46].mxu1 }
 0x3cd   :  { %v1935_v54 = vadd.f32 %v5449_v25, %v7240_v26  ;;  %v1926_v27 = vpop.f32.mrb[47].mxu1  ;;  %v1952_v30 = vmax.f32 %v1932_v22, 0.0  ;;  %v5910_v22 = vld [vmem:[%s8506_s11] ss:$28 sps:$4 sm:$0xff]   ;;  %v5916_v25 = vld [vmem:[%s8506_s11 + $0x38] ss:$28 sps:$4 sm:$0xff]  }
 0x3ce   :  { %v1927_v28 = vadd.f32 %v7240_v26, %v1926_v27  ;;  %v1950_v32 = vmax.f32 %v1924_v24, 0.0  ;;  %v5909_v26 = vld [vmem:[%s8504_s9 + $0x74] ss:$8 sps:$4 sm:$0xff]   ;;  %3411 = vmatpush1.bf16.msra.mxu0 %v5973_v1  ;;  %v5922_v27 = vld [vmem:[%s8506_s11 + $0x70] ss:$28 sps:$4 sm:$0xff]  }
 0x3cf   :  { %v1953_v31 = vmax.f32 %v1935_v54, 0.0  ;;  %2276 = vmatprep.subr.bf16.mxu1 %v5909_v26  ;;  %3412 = vmatprep.subr.bf16.mxu0 %v5981_v2  ;;  %v5918_v24 = vld [vmem:[%s8506_s11 + $0x3c] ss:$28 sps:$4 sm:$0xff]   ;;  %v5924_v54 = vld [vmem:[%s8506_s11 + $0x74] ss:$28 sps:$4 sm:$0xff]  }
 0x3d0   :  { %v1951_v33 = vmax.f32 %v1927_v28, 0.0  ;;  %2277 = vmatpush1.bf16.msra.mxu1 %v5907_v38  ;;  %v5936_v38 = vld [vmem:[%s8506_s11 + $0xe4] ss:$28 sps:$4 sm:$0xff]  }
 0x3d1   :  { %v1961_v34 = vpack.c.bf16 %v1953_v31, %v1952_v30  ;;  %3164 = vmatprep.subr.bf16.mxu1 %v5912_v39  ;;  %v5930_v30 = vld [vmem:[%s8506_s11 + $0xac] ss:$28 sps:$4 sm:$0xff]  }
 0x3d2   :  { %v1960_v35 = vpack.c.bf16 %v1951_v33, %v1950_v32  ;;  %3413 = vmatpush1.bf16.msra.mxu0 %v5979_v3 }
 0x3d3   :  { %3414 = vmatprep.subr.bf16.mxu0 %v5987_v4 }
 0x3d4   :  { %5478 = vmatprep.mubr.bf16.mxu1 %v1960_v35 }
 0x3d5   :  { %5479 = vmatmul.mubr.bf16.gmra.mrb[60].mxu1 %v1961_v34 }
 0x3d6   :  { %2294 = vmatprep.mubr.bf16.mxu1 %v6519_v29  ;;  %3415 = vmatpush1.bf16.msra.mxu0 %v5985_v5 }
 0x3d7   :  { %3416 = vmatprep.subr.bf16.mxu0 %v5993_v6  ;;  %v5958_v6 = vld [vmem:[%s8506_s11 + $0x1c0] ss:$28 sps:$4 sm:$0xff]  }
 0x3da   :  { %3417 = vmatpush1.bf16.msra.mxu0 %v5991_v7 }
 0x478   :  { %v5468_v9 = vpop.f32.mrb[48].mxu1 }
 0x479   :  { %v2076_v10 = vadd.f32 %v5468_v9, %v7394_v8  ;;  %v2067_v11 = vpop.f32.mrb[49].mxu1  ;;  %v5966_v9 = vld [vmem:[%s8506_s11 + $0x1fc] ss:$28 sps:$4 sm:$0xff]  }
 0x47a   :  { %v2068_v12 = vadd.f32 %v7394_v8, %v2067_v11  ;;  %v5469_v13 = vpop.f32.mrb[50].mxu1  ;;  %v5972_v11 = vld [vmem:[%s8506_s11 + $0x234] ss:$28 sps:$4 sm:$0xff]  }
 0x47b   :  { %v2079_v14 = vadd.f32 %v5469_v13, %v7394_v8  ;;  %v2070_v15 = vpop.f32.mrb[51].mxu1  ;;  %v2132_v17 = vmax.f32 %v2076_v10, 0.0  ;;  %v5964_v10 = vld [vmem:[%s8506_s11 + $0x1f8] ss:$28 sps:$4 sm:$0xff]  }
 0x47c   :  { %v2071_v16 = vadd.f32 %v7394_v8, %v2070_v15  ;;  %v2130_v19 = vmax.f32 %v2068_v12, 0.0  ;;  %v5970_v12 = vld [vmem:[%s8506_s11 + $0x230] ss:$28 sps:$4 sm:$0xff]  }
 0x47d   :  { %v2133_v18 = vmax.f32 %v2079_v14, 0.0  ;;  %v5978_v14 = vld [vmem:[%s8506_s11 + $0x26c] ss:$28 sps:$4 sm:$0xff]  }
 0x47e   :  { %v2131_v20 = vmax.f32 %v2071_v16, 0.0 }
 0x47f   :  { %v2147_v21 = vpack.c.bf16 %v2133_v18, %v2132_v17 }
 0x480   :  { %v2146_v23 = vpack.c.bf16 %v2131_v20, %v2130_v19 }
 0x482   :  { %2295 = vmatmul.mubr.bf16.vlgmr.msra.gmra.mrb[64].mxu1 %v2146_v23  ;;  %v5984_v23 = vld [vmem:[%s8506_s11 + $0x2a4] ss:$28 sps:$4 sm:$0xff]  }
 0x483   :  { %2304 = vmatprep.mubr.bf16.mxu1 %v6519_v29  ;;  %3165 = vmatpush1.bf16.msra.mxu1 %v5910_v22 }
 0x484   :  { %3166 = vmatprep.subr.bf16.mxu1 %v5918_v24 }
 0x487   :  { %3167 = vmatpush1.bf16.msra.mxu1 %v5916_v25 }
 0x488   :  { %v5472_v28 = vpop.f32.mrb[52].mxu1  ;;  %3168 = vmatprep.subr.bf16.mxu1 %v5924_v54 }
 0x489   :  { %v2092_v31 = vadd.f32 %v5472_v28, %v7394_v8  ;;  %v2083_v32 = vpop.f32.mrb[53].mxu1 }
 0x48a   :  { %v2084_v33 = vadd.f32 %v7394_v8, %v2083_v32  ;;  %v5473_v34 = vpop.f32.mrb[54].mxu1  ;;  %2305 = vmatmul.mubr.bf16.gmra.mrb[68].mxu1 %v2147_v21  ;;  %v5976_v21 = vld [vmem:[%s8506_s11 + $0x268] ss:$28 sps:$4 sm:$0xff]   ;;  %v5988_v32 = vld [vmem:[%s8506_s11 + $0x2d8] ss:$28 sps:$4 sm:$0xff]  }
 0x48b   :  { %v2095_v35 = vadd.f32 %v5473_v34, %v7394_v8  ;;  %v2086_v36 = vpop.f32.mrb[55].mxu1  ;;  %2314 = vmatprep.mubr.bf16.mxu1 %v6519_v29  ;;  %3169 = vmatpush1.bf16.msra.mxu1 %v5922_v27  ;;  %v2136_v39 = vmax.f32 %v2092_v31, 0.0  ;;  %v5999_v34 = vld [vmem:[%s8506_s11 + $0x324] ss:$28 sps:$4 sm:$0xff]  }
 0x48c   :  { %v2087_v26 = vadd.f32 %v7394_v8, %v2086_v36  ;;  %3170 = vmatprep.subr.bf16.mxu1 %v5930_v30  ;;  %v2134_v41 = vmax.f32 %v2084_v33, 0.0  ;;  %v5982_v30 = vld [vmem:[%s8506_s11 + $0x2a0] ss:$28 sps:$4 sm:$0xff]   ;;  %v5996_v33 = vld [vmem:[%s8506_s11 + $0x314] ss:$28 sps:$4 sm:$0xff]   ;;  %3418 = vmatprep.subr.bf16.mxu0 %v5999_v34 }
 0x48d   :  { %v2137_v40 = vmax.f32 %v2095_v35, 0.0  ;;  %v5997_v35 = vld [vmem:[%s8506_s11 + $0x320] ss:$28 sps:$4 sm:$0xff]   ;;  %v6002_v36 = vld [vmem:[%s8506_s11 + $0x34c] ss:$28 sps:$4 sm:$0xff]  }
 0x48e   :  { %v2135_v42 = vmax.f32 %v2087_v26, 0.0  ;;  %3419 = vmatpush1.bf16.msra.mxu0 %v5997_v35  ;;  %v6000_v26 = vld [vmem:[%s8506_s11 + $0x348] ss:$28 sps:$4 sm:$0xff]   ;;  %v7629_v34 = vld [vmem:[%s8506_s11 + $0xc0] ss:$28 sps:$4 sm:$0xff]  }
 0x48f   :  { %v2149_v43 = vpack.c.bf16 %v2137_v40, %v2136_v39  ;;  %3171 = vmatpush1.bf16.msra.mxu1 %v5928_v37  ;;  %v6005_v37 = vld [vmem:[%s8506_s11 + $0x35c] ss:$28 sps:$4 sm:$0xff]   ;;  %v6008_v39 = vld [vmem:[%s8506_s11 + $0xc] ss:$28 sps:$4 sm:$0xff]  }
 0x490   :  { %v2148_v47 = vpack.c.bf16 %v2135_v42, %v2134_v41  ;;  %3172 = vmatprep.subr.bf16.mxu1 %v5936_v38  ;;  %v6003_v38 = vld [vmem:[%s8506_s11 + $0x358] ss:$28 sps:$4 sm:$0xff]   ;;  %3420 = vmatprep.subr.bf16.mxu0 %v6005_v37  ;;  %v2170_v41 = vld [vmem:[%s8508_s10] sm:$0x3] }
 0x491   :  { %v7530_v40 = vld [vmem:[%s8506_s11 + $0x1d8] ss:$28 sps:$4 sm:$0xff]   ;;  %v7537_v42 = vrot.slane %v2170_v41, %v7122_v46 }
 0x492   :  { %2315 = vmatmul.mubr.bf16.gmra.mrb[72].mxu1 %v2148_v47  ;;  %3421 = vmatpush1.bf16.msra.mxu0 %v6003_v38  ;;  %v7638_v37 = vld [vmem:[%s8506_s11 + $0x2b8] ss:$28 sps:$4 sm:$0xff]  }
 0x493   :  { %2324 = vmatprep.mubr.bf16.mxu1 %v6519_v29  ;;  %3173 = vmatpush1.bf16.msra.mxu1 %v5934_v44 }
 0x494   :  { %3174 = vmatprep.subr.bf16.mxu1 %v5942_v51  ;;  %5354 = vmatprep.subr.bf16.mxu0 %v7530_v40 }
 0x497   :  { %3175 = vmatpush1.bf16.msra.mxu1 %v5940_v52 }
 0x498   :  { %v5476_v53 = vpop.f32.mrb[56].mxu1  ;;  %3176 = vmatprep.subr.bf16.mxu1 %v5948_v49 }
 0x499   :  { %v2108_v56 = vadd.f32 %v5476_v53, %v7394_v8  ;;  %v2099_v57 = vpop.f32.mrb[57].mxu1 }
 0x49a   :  { %v2100_v58 = vadd.f32 %v7394_v8, %v2099_v57  ;;  %v5477_v59 = vpop.f32.mrb[58].mxu1  ;;  %2325 = vmatmul.mubr.bf16.gmra.mrb[76].mxu1 %v2149_v43  ;;  %v7540_v43 = vrot.slane %v2170_v41, %v7128_v48 }
 0x49b   :  { %v2111_v60 = vadd.f32 %v5477_v59, %v7394_v8  ;;  %v2102_v61 = vpop.f32.mrb[59].mxu1  ;;  %2334 = vmatprep.mubr.bf16.mxu1 %v6519_v29  ;;  %3177 = vmatpush1.bf16.msra.mxu1 %v5946_v50  ;;  %v2140_v1 = vmax.f32 %v2108_v56, 0.0 }
 0x49c   :  { %v2103_v63 = vadd.f32 %v7394_v8, %v2102_v61  ;;  %3178 = vmatprep.subr.bf16.mxu1 %v5954_v55  ;;  %v2138_v3 = vmax.f32 %v2100_v58, 0.0 }
 0x49d   :  { %v2141_v2 = vmax.f32 %v2111_v60, 0.0 }
 0x49e   :  { %v2139_v4 = vmax.f32 %v2103_v63, 0.0  ;;  %v6006_v63 = vld [vmem:[%s8506_s11 + $0x8] ss:$28 sps:$4 sm:$0xff]  }
 0x49f   :  { %v2151_v5 = vpack.c.bf16 %v2141_v2, %v2140_v1  ;;  %3179 = vmatpush1.bf16.msra.mxu1 %v5952_v62 }
 0x4a0   :  { %v2150_v7 = vpack.c.bf16 %v2139_v4, %v2138_v3  ;;  %3180 = vmatprep.subr.bf16.mxu1 %v5960_v0  ;;  %v7556_v0 = vld [vmem:[%s8506_s11 + $0x18] ss:$28 sps:$4 sm:$0xff]   ;;  %v6011_v3 = vld [vmem:[%s8506_s11 + $0x44] ss:$28 sps:$4 sm:$0xff]   ;;  %v7565_v4 = vld [vmem:[%s8506_s11 + $0x210] ss:$28 sps:$4 sm:$0xff]  }
 0x4a2   :  { %2335 = vmatmul.mubr.bf16.gmra.mrb[80].mxu1 %v2150_v7 }
 0x4a3   :  { %2344 = vmatprep.mubr.bf16.mxu1 %v6519_v29  ;;  %3181 = vmatpush1.bf16.msra.mxu1 %v5958_v6 }
 0x4a4   :  { %3182 = vmatprep.subr.bf16.mxu1 %v5966_v9 }
 0x4a7   :  { %3183 = vmatpush1.bf16.msra.mxu1 %v5964_v10 }
 0x4a8   :  { %v5480_v13 = vpop.f32.mrb[60].mxu1  ;;  %3184 = vmatprep.subr.bf16.mxu1 %v5972_v11  ;;  %v6009_v11 = vld [vmem:[%s8506_s11 + $0x40] ss:$28 sps:$4 sm:$0xff]  }
 0x4a9   :  { %v2124_v15 = vadd.f32 %v5480_v13, %v7394_v8  ;;  %v2115_v16 = vpop.f32.mrb[61].mxu1 }
 0x4aa   :  { %v2116_v17 = vadd.f32 %v7394_v8, %v2115_v16  ;;  %v5481_v18 = vpop.f32.mrb[62].mxu1  ;;  %2345 = vmatmul.mubr.bf16.gmra.mrb[84].mxu1 %v2151_v5  ;;  %v7590_v16 = vld [vmem:[%s8506_s11 + $0x248] ss:$28 sps:$4 sm:$0xff]  }
 0x4ab   :  { %v2127_v19 = vadd.f32 %v5481_v18, %v7394_v8  ;;  %v2118_v20 = vpop.f32.mrb[63].mxu1  ;;  %2354 = vmatprep.mubr.bf16.mxu1 %v6519_v29  ;;  %3185 = vmatpush1.bf16.msra.mxu1 %v5970_v12  ;;  %v2144_v24 = vmax.f32 %v2124_v15, 0.0  ;;  %v7581_v12 = vld [vmem:[%s8506_s11 + $0x50] ss:$28 sps:$4 sm:$0xff]   ;;  %v6014_v15 = vld [vmem:[%s8506_s11 + $0x7c] ss:$28 sps:$4 sm:$0xff]  }
 0x4ac   :  { %v2119_v22 = vadd.f32 %v7394_v8, %v2118_v20  ;;  %3186 = vmatprep.subr.bf16.mxu1 %v5978_v14  ;;  %v2142_v54 = vmax.f32 %v2116_v17, 0.0  ;;  %v5990_v8 = vld [vmem:[%s8506_s11 + $0x2dc] ss:$28 sps:$4 sm:$0xff]  }
 0x4ad   :  { %v2145_v25 = vmax.f32 %v2127_v19, 0.0 }
 0x4ae   :  { %v2143_v27 = vmax.f32 %v2119_v22, 0.0  ;;  %v6012_v22 = vld [vmem:[%s8506_s11 + $0x78] ss:$28 sps:$4 sm:$0xff]  }
 0x4af   :  { %v2153_v28 = vpack.c.bf16 %v2145_v25, %v2144_v24  ;;  %3187 = vmatpush1.bf16.msra.mxu1 %v5976_v21 }
 0x4b0   :  { %v2152_v31 = vpack.c.bf16 %v2143_v27, %v2142_v54  ;;  %3188 = vmatprep.subr.bf16.mxu1 %v5984_v23  ;;  %v7603_v23 = vld [vmem:[%s8506_s11 + $0x88] ss:$28 sps:$4 sm:$0xff]   ;;  %v6017_v54 = vld [vmem:[%s8506_s11 + $0xb4] ss:$28 sps:$4 sm:$0xff]   ;;  %v7613_v27 = vld [vmem:[%s8506_s11 + $0x280] ss:$28 sps:$4 sm:$0xff]  }
 0x4b2   :  { %2355 = vmatmul.mubr.bf16.gmra.mrb[88].mxu1 %v2152_v31 }
 0x4b3   :  { %2364 = vmatprep.mubr.bf16.mxu1 %v6519_v29  ;;  %3189 = vmatpush1.bf16.msra.mxu1 %v5982_v30  ;;  %v5994_v29 = vld [vmem:[%s8506_s11 + $0x310] ss:$28 sps:$4 sm:$0xff]  }
 0x4b4   :  { %3190 = vmatprep.subr.bf16.mxu1 %v5990_v8 }
 0x4b7   :  { %3191 = vmatpush1.bf16.msra.mxu1 %v5988_v32 }
 0x4b8   :  { %3192 = vmatprep.subr.bf16.mxu1 %v5996_v33  ;;  %v6015_v33 = vld [vmem:[%s8506_s11 + $0xb0] ss:$28 sps:$4 sm:$0xff]  }
 0x4ba   :  { %2365 = vmatmul.mubr.bf16.gmra.mrb[92].mxu1 %v2153_v28 }
 0x4bb   :  { %3193 = vmatpush1.bf16.msra.mxu1 %v5994_v29 }
 0x4bc   :  { %3194 = vmatprep.subr.bf16.mxu1 %v6002_v36  ;;  %v6020_v36 = vld [vmem:[%s8506_s11 + $0xec] ss:$28 sps:$4 sm:$0xff]  }
 0x4bf   :  { %3195 = vmatpush1.bf16.msra.mxu1 %v6000_v26 }
 0x4c0   :  { %3277 = vmatprep.subr.bf16.mxu1 %v6008_v39 }
 0x555   :  { %v2296_v44 = vpop.f32.mrb[64].mxu1 }
 0x556   :  { %v2297_v47 = vadd.f32 %v2296_v44, %v7537_v42  ;;  %v2298_v51 = vpop.f32.mrb[65].mxu1 }
 0x557   :  { %v2299_v52 = vadd.f32 %v2298_v51, %v7540_v43  ;;  %v2300_v49 = vpop.f32.mrb[66].mxu1  ;;  %v7651_v51 = vld [vmem:[%s8506_s11 + $0xf8] ss:$28 sps:$4 sm:$0xff]  }
 0x558   :  { %v2301_v50 = vadd.f32 %v2300_v49, %v7537_v42  ;;  %v2302_v53 = vpop.f32.mrb[67].mxu1  ;;  %v2375_v56 = vmax.f32 %v2297_v47, 0.0  ;;  %v6018_v47 = vld [vmem:[%s8506_s11 + $0xe8] ss:$28 sps:$4 sm:$0xff]  }
 0x559   :  { %v2303_v55 = vadd.f32 %v2302_v53, %v7540_v43  ;;  %v2376_v58 = vmax.f32 %v2299_v52, 0.0  ;;  %v7661_v53 = vld [vmem:[%s8506_s11 + $0x2f0] ss:$28 sps:$4 sm:$0xff]  }
 0x55a   :  { %v2377_v57 = vmax.f32 %v2301_v50, 0.0  ;;  %v6023_v50 = vld [vmem:[%s8506_s11 + $0x124] ss:$28 sps:$4 sm:$0xff]  }
 0x55b   :  { %v2378_v59 = vmax.f32 %v2303_v55, 0.0 }
 0x55c   :  { %v7546_v60 = vpack.c.bf16 %v2377_v57, %v2375_v56 }
 0x55d   :  { %v7548_v61 = vpack.c.bf16 %v2378_v59, %v2376_v58  ;;  %v2306_v62 = vpop.f32.mrb[68].mxu1 }
 0x55e   :  { %v2307_v1 = vadd.f32 %v2306_v62, %v7537_v42  ;;  %v2308_v2 = vpop.f32.mrb[69].mxu1  ;;  %v6021_v62 = vld [vmem:[%s8506_s11 + $0x120] ss:$28 sps:$4 sm:$0xff]  }
 0x55f   :  { %v2309_v5 = vadd.f32 %v2308_v2, %v7540_v43  ;;  %v2310_v6 = vpop.f32.mrb[70].mxu1  ;;  %3196 = vmatprep.mubr.bf16.mxu1 %v7548_v61  ;;  %3422 = vmatprep.mubr.bf16.mxu0 %v7548_v61 }
 0x560   :  { %v2311_v7 = vadd.f32 %v2310_v6, %v7537_v42  ;;  %v2312_v9 = vpop.f32.mrb[71].mxu1  ;;  %3197 = vmatmul.mubr.bf16.vlgmr.msra.gmra.mrb[96].mxu1 %v7546_v60  ;;  %3423 = vmatmul.mubr.bf16.vlgmr.msra.gmra.mrb[32].mxu0 %v7546_v60  ;;  %v2379_v13 = vmax.f32 %v2307_v1, 0.0 }
 0x561   :  { %v2313_v10 = vadd.f32 %v2312_v9, %v7540_v43  ;;  %3278 = vmatpush1.bf16.msra.mxu1 %v6006_v63  ;;  %5355 = vmatpush3.bf16.msra.mxu0 %v7556_v0  ;;  %v2380_v17 = vmax.f32 %v2309_v5, 0.0  ;;  %v7677_v63 = vld [vmem:[%s8506_s11 + $0x130] ss:$28 sps:$4 sm:$0xff]   ;;  %v7686_v5 = vld [vmem:[%s8506_s11 + $0x328] ss:$28 sps:$4 sm:$0xff]  }
 0x562   :  { %v2381_v14 = vmax.f32 %v2311_v7, 0.0  ;;  %3279 = vmatprep.subr.bf16.mxu1 %v6011_v3  ;;  %5356 = vmatprep.subr.bf16.mxu0 %v7565_v4  ;;  %v6026_v3 = vld [vmem:[%s8506_s11 + $0x15c] ss:$28 sps:$4 sm:$0xff]  }
 0x563   :  { %v2382_v18 = vmax.f32 %v2313_v10, 0.0 }
 0x564   :  { %v7592_v19 = vpack.c.bf16 %v2381_v14, %v2379_v13  ;;  %v6024_v13 = vld [vmem:[%s8506_s11 + $0x158] ss:$28 sps:$4 sm:$0xff]   ;;  %v7699_v14 = vld [vmem:[%s8506_s11 + $0x168] ss:$28 sps:$4 sm:$0xff]  }
 0x565   :  { %v7594_v20 = vpack.c.bf16 %v2382_v18, %v2380_v17  ;;  %v2316_v21 = vpop.f32.mrb[72].mxu1  ;;  %3280 = vmatpush1.bf16.msra.mxu1 %v6009_v11  ;;  %5357 = vmatpush3.bf16.msra.mxu0 %v7581_v12  ;;  %v6029_v18 = vld [vmem:[%s8506_s11 + $0x194] ss:$28 sps:$4 sm:$0xff]  }
 0x566   :  { %v2317_v24 = vadd.f32 %v2316_v21, %v7537_v42  ;;  %v2318_v25 = vpop.f32.mrb[73].mxu1  ;;  %3281 = vmatprep.subr.bf16.mxu1 %v6014_v15  ;;  %5358 = vmatprep.subr.bf16.mxu0 %v7590_v16  ;;  %v7709_v21 = vld [vmem:[%s8506_s11 + $0x360] ss:$28 sps:$4 sm:$0xff]  }
 0x567   :  { %v2319_v28 = vadd.f32 %v2318_v25, %v7540_v43  ;;  %v2320_v30 = vpop.f32.mrb[74].mxu1  ;;  %3206 = vmatprep.mubr.bf16.mxu1 %v7594_v20  ;;  %3432 = vmatprep.mubr.bf16.mxu0 %v7594_v20 }
 0x568   :  { %v2321_v31 = vadd.f32 %v2320_v30, %v7537_v42  ;;  %v2322_v8 = vpop.f32.mrb[75].mxu1  ;;  %3207 = vmatmul.mubr.bf16.gmra.mrb[100].mxu1 %v7592_v19  ;;  %3433 = vmatmul.mubr.bf16.gmra.mrb[36].mxu0 %v7592_v19  ;;  %v2383_v29 = vmax.f32 %v2317_v24, 0.0  ;;  %v6027_v30 = vld [vmem:[%s8506_s11 + $0x190] ss:$28 sps:$4 sm:$0xff]  }
 0x569   :  { %v2323_v32 = vadd.f32 %v2322_v8, %v7540_v43  ;;  %3282 = vmatpush1.bf16.msra.mxu1 %v6012_v22  ;;  %5359 = vmatpush3.bf16.msra.mxu0 %v7603_v23  ;;  %v2384_v26 = vmax.f32 %v2319_v28, 0.0 }
 0x56a   :  { %v2385_v35 = vmax.f32 %v2321_v31, 0.0  ;;  %3283 = vmatprep.subr.bf16.mxu1 %v6017_v54  ;;  %5360 = vmatprep.subr.bf16.mxu0 %v7613_v27  ;;  %v7725_v31 = vld [vmem:[%s8506_s11 + $0x1a0] ss:$28 sps:$4 sm:$0xff]  }
 0x56b   :  { %v2386_v38 = vmax.f32 %v2323_v32, 0.0 }
 0x56c   :  { %v7640_v39 = vpack.c.bf16 %v2385_v35, %v2383_v29 }
 0x56d   :  { %v7642_v41 = vpack.c.bf16 %v2386_v38, %v2384_v26  ;;  %v2326_v44 = vpop.f32.mrb[76].mxu1  ;;  %3284 = vmatpush1.bf16.msra.mxu1 %v6015_v33  ;;  %5361 = vmatpush3.bf16.msra.mxu0 %v7629_v34  ;;  %v6032_v33 = vld [vmem:[%s8506_s11 + $0x1cc] ss:$28 sps:$4 sm:$0xff]  }
 0x56e   :  { %v2327_v52 = vadd.f32 %v2326_v44, %v7537_v42  ;;  %v2328_v49 = vpop.f32.mrb[77].mxu1  ;;  %3285 = vmatprep.subr.bf16.mxu1 %v6020_v36  ;;  %5362 = vmatprep.subr.bf16.mxu0 %v7638_v37  ;;  %v6030_v44 = vld [vmem:[%s8506_s11 + $0x1c8] ss:$28 sps:$4 sm:$0xff]  }
 0x56f   :  { %v2329_v55 = vadd.f32 %v2328_v49, %v7540_v43  ;;  %v2330_v56 = vpop.f32.mrb[78].mxu1  ;;  %3216 = vmatprep.mubr.bf16.mxu1 %v7642_v41  ;;  %3442 = vmatprep.mubr.bf16.mxu0 %v7642_v41  ;;  %v6037_v49 = vld [vmem:[%s8506_s11 + $0x204] ss:$28 sps:$4 sm:$0xff]  }
 0x570   :  { %v2331_v57 = vadd.f32 %v2330_v56, %v7537_v42  ;;  %v2332_v58 = vpop.f32.mrb[79].mxu1  ;;  %3217 = vmatmul.mubr.bf16.gmra.mrb[104].mxu1 %v7640_v39  ;;  %3443 = vmatmul.mubr.bf16.gmra.mrb[40].mxu0 %v7640_v39  ;;  %v2387_v1 = vmax.f32 %v2327_v52, 0.0 }
 0x571   :  { %v2333_v59 = vadd.f32 %v2332_v58, %v7540_v43  ;;  %3286 = vmatpush1.bf16.msra.mxu1 %v6018_v47  ;;  %5363 = vmatpush3.bf16.msra.mxu0 %v7651_v51  ;;  %v2388_v6 = vmax.f32 %v2329_v55, 0.0 }
 0x572   :  { %v2389_v2 = vmax.f32 %v2331_v57, 0.0  ;;  %3287 = vmatprep.subr.bf16.mxu1 %v6023_v50  ;;  %5364 = vmatprep.subr.bf16.mxu0 %v7661_v53 }
 0x573   :  { %v2390_v7 = vmax.f32 %v2333_v59, 0.0  ;;  %v6035_v59 = vld [vmem:[%s8506_s11 + $0x200] ss:$28 sps:$4 sm:$0xff]  }
 0x574   :  { %v7688_v9 = vpack.c.bf16 %v2389_v2, %v2387_v1  ;;  %v6042_v2 = vld [vmem:[%s8506_s11 + $0x23c] ss:$28 sps:$4 sm:$0xff]  }
 0x575   :  { %v7690_v10 = vpack.c.bf16 %v2390_v7, %v2388_v6  ;;  %v2336_v11 = vpop.f32.mrb[80].mxu1  ;;  %3288 = vmatpush1.bf16.msra.mxu1 %v6021_v62  ;;  %5365 = vmatpush3.bf16.msra.mxu0 %v7677_v63 }
 0x576   :  { %v2337_v15 = vadd.f32 %v2336_v11, %v7537_v42  ;;  %v2338_v17 = vpop.f32.mrb[81].mxu1  ;;  %3289 = vmatprep.subr.bf16.mxu1 %v6026_v3  ;;  %5366 = vmatprep.subr.bf16.mxu0 %v7686_v5 }
 0x577   :  { %v2339_v22 = vadd.f32 %v2338_v17, %v7540_v43  ;;  %v2340_v24 = vpop.f32.mrb[82].mxu1  ;;  %3226 = vmatprep.mubr.bf16.mxu1 %v7690_v10  ;;  %3452 = vmatprep.mubr.bf16.mxu0 %v7690_v10 }
 0x578   :  { %v2341_v25 = vadd.f32 %v2340_v24, %v7537_v42  ;;  %v2342_v54 = vpop.f32.mrb[83].mxu1  ;;  %3227 = vmatmul.mubr.bf16.gmra.mrb[108].mxu1 %v7688_v9  ;;  %3453 = vmatmul.mubr.bf16.gmra.mrb[44].mxu0 %v7688_v9  ;;  %v2391_v8 = vmax.f32 %v2337_v15, 0.0  ;;  %v6040_v15 = vld [vmem:[%s8506_s11 + $0x238] ss:$28 sps:$4 sm:$0xff]  }
 0x579   :  { %v2343_v28 = vadd.f32 %v2342_v54, %v7540_v43  ;;  %3290 = vmatpush1.bf16.msra.mxu1 %v6024_v13  ;;  %5367 = vmatpush3.bf16.msra.mxu0 %v7699_v14  ;;  %v2392_v29 = vmax.f32 %v2339_v22, 0.0  ;;  %v6047_v22 = vld [vmem:[%s8506_s11 + $0x274] ss:$28 sps:$4 sm:$0xff]  }
 0x57a   :  { %v2393_v32 = vmax.f32 %v2341_v25, 0.0  ;;  %3291 = vmatprep.subr.bf16.mxu1 %v6029_v18  ;;  %5368 = vmatprep.subr.bf16.mxu0 %v7709_v21 }
 0x57b   :  { %v2394_v35 = vmax.f32 %v2343_v28, 0.0 }
 0x57c   :  { %v7731_v36 = vpack.c.bf16 %v2393_v32, %v2391_v8  ;;  %v6045_v8 = vld [vmem:[%s8506_s11 + $0x270] ss:$28 sps:$4 sm:$0xff]  }
 0x57d   :  { %v7733_v26 = vpack.c.bf16 %v2394_v35, %v2392_v29  ;;  %v2346_v38 = vpop.f32.mrb[84].mxu1  ;;  %3292 = vmatpush1.bf16.msra.mxu1 %v6027_v30  ;;  %5369 = vmatpush3.bf16.msra.mxu0 %v7725_v31  ;;  %v6052_v29 = vld [vmem:[%s8506_s11 + $0x2ac] ss:$28 sps:$4 sm:$0xff]  }
 0x57e   :  { %v2347_v47 = vadd.f32 %v2346_v38, %v7537_v42  ;;  %v2348_v52 = vpop.f32.mrb[85].mxu1  ;;  %3293 = vmatprep.subr.bf16.mxu1 %v6032_v33 }
 0x57f   :  { %v2349_v50 = vadd.f32 %v2348_v52, %v7540_v43  ;;  %v2350_v55 = vpop.f32.mrb[86].mxu1  ;;  %3236 = vmatprep.mubr.bf16.mxu1 %v7733_v26  ;;  %3462 = vmatprep.mubr.bf16.mxu0 %v7733_v26 }
 0x580   :  { %v2351_v56 = vadd.f32 %v2350_v55, %v7537_v42  ;;  %v2352_v57 = vpop.f32.mrb[87].mxu1  ;;  %3237 = vmatmul.mubr.bf16.gmra.mrb[112].mxu1 %v7731_v36  ;;  %3463 = vmatmul.mubr.bf16.gmra.mrb[48].mxu0 %v7731_v36  ;;  %v2395_v62 = vmax.f32 %v2347_v47, 0.0 }
 0x581   :  { %v2353_v58 = vadd.f32 %v2352_v57, %v7540_v43  ;;  %3294 = vmatpush1.bf16.msra.mxu1 %v6030_v44  ;;  %v2396_v3 = vmax.f32 %v2349_v50, 0.0 }
 0x582   :  { %v2397_v1 = vmax.f32 %v2351_v56, 0.0  ;;  %3295 = vmatprep.subr.bf16.mxu1 %v6037_v49  ;;  %v6050_v49 = vld [vmem:[%s8506_s11 + $0x2a8] ss:$28 sps:$4 sm:$0xff]  }
 0x583   :  { %v2398_v6 = vmax.f32 %v2353_v58, 0.0  ;;  %v6057_v56 = vld [vmem:[%s8506_s11 + $0x2e4] ss:$28 sps:$4 sm:$0xff]  }
 0x584   :  { %v7756_v7 = vpack.c.bf16 %v2397_v1, %v2395_v62 }
 0x585   :  { %v7758_v11 = vpack.c.bf16 %v2398_v6, %v2396_v3  ;;  %v2356_v13 = vpop.f32.mrb[88].mxu1  ;;  %3296 = vmatpush1.bf16.msra.mxu1 %v6035_v59 }
 0x586   :  { %v2357_v17 = vadd.f32 %v2356_v13, %v7537_v42  ;;  %v2358_v18 = vpop.f32.mrb[89].mxu1  ;;  %3297 = vmatprep.subr.bf16.mxu1 %v6042_v2  ;;  %v6055_v2 = vld [vmem:[%s8506_s11 + $0x2e0] ss:$28 sps:$4 sm:$0xff]  }
 0x587   :  { %v2359_v24 = vadd.f32 %v2358_v18, %v7540_v43  ;;  %v2360_v25 = vpop.f32.mrb[90].mxu1  ;;  %3246 = vmatprep.mubr.bf16.mxu1 %v7758_v11  ;;  %3472 = vmatprep.mubr.bf16.mxu0 %v7758_v11  ;;  %v6062_v13 = vld [vmem:[%s8506_s11 + $0x31c] ss:$28 sps:$4 sm:$0xff]  }
 0x588   :  { %v2361_v54 = vadd.f32 %v2360_v25, %v7537_v42  ;;  %v2362_v28 = vpop.f32.mrb[91].mxu1  ;;  %3247 = vmatmul.mubr.bf16.gmra.mrb[116].mxu1 %v7756_v7  ;;  %3473 = vmatmul.mubr.bf16.gmra.mrb[52].mxu0 %v7756_v7  ;;  %v2399_v32 = vmax.f32 %v2357_v17, 0.0 }
 0x589   :  { %v2363_v30 = vadd.f32 %v2362_v28, %v7540_v43  ;;  %3298 = vmatpush1.bf16.msra.mxu1 %v6040_v15  ;;  %v2400_v35 = vmax.f32 %v2359_v24, 0.0  ;;  %v6065_v24 = vld [vmem:[%s8506_s11 + $0x350] ss:$28 sps:$4 sm:$0xff]  }
 0x58a   :  { %v2401_v33 = vmax.f32 %v2361_v54, 0.0  ;;  %3299 = vmatprep.subr.bf16.mxu1 %v6047_v22  ;;  %v6067_v22 = vld [vmem:[%s8506_s11 + $0x354] ss:$28 sps:$4 sm:$0xff]  }
 0x58b   :  { %v2402_v38 = vmax.f32 %v2363_v30, 0.0 }
 0x58c   :  { %v7780_v44 = vpack.c.bf16 %v2401_v33, %v2399_v32 }
 0x58d   :  { %v7782_v47 = vpack.c.bf16 %v2402_v38, %v2400_v35  ;;  %v2366_v52 = vpop.f32.mrb[92].mxu1  ;;  %3300 = vmatpush1.bf16.msra.mxu1 %v6045_v8 }
 0x58e   :  { %v2367_v50 = vadd.f32 %v2366_v52, %v7537_v42  ;;  %v2368_v55 = vpop.f32.mrb[93].mxu1  ;;  %3301 = vmatprep.subr.bf16.mxu1 %v6052_v29 }
 0x58f   :  { %v2369_v57 = vadd.f32 %v2368_v55, %v7540_v43  ;;  %v2370_v58 = vpop.f32.mrb[94].mxu1  ;;  %3256 = vmatprep.mubr.bf16.mxu1 %v7782_v47  ;;  %3482 = vmatprep.mubr.bf16.mxu0 %v7782_v47 }
 0x590   :  { %v2371_v59 = vadd.f32 %v2370_v58, %v7537_v42  ;;  %v2372_v62 = vpop.f32.mrb[95].mxu1  ;;  %3257 = vmatmul.mubr.bf16.gmra.mrb[120].mxu1 %v7780_v44  ;;  %3483 = vmatmul.mubr.bf16.gmra.mrb[56].mxu0 %v7780_v44  ;;  %v2403_v3 = vmax.f32 %v2367_v50, 0.0 }
 0x591   :  { %v2373_v1 = vadd.f32 %v2372_v62, %v7540_v43  ;;  %3302 = vmatpush1.bf16.msra.mxu1 %v6050_v49  ;;  %v2404_v42 = vmax.f32 %v2369_v57, 0.0  ;;  %v6060_v43 = vld [vmem:[%s8506_s11 + $0x318] ss:$28 sps:$4 sm:$0xff]  }
 0x592   :  { %v2405_v6 = vmax.f32 %v2371_v59, 0.0  ;;  %3303 = vmatprep.subr.bf16.mxu1 %v6057_v56 }
 0x593   :  { %v2406_v15 = vmax.f32 %v2373_v1, 0.0 }
 0x594   :  { %v2421_v17 = vpack.c.bf16 %v2405_v6, %v2403_v3 }
 0x595   :  { %v2422_v18 = vpack.c.bf16 %v2406_v15, %v2404_v42  ;;  %3304 = vmatpush1.bf16.msra.mxu1 %v6055_v2 }
 0x596   :  { %3305 = vmatprep.subr.bf16.mxu1 %v6062_v13 }
 0x597   :  { %3266 = vmatprep.mubr.bf16.mxu1 %v2422_v18  ;;  %3492 = vmatprep.mubr.bf16.mxu0 %v2422_v18 }
 0x598   :  { %3267 = vmatmul.mubr.bf16.gmra.mrb[124].mxu1 %v2421_v17  ;;  %3493 = vmatmul.mubr.bf16.gmra.mrb[60].mxu0 %v2421_v17 }
 0x599   :  { %3306 = vmatpush1.bf16.msra.mxu1 %v6060_v43  ;;  %3309 = vmatprep.mubr.bf16.mxu1 %v7548_v61 }
 0x59a   :  { %3535 = vmatprep.mubr.bf16.mxu0 %v7548_v61  ;;  %3307 = vmatprep.subr.bf16.mxu1 %v6067_v22  ;;  %v2575_v61 = vsub.s32 5, %v7119_v45 }
 0x59d   :  { %3308 = vmatpush1.bf16.msra.mxu1 %v6065_v24 }
 0x59e   :  { %5482 = vmatprep.subr.bf16.mxu1 %v7530_v40  ;;  %v2571_v40 = vsub.s32 4, %v7119_v45 }
 0x5a0   :  { %3310 = vmatmul.mubr.bf16.vlgmr.msra.gmra.mrb[128].mxu1 %v7546_v60  ;;  %3536 = vmatmul.mubr.bf16.vlgmr.msra.gmra.mrb[64].mxu0 %v7546_v60  ;;  %v2551_v60 = vld [vmem:[%s8509_s12] sm:$0x7f] }
 0x5a1   :  { %3319 = vmatprep.mubr.bf16.mxu1 %v7594_v20  ;;  %5490 = vmatpush3.bf16.msra.mxu1 %v7556_v0  ;;  %v7863_v0 = vrot.slane %v2551_v60, %v7122_v46 }
 0x5a2   :  { %3543 = vmatprep.mubr.bf16.mxu0 %v7594_v20  ;;  %5483 = vmatprep.subr.bf16.mxu1 %v7565_v4  ;;  %v7865_v4 = vrot.slane %v2551_v60, %v2571_v40 }
 0x5a5   :  { %5491 = vmatpush3.bf16.msra.mxu1 %v7581_v12  ;;  %v7868_v12 = vrot.slane %v2551_v60, %v7128_v48 }
 0x5a6   :  { %5484 = vmatprep.subr.bf16.mxu1 %v7590_v16  ;;  %v7870_v16 = vrot.slane %v2551_v60, %v2575_v61 }
 0x5a8   :  { %3320 = vmatmul.mubr.bf16.gmra.mrb[132].mxu1 %v7592_v19  ;;  %3544 = vmatmul.mubr.bf16.gmra.mrb[68].mxu0 %v7592_v19 }
 0x5a9   :  { %3329 = vmatprep.mubr.bf16.mxu1 %v7642_v41  ;;  %5492 = vmatpush3.bf16.msra.mxu1 %v7603_v23 }
 0x5aa   :  { %5485 = vmatprep.subr.bf16.mxu1 %v7613_v27 }
 0x5ad   :  { %5493 = vmatpush3.bf16.msra.mxu1 %v7629_v34 }
 0x5ae   :  { %5486 = vmatprep.subr.bf16.mxu1 %v7638_v37 }
 0x5b0   :  { %3330 = vmatmul.mubr.bf16.gmra.mrb[136].mxu1 %v7640_v39 }
 0x5b1   :  { %3339 = vmatprep.mubr.bf16.mxu1 %v7690_v10  ;;  %5494 = vmatpush3.bf16.msra.mxu1 %v7651_v51 }
 0x5b2   :  { %5487 = vmatprep.subr.bf16.mxu1 %v7661_v53 }
 0x5b5   :  { %5495 = vmatpush3.bf16.msra.mxu1 %v7677_v63 }
 0x5b6   :  { %5488 = vmatprep.subr.bf16.mxu1 %v7686_v5 }
 0x5b8   :  { %3340 = vmatmul.mubr.bf16.gmra.mrb[140].mxu1 %v7688_v9 }
 0x5b9   :  { %3349 = vmatprep.mubr.bf16.mxu1 %v7733_v26  ;;  %5496 = vmatpush3.bf16.msra.mxu1 %v7699_v14 }
 0x5ba   :  { %5489 = vmatprep.subr.bf16.mxu1 %v7709_v21 }
 0x5bd   :  { %5497 = vmatpush3.bf16.msra.mxu1 %v7725_v31 }
 0x5c0   :  { %3350 = vmatmul.mubr.bf16.gmra.mrb[144].mxu1 %v7731_v36 }
 0x5c1   :  { %3359 = vmatprep.mubr.bf16.mxu1 %v7758_v11 }
 0x5c8   :  { %3360 = vmatmul.mubr.bf16.gmra.mrb[148].mxu1 %v7756_v7 }
 0x5c9   :  { %3369 = vmatprep.mubr.bf16.mxu1 %v7782_v47 }
 0x5d0   :  { %3370 = vmatmul.mubr.bf16.gmra.mrb[152].mxu1 %v7780_v44 }
 0x5d1   :  { %3379 = vmatprep.mubr.bf16.mxu1 %v2422_v18 }
 0x5d8   :  { %3380 = vmatmul.mubr.bf16.gmra.mrb[156].mxu1 %v2421_v17 }
 0x5d9   :  { %3551 = vmatprep.mubr.bf16.mxu1 %v7642_v41 }
 0x5e0   :  { %3552 = vmatmul.mubr.bf16.vlgmr.msra.gmra.mrb[160].mxu1 %v7640_v39 }
 0x5e1   :  { %3559 = vmatprep.mubr.bf16.mxu1 %v7690_v10 }
 0x5e8   :  { %3560 = vmatmul.mubr.bf16.gmra.mrb[164].mxu1 %v7688_v9 }
 0x5e9   :  { %3567 = vmatprep.mubr.bf16.mxu1 %v7733_v26 }
 0x5f0   :  { %3568 = vmatmul.mubr.bf16.gmra.mrb[168].mxu1 %v7731_v36 }
 0x5f1   :  { %3575 = vmatprep.mubr.bf16.mxu1 %v7758_v11 }
 0x5f8   :  { %3576 = vmatmul.mubr.bf16.gmra.mrb[172].mxu1 %v7756_v7 }
 0x5f9   :  { %3583 = vmatprep.mubr.bf16.mxu1 %v7782_v47 }
 0x600   :  { %3584 = vmatmul.mubr.bf16.gmra.mrb[176].mxu1 %v7780_v44 }
 0x601   :  { %3591 = vmatprep.mubr.bf16.mxu1 %v2422_v18 }
 0x608   :  { %3592 = vmatmul.mubr.bf16.gmra.mrb[180].mxu1 %v2421_v17 }
 0x633   :  { %v3198_v19 = vpop.f32.mrb[96].mxu1  ;;  %v3424_v20 = vpop.f32.mrb[32].mxu0 }
 0x634   :  { %v3199_v23 = vadd.f32 %v3198_v19, %v7863_v0  ;;  %v3425_v27 = vadd.f32 %v3424_v20, %v7865_v4  ;;  %v3200_v34 = vpop.f32.mrb[97].mxu1  ;;  %v3426_v37 = vpop.f32.mrb[33].mxu0 }
 0x635   :  { %v3201_v39 = vadd.f32 %v3200_v34, %v7868_v12  ;;  %v3427_v46 = vadd.f32 %v3426_v37, %v7870_v16  ;;  %v3202_v41 = vpop.f32.mrb[98].mxu1  ;;  %v3428_v51 = vpop.f32.mrb[34].mxu0 }
 0x636   :  { %v5018_v53 = vmul.f32 -1.442695, %v3199_v23  ;;  %v5022_v63 = vmul.f32 -1.442695, %v3425_v27  ;;  %v3203_v48 = vadd.f32 %v3202_v41, %v7863_v0  ;;  %v3429_v5 = vadd.f32 %v3428_v51, %v7865_v4  ;;  %v3204_v9 = vpop.f32.mrb[99].mxu1  ;;  %v3430_v10 = vpop.f32.mrb[35].mxu0 }
 0x637   :  { %v5019_v14 = vmul.f32 -1.442695, %v3201_v39  ;;  %v5023_v21 = vmul.f32 -1.442695, %v3427_v46  ;;  %v3205_v31 = vadd.f32 %v3204_v9, %v7868_v12  ;;  %v3431_v36 = vadd.f32 %v3430_v10, %v7870_v16 }
 0x638   :  { %6070 = vpow2.f32 %v5018_v53  ;;  %v5025_v26 = vmul.f32 -1.442695, %v3203_v48  ;;  %v5029_v7 = vmul.f32 -1.442695, %v3429_v5 }
 0x639   :  { %6072 = vpow2.f32 %v5022_v63  ;;  %v5026_v11 = vmul.f32 -1.442695, %v3205_v31  ;;  %v5030_v25 = vmul.f32 -1.442695, %v3431_v36 }
 0x63a   :  { %6074 = vpow2.f32 %v5019_v14 }
 0x63b   :  { %6076 = vpow2.f32 %v5023_v21  ;;  %v3208_v54 = vpop.f32.mrb[100].mxu1  ;;  %v3434_v28 = vpop.f32.mrb[36].mxu0 }
 0x63c   :  { %6078 = vpow2.f32 %v5025_v26  ;;  %v3209_v30 = vadd.f32 %v3208_v54, %v7863_v0  ;;  %v3435_v8 = vadd.f32 %v3434_v28, %v7865_v4  ;;  %v3210_v32 = vpop.f32.mrb[101].mxu1  ;;  %v3436_v33 = vpop.f32.mrb[37].mxu0 }
 0x63d   :  { %6080 = vpow2.f32 %v5029_v7  ;;  %v3211_v29 = vadd.f32 %v3210_v32, %v7868_v12  ;;  %v3437_v35 = vadd.f32 %v3436_v33, %v7870_v16  ;;  %v3212_v38 = vpop.f32.mrb[102].mxu1  ;;  %v3438_v44 = vpop.f32.mrb[38].mxu0 }
 0x63e   :  { %6082 = vpow2.f32 %v5026_v11  ;;  %v5032_v47 = vmul.f32 -1.442695, %v3209_v30  ;;  %v5036_v52 = vmul.f32 -1.442695, %v3435_v8  ;;  %v3213_v49 = vadd.f32 %v3212_v38, %v7863_v0  ;;  %v3214_v50 = vpop.f32.mrb[103].mxu1  ;;  %v3440_v55 = vpop.f32.mrb[39].mxu0 }
 0x63f   :  { %6084 = vpow2.f32 %v5030_v25  ;;  %v5033_v56 = vmul.f32 -1.442695, %v3211_v29  ;;  %v5037_v57 = vmul.f32 -1.442695, %v3437_v35  ;;  %v3439_v41 = vadd.f32 %v3438_v44, %v7865_v4 }
 0x640   :  { %6086 = vpow2.f32 %v5032_v47  ;;  %v5039_v58 = vmul.f32 -1.442695, %v3213_v49  ;;  %v3215_v63 = vadd.f32 %v3214_v50, %v7868_v12  ;;  %v3441_v10 = vadd.f32 %v3440_v55, %v7870_v16 }
 0x641   :  { %6088 = vpow2.f32 %v5036_v52  ;;  %v5043_v28 = vmul.f32 -1.442695, %v3439_v41 }
 0x642   :  { %v6071_v59 = vpop.eup %6070  ;;  %6090 = vpow2.f32 %v5033_v56  ;;  %v5040_v35 = vmul.f32 -1.442695, %v3215_v63  ;;  %v5044_v52 = vmul.f32 -1.442695, %v3441_v10 }
 0x643   :  { %v6073_v62 = vpop.eup %6072  ;;  %v3936_v1 = vadd.f32 1.0, %v6071_v59  ;;  %6092 = vpow2.f32 %v5037_v57  ;;  %v3218_v2 = vpop.f32.mrb[104].mxu1 }
 0x644   :  { %v3444_v3 = vpop.f32.mrb[40].mxu0  ;;  %v6075_v6 = vpop.eup %6074  ;;  %v3940_v13 = vadd.f32 1.0, %v6073_v62  ;;  %6094 = vpow2.f32 %v5039_v58  ;;  %v3219_v26 = vadd.f32 %v3218_v2, %v7863_v0 }
 0x645   :  { %v3220_v42 = vpop.f32.mrb[105].mxu1  ;;  %v3446_v15 = vpop.f32.mrb[41].mxu0  ;;  %6096 = vrcp.f32 %v3936_v1  ;;  %v3937_v18 = vadd.f32 1.0, %v6075_v6  ;;  %v3445_v30 = vadd.f32 %v3444_v3, %v7865_v4 }
 0x646   :  { %v6077_v17 = vpop.eup %6076  ;;  %v3222_v43 = vpop.f32.mrb[106].mxu1  ;;  %6098 = vrcp.f32 %v3940_v13  ;;  %v3221_v38 = vadd.f32 %v3220_v42, %v7868_v12  ;;  %v3447_v49 = vadd.f32 %v3446_v15, %v7870_v16  ;;  %v5046_v55 = vmul.f32 -1.442695, %v3219_v26 }
 0x647   :  { %v3448_v22 = vpop.f32.mrb[42].mxu0  ;;  %v6079_v24 = vpop.eup %6078  ;;  %v3941_v40 = vadd.f32 1.0, %v6077_v17  ;;  %6100 = vrcp.f32 %v3937_v18  ;;  %v3223_v56 = vadd.f32 %v3222_v43, %v7863_v0  ;;  %v5050_v59 = vmul.f32 -1.442695, %v3445_v30 }
 0x648   :  { %v7885_v60 = vpop.f32.mrb[107].mxu1  ;;  %v6081_v61 = vpop.eup %6080  ;;  %v3943_v19 = vadd.f32 1.0, %v6079_v24  ;;  %v3449_v62 = vadd.f32 %v3448_v22, %v7865_v4  ;;  %v5047_v3 = vmul.f32 -1.442695, %v3221_v38  ;;  %v5051_v17 = vmul.f32 -1.442695, %v3447_v49 }
 0x649   :  { %v7887_v20 = vpop.f32.mrb[43].mxu0  ;;  %v6083_v23 = vpop.eup %6082  ;;  %6102 = vrcp.f32 %v3941_v40  ;;  %v3947_v27 = vadd.f32 1.0, %v6081_v61  ;;  %v3225_v6 = vadd.f32 %v7885_v60, %v7868_v12  ;;  %v5053_v40 = vmul.f32 -1.442695, %v3223_v56 }
 0x64a   :  { %v6085_v34 = vpop.eup %6084  ;;  %6104 = vrcp.f32 %v3943_v19  ;;  %v3944_v37 = vadd.f32 1.0, %v6083_v23  ;;  %v3451_v18 = vadd.f32 %v7887_v20, %v7870_v16  ;;  %v5057_v20 = vmul.f32 -1.442695, %v3449_v62 }
 0x64b   :  { %v6087_v39 = vpop.eup %6086  ;;  %6106 = vrcp.f32 %v3947_v27  ;;  %v3948_v46 = vadd.f32 1.0, %v6085_v34  ;;  %v3228_v48 = vpop.f32.mrb[108].mxu1 }
 0x64c   :  { %v6089_v51 = vpop.eup %6088  ;;  %6108 = vrcp.f32 %v3944_v37  ;;  %v3950_v53 = vadd.f32 1.0, %v6087_v39  ;;  %v3454_v14 = vpop.f32.mrb[44].mxu0  ;;  %v3229_v60 = vadd.f32 %v3228_v48, %v7863_v0  ;;  %v5058_v63 = vmul.f32 -1.442695, %v3451_v18 }
 0x64d   :  { %v6091_v5 = vpop.eup %6090  ;;  %6110 = vrcp.f32 %v3948_v46  ;;  %v3954_v9 = vadd.f32 1.0, %v6089_v51  ;;  %v7892_v21 = vpop.f32.mrb[109].mxu1  ;;  %v3455_v34 = vadd.f32 %v3454_v14, %v7865_v4  ;;  %v5054_v51 = vmul.f32 -1.442695, %v3225_v6 }
 0x64e   :  { %v6093_v31 = vpop.eup %6092  ;;  %6112 = vrcp.f32 %v3950_v53  ;;  %v3951_v36 = vadd.f32 1.0, %v6091_v5  ;;  %v7895_v7 = vpop.f32.mrb[45].mxu0 }
 0x64f   :  { %v7897_v11 = vpop.f32.mrb[110].mxu1  ;;  %v6095_v25 = vpop.eup %6094  ;;  %6114 = vrcp.f32 %v3954_v9  ;;  %v3955_v54 = vadd.f32 1.0, %v6093_v31  ;;  %v5060_v9 = vmul.f32 -1.442695, %v3229_v60 }
 0x650   :  { %v7900_v8 = vpop.f32.mrb[46].mxu0  ;;  %v7902_v32 = vpop.f32.mrb[111].mxu1  ;;  %6116 = vrcp.f32 %v3951_v36  ;;  %v3957_v29 = vadd.f32 1.0, %v6095_v25  ;;  %v5064_v36 = vmul.f32 -1.442695, %v3455_v34  ;;  %v3233_v34 = vadd.f32 %v7897_v11, %v7863_v0 }
 0x651   :  { %v6097_v33 = vpop.eup %6096  ;;  %v7905_v44 = vpop.f32.mrb[47].mxu0  ;;  %6118 = vrcp.f32 %v3955_v54  ;;  %v3231_v54 = vadd.f32 %v7892_v21, %v7868_v12 }
 0x652   :  { %v6099_v47 = vpop.eup %6098  ;;  %6120 = vrcp.f32 %v3957_v29 }
 0x653   :  { %v6101_v50 = vpop.eup %6100  ;;  %6122 = vpow2.f32 %v5043_v28  ;;  %v7912_v13 = vpop.f32.mrb[112].mxu1 }
 0x654   :  { %v6103_v57 = vpop.eup %6102  ;;  %v5194_v58 = vpack.c.bf16 %v6101_v50, %v6097_v33  ;;  %6124 = vpow2.f32 %v5040_v35  ;;  %v7914_v42 = vpop.f32.mrb[48].mxu0 }
 0x655   :  { %v6105_v1 = vpop.eup %6104  ;;  %v5196_v2 = vpack.c.bf16 %v6103_v57, %v6099_v47  ;;  %6126 = vpow2.f32 %v5044_v52  ;;  %v7921_v43 = vpop.f32.mrb[113].mxu1 }
 0x656   :  { %v6107_v15 = vpop.eup %6106  ;;  %4624 = vst [vmem:[%s8510_s13] sm:$0xff] %v5194_v58  ;;  %v7923_v22 = vpop.f32.mrb[49].mxu0  ;;  %6128 = vpow2.f32 %v5046_v55 }
 0x657   :  { %v6109_v24 = vpop.eup %6108  ;;  %4626 = vst [vmem:[%s8510_s13 + $0x10] sm:$0xff] %v5196_v2  ;;  %v7929_v61 = vpop.f32.mrb[114].mxu1  ;;  %6130 = vpow2.f32 %v5050_v59  ;;  %v3457_v59 = vadd.f32 %v7895_v7, %v7870_v16 }
 0x658   :  { %v3468_v19 = vpop.f32.mrb[50].mxu0  ;;  %v6111_v23 = vpop.eup %6110  ;;  %v5198_v27 = vpack.c.bf16 %v6109_v24, %v6105_v1  ;;  %6132 = vpow2.f32 %v5047_v3  ;;  %v7970_v3 = vmul.f32 -1.442695, %v3231_v54 }
 0x659   :  { %v7932_v37 = vpop.f32.mrb[115].mxu1  ;;  %v3470_v39 = vpop.f32.mrb[51].mxu0  ;;  %v5200_v41 = vpack.c.bf16 %v6111_v23, %v6107_v15  ;;  %6134 = vpow2.f32 %v5051_v17  ;;  %v7938_v48 = vadd.f32 %v3468_v19, %v7865_v4 }
 0x65a   :  { %v6113_v46 = vpop.eup %6112  ;;  %4629 = vst [vmem:[%s8510_s13 + $0x1c] sm:$0xff] %v5198_v27  ;;  %6136 = vpow2.f32 %v5053_v40  ;;  %v7944_v10 = vadd.f32 %v3470_v39, %v7870_v16 }
 0x65b   :  { %v6115_v53 = vpop.eup %6114  ;;  %4631 = vst [vmem:[%s8510_s13 + $0x2c] sm:$0xff] %v5200_v41  ;;  %6138 = vpow2.f32 %v5057_v20  ;;  %v3248_v28 = vpop.f32.mrb[116].mxu1  ;;  %v7984_v20 = vmul.f32 -1.442695, %v3457_v59  ;;  %v3459_v41 = vadd.f32 %v7900_v8, %v7865_v4 }
 0x65c   :  { %v6117_v5 = vpop.eup %6116  ;;  %6140 = vpow2.f32 %v5054_v51  ;;  %v3474_v30 = vpop.f32.mrb[52].mxu0  ;;  %v7954_v29 = vadd.f32 %v3248_v28, %v7863_v0  ;;  %v3235_v51 = vadd.f32 %v7902_v32, %v7868_v12 }
 0x65d   :  { %v6119_v14 = vpop.eup %6118  ;;  %v5202_v31 = vpack.c.bf16 %v6117_v5, %v6113_v46  ;;  %6142 = vpow2.f32 %v5058_v63  ;;  %v7957_v35 = vadd.f32 %v3474_v30, %v7865_v4  ;;  %v3250_v38 = vpop.f32.mrb[117].mxu1 }
 0x65e   :  { %v7946_v26 = vpop.eup %6120  ;;  %v5204_v25 = vpack.c.bf16 %v6119_v14, %v6115_v53  ;;  %v3476_v47 = vpop.f32.mrb[53].mxu0  ;;  %6144 = vpow2.f32 %v5060_v9  ;;  %v7963_v49 = vadd.f32 %v3250_v38, %v7868_v12  ;;  %v3461_v9 = vadd.f32 %v7905_v44, %v7870_v16 }
 0x65f   :  { %v6123_v33 = vpop.eup %6122  ;;  %4633 = vst [vmem:[%s8510_s13 + $0x38] sm:$0xff] %v5202_v31  ;;  %v7966_v50 = vadd.f32 %v3476_v47, %v7870_v16  ;;  %v3252_v55 = vpop.f32.mrb[118].mxu1  ;;  %6146 = vpow2.f32 %v5064_v36  ;;  %v5067_v44 = vmul.f32 -1.442695, %v3233_v34 }
 0x660   :  { %v6125_v52 = vpop.eup %6124  ;;  %4635 = vst [vmem:[%s8510_s13 + $0x48] sm:$0xff] %v5204_v25  ;;  %v3961_v21 = vadd.f32 1.0, %v6123_v33  ;;  %v3478_v56 = vpop.f32.mrb[54].mxu0  ;;  %v7973_v18 = vadd.f32 %v3252_v55, %v7863_v0 }
 0x661   :  { %v6127_v57 = vpop.eup %6126  ;;  %v3958_v58 = vadd.f32 1.0, %v6125_v52  ;;  %v3254_v62 = vpop.f32.mrb[119].mxu1  ;;  %v7976_v24 = vadd.f32 %v3478_v56, %v7865_v4  ;;  %v5071_v56 = vmul.f32 -1.442695, %v3459_v41  ;;  %v3467_v41 = vadd.f32 %v7923_v22, %v7870_v16 }
 0x662   :  { %v6129_v1 = vpop.eup %6128  ;;  %6148 = vrcp.f32 %v3961_v21  ;;  %v3962_v2 = vadd.f32 1.0, %v6127_v57  ;;  %v3480_v6 = vpop.f32.mrb[55].mxu0  ;;  %v7979_v7 = vadd.f32 %v3254_v62, %v7868_v12  ;;  %v5068_v57 = vmul.f32 -1.442695, %v3235_v51 }
 0x663   :  { %v6131_v15 = vpop.eup %6130  ;;  %6150 = vrcp.f32 %v3958_v58  ;;  %v3964_v17 = vadd.f32 1.0, %v6129_v1  ;;  %v7982_v19 = vadd.f32 %v3480_v6, %v7870_v16  ;;  %v3258_v53 = vpop.f32.mrb[120].mxu1  ;;  %v3239_v1 = vadd.f32 %v7912_v13, %v7863_v0 }
 0x664   :  { %v6133_v40 = vpop.eup %6132  ;;  %6152 = vrcp.f32 %v3962_v2  ;;  %v3968_v60 = vadd.f32 1.0, %v6131_v15  ;;  %v7995_v14 = vadd.f32 %v3258_v53, %v7863_v0  ;;  %v3484_v11 = vpop.f32.mrb[56].mxu0 }
 0x665   :  { %v6135_v23 = vpop.eup %6134  ;;  %6154 = vrcp.f32 %v3964_v17  ;;  %v3965_v27 = vadd.f32 1.0, %v6133_v40  ;;  %v3260_v31 = vpop.f32.mrb[121].mxu1  ;;  %v7998_v8 = vadd.f32 %v3484_v11, %v7865_v4 }
 0x666   :  { %v6137_v39 = vpop.eup %6136  ;;  %6156 = vrcp.f32 %v3968_v60  ;;  %v3969_v46 = vadd.f32 1.0, %v6135_v23  ;;  %v8001_v32 = vadd.f32 %v3260_v31, %v7868_v12  ;;  %v3486_v54 = vpop.f32.mrb[57].mxu0  ;;  %v5072_v23 = vmul.f32 -1.442695, %v3461_v9 }
 0x667   :  { %v6139_v63 = vpop.eup %6138  ;;  %6158 = vrcp.f32 %v3965_v27  ;;  %v3971_v5 = vadd.f32 1.0, %v6137_v39  ;;  %v3262_v28 = vpop.f32.mrb[122].mxu1  ;;  %v8004_v38 = vadd.f32 %v3486_v54, %v7870_v16  ;;  %v3465_v27 = vadd.f32 %v7914_v42, %v7865_v4 }
 0x668   :  { %v6141_v36 = vpop.eup %6140  ;;  %6160 = vrcp.f32 %v3969_v46  ;;  %v3975_v25 = vadd.f32 1.0, %v6139_v63  ;;  %v3488_v47 = vpop.f32.mrb[58].mxu0  ;;  %v8009_v2 = vadd.f32 %v3262_v28, %v7863_v0  ;;  %v3241_v46 = vadd.f32 %v7921_v43, %v7868_v12 }
 0x669   :  { %v6143_v30 = vpop.eup %6142  ;;  %6162 = vrcp.f32 %v3971_v5  ;;  %v3972_v33 = vadd.f32 1.0, %v6141_v36  ;;  %v3264_v52 = vpop.f32.mrb[123].mxu1  ;;  %v8012_v17 = vadd.f32 %v3488_v47, %v7865_v4  ;;  %v5074_v42 = vmul.f32 -1.442695, %v3239_v1 }
 0x66a   :  { %v6145_v21 = vpop.eup %6144  ;;  %6164 = vrcp.f32 %v3975_v25  ;;  %v3976_v55 = vadd.f32 1.0, %v6143_v30  ;;  %v3490_v58 = vpop.f32.mrb[59].mxu0  ;;  %v8015_v40 = vadd.f32 %v3264_v52, %v7868_v12 }
 0x66b   :  { %v6147_v59 = vpop.eup %6146  ;;  %6166 = vrcp.f32 %v3972_v33  ;;  %v3978_v62 = vadd.f32 1.0, %v6145_v21  ;;  %v8020_v13 = vadd.f32 %v3490_v58, %v7870_v16  ;;  %v3268_v51 = vpop.f32.mrb[124].mxu1 }
 0x66c   :  { %v6149_v6 = vpop.eup %6148  ;;  %6168 = vrcp.f32 %v3976_v55  ;;  %v3982_v15 = vadd.f32 1.0, %v6147_v59  ;;  %v3494_v53 = vpop.f32.mrb[60].mxu0  ;;  %v8029_v9 = vadd.f32 %v3268_v51, %v7863_v0  ;;  %v5078_v55 = vmul.f32 -1.442695, %v3465_v27 }
 0x66d   :  { %v6151_v60 = vpop.eup %6150  ;;  %6170 = vrcp.f32 %v3978_v62  ;;  %v3270_v11 = vpop.f32.mrb[125].mxu1  ;;  %v8036_v43 = vadd.f32 %v3494_v53, %v7865_v4  ;;  %v5075_v62 = vmul.f32 -1.442695, %v3241_v46 }
 0x66e   :  { %v6153_v34 = vpop.eup %6152  ;;  %v5206_v39 = vpack.c.bf16 %v6151_v60, %v7946_v26  ;;  %6172 = vrcp.f32 %v3982_v15  ;;  %v3496_v31 = vpop.f32.mrb[61].mxu0  ;;  %v8039_v22 = vadd.f32 %v3270_v11, %v7868_v12  ;;  %v5085_v15 = vmul.f32 -1.442695, %v7938_v48 }
 0x66f   :  { %v6155_v63 = vpop.eup %6154  ;;  %v5208_v5 = vpack.c.bf16 %v6153_v34, %v6149_v6  ;;  %6174 = vpow2.f32 %v7970_v3  ;;  %v8042_v3 = vadd.f32 %v3496_v31, %v7870_v16  ;;  %v3272_v36 = vpop.f32.mrb[126].mxu1 }
 0x670   :  { %v6157_v26 = vpop.eup %6156  ;;  %4637 = vst [vmem:[%s8510_s13 + $0x54] sm:$0xff] %v5206_v39  ;;  %6176 = vpow2.f32 %v7984_v20  ;;  %v3498_v25 = vpop.f32.mrb[62].mxu0  ;;  %v3243_v20 = vadd.f32 %v7929_v61, %v7863_v0  ;;  %v8050_v28 = vadd.f32 %v3272_v36, %v7863_v0  ;;  %v5079_v0 = vmul.f32 -1.442695, %v3467_v41 }
 0x671   :  { %v6159_v54 = vpop.eup %6158  ;;  %4639 = vst [vmem:[%s8510_s13 + $0x64] sm:$0xff] %v5208_v5  ;;  %6178 = vpow2.f32 %v5067_v44  ;;  %v8053_v30 = vadd.f32 %v3498_v25, %v7865_v4  ;;  %v3274_v33 = vpop.f32.mrb[127].mxu1  ;;  %v3245_v44 = vadd.f32 %v7932_v37, %v7868_v12 }
 0x672   :  { %v3500_v47 = vpop.f32.mrb[63].mxu0  ;;  %v6161_v52 = vpop.eup %6160  ;;  %v5210_v21 = vpack.c.bf16 %v6159_v54, %v6155_v63  ;;  %6180 = vpow2.f32 %v5071_v56  ;;  %v8061_v4 = vadd.f32 %v3274_v33, %v7868_v12  ;;  %v5081_v37 = vmul.f32 -1.442695, %v3243_v20 }
 0x673   :  { %v6163_v58 = vpop.eup %6162  ;;  %v5212_v59 = vpack.c.bf16 %v6161_v52, %v6157_v26  ;;  %6182 = vpow2.f32 %v5068_v57  ;;  %v8064_v56 = vadd.f32 %v3500_v47, %v7870_v16  ;;  %v8070_v60 = vpop.f32.mrb[128].mxu1  ;;  %v5082_v16 = vmul.f32 -1.442695, %v3245_v44 }
 0x674   :  { %v6165_v61 = vpop.eup %6164  ;;  %4641 = vst [vmem:[%s8510_s13 + $0x70] sm:$0xff] %v5210_v21  ;;  %6184 = vpow2.f32 %v5072_v23  ;;  %v5370_v23 = vpop.f32.mrb[64].mxu0 }
 0x675   :  { %v6167_v1 = vpop.eup %6166  ;;  %4643 = vst [vmem:[%s8510_s13 + $0x80] sm:$0xff] %v5212_v59  ;;  %6186 = vpow2.f32 %v5074_v42  ;;  %v8074_v34 = vpop.f32.mrb[129].mxu1 }
 0x676   :  { %v6169_v57 = vpop.eup %6168  ;;  %v5214_v6 = vpack.c.bf16 %v6167_v1, %v6163_v58  ;;  %6188 = vpow2.f32 %v5078_v55  ;;  %v5371_v39 = vpop.f32.mrb[65].mxu0 }
 0x677   :  { %v8072_v12 = vpop.eup %6170  ;;  %v5216_v27 = vpack.c.bf16 %v6169_v57, %v6165_v61  ;;  %6190 = vpow2.f32 %v5075_v62  ;;  %v8081_v41 = vadd.f32 %v5371_v39, %v5370_v23  ;;  %v8083_v48 = vpop.f32.mrb[130].mxu1 }
 0x678   :  { %v8076_v46 = vpop.eup %6172  ;;  %4645 = vst [vmem:[%s8510_s13 + $0x8c] sm:$0xff] %v5214_v6  ;;  %6192 = vpow2.f32 %v5079_v0  ;;  %v5373_v51 = vpop.f32.mrb[66].mxu0 }
 0x679   :  { %v6175_v53 = vpop.eup %6174  ;;  %4647 = vst [vmem:[%s8510_s13 + $0x9c] sm:$0xff] %v5216_v27  ;;  %6194 = vpow2.f32 %v5081_v37  ;;  %v8088_v63 = vpop.f32.mrb[131].mxu1 }
 0x67a   :  { %v5374_v5 = vpop.f32.mrb[67].mxu0  ;;  %v6177_v42 = vpop.eup %6176  ;;  %v3979_v11 = vadd.f32 1.0, %v6175_v53  ;;  %6196 = vpow2.f32 %v5085_v15 }
 0x67b   :  { %v6179_v31 = vpop.eup %6178  ;;  %v3983_v26 = vadd.f32 1.0, %v6177_v42  ;;  %6198 = vpow2.f32 %v5082_v16  ;;  %v8090_v54 = vadd.f32 %v5374_v5, %v5373_v51  ;;  %v8092_v21 = vpop.f32.mrb[132].mxu1 }
 0x67c   :  { %v6181_v36 = vpop.eup %6180  ;;  %6200 = vrcp.f32 %v3979_v11  ;;  %v3985_v25 = vadd.f32 1.0, %v6179_v31  ;;  %v5376_v55 = vpop.f32.mrb[68].mxu0 }
 0x67d   :  { %v6183_v20 = vpop.eup %6182  ;;  %6202 = vrcp.f32 %v3983_v26  ;;  %v3989_v33 = vadd.f32 1.0, %v6181_v36  ;;  %v8094_v62 = vpop.f32.mrb[133].mxu1  ;;  %v5086_v36 = vmul.f32 -1.442695, %v7944_v10  ;;  %v5089_v10 = vmul.f32 -1.442695, %v7963_v49 }
 0x67e   :  { %v6185_v47 = vpop.eup %6184  ;;  %6204 = vrcp.f32 %v3985_v25  ;;  %v3986_v52 = vadd.f32 1.0, %v6183_v20  ;;  %v5377_v44 = vpop.f32.mrb[69].mxu0  ;;  %v5095_v49 = vmul.f32 -1.442695, %v7973_v18  ;;  %v5102_v18 = vmul.f32 -1.442695, %v7995_v14 }
 0x67f   :  { %v6187_v58 = vpop.eup %6186  ;;  %6206 = vrcp.f32 %v3989_v33  ;;  %v3990_v59 = vadd.f32 1.0, %v6185_v47  ;;  %v8096_v1 = vpop.f32.mrb[134].mxu1  ;;  %v8098_v15 = vadd.f32 %v5377_v44, %v5376_v55  ;;  %v5088_v33 = vmul.f32 -1.442695, %v7954_v29 }
 0x680   :  { %v6189_v61 = vpop.eup %6188  ;;  %6208 = vrcp.f32 %v3986_v52  ;;  %v3992_v0 = vadd.f32 1.0, %v6187_v58  ;;  %v5379_v37 = vpop.f32.mrb[70].mxu0  ;;  %v5092_v58 = vmul.f32 -1.442695, %v7957_v35  ;;  %v5093_v29 = vmul.f32 -1.442695, %v7966_v50 }
 0x681   :  { %v6191_v57 = vpop.eup %6190  ;;  %6210 = vrcp.f32 %v3990_v59  ;;  %v3996_v6 = vadd.f32 1.0, %v6189_v61  ;;  %v8100_v23 = vpop.f32.mrb[135].mxu1  ;;  %v5096_v50 = vmul.f32 -1.442695, %v7979_v7  ;;  %v5107_v14 = vmul.f32 -1.442695, %v8004_v38 }
 0x682   :  { %v5380_v27 = vpop.f32.mrb[71].mxu0  ;;  %v6193_v16 = vpop.eup %6192  ;;  %6212 = vrcp.f32 %v3992_v0  ;;  %v3993_v39 = vadd.f32 1.0, %v6191_v57 }
 0x683   :  { %v6195_v51 = vpop.eup %6194  ;;  %6214 = vrcp.f32 %v3996_v6  ;;  %v3997_v53 = vadd.f32 1.0, %v6193_v16  ;;  %v8102_v11 = vadd.f32 %v5380_v27, %v5379_v37  ;;  %v8106_v47 = vpop.f32.mrb[136].mxu1  ;;  %v5099_v6 = vmul.f32 -1.442695, %v7976_v24 }
 0x684   :  { %v6197_v5 = vpop.eup %6196  ;;  %6216 = vrcp.f32 %v3993_v39  ;;  %v3999_v42 = vadd.f32 1.0, %v6195_v51  ;;  %v8110_v59 = vpop.f32.mrb[137].mxu1  ;;  %v5100_v51 = vmul.f32 -1.442695, %v7982_v19  ;;  %v5103_v19 = vmul.f32 -1.442695, %v8001_v32 }
 0x685   :  { %v6199_v31 = vpop.eup %6198  ;;  %6218 = vrcp.f32 %v3997_v53  ;;  %v4003_v26 = vadd.f32 1.0, %v6197_v5  ;;  %v8114_v0 = vpop.f32.mrb[138].mxu1 }
 0x686   :  { %v6201_v25 = vpop.eup %6200  ;;  %6220 = vrcp.f32 %v3999_v42  ;;  %v4000_v20 = vadd.f32 1.0, %v6199_v31  ;;  %v5106_v42 = vmul.f32 -1.442695, %v7998_v8 }
 0x687   :  { %v6203_v52 = vpop.eup %6202  ;;  %v5218_v55 = vpack.c.bf16 %v6201_v25, %v8072_v12  ;;  %6222 = vrcp.f32 %v4003_v26  ;;  %v8120_v12 = vpop.f32.mrb[139].mxu1 }
 0x688   :  { %v6205_v44 = vpop.eup %6204  ;;  %v5220_v61 = vpack.c.bf16 %v6203_v52, %v8076_v46  ;;  %6224 = vrcp.f32 %v4000_v20 }
 0x689   :  { %v6207_v37 = vpop.eup %6206  ;;  %4649 = vst [vmem:[%s8510_s13 + $0xa8] sm:$0xff] %v5218_v55  ;;  %6226 = vpow2.f32 %v5086_v36 }
 0x68a   :  { %v6209_v35 = vpop.eup %6208  ;;  %4651 = vst [vmem:[%s8510_s13 + $0xb8] sm:$0xff] %v5220_v61  ;;  %6228 = vpow2.f32 %v5088_v33 }
 0x68b   :  { %v6211_v46 = vpop.eup %6210  ;;  %v5222_v57 = vpack.c.bf16 %v6209_v35, %v6205_v44  ;;  %6230 = vpow2.f32 %v5092_v58  ;;  %v8136_v24 = vpop.f32.mrb[140].mxu1 }
 0x68c   :  { %v6213_v27 = vpop.eup %6212  ;;  %v5224_v16 = vpack.c.bf16 %v6211_v46, %v6207_v37  ;;  %6232 = vpow2.f32 %v5089_v10  ;;  %v8139_v31 = vpop.f32.mrb[141].mxu1 }
 0x68d   :  { %v6215_v39 = vpop.eup %6214  ;;  %4653 = vst [vmem:[%s8510_s13 + $0xc4] sm:$0xff] %v5222_v57  ;;  %6234 = vpow2.f32 %v5093_v29  ;;  %v8142_v25 = vpop.f32.mrb[142].mxu1 }
 0x68e   :  { %v6217_v53 = vpop.eup %6216  ;;  %4655 = vst [vmem:[%s8510_s13 + $0xd4] sm:$0xff] %v5224_v16  ;;  %6236 = vpow2.f32 %v5095_v49  ;;  %v8150_v33 = vpop.f32.mrb[143].mxu1 }
 0x68f   :  { %v6219_v5 = vpop.eup %6218  ;;  %v5226_v7 = vpack.c.bf16 %v6217_v53, %v6213_v27  ;;  %6238 = vpow2.f32 %v5099_v6 }
 0x690   :  { %v6221_v26 = vpop.eup %6220  ;;  %v5228_v36 = vpack.c.bf16 %v6219_v5, %v6215_v39  ;;  %6240 = vpow2.f32 %v5096_v50 }
 0x691   :  { %v8144_v20 = vpop.eup %6222  ;;  %4657 = vst [vmem:[%s8510_s13 + $0xe0] sm:$0xff] %v5226_v7  ;;  %6242 = vpow2.f32 %v5100_v51 }
 0x692   :  { %v6225_v8 = vpop.eup %6224  ;;  %4659 = vst [vmem:[%s8510_s13 + $0xf0] sm:$0xff] %v5228_v36  ;;  %6244 = vpow2.f32 %v5102_v18 }
 0x693   :  { %v6227_v32 = vpop.eup %6226  ;;  %v5230_v52 = vpack.c.bf16 %v6225_v8, %v6221_v26  ;;  %6246 = vpow2.f32 %v5106_v42  ;;  %v8158_v37 = vpop.f32.mrb[144].mxu1 }
 0x694   :  { %v6229_v55 = vpop.eup %6228  ;;  %v4004_v58 = vadd.f32 1.0, %v6227_v32  ;;  %6248 = vpow2.f32 %v5103_v19  ;;  %v8160_v49 = vpop.f32.mrb[145].mxu1 }
 0x695   :  { %v6231_v44 = vpop.eup %6230  ;;  %4661 = vst [vmem:[%s8510_s13 + $0xfc] sm:$0xff] %v5230_v52  ;;  %v4006_v38 = vadd.f32 1.0, %v6229_v55  ;;  %6250 = vpow2.f32 %v5107_v14  ;;  %v8162_v6 = vpop.f32.mrb[146].mxu1  ;;  %v5109_v52 = vmul.f32 -1.442695, %v8009_v2  ;;  %v2563_v55 = vsub.s32 2, %v7119_v45 }
 0x696   :  { %v6233_v61 = vpop.eup %6232  ;;  %6252 = vrcp.f32 %v4004_v58  ;;  %v4010_v10 = vadd.f32 1.0, %v6231_v44  ;;  %v8164_v50 = vpop.f32.mrb[147].mxu1 }
 0x697   :  { %v6235_v29 = vpop.eup %6234  ;;  %6254 = vrcp.f32 %v4006_v38  ;;  %v4007_v35 = vadd.f32 1.0, %v6233_v61  ;;  %v5113_v61 = vmul.f32 -1.442695, %v8012_v17  ;;  %v5116_v17 = vmul.f32 -1.442695, %v8029_v9 }
 0x698   :  { %v6237_v46 = vpop.eup %6236  ;;  %6256 = vrcp.f32 %v4010_v10  ;;  %v4011_v57 = vadd.f32 1.0, %v6235_v29  ;;  %v5121_v9 = vmul.f32 -1.442695, %v8042_v3  ;;  %v5127_v3 = vmul.f32 -1.442695, %v8053_v30 }
 0x699   :  { %v6239_v27 = vpop.eup %6238  ;;  %6258 = vrcp.f32 %v4007_v35  ;;  %v4013_v16 = vadd.f32 1.0, %v6237_v46  ;;  %v5110_v46 = vmul.f32 -1.442695, %v8015_v40 }
 0x69a   :  { %v6241_v39 = vpop.eup %6240  ;;  %6260 = vrcp.f32 %v4011_v57  ;;  %v4017_v51 = vadd.f32 1.0, %v6239_v27  ;;  %v5114_v27 = vmul.f32 -1.442695, %v8020_v13  ;;  %v5120_v13 = vmul.f32 -1.442695, %v8036_v43 }
 0x69b   :  { %v6243_v53 = vpop.eup %6242  ;;  %6262 = vrcp.f32 %v4013_v16  ;;  %v4014_v18 = vadd.f32 1.0, %v6241_v39  ;;  %v8166_v14 = vpop.f32.mrb[148].mxu1  ;;  %v5123_v43 = vmul.f32 -1.442695, %v8050_v28 }
 0x69c   :  { %v6245_v5 = vpop.eup %6244  ;;  %6264 = vrcp.f32 %v4017_v51  ;;  %v4018_v7 = vadd.f32 1.0, %v6243_v53  ;;  %v8170_v58 = vpop.f32.mrb[149].mxu1 }
 0x69d   :  { %v6247_v42 = vpop.eup %6246  ;;  %6266 = vrcp.f32 %v4014_v18  ;;  %v4020_v26 = vadd.f32 1.0, %v6245_v5  ;;  %v8173_v10 = vpop.f32.mrb[150].mxu1  ;;  %v5117_v5 = vmul.f32 -1.442695, %v8039_v22 }
 0x69e   :  { %v6249_v36 = vpop.eup %6248  ;;  %6268 = vrcp.f32 %v4018_v7  ;;  %v4024_v19 = vadd.f32 1.0, %v6247_v42  ;;  %v8177_v57 = vpop.f32.mrb[151].mxu1 }
 0x69f   :  { %v6251_v8 = vpop.eup %6250  ;;  %6270 = vrcp.f32 %v4020_v26  ;;  %v4021_v32 = vadd.f32 1.0, %v6249_v36 }
 0x6a0   :  { %v6253_v44 = vpop.eup %6252  ;;  %6272 = vrcp.f32 %v4024_v19  ;;  %v4025_v38 = vadd.f32 1.0, %v6251_v8 }
 0x6a1   :  { %v6255_v29 = vpop.eup %6254  ;;  %v5232_v35 = vpack.c.bf16 %v6253_v44, %v8144_v20  ;;  %6274 = vrcp.f32 %v4021_v32  ;;  %v8187_v20 = vld [vmem:[%s8509_s12] sm:$0x7f]  ;;  %v5124_v44 = vmul.f32 -1.442695, %v8061_v4 }
 0x6a2   :  { %v6257_v2 = vpop.eup %6256  ;;  %6276 = vrcp.f32 %v4025_v38  ;;  %v8190_v40 = vrot.slane %v8187_v20, %v2563_v55 }
 0x6a3   :  { %v6259_v16 = vpop.eup %6258  ;;  %4663 = vst [vmem:[%s8510_s13 + $0x10c] sm:$0xff] %v5232_v35  ;;  %6278 = vpow2.f32 %v5109_v52  ;;  %v8198_v42 = vpop.f32.mrb[152].mxu1 }
 0x6a4   :  { %v6261_v39 = vpop.eup %6260  ;;  %v5234_v51 = vpack.c.bf16 %v6259_v16, %v6255_v29  ;;  %6280 = vpow2.f32 %v5113_v61  ;;  %v3312_v22 = vadd.f32 %v8070_v60, %v8190_v40  ;;  %v8206_v36 = vpop.f32.mrb[153].mxu1  ;;  %v5128_v60 = vmul.f32 -1.442695, %v8064_v56 }
 0x6a5   :  { %v6263_v53 = vpop.eup %6262  ;;  %v5236_v18 = vpack.c.bf16 %v6261_v39, %v6257_v2  ;;  %6282 = vpow2.f32 %v5110_v46  ;;  %v8209_v32 = vpop.f32.mrb[154].mxu1  ;;  %v2567_v29 = vsub.s32 3, %v7119_v45 }
 0x6a6   :  { %v6265_v7 = vpop.eup %6264  ;;  %4665 = vst [vmem:[%s8510_s13 + $0x118] sm:$0xff] %v5234_v51  ;;  %6284 = vpow2.f32 %v5114_v27  ;;  %v8212_v38 = vpop.f32.mrb[155].mxu1  ;;  %v5020_v30 = vmul.f32 -1.442695, %v3312_v22  ;;  %v2579_v27 = vsub.s32 6, %v7119_v45 }
 0x6a7   :  { %v6267_v26 = vpop.eup %6266  ;;  %4667 = vst [vmem:[%s8510_s13 + $0x128] sm:$0xff] %v5236_v18  ;;  %6286 = vpow2.f32 %v5116_v17 }
 0x6a8   :  { %v6269_v19 = vpop.eup %6268  ;;  %v5238_v8 = vpack.c.bf16 %v6267_v26, %v6263_v53  ;;  %6288 = vpow2.f32 %v5120_v13  ;;  %v8232_v13 = vrot.slane %v8187_v20, %v2567_v29  ;;  %v8239_v26 = vrot.slane %v8187_v20, %v2579_v27 }
 0x6a9   :  { %v6271_v52 = vpop.eup %6270  ;;  %v5240_v55 = vpack.c.bf16 %v6269_v19, %v6265_v7  ;;  %6290 = vpow2.f32 %v5117_v5 }
 0x6aa   :  { %v6273_v28 = vpop.eup %6272  ;;  %4669 = vst [vmem:[%s8510_s13 + $0x134] sm:$0xff] %v5238_v8  ;;  %6292 = vpow2.f32 %v5121_v9  ;;  %v3538_v20 = vadd.f32 %v8081_v41, %v8239_v26 }
 0x6ab   :  { %v6275_v61 = vpop.eup %6274  ;;  %4671 = vst [vmem:[%s8510_s13 + $0x144] sm:$0xff] %v5240_v55  ;;  %6294 = vpow2.f32 %v5123_v43  ;;  %v8226_v17 = vpop.f32.mrb[156].mxu1 }
 0x6ac   :  { %v6277_v4 = vpop.eup %6276  ;;  %v5242_v35 = vpack.c.bf16 %v6275_v61, %v6271_v52  ;;  %6296 = vpow2.f32 %v5127_v3  ;;  %v8234_v45 = vpop.f32.mrb[157].mxu1  ;;  %v3314_v52 = vadd.f32 %v8074_v34, %v8232_v13  ;;  %v3316_v34 = vadd.f32 %v8083_v48, %v8190_v40 }
 0x6ad   :  { %v6279_v46 = vpop.eup %6278  ;;  %v5244_v2 = vpack.c.bf16 %v6277_v4, %v6273_v28  ;;  %6298 = vpow2.f32 %v5124_v44  ;;  %v8236_v5 = vpop.f32.mrb[158].mxu1 }
 0x6ae   :  { %v6281_v16 = vpop.eup %6280  ;;  %4673 = vst [vmem:[%s8510_s13 + $0x150] sm:$0xff] %v5242_v35  ;;  %v4027_v56 = vadd.f32 1.0, %v6279_v46  ;;  %6300 = vpow2.f32 %v5128_v60  ;;  %v8241_v43 = vpop.f32.mrb[159].mxu1  ;;  %v5021_v46 = vmul.f32 -1.442695, %v3314_v52  ;;  %v3324_v52 = vadd.f32 %v8094_v62, %v8232_v13 }
 0x6af   :  { %v6283_v39 = vpop.eup %6282  ;;  %4675 = vst [vmem:[%s8510_s13 + $0x160] sm:$0xff] %v5244_v2  ;;  %v4031_v51 = vadd.f32 1.0, %v6281_v16  ;;  %6302 = vpow2.f32 %v5020_v30  ;;  %v3328_v62 = vadd.f32 %v8100_v23, %v8232_v13  ;;  %v3332_v23 = vadd.f32 %v8106_v47, %v8190_v40 }
 0x6b0   :  { %v6285_v53 = vpop.eup %6284  ;;  %6304 = vrcp.f32 %v4027_v56  ;;  %v4028_v18 = vadd.f32 1.0, %v6283_v39  ;;  %v3318_v56 = vadd.f32 %v8088_v63, %v8232_v13 }
 0x6b1   :  { %v6287_v7 = vpop.eup %6286  ;;  %6306 = vrcp.f32 %v4031_v51  ;;  %v4032_v9 = vadd.f32 1.0, %v6285_v53 }
 0x6b2   :  { %v6289_v22 = vpop.eup %6288  ;;  %6308 = vrcp.f32 %v4028_v18  ;;  %v4034_v19 = vadd.f32 1.0, %v6287_v7  ;;  %v5024_v18 = vmul.f32 -1.442695, %v3538_v20  ;;  %v3541_v7 = vadd.f32 %v8090_v54, %v8239_v26 }
 0x6b3   :  { %v6291_v8 = vpop.eup %6290  ;;  %6310 = vrcp.f32 %v4032_v9  ;;  %v4038_v3 = vadd.f32 1.0, %v6289_v22  ;;  %v5382_v29 = vpop.f32.mrb[160].mxu1  ;;  %v3546_v54 = vadd.f32 %v8098_v15, %v8239_v26  ;;  %v5035_v15 = vmul.f32 -1.442695, %v3324_v52 }
 0x6b4   :  { %v6293_v55 = vpop.eup %6292  ;;  %6312 = vrcp.f32 %v4034_v19  ;;  %v4035_v44 = vadd.f32 1.0, %v6291_v8  ;;  %v5383_v2 = vpop.f32.mrb[161].mxu1  ;;  %v3322_v19 = vadd.f32 %v8092_v21, %v8190_v40  ;;  %v5031_v20 = vmul.f32 -1.442695, %v3541_v7 }
 0x6b5   :  { %v6295_v28 = vpop.eup %6294  ;;  %6314 = vrcp.f32 %v4038_v3  ;;  %v4039_v60 = vadd.f32 1.0, %v6293_v55  ;;  %v8251_v39 = vadd.f32 %v5383_v2, %v5382_v29  ;;  %v5385_v41 = vpop.f32.mrb[162].mxu1  ;;  %v5027_v3 = vmul.f32 -1.442695, %v3316_v34 }
 0x6b6   :  { %v6297_v61 = vpop.eup %6296  ;;  %6316 = vrcp.f32 %v4035_v44  ;;  %v4041_v30 = vadd.f32 1.0, %v6295_v28  ;;  %v5386_v9 = vpop.f32.mrb[163].mxu1  ;;  %v5028_v44 = vmul.f32 -1.442695, %v3318_v56  ;;  %v3326_v21 = vadd.f32 %v8096_v1, %v8190_v40 }
 0x6b7   :  { %v6299_v4 = vpop.eup %6298  ;;  %6318 = vrcp.f32 %v4039_v60  ;;  %v4045_v35 = vadd.f32 1.0, %v6297_v61  ;;  %v8257_v8 = vadd.f32 %v5386_v9, %v5385_v41  ;;  %v5034_v29 = vmul.f32 -1.442695, %v3322_v19 }
 0x6b8   :  { %v6301_v27 = vpop.eup %6300  ;;  %6320 = vrcp.f32 %v4041_v30  ;;  %v4042_v16 = vadd.f32 1.0, %v6299_v4  ;;  %v5038_v2 = vmul.f32 -1.442695, %v3546_v54  ;;  %v5042_v9 = vmul.f32 -1.442695, %v3328_v62 }
 0x6b9   :  { %v6303_v51 = vpop.eup %6302  ;;  %6322 = vrcp.f32 %v4045_v35  ;;  %v4046_v53 = vadd.f32 1.0, %v6301_v27 }
 0x6ba   :  { %v6305_v22 = vpop.eup %6304  ;;  %6324 = vrcp.f32 %v4042_v16  ;;  %v3938_v48 = vadd.f32 1.0, %v6303_v51  ;;  %v5041_v51 = vmul.f32 -1.442695, %v3326_v21 }
 0x6bb   :  { %v6307_v63 = vpop.eup %6306  ;;  %6326 = vrcp.f32 %v4046_v53  ;;  %v5388_v4 = vpop.f32.mrb[164].mxu1 }
 0x6bc   :  { %v6309_v55 = vpop.eup %6308  ;;  %6328 = vrcp.f32 %v3938_v48  ;;  %v5389_v34 = vpop.f32.mrb[165].mxu1 }
 0x6bd   :  { %v6311_v28 = vpop.eup %6310  ;;  %v5246_v60 = vpack.c.bf16 %v6309_v55, %v6305_v22  ;;  %6330 = vpow2.f32 %v5021_v46  ;;  %v3549_v46 = vadd.f32 %v8102_v11, %v8239_v26  ;;  %v8277_v27 = vadd.f32 %v5389_v34, %v5388_v4  ;;  %v5391_v16 = vpop.f32.mrb[166].mxu1 }
 0x6be   :  { %v6313_v61 = vpop.eup %6312  ;;  %v5248_v30 = vpack.c.bf16 %v6311_v28, %v6307_v63  ;;  %6332 = vpow2.f32 %v5024_v18  ;;  %v3334_v11 = vadd.f32 %v8110_v59, %v8232_v13  ;;  %v5392_v53 = vpop.f32.mrb[167].mxu1  ;;  %v5048_v59 = vmul.f32 -1.442695, %v3332_v23 }
 0x6bf   :  { %v6315_v35 = vpop.eup %6314  ;;  %4677 = vst [vmem:[%s8510_s13 + $0x16c] sm:$0xff] %v5246_v60  ;;  %6334 = vpow2.f32 %v5027_v3  ;;  %v8281_v22 = vadd.f32 %v5392_v53, %v5391_v16  ;;  %v5045_v47 = vmul.f32 -1.442695, %v3549_v46 }
 0x6c0   :  { %v6317_v1 = vpop.eup %6316  ;;  %4679 = vst [vmem:[%s8510_s13 + $0x17c] sm:$0xff] %v5248_v30  ;;  %6336 = vpow2.f32 %v5028_v44  ;;  %v5049_v52 = vmul.f32 -1.442695, %v3334_v11 }
 0x6c1   :  { %v6319_v56 = vpop.eup %6318  ;;  %v5250_v41 = vpack.c.bf16 %v6317_v1, %v6313_v61  ;;  %6338 = vpow2.f32 %v5031_v20 }
 0x6c2   :  { %v6321_v18 = vpop.eup %6320  ;;  %v5252_v7 = vpack.c.bf16 %v6319_v56, %v6315_v35  ;;  %6340 = vpow2.f32 %v5034_v29 }
 0x6c3   :  { %v6323_v48 = vpop.eup %6322  ;;  %4681 = vst [vmem:[%s8510_s13 + $0x188] sm:$0xff] %v5250_v41  ;;  %6342 = vpow2.f32 %v5035_v15  ;;  %v5394_v54 = vpop.f32.mrb[168].mxu1  ;;  %v3336_v41 = vadd.f32 %v8114_v0, %v8190_v40 }
 0x6c4   :  { %v6325_v19 = vpop.eup %6324  ;;  %4683 = vst [vmem:[%s8510_s13 + $0x198] sm:$0xff] %v5252_v7  ;;  %6344 = vpow2.f32 %v5038_v2  ;;  %v5395_v60 = vpop.f32.mrb[169].mxu1 }
 0x6c5   :  { %v6327_v63 = vpop.eup %6326  ;;  %v5254_v3 = vpack.c.bf16 %v6325_v19, %v6321_v18  ;;  %6346 = vpow2.f32 %v5041_v51  ;;  %v8297_v61 = vadd.f32 %v5395_v60, %v5394_v54  ;;  %v5397_v30 = vpop.f32.mrb[170].mxu1  ;;  %v3338_v19 = vadd.f32 %v8120_v12, %v8232_v13 }
 0x6c6   :  { %v8289_v55 = vpop.eup %6328  ;;  %v5256_v44 = vpack.c.bf16 %v6327_v63, %v6323_v48  ;;  %6348 = vpow2.f32 %v5042_v9  ;;  %v5398_v4 = vpop.f32.mrb[171].mxu1 }
 0x6c7   :  { %v6331_v28 = vpop.eup %6330  ;;  %4685 = vst [vmem:[%s8510_s13 + $0x1a4] sm:$0xff] %v5254_v3  ;;  %6350 = vpow2.f32 %v5045_v47  ;;  %v8299_v46 = vadd.f32 %v5398_v4, %v5397_v30 }
 0x6c8   :  { %v6333_v20 = vpop.eup %6332  ;;  %4687 = vst [vmem:[%s8510_s13 + $0x1b4] sm:$0xff] %v5256_v44  ;;  %v3939_v21 = vadd.f32 1.0, %v6331_v28  ;;  %6352 = vpow2.f32 %v5048_v59  ;;  %v3342_v44 = vadd.f32 %v8136_v24, %v8190_v40 }
 0x6c9   :  { %v6335_v29 = vpop.eup %6334  ;;  %v3942_v62 = vadd.f32 1.0, %v6333_v20  ;;  %6354 = vpow2.f32 %v5049_v52  ;;  %v5055_v52 = vmul.f32 -1.442695, %v3336_v41  ;;  %v3344_v20 = vadd.f32 %v8139_v31, %v8232_v13 }
 0x6ca   :  { %v6337_v35 = vpop.eup %6336  ;;  %6356 = vrcp.f32 %v3939_v21  ;;  %v3945_v15 = vadd.f32 1.0, %v6335_v29  ;;  %v3346_v29 = vadd.f32 %v8142_v25, %v8190_v40  ;;  %v5062_v31 = vmul.f32 -1.442695, %v3342_v44 }
 0x6cb   :  { %v6339_v34 = vpop.eup %6338  ;;  %6358 = vrcp.f32 %v3942_v62  ;;  %v3946_v1 = vadd.f32 1.0, %v6337_v35  ;;  %v5400_v53 = vpop.f32.mrb[172].mxu1  ;;  %v3348_v62 = vadd.f32 %v8150_v33, %v8232_v13  ;;  %v5056_v35 = vmul.f32 -1.442695, %v3338_v19 }
 0x6cc   :  { %v6341_v2 = vpop.eup %6340  ;;  %6360 = vrcp.f32 %v3945_v15  ;;  %v3949_v23 = vadd.f32 1.0, %v6339_v34  ;;  %v5401_v9 = vpop.f32.mrb[173].mxu1  ;;  %v5063_v25 = vmul.f32 -1.442695, %v3344_v20  ;;  %v3354_v33 = vadd.f32 %v8160_v49, %v8232_v13 }
 0x6cd   :  { %v6343_v16 = vpop.eup %6342  ;;  %6362 = vrcp.f32 %v3946_v1  ;;  %v3952_v56 = vadd.f32 1.0, %v6341_v2  ;;  %v8305_v59 = vadd.f32 %v5401_v9, %v5400_v53  ;;  %v5403_v63 = vpop.f32.mrb[174].mxu1  ;;  %v3352_v1 = vadd.f32 %v8158_v37, %v8190_v40 }
 0x6ce   :  { %v6345_v51 = vpop.eup %6344  ;;  %6364 = vrcp.f32 %v3949_v23  ;;  %v3953_v11 = vadd.f32 1.0, %v6343_v16  ;;  %v5404_v54 = vpop.f32.mrb[175].mxu1  ;;  %v5070_v41 = vmul.f32 -1.442695, %v3348_v62  ;;  %v3358_v53 = vadd.f32 %v8164_v50, %v8232_v13 }
 0x6cf   :  { %v6347_v18 = vpop.eup %6346  ;;  %6366 = vrcp.f32 %v3952_v56  ;;  %v3956_v7 = vadd.f32 1.0, %v6345_v51  ;;  %v8311_v21 = vadd.f32 %v5404_v54, %v5403_v63  ;;  %v3356_v51 = vadd.f32 %v8162_v6, %v8190_v40 }
 0x6d0   :  { %v6349_v48 = vpop.eup %6348  ;;  %6368 = vrcp.f32 %v3953_v11  ;;  %v3959_v47 = vadd.f32 1.0, %v6347_v18  ;;  %v3362_v6 = vadd.f32 %v8166_v14, %v8190_v40  ;;  %v3364_v50 = vadd.f32 %v8170_v58, %v8232_v13 }
 0x6d1   :  { %v6351_v3 = vpop.eup %6350  ;;  %6370 = vrcp.f32 %v3956_v7  ;;  %v3960_v0 = vadd.f32 1.0, %v6349_v48  ;;  %v5083_v44 = vmul.f32 -1.442695, %v3356_v51  ;;  %v3366_v54 = vadd.f32 %v8173_v10, %v8190_v40 }
 0x6d2   :  { %v6353_v28 = vpop.eup %6352  ;;  %6372 = vrcp.f32 %v3959_v47  ;;  %v3963_v60 = vadd.f32 1.0, %v6351_v3  ;;  %v5076_v47 = vmul.f32 -1.442695, %v3352_v1  ;;  %v5077_v3 = vmul.f32 -1.442695, %v3354_v33 }
 0x6d3   :  { %v6355_v12 = vpop.eup %6354  ;;  %6374 = vrcp.f32 %v3960_v0  ;;  %v3966_v30 = vadd.f32 1.0, %v6353_v28  ;;  %v5406_v16 = vpop.f32.mrb[176].mxu1  ;;  %v5084_v20 = vmul.f32 -1.442695, %v3358_v53  ;;  %v5090_v58 = vmul.f32 -1.442695, %v3362_v6 }
 0x6d4   :  { %v6357_v4 = vpop.eup %6356  ;;  %6376 = vrcp.f32 %v3963_v60  ;;  %v3967_v24 = vadd.f32 1.0, %v6355_v12  ;;  %v5407_v37 = vpop.f32.mrb[177].mxu1  ;;  %v5091_v10 = vmul.f32 -1.442695, %v3364_v50 }
 0x6d5   :  { %v6359_v15 = vpop.eup %6358  ;;  %v5195_v34 = vpack.c.bf16 %v6357_v4, %v8289_v55  ;;  %6378 = vrcp.f32 %v3966_v30  ;;  %v5069_v55 = vmul.f32 -1.442695, %v3346_v29  ;;  %v8333_v18 = vadd.f32 %v5407_v37, %v5406_v16  ;;  %v5409_v7 = vpop.f32.mrb[178].mxu1 }
 0x6d6   :  { %v6361_v2 = vpop.eup %6360  ;;  %v5197_v23 = vpack.c.bf16 %v6359_v15, %v6359_v15  ;;  %6380 = vrcp.f32 %v3967_v24  ;;  %v5410_v19 = vpop.f32.mrb[179].mxu1 }
 0x6d7   :  { %v6363_v56 = vpop.eup %6362  ;;  %4625 = vst [vmem:[%s8510_s13 + $0x8] sm:$0xff] %v5195_v34  ;;  %6382 = vpow2.f32 %v5055_v52  ;;  %v8342_v0 = vadd.f32 %v5410_v19, %v5409_v7 }
 0x6d8   :  { %v6365_v11 = vpop.eup %6364  ;;  %4628 = vst.msk [vmem:[%s8510_s13 + $0x18] sm:$0xf] %vm4627_vm1, %v5197_v23  ;;  %v5199_v49 = vpack.c.bf16 %v6363_v56, %v6361_v2  ;;  %6384 = vpow2.f32 %v5056_v35  ;;  %v5097_v35 = vmul.f32 -1.442695, %v3366_v54 }
 0x6d9   :  { %v6367_v9 = vpop.eup %6366  ;;  %v5201_v48 = vpack.c.bf16 %v6365_v11, %v6365_v11  ;;  %6386 = vpow2.f32 %v5062_v31 }
 0x6da   :  { %v6369_v63 = vpop.eup %6368  ;;  %4630 = vst [vmem:[%s8510_s13 + $0x24] sm:$0xff] %v5199_v49  ;;  %6388 = vpow2.f32 %v5063_v25 }
 0x6db   :  { %v6371_v52 = vpop.eup %6370  ;;  %4632 = vst.msk [vmem:[%s8510_s13 + $0x34] sm:$0xf] %vm4627_vm1, %v5201_v48  ;;  %v5203_v14 = vpack.c.bf16 %v6369_v63, %v6367_v9  ;;  %6390 = vpow2.f32 %v5069_v55  ;;  %v5412_v62 = vpop.f32.mrb[180].mxu1 }
 0x6dc   :  { %v6373_v28 = vpop.eup %6372  ;;  %v5205_v60 = vpack.c.bf16 %v6371_v52, %v6371_v52  ;;  %6392 = vpow2.f32 %v5070_v41  ;;  %v5413_v15 = vpop.f32.mrb[181].mxu1 }
 0x6dd   :  { %v6375_v12 = vpop.eup %6374  ;;  %4634 = vst [vmem:[%s8510_s13 + $0x40] sm:$0xff] %v5203_v14  ;;  %6394 = vpow2.f32 %v5076_v47  ;;  %v8360_v31 = vadd.f32 %v5413_v15, %v5412_v62  ;;  %v5415_v1 = vpop.f32.mrb[182].mxu1  ;;  %v3372_v14 = vadd.f32 %v8198_v42, %v8190_v40 }
 0x6de   :  { %v6377_v30 = vpop.eup %6376  ;;  %4636 = vst.msk [vmem:[%s8510_s13 + $0x50] sm:$0xf] %vm4627_vm1, %v5205_v60  ;;  %v5207_v29 = vpack.c.bf16 %v6375_v12, %v6373_v28  ;;  %6396 = vpow2.f32 %v5077_v3  ;;  %v5416_v25 = vpop.f32.mrb[183].mxu1  ;;  %v3368_v3 = vadd.f32 %v8177_v57, %v8232_v13  ;;  %v3374_v28 = vadd.f32 %v8206_v36, %v8232_v13 }
 0x6df   :  { %v6379_v4 = vpop.eup %6378  ;;  %v5209_v24 = vpack.c.bf16 %v6377_v30, %v6377_v30  ;;  %6398 = vpow2.f32 %v5083_v44  ;;  %v8366_v56 = vadd.f32 %v5416_v25, %v5415_v1  ;;  %v3376_v12 = vadd.f32 %v8209_v32, %v8190_v40 }
 0x6e0   :  { %v6381_v34 = vpop.eup %6380  ;;  %4638 = vst [vmem:[%s8510_s13 + $0x5c] sm:$0xff] %v5207_v29  ;;  %6400 = vpow2.f32 %v5084_v20  ;;  %v5098_v30 = vmul.f32 -1.442695, %v3368_v3  ;;  %v3378_v29 = vadd.f32 %v8212_v38, %v8232_v13  ;;  %v5104_v62 = vmul.f32 -1.442695, %v3372_v14 }
 0x6e1   :  { %v6383_v2 = vpop.eup %6382  ;;  %4640 = vst.msk [vmem:[%s8510_s13 + $0x6c] sm:$0xf] %vm4627_vm1, %v5209_v24  ;;  %v5211_v23 = vpack.c.bf16 %v6381_v34, %v6379_v4  ;;  %6402 = vpow2.f32 %v5090_v58  ;;  %v3382_v36 = vadd.f32 %v8226_v17, %v8190_v40  ;;  %v5105_v24 = vmul.f32 -1.442695, %v3374_v28 }
 0x6e2   :  { %v6385_v33 = vpop.eup %6384  ;;  %v3973_v16 = vadd.f32 1.0, %v6383_v2  ;;  %6404 = vpow2.f32 %v5091_v10  ;;  %v3384_v32 = vadd.f32 %v8234_v45, %v8232_v13  ;;  %v5111_v34 = vmul.f32 -1.442695, %v3376_v12 }
 0x6e3   :  { %v6387_v55 = vpop.eup %6386  ;;  %4642 = vst [vmem:[%s8510_s13 + $0x78] sm:$0xff] %v5211_v23  ;;  %v3974_v41 = vadd.f32 1.0, %v6385_v33  ;;  %6406 = vpow2.f32 %v5097_v35  ;;  %v3386_v38 = vadd.f32 %v8236_v5, %v8190_v40  ;;  %v5112_v2 = vmul.f32 -1.442695, %v3378_v29 }
 0x6e4   :  { %v6389_v51 = vpop.eup %6388  ;;  %6408 = vrcp.f32 %v3973_v16  ;;  %v3980_v37 = vadd.f32 1.0, %v6387_v55  ;;  %v3388_v23 = vadd.f32 %v8241_v43, %v8232_v13  ;;  %v5118_v45 = vmul.f32 -1.442695, %v3382_v36 }
 0x6e5   :  { %v6391_v11 = vpop.eup %6390  ;;  %6410 = vrcp.f32 %v3974_v41  ;;  %v3981_v49 = vadd.f32 1.0, %v6389_v51  ;;  %v3554_v33 = vadd.f32 %v8251_v39, %v8239_v26  ;;  %v5119_v40 = vmul.f32 -1.442695, %v3384_v32 }
 0x6e6   :  { %v6393_v53 = vpop.eup %6392  ;;  %6412 = vrcp.f32 %v3980_v37  ;;  %v3987_v7 = vadd.f32 1.0, %v6391_v11  ;;  %v3557_v5 = vadd.f32 %v8257_v8, %v8239_v26  ;;  %v5125_v43 = vmul.f32 -1.442695, %v3386_v38 }
 0x6e7   :  { %v6395_v9 = vpop.eup %6394  ;;  %6414 = vrcp.f32 %v3981_v49  ;;  %v3988_v48 = vadd.f32 1.0, %v6393_v53  ;;  %v3562_v41 = vadd.f32 %v8277_v27, %v8239_v26  ;;  %v5126_v39 = vmul.f32 -1.442695, %v3388_v23 }
 0x6e8   :  { %v6397_v47 = vpop.eup %6396  ;;  %6416 = vrcp.f32 %v3987_v7  ;;  %v3994_v6 = vadd.f32 1.0, %v6395_v9  ;;  %v3565_v37 = vadd.f32 %v8281_v22, %v8239_v26  ;;  %v5052_v49 = vmul.f32 -1.442695, %v3554_v33 }
 0x6e9   :  { %v6399_v19 = vpop.eup %6398  ;;  %6418 = vrcp.f32 %v3988_v48  ;;  %v3995_v63 = vadd.f32 1.0, %v6397_v47  ;;  %v5059_v7 = vmul.f32 -1.442695, %v3557_v5  ;;  %v5066_v48 = vmul.f32 -1.442695, %v3562_v41 }
 0x6ea   :  { %v6401_v50 = vpop.eup %6400  ;;  %6420 = vrcp.f32 %v3994_v6  ;;  %v4001_v52 = vadd.f32 1.0, %v6399_v19  ;;  %v5073_v47 = vmul.f32 -1.442695, %v3565_v37 }
 0x6eb   :  { %v6403_v44 = vpop.eup %6402  ;;  %6422 = vrcp.f32 %v3995_v63  ;;  %v4002_v54 = vadd.f32 1.0, %v6401_v50 }
 0x6ec   :  { %v6405_v60 = vpop.eup %6404  ;;  %6424 = vrcp.f32 %v4001_v52  ;;  %v4008_v20 = vadd.f32 1.0, %v6403_v44 }
 0x6ed   :  { %v6407_v58 = vpop.eup %6406  ;;  %6426 = vrcp.f32 %v4002_v54  ;;  %v4009_v57 = vadd.f32 1.0, %v6405_v60 }
 0x6ee   :  { %v6409_v42 = vpop.eup %6408  ;;  %6428 = vrcp.f32 %v4008_v20  ;;  %v4015_v10 = vadd.f32 1.0, %v6407_v58 }
 0x6ef   :  { %v6411_v4 = vpop.eup %6410  ;;  %6430 = vrcp.f32 %v4009_v57 }
 0x6f0   :  { %v6413_v35 = vpop.eup %6412  ;;  %v5215_v15 = vpack.c.bf16 %v6411_v4, %v6409_v42  ;;  %6432 = vrcp.f32 %v4015_v10 }
 0x6f1   :  { %v6415_v1 = vpop.eup %6414  ;;  %6434 = vpow2.f32 %v5098_v30 }
 0x6f2   :  { %v6417_v17 = vpop.eup %6416  ;;  %4646 = vst [vmem:[%s8510_s13 + $0x94] sm:$0xff] %v5215_v15  ;;  %v5219_v25 = vpack.c.bf16 %v6415_v1, %v6413_v35  ;;  %6436 = vpow2.f32 %v5104_v62  ;;  %v3570_v62 = vadd.f32 %v8297_v61, %v8239_v26  ;;  %v3578_v15 = vadd.f32 %v8305_v59, %v8239_v26 }
 0x6f3   :  { %v6419_v16 = vpop.eup %6418  ;;  %6438 = vpow2.f32 %v5105_v24  ;;  %v3573_v24 = vadd.f32 %v8299_v46, %v8239_v26  ;;  %v3581_v1 = vadd.f32 %v8311_v21, %v8239_v26  ;;  %v3589_v59 = vadd.f32 %v8342_v0, %v8239_v26 }
 0x6f4   :  { %v6421_v55 = vpop.eup %6420  ;;  %4650 = vst [vmem:[%s8510_s13 + $0xb0] sm:$0xff] %v5219_v25  ;;  %v5223_v13 = vpack.c.bf16 %v6419_v16, %v6417_v17  ;;  %6440 = vpow2.f32 %v5111_v34  ;;  %v5080_v23 = vmul.f32 -1.442695, %v3570_v62  ;;  %v3586_v17 = vadd.f32 %v8333_v18, %v8239_v26 }
 0x6f5   :  { %v6423_v51 = vpop.eup %6422  ;;  %6442 = vpow2.f32 %v5112_v2  ;;  %v3594_v21 = vadd.f32 %v8360_v31, %v8239_v26  ;;  %v3597_v18 = vadd.f32 %v8366_v56, %v8239_v26 }
 0x6f6   :  { %v6425_v11 = vpop.eup %6424  ;;  %4654 = vst [vmem:[%s8510_s13 + $0xcc] sm:$0xff] %v5223_v13  ;;  %v5227_v8 = vpack.c.bf16 %v6423_v51, %v6421_v55  ;;  %6444 = vpow2.f32 %v5118_v45  ;;  %v5087_v45 = vmul.f32 -1.442695, %v3573_v24  ;;  %v5101_v55 = vmul.f32 -1.442695, %v3581_v1 }
 0x6f7   :  { %v6427_v53 = vpop.eup %6426  ;;  %6446 = vpow2.f32 %v5119_v40  ;;  %v5094_v40 = vmul.f32 -1.442695, %v3578_v15  ;;  %v5115_v51 = vmul.f32 -1.442695, %v3589_v59  ;;  %v5122_v37 = vmul.f32 -1.442695, %v3594_v21 }
 0x6f8   :  { %v6429_v9 = vpop.eup %6428  ;;  %4658 = vst [vmem:[%s8510_s13 + $0xe8] sm:$0xff] %v5227_v8  ;;  %v5231_v27 = vpack.c.bf16 %v6427_v53, %v6425_v11  ;;  %6448 = vpow2.f32 %v5125_v43  ;;  %v5108_v43 = vmul.f32 -1.442695, %v3586_v17  ;;  %v5129_v56 = vmul.f32 -1.442695, %v3597_v18 }
 0x6f9   :  { %v6431_v22 = vpop.eup %6430  ;;  %6450 = vpow2.f32 %v5126_v39 }
 0x6fa   :  { %v8409_v6 = vpop.eup %6432  ;;  %4662 = vst [vmem:[%s8510_s13 + $0x104] sm:$0xff] %v5231_v27  ;;  %v5235_v19 = vpack.c.bf16 %v6431_v22, %v6429_v9  ;;  %6452 = vpow2.f32 %v5052_v49 }
 0x6fb   :  { %v6435_v63 = vpop.eup %6434  ;;  %6454 = vpow2.f32 %v5059_v7 }
 0x6fc   :  { %v6437_v3 = vpop.eup %6436  ;;  %4666 = vst [vmem:[%s8510_s13 + $0x120] sm:$0xff] %v5235_v19  ;;  %v4016_v50 = vadd.f32 1.0, %v6435_v63  ;;  %6456 = vpow2.f32 %v5066_v48 }
 0x6fd   :  { %v6439_v52 = vpop.eup %6438  ;;  %v4022_v14 = vadd.f32 1.0, %v6437_v3  ;;  %6458 = vpow2.f32 %v5073_v47 }
 0x6fe   :  { %v6441_v44 = vpop.eup %6440  ;;  %6460 = vrcp.f32 %v4016_v50  ;;  %v4023_v54 = vadd.f32 1.0, %v6439_v52 }
 0x6ff   :  { %v6443_v28 = vpop.eup %6442  ;;  %6462 = vrcp.f32 %v4022_v14  ;;  %v4029_v60 = vadd.f32 1.0, %v6441_v44 }
 0x700   :  { %v6445_v20 = vpop.eup %6444  ;;  %6464 = vrcp.f32 %v4023_v54  ;;  %v4030_v12 = vadd.f32 1.0, %v6443_v28 }
 0x701   :  { %v6447_v58 = vpop.eup %6446  ;;  %6466 = vrcp.f32 %v4029_v60  ;;  %v4036_v57 = vadd.f32 1.0, %v6445_v20 }
 0x702   :  { %v6449_v30 = vpop.eup %6448  ;;  %6468 = vrcp.f32 %v4030_v12  ;;  %v4037_v29 = vadd.f32 1.0, %v6447_v58 }
 0x703   :  { %v6451_v42 = vpop.eup %6450  ;;  %6470 = vrcp.f32 %v4036_v57  ;;  %v4043_v10 = vadd.f32 1.0, %v6449_v30 }
 0x704   :  { %v6453_v36 = vpop.eup %6452  ;;  %6472 = vrcp.f32 %v4037_v29  ;;  %v4044_v4 = vadd.f32 1.0, %v6451_v42 }
 0x705   :  { %v6455_v32 = vpop.eup %6454  ;;  %6474 = vrcp.f32 %v4043_v10  ;;  %v3970_v35 = vadd.f32 1.0, %v6453_v36 }
 0x706   :  { %v6457_v34 = vpop.eup %6456  ;;  %6476 = vrcp.f32 %v4044_v4  ;;  %v3977_v38 = vadd.f32 1.0, %v6455_v32 }
 0x707   :  { %v6459_v2 = vpop.eup %6458  ;;  %6478 = vrcp.f32 %v3970_v35  ;;  %v3984_v61 = vadd.f32 1.0, %v6457_v34 }
 0x708   :  { %v6461_v46 = vpop.eup %6460  ;;  %6480 = vrcp.f32 %v3977_v38  ;;  %v3991_v25 = vadd.f32 1.0, %v6459_v2 }
 0x709   :  { %v6463_v33 = vpop.eup %6462  ;;  %v5239_v16 = vpack.c.bf16 %v6461_v46, %v8409_v6  ;;  %6482 = vrcp.f32 %v3984_v61 }
 0x70a   :  { %v6465_v5 = vpop.eup %6464  ;;  %6484 = vrcp.f32 %v3991_v25 }
 0x70b   :  { %v6467_v13 = vpop.eup %6466  ;;  %4670 = vst [vmem:[%s8510_s13 + $0x13c] sm:$0xff] %v5239_v16  ;;  %v5243_v0 = vpack.c.bf16 %v6465_v5, %v6463_v33  ;;  %6486 = vpow2.f32 %v5080_v23 }
 0x70c   :  { %v6469_v41 = vpop.eup %6468  ;;  %6488 = vpow2.f32 %v5087_v45 }
 0x70d   :  { %v6471_v39 = vpop.eup %6470  ;;  %4674 = vst [vmem:[%s8510_s13 + $0x158] sm:$0xff] %v5243_v0  ;;  %v5247_v31 = vpack.c.bf16 %v6469_v41, %v6467_v13  ;;  %6490 = vpow2.f32 %v5094_v40 }
 0x70e   :  { %v6473_v26 = vpop.eup %6472  ;;  %6492 = vpow2.f32 %v5101_v55 }
 0x70f   :  { %v6475_v11 = vpop.eup %6474  ;;  %4678 = vst [vmem:[%s8510_s13 + $0x174] sm:$0xff] %v5247_v31  ;;  %v5251_v8 = vpack.c.bf16 %v6473_v26, %v6471_v39  ;;  %6494 = vpow2.f32 %v5108_v43 }
 0x710   :  { %v6477_v49 = vpop.eup %6476  ;;  %6496 = vpow2.f32 %v5115_v51 }
 0x711   :  { %v6479_v53 = vpop.eup %6478  ;;  %4682 = vst [vmem:[%s8510_s13 + $0x190] sm:$0xff] %v5251_v8  ;;  %v5255_v7 = vpack.c.bf16 %v6477_v49, %v6475_v11  ;;  %6498 = vpow2.f32 %v5122_v37 }
 0x712   :  { %v6481_v9 = vpop.eup %6480  ;;  %v5213_v27 = vpack.c.bf16 %v6479_v53, %v6479_v53  ;;  %6500 = vpow2.f32 %v5129_v56 }
 0x713   :  { %v6483_v48 = vpop.eup %6482  ;;  %4686 = vst [vmem:[%s8510_s13 + $0x1ac] sm:$0xff] %v5255_v7  ;;  %v5217_v22 = vpack.c.bf16 %v6481_v9, %v6481_v9 }
 0x714   :  { %v6485_v47 = vpop.eup %6484  ;;  %4644 = vst.msk [vmem:[%s8510_s13 + $0x88] sm:$0xf] %vm4627_vm1, %v5213_v27  ;;  %v5221_v6 = vpack.c.bf16 %v6483_v48, %v6483_v48 }
 0x715   :  { %v6487_v19 = vpop.eup %6486  ;;  %4648 = vst.msk [vmem:[%s8510_s13 + $0xa4] sm:$0xf] %vm4627_vm1, %v5217_v22  ;;  %v5225_v63 = vpack.c.bf16 %v6485_v47, %v6485_v47 }
 0x716   :  { %v6489_v3 = vpop.eup %6488  ;;  %4652 = vst.msk [vmem:[%s8510_s13 + $0xc0] sm:$0xf] %vm4627_vm1, %v5221_v6  ;;  %v3998_v50 = vadd.f32 1.0, %v6487_v19 }
 0x717   :  { %v6491_v52 = vpop.eup %6490  ;;  %4656 = vst.msk [vmem:[%s8510_s13 + $0xdc] sm:$0xf] %vm4627_vm1, %v5225_v63  ;;  %v4005_v14 = vadd.f32 1.0, %v6489_v3 }
 0x718   :  { %v6493_v44 = vpop.eup %6492  ;;  %6502 = vrcp.f32 %v3998_v50  ;;  %v4012_v54 = vadd.f32 1.0, %v6491_v52 }
 0x719   :  { %v6495_v28 = vpop.eup %6494  ;;  %6504 = vrcp.f32 %v4005_v14  ;;  %v4019_v60 = vadd.f32 1.0, %v6493_v44 }
 0x71a   :  { %v6497_v20 = vpop.eup %6496  ;;  %6506 = vrcp.f32 %v4012_v54  ;;  %v4026_v12 = vadd.f32 1.0, %v6495_v28 }
 0x71b   :  { %v6499_v58 = vpop.eup %6498  ;;  %6508 = vrcp.f32 %v4019_v60  ;;  %v4033_v57 = vadd.f32 1.0, %v6497_v20 }
 0x71c   :  { %v6501_v30 = vpop.eup %6500  ;;  %6510 = vrcp.f32 %v4026_v12  ;;  %v4040_v29 = vadd.f32 1.0, %v6499_v58 }
 0x71d   :  { %6512 = vrcp.f32 %v4033_v57  ;;  %v4047_v42 = vadd.f32 1.0, %v6501_v30 }
 0x71e   :  { %6514 = vrcp.f32 %v4040_v29 }
 0x71f   :  { %6516 = vrcp.f32 %v4047_v42 }
 0x722   :  { %v6503_v10 = vpop.eup %6502 }
 0x723   :  { %v6505_v62 = vpop.eup %6504  ;;  %v5229_v36 = vpack.c.bf16 %v6503_v10, %v6503_v10 }
 0x724   :  { %v6507_v4 = vpop.eup %6506  ;;  %v5233_v24 = vpack.c.bf16 %v6505_v62, %v6505_v62 }
 0x725   :  { %v6509_v32 = vpop.eup %6508  ;;  %4660 = vst.msk [vmem:[%s8510_s13 + $0xf8] sm:$0xf] %vm4627_vm1, %v5229_v36  ;;  %v5237_v35 = vpack.c.bf16 %v6507_v4, %v6507_v4 }
 0x726   :  { %v6511_v15 = vpop.eup %6510  ;;  %4664 = vst.msk [vmem:[%s8510_s13 + $0x114] sm:$0xf] %vm4627_vm1, %v5233_v24  ;;  %v5241_v34 = vpack.c.bf16 %v6509_v32, %v6509_v32 }
 0x727   :  { %v6513_v38 = vpop.eup %6512  ;;  %4668 = vst.msk [vmem:[%s8510_s13 + $0x130] sm:$0xf] %vm4627_vm1, %v5237_v35  ;;  %v5245_v1 = vpack.c.bf16 %v6511_v15, %v6511_v15 }
 0x728   :  { %v6515_v2 = vpop.eup %6514  ;;  %4672 = vst.msk [vmem:[%s8510_s13 + $0x14c] sm:$0xf] %vm4627_vm1, %v5241_v34  ;;  %v5249_v61 = vpack.c.bf16 %v6513_v38, %v6513_v38 }
 0x729   :  { %v6517_v23 = vpop.eup %6516  ;;  %4676 = vst.msk [vmem:[%s8510_s13 + $0x168] sm:$0xf] %vm4627_vm1, %v5245_v1  ;;  %v5253_v17 = vpack.c.bf16 %v6515_v2, %v6515_v2 }
 0x72a   :  { %4680 = vst.msk [vmem:[%s8510_s13 + $0x184] sm:$0xf] %vm4627_vm1, %v5249_v61  ;;  %v5257_v46 = vpack.c.bf16 %v6517_v23, %v6517_v23 }
 0x72b   :  { %4684 = vst.msk [vmem:[%s8510_s13 + $0x1a0] sm:$0xf] %vm4627_vm1, %v5253_v17 }
 0x72c   :  { %4688 = vst.msk [vmem:[%s8510_s13 + $0x1bc] sm:$0xf] %vm4627_vm1, %v5257_v46 }

</bundles_post_ra>
